<compile_context>
chip_gen: v5e
topology: v5e:2x2
jax: 0.10.0
libtpu: 0.0.40
codegen_flags: <defaults>
</compile_context>

<pallas_src>
import functools

import jax
import jax.numpy as jnp
from jax.experimental import pallas as pl
from jax.experimental.pallas import tpu as pltpu  # noqa: F401  (TPU backend)

# Small config (cf.nz, cf.ngf, cf.nc in the original module)
NZ, NGF, NC = 16, 8, 3
BN_EPS = 1e-5
K = 4            # ConvTranspose2d kernel size everywhere
L = 256          # per-kernel-row output lane width (OW * Cout) for every layer


# --------------------------------------------------------------------------- #
#                    one-time (host / XLA) weight packing                      #
# --------------------------------------------------------------------------- #
def _fold_width(w, w_in, stride=2, pad=1):
    """Fold the ConvTranspose2d *width* placement into the weight.

    w: (Cin, Cout, K, K) PyTorch layout.  Returns (w_in*Cin, K*OW*Cout) bf16
    where lane block kh holds M_kh with
        M_kh[(iw,ci), (ow,co)] = w[ci, co, kh, ow - stride*iw + pad]  (if valid)
    so  m = x @ W_cat  gives, per input row ih, the contribution of kernel row
    kh to output row oh = stride*ih + kh - pad in lanes [kh*L, (kh+1)*L).
    """
    cin, cout, k, _ = w.shape
    ow_dim = (w_in - 1) * stride - 2 * pad + k
    iw = jnp.arange(w_in)[:, None]
    ow = jnp.arange(ow_dim)[None, :]
    kw = ow - stride * iw + pad                               # (w_in, OW)
    valid = ((kw >= 0) & (kw < k)).astype(w.dtype)
    kw_c = jnp.clip(kw, 0, k - 1)
    g = w[:, :, :, kw_c] * valid[None, None, None]            # (Cin,Cout,K,w_in,OW)
    g = jnp.transpose(g, (3, 0, 2, 4, 1))                     # (w_in,Cin,K,OW,Cout)
    return g.reshape(w_in * cin, k * ow_dim * cout).astype(jnp.bfloat16)


def _fold_layer1(w1):
    """Layer-1 (1x1 input, s=1, p=0) weight -> (K*NZ, K*C1) bf16.

    Row index (oh*NZ + ci), lane index (ow*C1 + co); pairs with the
    block-diagonal expanded z so the whole layer is a single matmul that
    directly produces rows in (n, oh) order.
    """
    c1 = w1.shape[1]
    g = jnp.transpose(w1, (2, 0, 3, 1))                       # (oh, ci, ow, co)
    return g.reshape(K * NZ, K * c1).astype(jnp.bfloat16)


def pack_params(params):
    """One-time packing of all weights/affine params (hoisted out of forward)."""
    w5 = jnp.pad(params["w5"], ((0, 0), (0, 1), (0, 0), (0, 0)))   # NC 3 -> 4 pad
    packed = {
        "w1": _fold_layer1(params["w1"]),
        "w2": _fold_width(params["w2"], 4),
        "w3": _fold_width(params["w3"], 8),
        "w4": _fold_width(params["w4"], 16),
        "w5": _fold_width(w5, 32),
    }
    for i, c in zip((1, 2, 3, 4), (NGF * 8, NGF * 4, NGF * 2, NGF)):
        packed[f"g{i}"] = params[f"g{i}"].reshape(1, c).astype(jnp.float32)
        packed[f"b{i}"] = params[f"b{i}"].reshape(1, c).astype(jnp.float32)
    return packed


def _expand_z(z2):
    """(N, NZ) -> (N*K, K*NZ) block-diagonal slab: row (n, oh) holds z[n] in
    columns [oh*NZ, (oh+1)*NZ).  Tiny per-call XLA op on the actual input."""
    n = z2.shape[0]
    eye = jnp.eye(K, dtype=z2.dtype)
    return (eye[None, :, :, None] * z2[:, None, None, :]).reshape(n * K, K * NZ)


# --------------------------------------------------------------------------- #
#                          in-kernel building blocks                           #
# --------------------------------------------------------------------------- #
def _group_mats(l, c):
    """0/1 matrices built from iota: gsum (l,c) sums the ow-groups per channel,
    gbc (c,l) broadcasts a per-channel row back to (ow, channel) lanes."""
    assert c & (c - 1) == 0, "channel count must be a power of two"
    li = jax.lax.broadcasted_iota(jnp.int32, (l, c), 0)
    ci = jax.lax.broadcasted_iota(jnp.int32, (l, c), 1)
    gsum = jnp.where((li & (c - 1)) == ci, jnp.float32(1), jnp.float32(0))
    lj = jax.lax.broadcasted_iota(jnp.int32, (c, l), 1)
    cj = jax.lax.broadcasted_iota(jnp.int32, (c, l), 0)
    gbc = jnp.where((lj & (c - 1)) == cj, jnp.float32(1), jnp.float32(0))
    return gsum, gbc


def _bn_relu(y, gamma, beta, c, count):
    """Training-mode BatchNorm (biased batch stats) + ReLU, on values (f32)."""
    l = y.shape[1]
    gsum, gbc = _group_mats(l, c)
    s1 = jnp.sum(y, axis=0, keepdims=True)                    # (1, l)
    s2 = jnp.sum(y * y, axis=0, keepdims=True)
    sum_c = jnp.dot(s1, gsum, preferred_element_type=jnp.float32)   # (1, c)
    sq_c = jnp.dot(s2, gsum, preferred_element_type=jnp.float32)
    inv_n = 1.0 / count
    mean = sum_c * inv_n
    var = sq_c * inv_n - mean * mean
    scale = gamma * jax.lax.rsqrt(var + BN_EPS)               # (1, c)
    shift = beta - mean * scale
    scale_row = jnp.dot(scale, gbc, preferred_element_type=jnp.float32)  # (1, l)
    shift_row = jnp.dot(shift, gbc, preferred_element_type=jnp.float32)
    return jnp.maximum(y * scale_row + shift_row, 0.0)


def _conv_up(x, w_cat, n_batch, h_in):
    """ConvTranspose2d(s=2, p=1, K=4) on a [(n,ih), (iw,ci)] slab.

    One wide MXU matmul for all four kernel rows, then the height placement
    (oh = 2*ih + kh - 1) done as four tiny 0/1 scatter matmuls with per-image
    boundary masks -- output is (2*N*h_in, L) in spatial (n, oh) row order.
    """
    assert h_in & (h_in - 1) == 0
    r = n_batch * h_in
    m = jnp.dot(x.astype(jnp.bfloat16), w_cat,
                preferred_element_type=jnp.float32)           # (r, 4*L)
    two_r = 2 * r
    ri = jax.lax.broadcasted_iota(jnp.int32, (two_r, r), 0)   # output row
    ci = jax.lax.broadcasted_iota(jnp.int32, (two_r, r), 1)   # input (matmul) row
    pos = ci & (h_in - 1)                                     # ih within its image
    one, zero = jnp.float32(1), jnp.float32(0)
    a0 = jnp.where((ri == 2 * ci - 1) & (pos != 0), one, zero)          # kh=0
    a1 = jnp.where(ri == 2 * ci, one, zero)                             # kh=1
    a2 = jnp.where(ri == 2 * ci + 1, one, zero)                         # kh=2
    a3 = jnp.where((ri == 2 * ci + 2) & (pos != h_in - 1), one, zero)   # kh=3
    out = jnp.dot(a1, m[:, L:2 * L], preferred_element_type=jnp.float32)
    out = out + jnp.dot(a2, m[:, 2 * L:3 * L], preferred_element_type=jnp.float32)
    out = out + jnp.dot(a0, m[:, 0:L], preferred_element_type=jnp.float32)
    out = out + jnp.dot(a3, m[:, 3 * L:4 * L], preferred_element_type=jnp.float32)
    return out                                                # (2r, L), (n, oh) order


# --------------------------------------------------------------------------- #
#                              the fused kernel                                #
# --------------------------------------------------------------------------- #
def _generator_kernel(z_ref, w1_ref, w2_ref, w3_ref, w4_ref, w5_ref,
                      g1_ref, b1_ref, g2_ref, b2_ref, g3_ref, b3_ref,
                      g4_ref, b4_ref, o_ref, *, n_batch):
    # Layer 1: ConvT(nz -> 8*ngf, 4, 1, 0) on a 1x1 input == one matmul.
    y = jnp.dot(z_ref[...].astype(jnp.bfloat16), w1_ref[...],
                preferred_element_type=jnp.float32)           # (4N, 256)
    y = _bn_relu(y, g1_ref[...], b1_ref[...], c=NGF * 8,
                 count=float(n_batch * 4 * 4))

    # Layers 2-4: ConvT(s=2, p=1) + BN + ReLU, all on VMEM-resident values.
    h = 4
    for w_ref, g_ref, b_ref, c in ((w2_ref, g2_ref, b2_ref, NGF * 4),
                                   (w3_ref, g3_ref, b3_ref, NGF * 2),
                                   (w4_ref, g4_ref, b4_ref, NGF)):
        y = _conv_up(y, w_ref[...], n_batch, h)
        h = 2 * h
        y = _bn_relu(y, g_ref[...], b_ref[...], c=c,
                     count=float(n_batch * h * h))

    # Layer 5: ConvT(ngf -> nc(padded to 4), 4, 2, 1) + Tanh.  Single store.
    y = _conv_up(y, w5_ref[...], n_batch, h)                  # (N*64, 256)
    o_ref[...] = jnp.tanh(y)


# --------------------------------------------------------------------------- #
#                                   forward                                    #
# --------------------------------------------------------------------------- #
@jax.jit
def generator_forward(z_nchw, packed):
    """z: (N, nz, 1, 1) NCHW -> image (N, nc, 64, 64) NCHW."""
    n = z_nchw.shape[0]
    z2 = z_nchw.reshape(n, NZ).astype(jnp.float32)
    z_exp = _expand_z(z2)                                     # (4N, 64)

    kern = functools.partial(_generator_kernel, n_batch=n)
    y = pl.pallas_call(
        kern,
        out_shape=jax.ShapeDtypeStruct((n * 64, 64 * 4), jnp.float32),
    )(z_exp, packed["w1"], packed["w2"], packed["w3"], packed["w4"], packed["w5"],
      packed["g1"], packed["b1"], packed["g2"], packed["b2"],
      packed["g3"], packed["b3"], packed["g4"], packed["b4"])

    # rows = (n, oh), lanes = (ow, c_pad=4) -> NCHW, dropping the pad channel.
    img = y.reshape(n, 64, 64, 4)[..., :NC]
    return jnp.transpose(img, (0, 3, 1, 2))


# --------------------------------------------------------------------------- #
#                                   params                                     #
# --------------------------------------------------------------------------- #
def init_params(key):
    ks = jax.random.split(key, 9)
    return {
        # ConvTranspose2d weights: (in_channels, out_channels, kH, kW)
        "w1": 0.02 * jax.random.normal(ks[0], (NZ, NGF * 8, K, K), jnp.float32),
        "w2": 0.02 * jax.random.normal(ks[1], (NGF * 8, NGF * 4, K, K), jnp.float32),
        "w3": 0.02 * jax.random.normal(ks[2], (NGF * 4, NGF * 2, K, K), jnp.float32),
        "w4": 0.02 * jax.random.normal(ks[3], (NGF * 2, NGF, K, K), jnp.float32),
        "w5": 0.02 * jax.random.normal(ks[4], (NGF, NC, K, K), jnp.float32),
        # BatchNorm affine params
        "g1": 1.0 + 0.02 * jax.random.normal(ks[5], (NGF * 8,), jnp.float32),
        "g2": 1.0 + 0.02 * jax.random.normal(ks[6], (NGF * 4,), jnp.float32),
        "g3": 1.0 + 0.02 * jax.random.normal(ks[7], (NGF * 2,), jnp.float32),
        "g4": 1.0 + 0.02 * jax.random.normal(ks[8], (NGF,), jnp.float32),
        "b1": jnp.zeros((NGF * 8,), jnp.float32),
        "b2": jnp.zeros((NGF * 4,), jnp.float32),
        "b3": jnp.zeros((NGF * 2,), jnp.float32),
        "b4": jnp.zeros((NGF,), jnp.float32),
    }


# --------------------------------------------------------------------------- #
#                    pure-JAX f32 reference (for validation)                   #
# --------------------------------------------------------------------------- #
def _ref_conv_transpose(x_nhwc, w, stride, pad):
    n, h, w_sp, cin = x_nhwc.shape
    _, cout, k, _ = w.shape
    oh = (h - 1) * stride - 2 * pad + k
    ow = (w_sp - 1) * stride - 2 * pad + k
    a = x_nhwc.reshape(n * h * w_sp, cin)
    wr = jnp.transpose(w, (0, 2, 3, 1)).reshape(cin, k * k * cout)
    y = (a @ wr).reshape(n, h, w_sp, k, k, cout)
    full_h = (h - 1) * stride + k
    full_w = (w_sp - 1) * stride + k
    out = jnp.zeros((n, full_h, full_w, cout), jnp.float32)
    for kh in range(k):
        for kw in range(k):
            out = out.at[:, kh:kh + (h - 1) * stride + 1:stride,
                            kw:kw + (w_sp - 1) * stride + 1:stride, :].add(
                y[:, :, :, kh, kw, :])
    return out[:, pad:pad + oh, pad:pad + ow, :]


def _ref_bn_relu(x, gamma, beta):
    mean = x.mean(axis=(0, 1, 2))
    var = ((x - mean) ** 2).mean(axis=(0, 1, 2))        # biased, as nn.BatchNorm2d
    y = (x - mean) / jnp.sqrt(var + BN_EPS) * gamma + beta
    return jnp.maximum(y, 0.0)


def _reference_forward(z_nchw, params):
    x = jnp.transpose(z_nchw, (0, 2, 3, 1)).astype(jnp.float32)
    x = _ref_bn_relu(_ref_conv_transpose(x, params["w1"], 1, 0), params["g1"], params["b1"])
    x = _ref_bn_relu(_ref_conv_transpose(x, params["w2"], 2, 1), params["g2"], params["b2"])
    x = _ref_bn_relu(_ref_conv_transpose(x, params["w3"], 2, 1), params["g3"], params["b3"])
    x = _ref_bn_relu(_ref_conv_transpose(x, params["w4"], 2, 1), params["g4"], params["b4"])
    x = jnp.tanh(_ref_conv_transpose(x, params["w5"], 2, 1))
    return jnp.transpose(x, (0, 3, 1, 2))


if __name__ == "__main__":
    key = jax.random.PRNGKey(0)
    pkey, zkey = jax.random.split(key)
    params = init_params(pkey)
    packed = pack_params(params)          # one-time weight packing (not per call)
    z = jax.random.normal(zkey, (2, NZ, 1, 1), jnp.float32)

    out = generator_forward(z, packed)
    out = jax.block_until_ready(out)

    assert out.shape == (2, NC, 64, 64), out.shape
    assert bool(jnp.all(jnp.isfinite(out)))
    assert bool(jnp.all(jnp.abs(out) <= 1.0))           # tanh output range

    ref = _reference_forward(z, params)
    err = float(jnp.max(jnp.abs(out - ref)))
    assert err < 8e-2, f"max |kernel - reference| too large: {err}"

    print("KERNEL_OK")
</pallas_src>

<mosaic_0001>
module attributes {stable_mosaic.version = 11 : i64} {
  func.func @_generator_kernel(%arg0: memref<8x64xf32, #tpu.memory_space<vmem>>, %arg1: memref<64x256xbf16, #tpu.memory_space<vmem>>, %arg2: memref<256x1024xbf16, #tpu.memory_space<vmem>>, %arg3: memref<256x1024xbf16, #tpu.memory_space<vmem>>, %arg4: memref<256x1024xbf16, #tpu.memory_space<vmem>>, %arg5: memref<256x1024xbf16, #tpu.memory_space<vmem>>, %arg6: memref<1x64xf32, #tpu.memory_space<vmem>>, %arg7: memref<1x64xf32, #tpu.memory_space<vmem>>, %arg8: memref<1x32xf32, #tpu.memory_space<vmem>>, %arg9: memref<1x32xf32, #tpu.memory_space<vmem>>, %arg10: memref<1x16xf32, #tpu.memory_space<vmem>>, %arg11: memref<1x16xf32, #tpu.memory_space<vmem>>, %arg12: memref<1x8xf32, #tpu.memory_space<vmem>>, %arg13: memref<1x8xf32, #tpu.memory_space<vmem>>, %arg14: memref<128x256xf32, #tpu.memory_space<vmem>>) attributes {dimension_semantics = [], scalar_prefetch = 0 : i64, scratch_operands = 0 : i64, tpu.core_type = #tpu.core_type<tc>} {
    %c0 = arith.constant 0 : index
    %c0_0 = arith.constant 0 : index
    %0 = vector.load %arg0[%c0, %c0_0] : memref<8x64xf32, #tpu.memory_space<vmem>>, vector<8x64xf32>
    %1 = arith.truncf %0 : vector<8x64xf32> to vector<8x64xbf16>
    %c0_1 = arith.constant 0 : index
    %c0_2 = arith.constant 0 : index
    %2 = vector.load %arg1[%c0_1, %c0_2] : memref<64x256xbf16, #tpu.memory_space<vmem>>, vector<64x256xbf16>
    %cst = arith.constant dense<0.000000e+00> : vector<8x256xf32>
    %3 = tpu.matmul %1, %2, %cst {dimension_numbers = #tpu.dot_dimension_numbers<[1], [0], [0], [1], [0, 0, 1, 1], [], []>} : vector<8x64xbf16>, vector<64x256xbf16>, vector<8x256xf32> -> vector<8x256xf32>
    %c0_3 = arith.constant 0 : index
    %c0_4 = arith.constant 0 : index
    %4 = vector.load %arg6[%c0_3, %c0_4] : memref<1x64xf32, #tpu.memory_space<vmem>>, vector<1x64xf32>
    %c0_5 = arith.constant 0 : index
    %c0_6 = arith.constant 0 : index
    %5 = vector.load %arg7[%c0_5, %c0_6] : memref<1x64xf32, #tpu.memory_space<vmem>>, vector<1x64xf32>
    %6 = tpu.iota {dimensions = array<i32: 0>} : vector<256x64xi32>
    %7 = tpu.iota {dimensions = array<i32: 1>} : vector<256x64xi32>
    %c63_i32 = arith.constant 63 : i32
    %8 = vector.broadcast %c63_i32 : i32 to vector<256x64xi32>
    %9 = arith.andi %6, %8 : vector<256x64xi32>
    %10 = arith.cmpi eq, %9, %7 : vector<256x64xi32>
    %cst_7 = arith.constant 1.000000e+00 : f32
    %cst_8 = arith.constant 0.000000e+00 : f32
    %11 = vector.broadcast %cst_7 : f32 to vector<256x64xf32>
    %12 = vector.broadcast %cst_8 : f32 to vector<256x64xf32>
    %13 = arith.select %10, %11, %12 : vector<256x64xi1>, vector<256x64xf32>
    %14 = tpu.iota {dimensions = array<i32: 1>} : vector<64x256xi32>
    %15 = tpu.iota {dimensions = array<i32: 0>} : vector<64x256xi32>
    %c63_i32_9 = arith.constant 63 : i32
    %16 = vector.broadcast %c63_i32_9 : i32 to vector<64x256xi32>
    %17 = arith.andi %14, %16 : vector<64x256xi32>
    %18 = arith.cmpi eq, %17, %15 : vector<64x256xi32>
    %cst_10 = arith.constant 1.000000e+00 : f32
    %cst_11 = arith.constant 0.000000e+00 : f32
    %19 = vector.broadcast %cst_10 : f32 to vector<64x256xf32>
    %20 = vector.broadcast %cst_11 : f32 to vector<64x256xf32>
    %21 = arith.select %18, %19, %20 : vector<64x256xi1>, vector<64x256xf32>
    %cst_12 = arith.constant dense<0.000000e+00> : vector<256xf32>
    %22 = vector.multi_reduction <add>, %3, %cst_12 [0] : vector<8x256xf32> to vector<256xf32>
    %23 = vector.shape_cast %22 : vector<256xf32> to vector<1x256xf32>
    %24 = arith.mulf %3, %3 : vector<8x256xf32>
    %cst_13 = arith.constant dense<0.000000e+00> : vector<256xf32>
    %25 = vector.multi_reduction <add>, %24, %cst_13 [0] : vector<8x256xf32> to vector<256xf32>
    %26 = vector.shape_cast %25 : vector<256xf32> to vector<1x256xf32>
    %cst_14 = arith.constant dense<0.000000e+00> : vector<1x64xf32>
    %27 = tpu.matmul %23, %13, %cst_14 {dimension_numbers = #tpu.dot_dimension_numbers<[1], [0], [0], [1], [0, 0, 1, 1], [], []>} : vector<1x256xf32>, vector<256x64xf32>, vector<1x64xf32> -> vector<1x64xf32>
    %cst_15 = arith.constant dense<0.000000e+00> : vector<1x64xf32>
    %28 = tpu.matmul %26, %13, %cst_15 {dimension_numbers = #tpu.dot_dimension_numbers<[1], [0], [0], [1], [0, 0, 1, 1], [], []>} : vector<1x256xf32>, vector<256x64xf32>, vector<1x64xf32> -> vector<1x64xf32>
    %cst_16 = arith.constant 3.125000e-02 : f32
    %29 = vector.broadcast %cst_16 : f32 to vector<1x64xf32>
    %30 = arith.mulf %27, %29 : vector<1x64xf32>
    %cst_17 = arith.constant 3.125000e-02 : f32
    %31 = vector.broadcast %cst_17 : f32 to vector<1x64xf32>
    %32 = arith.mulf %28, %31 : vector<1x64xf32>
    %33 = arith.mulf %30, %30 : vector<1x64xf32>
    %34 = arith.subf %32, %33 : vector<1x64xf32>
    %cst_18 = arith.constant 9.99999974E-6 : f32
    %35 = vector.broadcast %cst_18 : f32 to vector<1x64xf32>
    %36 = arith.addf %34, %35 : vector<1x64xf32>
    %37 = math.rsqrt %36 : vector<1x64xf32>
    %38 = arith.mulf %4, %37 : vector<1x64xf32>
    %39 = arith.mulf %30, %38 : vector<1x64xf32>
    %40 = arith.subf %5, %39 : vector<1x64xf32>
    %cst_19 = arith.constant dense<0.000000e+00> : vector<1x256xf32>
    %41 = tpu.matmul %38, %21, %cst_19 {dimension_numbers = #tpu.dot_dimension_numbers<[1], [0], [0], [1], [0, 0, 1, 1], [], []>} : vector<1x64xf32>, vector<64x256xf32>, vector<1x256xf32> -> vector<1x256xf32>
    %cst_20 = arith.constant dense<0.000000e+00> : vector<1x256xf32>
    %42 = tpu.matmul %40, %21, %cst_20 {dimension_numbers = #tpu.dot_dimension_numbers<[1], [0], [0], [1], [0, 0, 1, 1], [], []>} : vector<1x64xf32>, vector<64x256xf32>, vector<1x256xf32> -> vector<1x256xf32>
    %43 = vector.broadcast %41 : vector<1x256xf32> to vector<8x256xf32>
    %44 = arith.mulf %3, %43 : vector<8x256xf32>
    %45 = vector.broadcast %42 : vector<1x256xf32> to vector<8x256xf32>
    %46 = arith.addf %44, %45 : vector<8x256xf32>
    %cst_21 = arith.constant 0.000000e+00 : f32
    %47 = vector.broadcast %cst_21 : f32 to vector<8x256xf32>
    %48 = arith.maximumf %46, %47 : vector<8x256xf32>
    %c0_22 = arith.constant 0 : index
    %c0_23 = arith.constant 0 : index
    %49 = vector.load %arg2[%c0_22, %c0_23] : memref<256x1024xbf16, #tpu.memory_space<vmem>>, vector<256x1024xbf16>
    %50 = arith.truncf %48 : vector<8x256xf32> to vector<8x256xbf16>
    %cst_24 = arith.constant dense<0.000000e+00> : vector<8x1024xf32>
    %51 = tpu.matmul %50, %49, %cst_24 {dimension_numbers = #tpu.dot_dimension_numbers<[1], [0], [0], [1], [0, 0, 1, 1], [], []>} : vector<8x256xbf16>, vector<256x1024xbf16>, vector<8x1024xf32> -> vector<8x1024xf32>
    %52 = tpu.iota {dimensions = array<i32: 0>} : vector<16x8xi32>
    %53 = tpu.iota {dimensions = array<i32: 1>} : vector<16x8xi32>
    %c3_i32 = arith.constant 3 : i32
    %54 = vector.broadcast %c3_i32 : i32 to vector<16x8xi32>
    %55 = arith.andi %53, %54 : vector<16x8xi32>
    %c2_i32 = arith.constant 2 : i32
    %56 = vector.broadcast %c2_i32 : i32 to vector<16x8xi32>
    %57 = arith.muli %56, %53 : vector<16x8xi32>
    %c1_i32 = arith.constant 1 : i32
    %58 = vector.broadcast %c1_i32 : i32 to vector<16x8xi32>
    %59 = arith.subi %57, %58 : vector<16x8xi32>
    %60 = arith.cmpi eq, %52, %59 : vector<16x8xi32>
    %c0_i32 = arith.constant 0 : i32
    %61 = vector.broadcast %c0_i32 : i32 to vector<16x8xi32>
    %62 = arith.cmpi ne, %55, %61 : vector<16x8xi32>
    %63 = arith.andi %60, %62 : vector<16x8xi1>
    %cst_25 = arith.constant 1.000000e+00 : f32
    %cst_26 = arith.constant 0.000000e+00 : f32
    %64 = vector.broadcast %cst_25 : f32 to vector<16x8xf32>
    %65 = vector.broadcast %cst_26 : f32 to vector<16x8xf32>
    %66 = arith.select %63, %64, %65 : vector<16x8xi1>, vector<16x8xf32>
    %c2_i32_27 = arith.constant 2 : i32
    %67 = vector.broadcast %c2_i32_27 : i32 to vector<16x8xi32>
    %68 = arith.muli %67, %53 : vector<16x8xi32>
    %69 = arith.cmpi eq, %52, %68 : vector<16x8xi32>
    %cst_28 = arith.constant 1.000000e+00 : f32
    %cst_29 = arith.constant 0.000000e+00 : f32
    %70 = vector.broadcast %cst_28 : f32 to vector<16x8xf32>
    %71 = vector.broadcast %cst_29 : f32 to vector<16x8xf32>
    %72 = arith.select %69, %70, %71 : vector<16x8xi1>, vector<16x8xf32>
    %c2_i32_30 = arith.constant 2 : i32
    %73 = vector.broadcast %c2_i32_30 : i32 to vector<16x8xi32>
    %74 = arith.muli %73, %53 : vector<16x8xi32>
    %c1_i32_31 = arith.constant 1 : i32
    %75 = vector.broadcast %c1_i32_31 : i32 to vector<16x8xi32>
    %76 = arith.addi %74, %75 : vector<16x8xi32>
    %77 = arith.cmpi eq, %52, %76 : vector<16x8xi32>
    %cst_32 = arith.constant 1.000000e+00 : f32
    %cst_33 = arith.constant 0.000000e+00 : f32
    %78 = vector.broadcast %cst_32 : f32 to vector<16x8xf32>
    %79 = vector.broadcast %cst_33 : f32 to vector<16x8xf32>
    %80 = arith.select %77, %78, %79 : vector<16x8xi1>, vector<16x8xf32>
    %c2_i32_34 = arith.constant 2 : i32
    %81 = vector.broadcast %c2_i32_34 : i32 to vector<16x8xi32>
    %82 = arith.muli %81, %53 : vector<16x8xi32>
    %c2_i32_35 = arith.constant 2 : i32
    %83 = vector.broadcast %c2_i32_35 : i32 to vector<16x8xi32>
    %84 = arith.addi %82, %83 : vector<16x8xi32>
    %85 = arith.cmpi eq, %52, %84 : vector<16x8xi32>
    %c3_i32_36 = arith.constant 3 : i32
    %86 = vector.broadcast %c3_i32_36 : i32 to vector<16x8xi32>
    %87 = arith.cmpi ne, %55, %86 : vector<16x8xi32>
    %88 = arith.andi %85, %87 : vector<16x8xi1>
    %cst_37 = arith.constant 1.000000e+00 : f32
    %cst_38 = arith.constant 0.000000e+00 : f32
    %89 = vector.broadcast %cst_37 : f32 to vector<16x8xf32>
    %90 = vector.broadcast %cst_38 : f32 to vector<16x8xf32>
    %91 = arith.select %88, %89, %90 : vector<16x8xi1>, vector<16x8xf32>
    %92 = vector.extract_strided_slice %51 {offsets = [0, 256], sizes = [8, 256], strides = [1, 1]} : vector<8x1024xf32> to vector<8x256xf32>
    %cst_39 = arith.constant dense<0.000000e+00> : vector<16x256xf32>
    %93 = tpu.matmul %72, %92, %cst_39 {dimension_numbers = #tpu.dot_dimension_numbers<[1], [0], [0], [1], [0, 0, 1, 1], [], []>} : vector<16x8xf32>, vector<8x256xf32>, vector<16x256xf32> -> vector<16x256xf32>
    %94 = vector.extract_strided_slice %51 {offsets = [0, 512], sizes = [8, 256], strides = [1, 1]} : vector<8x1024xf32> to vector<8x256xf32>
    %cst_40 = arith.constant dense<0.000000e+00> : vector<16x256xf32>
    %95 = tpu.matmul %80, %94, %cst_40 {dimension_numbers = #tpu.dot_dimension_numbers<[1], [0], [0], [1], [0, 0, 1, 1], [], []>} : vector<16x8xf32>, vector<8x256xf32>, vector<16x256xf32> -> vector<16x256xf32>
    %96 = arith.addf %93, %95 : vector<16x256xf32>
    %97 = vector.extract_strided_slice %51 {offsets = [0, 0], sizes = [8, 256], strides = [1, 1]} : vector<8x1024xf32> to vector<8x256xf32>
    %cst_41 = arith.constant dense<0.000000e+00> : vector<16x256xf32>
    %98 = tpu.matmul %66, %97, %cst_41 {dimension_numbers = #tpu.dot_dimension_numbers<[1], [0], [0], [1], [0, 0, 1, 1], [], []>} : vector<16x8xf32>, vector<8x256xf32>, vector<16x256xf32> -> vector<16x256xf32>
    %99 = arith.addf %96, %98 : vector<16x256xf32>
    %100 = vector.extract_strided_slice %51 {offsets = [0, 768], sizes = [8, 256], strides = [1, 1]} : vector<8x1024xf32> to vector<8x256xf32>
    %cst_42 = arith.constant dense<0.000000e+00> : vector<16x256xf32>
    %101 = tpu.matmul %91, %100, %cst_42 {dimension_numbers = #tpu.dot_dimension_numbers<[1], [0], [0], [1], [0, 0, 1, 1], [], []>} : vector<16x8xf32>, vector<8x256xf32>, vector<16x256xf32> -> vector<16x256xf32>
    %102 = arith.addf %99, %101 : vector<16x256xf32>
    %c0_43 = arith.constant 0 : index
    %c0_44 = arith.constant 0 : index
    %103 = vector.load %arg8[%c0_43, %c0_44] : memref<1x32xf32, #tpu.memory_space<vmem>>, vector<1x32xf32>
    %c0_45 = arith.constant 0 : index
    %c0_46 = arith.constant 0 : index
    %104 = vector.load %arg9[%c0_45, %c0_46] : memref<1x32xf32, #tpu.memory_space<vmem>>, vector<1x32xf32>
    %105 = tpu.iota {dimensions = array<i32: 0>} : vector<256x32xi32>
    %106 = tpu.iota {dimensions = array<i32: 1>} : vector<256x32xi32>
    %c31_i32 = arith.constant 31 : i32
    %107 = vector.broadcast %c31_i32 : i32 to vector<256x32xi32>
    %108 = arith.andi %105, %107 : vector<256x32xi32>
    %109 = arith.cmpi eq, %108, %106 : vector<256x32xi32>
    %cst_47 = arith.constant 1.000000e+00 : f32
    %cst_48 = arith.constant 0.000000e+00 : f32
    %110 = vector.broadcast %cst_47 : f32 to vector<256x32xf32>
    %111 = vector.broadcast %cst_48 : f32 to vector<256x32xf32>
    %112 = arith.select %109, %110, %111 : vector<256x32xi1>, vector<256x32xf32>
    %113 = tpu.iota {dimensions = array<i32: 1>} : vector<32x256xi32>
    %114 = tpu.iota {dimensions = array<i32: 0>} : vector<32x256xi32>
    %c31_i32_49 = arith.constant 31 : i32
    %115 = vector.broadcast %c31_i32_49 : i32 to vector<32x256xi32>
    %116 = arith.andi %113, %115 : vector<32x256xi32>
    %117 = arith.cmpi eq, %116, %114 : vector<32x256xi32>
    %cst_50 = arith.constant 1.000000e+00 : f32
    %cst_51 = arith.constant 0.000000e+00 : f32
    %118 = vector.broadcast %cst_50 : f32 to vector<32x256xf32>
    %119 = vector.broadcast %cst_51 : f32 to vector<32x256xf32>
    %120 = arith.select %117, %118, %119 : vector<32x256xi1>, vector<32x256xf32>
    %cst_52 = arith.constant dense<0.000000e+00> : vector<256xf32>
    %121 = vector.multi_reduction <add>, %102, %cst_52 [0] : vector<16x256xf32> to vector<256xf32>
    %122 = vector.shape_cast %121 : vector<256xf32> to vector<1x256xf32>
    %123 = arith.mulf %102, %102 : vector<16x256xf32>
    %cst_53 = arith.constant dense<0.000000e+00> : vector<256xf32>
    %124 = vector.multi_reduction <add>, %123, %cst_53 [0] : vector<16x256xf32> to vector<256xf32>
    %125 = vector.shape_cast %124 : vector<256xf32> to vector<1x256xf32>
    %cst_54 = arith.constant dense<0.000000e+00> : vector<1x32xf32>
    %126 = tpu.matmul %122, %112, %cst_54 {dimension_numbers = #tpu.dot_dimension_numbers<[1], [0], [0], [1], [0, 0, 1, 1], [], []>} : vector<1x256xf32>, vector<256x32xf32>, vector<1x32xf32> -> vector<1x32xf32>
    %cst_55 = arith.constant dense<0.000000e+00> : vector<1x32xf32>
    %127 = tpu.matmul %125, %112, %cst_55 {dimension_numbers = #tpu.dot_dimension_numbers<[1], [0], [0], [1], [0, 0, 1, 1], [], []>} : vector<1x256xf32>, vector<256x32xf32>, vector<1x32xf32> -> vector<1x32xf32>
    %cst_56 = arith.constant 7.812500e-03 : f32
    %128 = vector.broadcast %cst_56 : f32 to vector<1x32xf32>
    %129 = arith.mulf %126, %128 : vector<1x32xf32>
    %cst_57 = arith.constant 7.812500e-03 : f32
    %130 = vector.broadcast %cst_57 : f32 to vector<1x32xf32>
    %131 = arith.mulf %127, %130 : vector<1x32xf32>
    %132 = arith.mulf %129, %129 : vector<1x32xf32>
    %133 = arith.subf %131, %132 : vector<1x32xf32>
    %cst_58 = arith.constant 9.99999974E-6 : f32
    %134 = vector.broadcast %cst_58 : f32 to vector<1x32xf32>
    %135 = arith.addf %133, %134 : vector<1x32xf32>
    %136 = math.rsqrt %135 : vector<1x32xf32>
    %137 = arith.mulf %103, %136 : vector<1x32xf32>
    %138 = arith.mulf %129, %137 : vector<1x32xf32>
    %139 = arith.subf %104, %138 : vector<1x32xf32>
    %cst_59 = arith.constant dense<0.000000e+00> : vector<1x256xf32>
    %140 = tpu.matmul %137, %120, %cst_59 {dimension_numbers = #tpu.dot_dimension_numbers<[1], [0], [0], [1], [0, 0, 1, 1], [], []>} : vector<1x32xf32>, vector<32x256xf32>, vector<1x256xf32> -> vector<1x256xf32>
    %cst_60 = arith.constant dense<0.000000e+00> : vector<1x256xf32>
    %141 = tpu.matmul %139, %120, %cst_60 {dimension_numbers = #tpu.dot_dimension_numbers<[1], [0], [0], [1], [0, 0, 1, 1], [], []>} : vector<1x32xf32>, vector<32x256xf32>, vector<1x256xf32> -> vector<1x256xf32>
    %142 = vector.broadcast %140 : vector<1x256xf32> to vector<16x256xf32>
    %143 = arith.mulf %102, %142 : vector<16x256xf32>
    %144 = vector.broadcast %141 : vector<1x256xf32> to vector<16x256xf32>
    %145 = arith.addf %143, %144 : vector<16x256xf32>
    %cst_61 = arith.constant 0.000000e+00 : f32
    %146 = vector.broadcast %cst_61 : f32 to vector<16x256xf32>
    %147 = arith.maximumf %145, %146 : vector<16x256xf32>
    %c0_62 = arith.constant 0 : index
    %c0_63 = arith.constant 0 : index
    %148 = vector.load %arg3[%c0_62, %c0_63] : memref<256x1024xbf16, #tpu.memory_space<vmem>>, vector<256x1024xbf16>
    %149 = arith.truncf %147 : vector<16x256xf32> to vector<16x256xbf16>
    %cst_64 = arith.constant dense<0.000000e+00> : vector<16x1024xf32>
    %150 = tpu.matmul %149, %148, %cst_64 {dimension_numbers = #tpu.dot_dimension_numbers<[1], [0], [0], [1], [0, 0, 1, 1], [], []>} : vector<16x256xbf16>, vector<256x1024xbf16>, vector<16x1024xf32> -> vector<16x1024xf32>
    %151 = tpu.iota {dimensions = array<i32: 0>} : vector<32x16xi32>
    %152 = tpu.iota {dimensions = array<i32: 1>} : vector<32x16xi32>
    %c7_i32 = arith.constant 7 : i32
    %153 = vector.broadcast %c7_i32 : i32 to vector<32x16xi32>
    %154 = arith.andi %152, %153 : vector<32x16xi32>
    %c2_i32_65 = arith.constant 2 : i32
    %155 = vector.broadcast %c2_i32_65 : i32 to vector<32x16xi32>
    %156 = arith.muli %155, %152 : vector<32x16xi32>
    %c1_i32_66 = arith.constant 1 : i32
    %157 = vector.broadcast %c1_i32_66 : i32 to vector<32x16xi32>
    %158 = arith.subi %156, %157 : vector<32x16xi32>
    %159 = arith.cmpi eq, %151, %158 : vector<32x16xi32>
    %c0_i32_67 = arith.constant 0 : i32
    %160 = vector.broadcast %c0_i32_67 : i32 to vector<32x16xi32>
    %161 = arith.cmpi ne, %154, %160 : vector<32x16xi32>
    %162 = arith.andi %159, %161 : vector<32x16xi1>
    %cst_68 = arith.constant 1.000000e+00 : f32
    %cst_69 = arith.constant 0.000000e+00 : f32
    %163 = vector.broadcast %cst_68 : f32 to vector<32x16xf32>
    %164 = vector.broadcast %cst_69 : f32 to vector<32x16xf32>
    %165 = arith.select %162, %163, %164 : vector<32x16xi1>, vector<32x16xf32>
    %c2_i32_70 = arith.constant 2 : i32
    %166 = vector.broadcast %c2_i32_70 : i32 to vector<32x16xi32>
    %167 = arith.muli %166, %152 : vector<32x16xi32>
    %168 = arith.cmpi eq, %151, %167 : vector<32x16xi32>
    %cst_71 = arith.constant 1.000000e+00 : f32
    %cst_72 = arith.constant 0.000000e+00 : f32
    %169 = vector.broadcast %cst_71 : f32 to vector<32x16xf32>
    %170 = vector.broadcast %cst_72 : f32 to vector<32x16xf32>
    %171 = arith.select %168, %169, %170 : vector<32x16xi1>, vector<32x16xf32>
    %c2_i32_73 = arith.constant 2 : i32
    %172 = vector.broadcast %c2_i32_73 : i32 to vector<32x16xi32>
    %173 = arith.muli %172, %152 : vector<32x16xi32>
    %c1_i32_74 = arith.constant 1 : i32
    %174 = vector.broadcast %c1_i32_74 : i32 to vector<32x16xi32>
    %175 = arith.addi %173, %174 : vector<32x16xi32>
    %176 = arith.cmpi eq, %151, %175 : vector<32x16xi32>
    %cst_75 = arith.constant 1.000000e+00 : f32
    %cst_76 = arith.constant 0.000000e+00 : f32
    %177 = vector.broadcast %cst_75 : f32 to vector<32x16xf32>
    %178 = vector.broadcast %cst_76 : f32 to vector<32x16xf32>
    %179 = arith.select %176, %177, %178 : vector<32x16xi1>, vector<32x16xf32>
    %c2_i32_77 = arith.constant 2 : i32
    %180 = vector.broadcast %c2_i32_77 : i32 to vector<32x16xi32>
    %181 = arith.muli %180, %152 : vector<32x16xi32>
    %c2_i32_78 = arith.constant 2 : i32
    %182 = vector.broadcast %c2_i32_78 : i32 to vector<32x16xi32>
    %183 = arith.addi %181, %182 : vector<32x16xi32>
    %184 = arith.cmpi eq, %151, %183 : vector<32x16xi32>
    %c7_i32_79 = arith.constant 7 : i32
    %185 = vector.broadcast %c7_i32_79 : i32 to vector<32x16xi32>
    %186 = arith.cmpi ne, %154, %185 : vector<32x16xi32>
    %187 = arith.andi %184, %186 : vector<32x16xi1>
    %cst_80 = arith.constant 1.000000e+00 : f32
    %cst_81 = arith.constant 0.000000e+00 : f32
    %188 = vector.broadcast %cst_80 : f32 to vector<32x16xf32>
    %189 = vector.broadcast %cst_81 : f32 to vector<32x16xf32>
    %190 = arith.select %187, %188, %189 : vector<32x16xi1>, vector<32x16xf32>
    %191 = vector.extract_strided_slice %150 {offsets = [0, 256], sizes = [16, 256], strides = [1, 1]} : vector<16x1024xf32> to vector<16x256xf32>
    %cst_82 = arith.constant dense<0.000000e+00> : vector<32x256xf32>
    %192 = tpu.matmul %171, %191, %cst_82 {dimension_numbers = #tpu.dot_dimension_numbers<[1], [0], [0], [1], [0, 0, 1, 1], [], []>} : vector<32x16xf32>, vector<16x256xf32>, vector<32x256xf32> -> vector<32x256xf32>
    %193 = vector.extract_strided_slice %150 {offsets = [0, 512], sizes = [16, 256], strides = [1, 1]} : vector<16x1024xf32> to vector<16x256xf32>
    %cst_83 = arith.constant dense<0.000000e+00> : vector<32x256xf32>
    %194 = tpu.matmul %179, %193, %cst_83 {dimension_numbers = #tpu.dot_dimension_numbers<[1], [0], [0], [1], [0, 0, 1, 1], [], []>} : vector<32x16xf32>, vector<16x256xf32>, vector<32x256xf32> -> vector<32x256xf32>
    %195 = arith.addf %192, %194 : vector<32x256xf32>
    %196 = vector.extract_strided_slice %150 {offsets = [0, 0], sizes = [16, 256], strides = [1, 1]} : vector<16x1024xf32> to vector<16x256xf32>
    %cst_84 = arith.constant dense<0.000000e+00> : vector<32x256xf32>
    %197 = tpu.matmul %165, %196, %cst_84 {dimension_numbers = #tpu.dot_dimension_numbers<[1], [0], [0], [1], [0, 0, 1, 1], [], []>} : vector<32x16xf32>, vector<16x256xf32>, vector<32x256xf32> -> vector<32x256xf32>
    %198 = arith.addf %195, %197 : vector<32x256xf32>
    %199 = vector.extract_strided_slice %150 {offsets = [0, 768], sizes = [16, 256], strides = [1, 1]} : vector<16x1024xf32> to vector<16x256xf32>
    %cst_85 = arith.constant dense<0.000000e+00> : vector<32x256xf32>
    %200 = tpu.matmul %190, %199, %cst_85 {dimension_numbers = #tpu.dot_dimension_numbers<[1], [0], [0], [1], [0, 0, 1, 1], [], []>} : vector<32x16xf32>, vector<16x256xf32>, vector<32x256xf32> -> vector<32x256xf32>
    %201 = arith.addf %198, %200 : vector<32x256xf32>
    %c0_86 = arith.constant 0 : index
    %c0_87 = arith.constant 0 : index
    %202 = vector.load %arg10[%c0_86, %c0_87] : memref<1x16xf32, #tpu.memory_space<vmem>>, vector<1x16xf32>
    %c0_88 = arith.constant 0 : index
    %c0_89 = arith.constant 0 : index
    %203 = vector.load %arg11[%c0_88, %c0_89] : memref<1x16xf32, #tpu.memory_space<vmem>>, vector<1x16xf32>
    %204 = tpu.iota {dimensions = array<i32: 0>} : vector<256x16xi32>
    %205 = tpu.iota {dimensions = array<i32: 1>} : vector<256x16xi32>
    %c15_i32 = arith.constant 15 : i32
    %206 = vector.broadcast %c15_i32 : i32 to vector<256x16xi32>
    %207 = arith.andi %204, %206 : vector<256x16xi32>
    %208 = arith.cmpi eq, %207, %205 : vector<256x16xi32>
    %cst_90 = arith.constant 1.000000e+00 : f32
    %cst_91 = arith.constant 0.000000e+00 : f32
    %209 = vector.broadcast %cst_90 : f32 to vector<256x16xf32>
    %210 = vector.broadcast %cst_91 : f32 to vector<256x16xf32>
    %211 = arith.select %208, %209, %210 : vector<256x16xi1>, vector<256x16xf32>
    %212 = tpu.iota {dimensions = array<i32: 1>} : vector<16x256xi32>
    %213 = tpu.iota {dimensions = array<i32: 0>} : vector<16x256xi32>
    %c15_i32_92 = arith.constant 15 : i32
    %214 = vector.broadcast %c15_i32_92 : i32 to vector<16x256xi32>
    %215 = arith.andi %212, %214 : vector<16x256xi32>
    %216 = arith.cmpi eq, %215, %213 : vector<16x256xi32>
    %cst_93 = arith.constant 1.000000e+00 : f32
    %cst_94 = arith.constant 0.000000e+00 : f32
    %217 = vector.broadcast %cst_93 : f32 to vector<16x256xf32>
    %218 = vector.broadcast %cst_94 : f32 to vector<16x256xf32>
    %219 = arith.select %216, %217, %218 : vector<16x256xi1>, vector<16x256xf32>
    %cst_95 = arith.constant dense<0.000000e+00> : vector<256xf32>
    %220 = vector.multi_reduction <add>, %201, %cst_95 [0] : vector<32x256xf32> to vector<256xf32>
    %221 = vector.shape_cast %220 : vector<256xf32> to vector<1x256xf32>
    %222 = arith.mulf %201, %201 : vector<32x256xf32>
    %cst_96 = arith.constant dense<0.000000e+00> : vector<256xf32>
    %223 = vector.multi_reduction <add>, %222, %cst_96 [0] : vector<32x256xf32> to vector<256xf32>
    %224 = vector.shape_cast %223 : vector<256xf32> to vector<1x256xf32>
    %cst_97 = arith.constant dense<0.000000e+00> : vector<1x16xf32>
    %225 = tpu.matmul %221, %211, %cst_97 {dimension_numbers = #tpu.dot_dimension_numbers<[1], [0], [0], [1], [0, 0, 1, 1], [], []>} : vector<1x256xf32>, vector<256x16xf32>, vector<1x16xf32> -> vector<1x16xf32>
    %cst_98 = arith.constant dense<0.000000e+00> : vector<1x16xf32>
    %226 = tpu.matmul %224, %211, %cst_98 {dimension_numbers = #tpu.dot_dimension_numbers<[1], [0], [0], [1], [0, 0, 1, 1], [], []>} : vector<1x256xf32>, vector<256x16xf32>, vector<1x16xf32> -> vector<1x16xf32>
    %cst_99 = arith.constant 0.001953125 : f32
    %227 = vector.broadcast %cst_99 : f32 to vector<1x16xf32>
    %228 = arith.mulf %225, %227 : vector<1x16xf32>
    %cst_100 = arith.constant 0.001953125 : f32
    %229 = vector.broadcast %cst_100 : f32 to vector<1x16xf32>
    %230 = arith.mulf %226, %229 : vector<1x16xf32>
    %231 = arith.mulf %228, %228 : vector<1x16xf32>
    %232 = arith.subf %230, %231 : vector<1x16xf32>
    %cst_101 = arith.constant 9.99999974E-6 : f32
    %233 = vector.broadcast %cst_101 : f32 to vector<1x16xf32>
    %234 = arith.addf %232, %233 : vector<1x16xf32>
    %235 = math.rsqrt %234 : vector<1x16xf32>
    %236 = arith.mulf %202, %235 : vector<1x16xf32>
    %237 = arith.mulf %228, %236 : vector<1x16xf32>
    %238 = arith.subf %203, %237 : vector<1x16xf32>
    %cst_102 = arith.constant dense<0.000000e+00> : vector<1x256xf32>
    %239 = tpu.matmul %236, %219, %cst_102 {dimension_numbers = #tpu.dot_dimension_numbers<[1], [0], [0], [1], [0, 0, 1, 1], [], []>} : vector<1x16xf32>, vector<16x256xf32>, vector<1x256xf32> -> vector<1x256xf32>
    %cst_103 = arith.constant dense<0.000000e+00> : vector<1x256xf32>
    %240 = tpu.matmul %238, %219, %cst_103 {dimension_numbers = #tpu.dot_dimension_numbers<[1], [0], [0], [1], [0, 0, 1, 1], [], []>} : vector<1x16xf32>, vector<16x256xf32>, vector<1x256xf32> -> vector<1x256xf32>
    %241 = vector.broadcast %239 : vector<1x256xf32> to vector<32x256xf32>
    %242 = arith.mulf %201, %241 : vector<32x256xf32>
    %243 = vector.broadcast %240 : vector<1x256xf32> to vector<32x256xf32>
    %244 = arith.addf %242, %243 : vector<32x256xf32>
    %cst_104 = arith.constant 0.000000e+00 : f32
    %245 = vector.broadcast %cst_104 : f32 to vector<32x256xf32>
    %246 = arith.maximumf %244, %245 : vector<32x256xf32>
    %c0_105 = arith.constant 0 : index
    %c0_106 = arith.constant 0 : index
    %247 = vector.load %arg4[%c0_105, %c0_106] : memref<256x1024xbf16, #tpu.memory_space<vmem>>, vector<256x1024xbf16>
    %248 = arith.truncf %246 : vector<32x256xf32> to vector<32x256xbf16>
    %cst_107 = arith.constant dense<0.000000e+00> : vector<32x1024xf32>
    %249 = tpu.matmul %248, %247, %cst_107 {dimension_numbers = #tpu.dot_dimension_numbers<[1], [0], [0], [1], [0, 0, 1, 1], [], []>} : vector<32x256xbf16>, vector<256x1024xbf16>, vector<32x1024xf32> -> vector<32x1024xf32>
    %250 = tpu.iota {dimensions = array<i32: 0>} : vector<64x32xi32>
    %251 = tpu.iota {dimensions = array<i32: 1>} : vector<64x32xi32>
    %c15_i32_108 = arith.constant 15 : i32
    %252 = vector.broadcast %c15_i32_108 : i32 to vector<64x32xi32>
    %253 = arith.andi %251, %252 : vector<64x32xi32>
    %c2_i32_109 = arith.constant 2 : i32
    %254 = vector.broadcast %c2_i32_109 : i32 to vector<64x32xi32>
    %255 = arith.muli %254, %251 : vector<64x32xi32>
    %c1_i32_110 = arith.constant 1 : i32
    %256 = vector.broadcast %c1_i32_110 : i32 to vector<64x32xi32>
    %257 = arith.subi %255, %256 : vector<64x32xi32>
    %258 = arith.cmpi eq, %250, %257 : vector<64x32xi32>
    %c0_i32_111 = arith.constant 0 : i32
    %259 = vector.broadcast %c0_i32_111 : i32 to vector<64x32xi32>
    %260 = arith.cmpi ne, %253, %259 : vector<64x32xi32>
    %261 = arith.andi %258, %260 : vector<64x32xi1>
    %cst_112 = arith.constant 1.000000e+00 : f32
    %cst_113 = arith.constant 0.000000e+00 : f32
    %262 = vector.broadcast %cst_112 : f32 to vector<64x32xf32>
    %263 = vector.broadcast %cst_113 : f32 to vector<64x32xf32>
    %264 = arith.select %261, %262, %263 : vector<64x32xi1>, vector<64x32xf32>
    %c2_i32_114 = arith.constant 2 : i32
    %265 = vector.broadcast %c2_i32_114 : i32 to vector<64x32xi32>
    %266 = arith.muli %265, %251 : vector<64x32xi32>
    %267 = arith.cmpi eq, %250, %266 : vector<64x32xi32>
    %cst_115 = arith.constant 1.000000e+00 : f32
    %cst_116 = arith.constant 0.000000e+00 : f32
    %268 = vector.broadcast %cst_115 : f32 to vector<64x32xf32>
    %269 = vector.broadcast %cst_116 : f32 to vector<64x32xf32>
    %270 = arith.select %267, %268, %269 : vector<64x32xi1>, vector<64x32xf32>
    %c2_i32_117 = arith.constant 2 : i32
    %271 = vector.broadcast %c2_i32_117 : i32 to vector<64x32xi32>
    %272 = arith.muli %271, %251 : vector<64x32xi32>
    %c1_i32_118 = arith.constant 1 : i32
    %273 = vector.broadcast %c1_i32_118 : i32 to vector<64x32xi32>
    %274 = arith.addi %272, %273 : vector<64x32xi32>
    %275 = arith.cmpi eq, %250, %274 : vector<64x32xi32>
    %cst_119 = arith.constant 1.000000e+00 : f32
    %cst_120 = arith.constant 0.000000e+00 : f32
    %276 = vector.broadcast %cst_119 : f32 to vector<64x32xf32>
    %277 = vector.broadcast %cst_120 : f32 to vector<64x32xf32>
    %278 = arith.select %275, %276, %277 : vector<64x32xi1>, vector<64x32xf32>
    %c2_i32_121 = arith.constant 2 : i32
    %279 = vector.broadcast %c2_i32_121 : i32 to vector<64x32xi32>
    %280 = arith.muli %279, %251 : vector<64x32xi32>
    %c2_i32_122 = arith.constant 2 : i32
    %281 = vector.broadcast %c2_i32_122 : i32 to vector<64x32xi32>
    %282 = arith.addi %280, %281 : vector<64x32xi32>
    %283 = arith.cmpi eq, %250, %282 : vector<64x32xi32>
    %c15_i32_123 = arith.constant 15 : i32
    %284 = vector.broadcast %c15_i32_123 : i32 to vector<64x32xi32>
    %285 = arith.cmpi ne, %253, %284 : vector<64x32xi32>
    %286 = arith.andi %283, %285 : vector<64x32xi1>
    %cst_124 = arith.constant 1.000000e+00 : f32
    %cst_125 = arith.constant 0.000000e+00 : f32
    %287 = vector.broadcast %cst_124 : f32 to vector<64x32xf32>
    %288 = vector.broadcast %cst_125 : f32 to vector<64x32xf32>
    %289 = arith.select %286, %287, %288 : vector<64x32xi1>, vector<64x32xf32>
    %290 = vector.extract_strided_slice %249 {offsets = [0, 256], sizes = [32, 256], strides = [1, 1]} : vector<32x1024xf32> to vector<32x256xf32>
    %cst_126 = arith.constant dense<0.000000e+00> : vector<64x256xf32>
    %291 = tpu.matmul %270, %290, %cst_126 {dimension_numbers = #tpu.dot_dimension_numbers<[1], [0], [0], [1], [0, 0, 1, 1], [], []>} : vector<64x32xf32>, vector<32x256xf32>, vector<64x256xf32> -> vector<64x256xf32>
    %292 = vector.extract_strided_slice %249 {offsets = [0, 512], sizes = [32, 256], strides = [1, 1]} : vector<32x1024xf32> to vector<32x256xf32>
    %cst_127 = arith.constant dense<0.000000e+00> : vector<64x256xf32>
    %293 = tpu.matmul %278, %292, %cst_127 {dimension_numbers = #tpu.dot_dimension_numbers<[1], [0], [0], [1], [0, 0, 1, 1], [], []>} : vector<64x32xf32>, vector<32x256xf32>, vector<64x256xf32> -> vector<64x256xf32>
    %294 = arith.addf %291, %293 : vector<64x256xf32>
    %295 = vector.extract_strided_slice %249 {offsets = [0, 0], sizes = [32, 256], strides = [1, 1]} : vector<32x1024xf32> to vector<32x256xf32>
    %cst_128 = arith.constant dense<0.000000e+00> : vector<64x256xf32>
    %296 = tpu.matmul %264, %295, %cst_128 {dimension_numbers = #tpu.dot_dimension_numbers<[1], [0], [0], [1], [0, 0, 1, 1], [], []>} : vector<64x32xf32>, vector<32x256xf32>, vector<64x256xf32> -> vector<64x256xf32>
    %297 = arith.addf %294, %296 : vector<64x256xf32>
    %298 = vector.extract_strided_slice %249 {offsets = [0, 768], sizes = [32, 256], strides = [1, 1]} : vector<32x1024xf32> to vector<32x256xf32>
    %cst_129 = arith.constant dense<0.000000e+00> : vector<64x256xf32>
    %299 = tpu.matmul %289, %298, %cst_129 {dimension_numbers = #tpu.dot_dimension_numbers<[1], [0], [0], [1], [0, 0, 1, 1], [], []>} : vector<64x32xf32>, vector<32x256xf32>, vector<64x256xf32> -> vector<64x256xf32>
    %300 = arith.addf %297, %299 : vector<64x256xf32>
    %c0_130 = arith.constant 0 : index
    %c0_131 = arith.constant 0 : index
    %301 = vector.load %arg12[%c0_130, %c0_131] : memref<1x8xf32, #tpu.memory_space<vmem>>, vector<1x8xf32>
    %c0_132 = arith.constant 0 : index
    %c0_133 = arith.constant 0 : index
    %302 = vector.load %arg13[%c0_132, %c0_133] : memref<1x8xf32, #tpu.memory_space<vmem>>, vector<1x8xf32>
    %303 = tpu.iota {dimensions = array<i32: 0>} : vector<256x8xi32>
    %304 = tpu.iota {dimensions = array<i32: 1>} : vector<256x8xi32>
    %c7_i32_134 = arith.constant 7 : i32
    %305 = vector.broadcast %c7_i32_134 : i32 to vector<256x8xi32>
    %306 = arith.andi %303, %305 : vector<256x8xi32>
    %307 = arith.cmpi eq, %306, %304 : vector<256x8xi32>
    %cst_135 = arith.constant 1.000000e+00 : f32
    %cst_136 = arith.constant 0.000000e+00 : f32
    %308 = vector.broadcast %cst_135 : f32 to vector<256x8xf32>
    %309 = vector.broadcast %cst_136 : f32 to vector<256x8xf32>
    %310 = arith.select %307, %308, %309 : vector<256x8xi1>, vector<256x8xf32>
    %311 = tpu.iota {dimensions = array<i32: 1>} : vector<8x256xi32>
    %312 = tpu.iota {dimensions = array<i32: 0>} : vector<8x256xi32>
    %c7_i32_137 = arith.constant 7 : i32
    %313 = vector.broadcast %c7_i32_137 : i32 to vector<8x256xi32>
    %314 = arith.andi %311, %313 : vector<8x256xi32>
    %315 = arith.cmpi eq, %314, %312 : vector<8x256xi32>
    %cst_138 = arith.constant 1.000000e+00 : f32
    %cst_139 = arith.constant 0.000000e+00 : f32
    %316 = vector.broadcast %cst_138 : f32 to vector<8x256xf32>
    %317 = vector.broadcast %cst_139 : f32 to vector<8x256xf32>
    %318 = arith.select %315, %316, %317 : vector<8x256xi1>, vector<8x256xf32>
    %cst_140 = arith.constant dense<0.000000e+00> : vector<256xf32>
    %319 = vector.multi_reduction <add>, %300, %cst_140 [0] : vector<64x256xf32> to vector<256xf32>
    %320 = vector.shape_cast %319 : vector<256xf32> to vector<1x256xf32>
    %321 = arith.mulf %300, %300 : vector<64x256xf32>
    %cst_141 = arith.constant dense<0.000000e+00> : vector<256xf32>
    %322 = vector.multi_reduction <add>, %321, %cst_141 [0] : vector<64x256xf32> to vector<256xf32>
    %323 = vector.shape_cast %322 : vector<256xf32> to vector<1x256xf32>
    %cst_142 = arith.constant dense<0.000000e+00> : vector<1x8xf32>
    %324 = tpu.matmul %320, %310, %cst_142 {dimension_numbers = #tpu.dot_dimension_numbers<[1], [0], [0], [1], [0, 0, 1, 1], [], []>} : vector<1x256xf32>, vector<256x8xf32>, vector<1x8xf32> -> vector<1x8xf32>
    %cst_143 = arith.constant dense<0.000000e+00> : vector<1x8xf32>
    %325 = tpu.matmul %323, %310, %cst_143 {dimension_numbers = #tpu.dot_dimension_numbers<[1], [0], [0], [1], [0, 0, 1, 1], [], []>} : vector<1x256xf32>, vector<256x8xf32>, vector<1x8xf32> -> vector<1x8xf32>
    %cst_144 = arith.constant 4.8828125E-4 : f32
    %326 = vector.broadcast %cst_144 : f32 to vector<1x8xf32>
    %327 = arith.mulf %324, %326 : vector<1x8xf32>
    %cst_145 = arith.constant 4.8828125E-4 : f32
    %328 = vector.broadcast %cst_145 : f32 to vector<1x8xf32>
    %329 = arith.mulf %325, %328 : vector<1x8xf32>
    %330 = arith.mulf %327, %327 : vector<1x8xf32>
    %331 = arith.subf %329, %330 : vector<1x8xf32>
    %cst_146 = arith.constant 9.99999974E-6 : f32
    %332 = vector.broadcast %cst_146 : f32 to vector<1x8xf32>
    %333 = arith.addf %331, %332 : vector<1x8xf32>
    %334 = math.rsqrt %333 : vector<1x8xf32>
    %335 = arith.mulf %301, %334 : vector<1x8xf32>
    %336 = arith.mulf %327, %335 : vector<1x8xf32>
    %337 = arith.subf %302, %336 : vector<1x8xf32>
    %cst_147 = arith.constant dense<0.000000e+00> : vector<1x256xf32>
    %338 = tpu.matmul %335, %318, %cst_147 {dimension_numbers = #tpu.dot_dimension_numbers<[1], [0], [0], [1], [0, 0, 1, 1], [], []>} : vector<1x8xf32>, vector<8x256xf32>, vector<1x256xf32> -> vector<1x256xf32>
    %cst_148 = arith.constant dense<0.000000e+00> : vector<1x256xf32>
    %339 = tpu.matmul %337, %318, %cst_148 {dimension_numbers = #tpu.dot_dimension_numbers<[1], [0], [0], [1], [0, 0, 1, 1], [], []>} : vector<1x8xf32>, vector<8x256xf32>, vector<1x256xf32> -> vector<1x256xf32>
    %340 = vector.broadcast %338 : vector<1x256xf32> to vector<64x256xf32>
    %341 = arith.mulf %300, %340 : vector<64x256xf32>
    %342 = vector.broadcast %339 : vector<1x256xf32> to vector<64x256xf32>
    %343 = arith.addf %341, %342 : vector<64x256xf32>
    %cst_149 = arith.constant 0.000000e+00 : f32
    %344 = vector.broadcast %cst_149 : f32 to vector<64x256xf32>
    %345 = arith.maximumf %343, %344 : vector<64x256xf32>
    %c0_150 = arith.constant 0 : index
    %c0_151 = arith.constant 0 : index
    %346 = vector.load %arg5[%c0_150, %c0_151] : memref<256x1024xbf16, #tpu.memory_space<vmem>>, vector<256x1024xbf16>
    %347 = arith.truncf %345 : vector<64x256xf32> to vector<64x256xbf16>
    %cst_152 = arith.constant dense<0.000000e+00> : vector<64x1024xf32>
    %348 = tpu.matmul %347, %346, %cst_152 {dimension_numbers = #tpu.dot_dimension_numbers<[1], [0], [0], [1], [0, 0, 1, 1], [], []>} : vector<64x256xbf16>, vector<256x1024xbf16>, vector<64x1024xf32> -> vector<64x1024xf32>
    %349 = tpu.iota {dimensions = array<i32: 0>} : vector<128x64xi32>
    %350 = tpu.iota {dimensions = array<i32: 1>} : vector<128x64xi32>
    %c31_i32_153 = arith.constant 31 : i32
    %351 = vector.broadcast %c31_i32_153 : i32 to vector<128x64xi32>
    %352 = arith.andi %350, %351 : vector<128x64xi32>
    %c2_i32_154 = arith.constant 2 : i32
    %353 = vector.broadcast %c2_i32_154 : i32 to vector<128x64xi32>
    %354 = arith.muli %353, %350 : vector<128x64xi32>
    %c1_i32_155 = arith.constant 1 : i32
    %355 = vector.broadcast %c1_i32_155 : i32 to vector<128x64xi32>
    %356 = arith.subi %354, %355 : vector<128x64xi32>
    %357 = arith.cmpi eq, %349, %356 : vector<128x64xi32>
    %c0_i32_156 = arith.constant 0 : i32
    %358 = vector.broadcast %c0_i32_156 : i32 to vector<128x64xi32>
    %359 = arith.cmpi ne, %352, %358 : vector<128x64xi32>
    %360 = arith.andi %357, %359 : vector<128x64xi1>
    %cst_157 = arith.constant 1.000000e+00 : f32
    %cst_158 = arith.constant 0.000000e+00 : f32
    %361 = vector.broadcast %cst_157 : f32 to vector<128x64xf32>
    %362 = vector.broadcast %cst_158 : f32 to vector<128x64xf32>
    %363 = arith.select %360, %361, %362 : vector<128x64xi1>, vector<128x64xf32>
    %c2_i32_159 = arith.constant 2 : i32
    %364 = vector.broadcast %c2_i32_159 : i32 to vector<128x64xi32>
    %365 = arith.muli %364, %350 : vector<128x64xi32>
    %366 = arith.cmpi eq, %349, %365 : vector<128x64xi32>
    %cst_160 = arith.constant 1.000000e+00 : f32
    %cst_161 = arith.constant 0.000000e+00 : f32
    %367 = vector.broadcast %cst_160 : f32 to vector<128x64xf32>
    %368 = vector.broadcast %cst_161 : f32 to vector<128x64xf32>
    %369 = arith.select %366, %367, %368 : vector<128x64xi1>, vector<128x64xf32>
    %c2_i32_162 = arith.constant 2 : i32
    %370 = vector.broadcast %c2_i32_162 : i32 to vector<128x64xi32>
    %371 = arith.muli %370, %350 : vector<128x64xi32>
    %c1_i32_163 = arith.constant 1 : i32
    %372 = vector.broadcast %c1_i32_163 : i32 to vector<128x64xi32>
    %373 = arith.addi %371, %372 : vector<128x64xi32>
    %374 = arith.cmpi eq, %349, %373 : vector<128x64xi32>
    %cst_164 = arith.constant 1.000000e+00 : f32
    %cst_165 = arith.constant 0.000000e+00 : f32
    %375 = vector.broadcast %cst_164 : f32 to vector<128x64xf32>
    %376 = vector.broadcast %cst_165 : f32 to vector<128x64xf32>
    %377 = arith.select %374, %375, %376 : vector<128x64xi1>, vector<128x64xf32>
    %c2_i32_166 = arith.constant 2 : i32
    %378 = vector.broadcast %c2_i32_166 : i32 to vector<128x64xi32>
    %379 = arith.muli %378, %350 : vector<128x64xi32>
    %c2_i32_167 = arith.constant 2 : i32
    %380 = vector.broadcast %c2_i32_167 : i32 to vector<128x64xi32>
    %381 = arith.addi %379, %380 : vector<128x64xi32>
    %382 = arith.cmpi eq, %349, %381 : vector<128x64xi32>
    %c31_i32_168 = arith.constant 31 : i32
    %383 = vector.broadcast %c31_i32_168 : i32 to vector<128x64xi32>
    %384 = arith.cmpi ne, %352, %383 : vector<128x64xi32>
    %385 = arith.andi %382, %384 : vector<128x64xi1>
    %cst_169 = arith.constant 1.000000e+00 : f32
    %cst_170 = arith.constant 0.000000e+00 : f32
    %386 = vector.broadcast %cst_169 : f32 to vector<128x64xf32>
    %387 = vector.broadcast %cst_170 : f32 to vector<128x64xf32>
    %388 = arith.select %385, %386, %387 : vector<128x64xi1>, vector<128x64xf32>
    %389 = vector.extract_strided_slice %348 {offsets = [0, 256], sizes = [64, 256], strides = [1, 1]} : vector<64x1024xf32> to vector<64x256xf32>
    %cst_171 = arith.constant dense<0.000000e+00> : vector<128x256xf32>
    %390 = tpu.matmul %369, %389, %cst_171 {dimension_numbers = #tpu.dot_dimension_numbers<[1], [0], [0], [1], [0, 0, 1, 1], [], []>} : vector<128x64xf32>, vector<64x256xf32>, vector<128x256xf32> -> vector<128x256xf32>
    %391 = vector.extract_strided_slice %348 {offsets = [0, 512], sizes = [64, 256], strides = [1, 1]} : vector<64x1024xf32> to vector<64x256xf32>
    %cst_172 = arith.constant dense<0.000000e+00> : vector<128x256xf32>
    %392 = tpu.matmul %377, %391, %cst_172 {dimension_numbers = #tpu.dot_dimension_numbers<[1], [0], [0], [1], [0, 0, 1, 1], [], []>} : vector<128x64xf32>, vector<64x256xf32>, vector<128x256xf32> -> vector<128x256xf32>
    %393 = arith.addf %390, %392 : vector<128x256xf32>
    %394 = vector.extract_strided_slice %348 {offsets = [0, 0], sizes = [64, 256], strides = [1, 1]} : vector<64x1024xf32> to vector<64x256xf32>
    %cst_173 = arith.constant dense<0.000000e+00> : vector<128x256xf32>
    %395 = tpu.matmul %363, %394, %cst_173 {dimension_numbers = #tpu.dot_dimension_numbers<[1], [0], [0], [1], [0, 0, 1, 1], [], []>} : vector<128x64xf32>, vector<64x256xf32>, vector<128x256xf32> -> vector<128x256xf32>
    %396 = arith.addf %393, %395 : vector<128x256xf32>
    %397 = vector.extract_strided_slice %348 {offsets = [0, 768], sizes = [64, 256], strides = [1, 1]} : vector<64x1024xf32> to vector<64x256xf32>
    %cst_174 = arith.constant dense<0.000000e+00> : vector<128x256xf32>
    %398 = tpu.matmul %388, %397, %cst_174 {dimension_numbers = #tpu.dot_dimension_numbers<[1], [0], [0], [1], [0, 0, 1, 1], [], []>} : vector<128x64xf32>, vector<64x256xf32>, vector<128x256xf32> -> vector<128x256xf32>
    %399 = arith.addf %396, %398 : vector<128x256xf32>
    %400 = math.tanh %399 : vector<128x256xf32>
    %c0_175 = arith.constant 0 : index
    %c0_176 = arith.constant 0 : index
    %401 = vector.load %arg14[%c0_175, %c0_176] : memref<128x256xf32, #tpu.memory_space<vmem>>, vector<128x256xf32>
    tpu.vector_store %arg14[%c0_175, %c0_176], %400 {strides = array<i32>} : memref<128x256xf32, #tpu.memory_space<vmem>>, vector<128x256xf32>,
    return
  }
}

</mosaic_0001>

<bundles_post_ra>
// kernel: generator_forward.1
= control target key start
LH: loop header
LB: loop body
LE: loop exit
PB: predicated region body
PF: predicated region fallthrough
CT: control target
= control target key end

     0   :  { %19 = vsyncpa [#allocation3], 0  ;;  %s14380_s0 = inlined_call_operand.vmem [shape: f32[8,64], index: 0, kind: input, shape index: {}]   ;;  %s14381_s1 = inlined_call_operand.vmem [shape: bf16[64,256], index: 1, kind: input, shape index: {}]   ;;  %s14382_s2 = inlined_call_operand.hbm [shape: bf16[256,1024], index: 2, kind: input, shape index: {}]   ;;  %s14383_s3 = inlined_call_operand.hbm [shape: bf16[256,1024], index: 3, kind: input, shape index: {}]   ;;  %s14384_s4 = inlined_call_operand.hbm [shape: bf16[256,1024], index: 4, kind: input, shape index: {}]   ;;  %s14385_s5 = inlined_call_operand.hbm [shape: bf16[256,1024], index: 5, kind: input, shape index: {}]   ;;  %s14386_s6 = inlined_call_operand.vmem [shape: f32[1,64], index: 6, kind: input, shape index: {}]   ;;  %s14387_s7 = inlined_call_operand.vmem [shape: f32[1,64], index: 7, kind: input, shape index: {}]   ;;  %s14388_s8 = inlined_call_operand.vmem [shape: f32[1,32], index: 8, kind: input, shape index: {}]   ;;  %s14389_s9 = inlined_call_operand.vmem [shape: f32[1,32], index: 9, kind: input, shape index: {}]   ;;  %s14390_s10 = inlined_call_operand.vmem [shape: f32[1,16], index: 10, kind: input, shape index: {}]   ;;  %s14391_s11 = inlined_call_operand.vmem [shape: f32[1,16], index: 11, kind: input, shape index: {}]   ;;  %s14392_s12 = inlined_call_operand.vmem [shape: f32[1,8], index: 12, kind: input, shape index: {}]   ;;  %s14393_s13 = inlined_call_operand.vmem [shape: f32[1,8], index: 13, kind: input, shape index: {}]   ;;  %s14394_s14 = inlined_call_operand.vmem [shape: f32[128,256], index: 14, kind: output, shape index: {}]  }
   0x1   :  { %20 = vsyncpa [#allocation5], 0 }
   0x2   :  { %21 = vsyncpa [#allocation8], 0  ;;  %s43_s15 = sshll.u32 %s14383_s3, 4  ;;  %s11363_s16 = smov [#allocation4]   ;;  %s44_s15 = int_to_ptr.hbm [resolvable:$true] %s43_s15 }
   0x3   :  { %s45_s17 = sshll.u32 %s11363_s16, 4  ;;  %s30_s20 = sshll.u32 %s14382_s2, 4  ;;  %s46_s17 = int_to_ptr.vmem [resolvable:$true] %s45_s17  ;;  %s31_s20 = int_to_ptr.hbm [resolvable:$true] %s30_s20 }
   0x4   :  { %s11364_s21 = smov 512   ;;  %s11365_s22 = smov 32  }
   0x5   :  { %51 = dma.hbm_to_vmem [thread:$0]  %s44_s15, 16384, %s46_s17, [#allocation5], %s11364_s21, %s11364_s21, %s11365_s22  }
   0x6   :  { %s11366_s23 = smov [#allocation2]   ;;  %s56_s27 = sshll.u32 %s14384_s4, 4  ;;  %s57_s27 = int_to_ptr.hbm [resolvable:$true] %s56_s27 }
   0x7   :  { %s32_s24 = sshll.u32 %s11366_s23, 4  ;;  %s69_s29 = sshll.u32 %s14385_s5, 4  ;;  %s33_s24 = int_to_ptr.vmem [resolvable:$true] %s32_s24  ;;  %s70_s29 = int_to_ptr.hbm [resolvable:$true] %s69_s29 }
   0x8   :  { %38 = dma.hbm_to_vmem [thread:$0]  %s31_s20, 16384, %s33_s24, [#allocation3], %s11364_s21, %s11364_s21, %s11365_s22  }
   0x9   :  { %s11367_s30 = smov [#allocation6]   ;;  %s11368_s2 = smov [#allocation7]  }
   0xa   :  { %s58_s16 = sshll.u32 %s11367_s30, 4  ;;  %s71_s15 = sshll.u32 %s11368_s2, 4  ;;  %s59_s16 = int_to_ptr.vmem [resolvable:$true] %s58_s16  ;;  %s72_s15 = int_to_ptr.vmem [resolvable:$true] %s71_s15 }
   0xb   :  { %64 = dma.hbm_to_vmem [thread:$0]  %s57_s27, 16384, %s59_s16, [#allocation5], %s11364_s21, %s11364_s21, %s11365_s22  }
   0xc   :  { %77 = dma.hbm_to_vmem [thread:$0]  %s70_s29, 16384, %s72_s15, [#allocation8], %s11364_s21, %s11364_s21, %s11365_s22  }
   0xd   :  { %11357 = dma.done.wait [#allocation3], 16384  }
   0xe   :  { %11358 = vsyncadd [#allocation3], 4294950912 }
   0xf   :  { %11359 = dma.done.wait [#allocation5], 32768  }
  0x10   :  { %11360 = vsyncadd [#allocation5], 4294934528 }
  0x11   :  { %11361 = dma.done.wait [#allocation8], 16384  }
  0x12   :  { %11362 = vsyncadd [#allocation8], 4294950912  ;;  %v193_v0 = vlaneseq  ;;  %v8032_v15 = vld [vmem:[%s14381_s1 + $0x30] sm:$0xf]  ;;  %v10668_v16 = vld [vmem:[%s14381_s1 + $0x34] sm:$0xf0] }
  0x13   :  { %v10667_v17 = vld [vmem:[%s14381_s1 + $0x34] sm:$0xf]  ;;  %v8033_v18 = vor.u32 %v10668_v16, %v8032_v15  ;;  %v8034_v19 = vld [vmem:[%s14381_s1 + $0x38] sm:$0xf0]  ;;  %v8024_v20 = vld [vmem:[%s14381_s1 + $0x20] sm:$0xf] }
  0x14   :  { %v11458_v1 = vshrl.u32 %v193_v0, 7  ;;  %v11460_v2 = vand.u32 127, %v193_v0  ;;  %v10666_v21 = vld [vmem:[%s14381_s1 + $0x24] sm:$0xf0]  ;;  %v8037_v25 = vor.u32 %v10667_v17, %v8034_v19  ;;  %v10665_v26 = vld [vmem:[%s14381_s1 + $0x24] sm:$0xf] }
  0x15   :  { %v8026_v27 = vld [vmem:[%s14381_s1 + $0x28] sm:$0xf0]  ;;  %v8016_v28 = vld [vmem:[%s14381_s1 + $0x10] sm:$0xf]  ;;  %v14396_v29 = vmov 1.0   ;;  %169 = vmatpush.bf16.msra.mxu0 %v8033_v18  ;;  %v8025_v31 = vor.u32 %v10666_v21, %v8024_v20  ;;  %v111_v0 = vld [vmem:[%s14380_s0] sm:$0xff] }
  0x16   :  { %14506 = vst [vmem:[#allocation12_spill] sm:$0xff] %v11458_v1  ;;  %v11463_v3 = vadd.s32 120, %v11458_v1  ;;  %v11466_v4 = vadd.s32 248, %v11458_v1  ;;  %v11469_v5 = vadd.s32 112, %v11458_v1  ;;  %v11472_v6 = vadd.s32 240, %v11458_v1  ;;  %182 = vmatpush.bf16.msra.mxu1 %v8037_v25 }
  0x17   :  { %14507 = vst [vmem:[#allocation13_spill] sm:$0xff] %v11460_v2  ;;  %v11475_v7 = vadd.s32 104, %v11458_v1  ;;  %v11478_v8 = vadd.s32 232, %v11458_v1  ;;  %v11481_v9 = vadd.s32 96, %v11458_v1  ;;  %v11484_v10 = vadd.s32 224, %v11458_v1 }
  0x18   :  { %14508 = vst [vmem:[#allocation14_spill] sm:$0xff] %v11463_v3  ;;  %v243_v11 = vand.u32 63, %v11463_v3  ;;  %v259_v12 = vand.u32 63, %v11466_v4  ;;  %v242_v13 = vand.u32 63, %v11469_v5  ;;  %v258_v14 = vand.u32 63, %v11472_v6 }
  0x19   :  { %14509 = vst [vmem:[#allocation15_spill] sm:$0xff] %v11466_v4  ;;  %v10664_v32 = vld [vmem:[%s14381_s1 + $0x14] sm:$0xf0]  ;;  %v10663_v33 = vld [vmem:[%s14381_s1 + $0x14] sm:$0xf]  ;;  %v8029_v35 = vor.u32 %v10665_v26, %v8026_v27  ;;  %v241_v36 = vand.u32 63, %v11475_v7  ;;  %170 = vmatpush.bf16.msra.mxu0 %v8025_v31  ;;  %v112_v20 = vpack.c.bf16 %v111_v0, %v111_v0 }
  0x1a   :  { %14510 = vst [vmem:[#allocation16_spill] sm:$0xff] %v11469_v5  ;;  %vm11509_vm0 = vcmp.eq.s32.totalorder %v243_v11, %v11460_v2  ;;  %vm11514_vm1 = vcmp.eq.s32.totalorder %v259_v12, %v11460_v2  ;;  %vm11519_vm2 = vcmp.eq.s32.totalorder %v242_v13, %v11460_v2  ;;  %vm11539_vm3 = vcmp.eq.s32.totalorder %v258_v14, %v11460_v2  ;;  %v8018_v34 = vld [vmem:[%s14381_s1 + $0x18] sm:$0xf0]  ;;  %v8008_v43 = vld [vmem:[%s14381_s1] sm:$0xf] }
  0x1b   :  { %14511 = vst [vmem:[#allocation17_spill] sm:$0xff] %v11472_v6  ;;  %8040 = vmatpush.msk.msra.mxu2 %vm11509_vm0, %v14396_v29  ;;  %8056 = vmatpush.msk.msra.mxu3 %vm11514_vm1, %v14396_v29  ;;  %v257_v37 = vand.u32 63, %v11478_v8  ;;  %v240_v38 = vand.u32 63, %v11481_v9  ;;  %v8017_v39 = vor.u32 %v10664_v32, %v8016_v28  ;;  %v8021_v40 = vor.u32 %v10663_v33, %v8018_v34  ;;  %v10662_v44 = vld [vmem:[%s14381_s1 + $0x4] sm:$0xf0] }
  0x1c   :  { %14512 = vst [vmem:[#allocation18_spill] sm:$0xff] %v11475_v7  ;;  %v256_v41 = vand.u32 63, %v11484_v10  ;;  %v11563_v42 = vadd.s32 88, %v11458_v1  ;;  %vm11572_vm4 = vcmp.eq.s32.totalorder %v241_v36, %v11460_v2  ;;  %v11587_v48 = vadd.s32 216, %v11458_v1  ;;  %183 = vmatpush.bf16.msra.mxu1 %v8029_v35  ;;  %v10661_v49 = vld [vmem:[%s14381_s1 + $0x4] sm:$0xf] }
  0x1d   :  { %14513 = vst [vmem:[#allocation19_spill] sm:$0xff] %v11478_v8  ;;  %8041 = vmatpush.msk.msra.mxu2 %vm11519_vm2, %v14396_v29  ;;  %8057 = vmatpush.msk.msra.mxu3 %vm11539_vm3, %v14396_v29  ;;  %vm11577_vm5 = vcmp.eq.s32.totalorder %v257_v37, %v11460_v2  ;;  %vm11582_vm6 = vcmp.eq.s32.totalorder %v240_v38, %v11460_v2  ;;  %v11602_v52 = vadd.s32 80, %v11458_v1  ;;  %v11605_v53 = vadd.s32 208, %v11458_v1  ;;  %v8010_v54 = vld [vmem:[%s14381_s1 + $0x8] sm:$0xf0] }
  0x1e   :  { %14514 = vst [vmem:[#allocation20_spill] sm:$0xff] %v11481_v9  ;;  %vm11596_vm7 = vcmp.eq.s32.totalorder %v256_v41, %v11460_v2  ;;  %v239_v51 = vand.u32 63, %v11563_v42  ;;  %v255_v55 = vand.u32 63, %v11587_v48  ;;  %v11615_v56 = vadd.s32 72, %v11458_v1  ;;  %171 = vmatpush.bf16.msra.mxu0 %v8017_v39 }
  0x1f   :  { %14515 = vst [vmem:[#allocation21_spill] sm:$0xff] %v11484_v10  ;;  %8042 = vmatpush.msk.msra.mxu2 %vm11572_vm4, %v14396_v29  ;;  %8058 = vmatpush.msk.msra.mxu3 %vm11577_vm5, %v14396_v29  ;;  %v11618_v57 = vadd.s32 200, %v11458_v1  ;;  %v11621_v58 = vadd.s32 64, %v11458_v1  ;;  %v238_v60 = vand.u32 63, %v11602_v52  ;;  %v254_v61 = vand.u32 63, %v11605_v53 }
  0x20   :  { %14524 = vst [vmem:[#allocation22_spill] sm:$0xff] %v11563_v42  ;;  %vm11627_vm8 = vcmp.eq.s32.totalorder %v239_v51, %v11460_v2  ;;  %v11634_v62 = vadd.s32 192, %v11458_v1  ;;  %v8009_v63 = vor.u32 %v10662_v44, %v8008_v43  ;;  %vm11643_vm9 = vcmp.eq.s32.totalorder %v255_v55, %v11460_v2  ;;  %184 = vmatpush.bf16.msra.mxu1 %v8021_v40 }
  0x21   :  { %14531 = vst [vmem:[#allocation23_spill] sm:$0xff] %v11587_v48  ;;  %8043 = vmatpush.msk.msra.mxu2 %vm11582_vm6, %v14396_v29  ;;  %8059 = vmatpush.msk.msra.mxu3 %vm11596_vm7, %v14396_v29  ;;  %v237_v12 = vand.u32 63, %v11615_v56  ;;  %v253_v13 = vand.u32 63, %v11618_v57  ;;  %v8013_v14 = vor.u32 %v10661_v49, %v8010_v54  ;;  %vm11653_vm10 = vcmp.eq.s32.totalorder %v238_v60, %v11460_v2 }
  0x22   :  { %14534 = vst [vmem:[#allocation24_spill] sm:$0xff] %v11602_v52  ;;  %vm11658_vm11 = vcmp.eq.s32.totalorder %v254_v61, %v11460_v2  ;;  %v11663_v17 = vadd.s32 56, %v11458_v1  ;;  %v236_v18 = vand.u32 63, %v11621_v58  ;;  %v11670_v19 = vadd.s32 184, %v11458_v1  ;;  %172 = vmatpush.bf16.msra.mxu0 %v8009_v63 }
  0x23   :  { %14535 = vst [vmem:[#allocation25_spill] sm:$0xff] %v11605_v53  ;;  %8044 = vmatpush.msk.msra.mxu2 %vm11627_vm8, %v14396_v29  ;;  %8060 = vmatpush.msk.msra.mxu3 %vm11643_vm9, %v14396_v29  ;;  %vm11676_vm12 = vcmp.eq.s32.totalorder %v237_v12, %v11460_v2  ;;  %v252_v25 = vand.u32 63, %v11634_v62  ;;  %vm14434_vm13 = vcmask 523264   ;;  %vm11685_vm14 = vcmp.eq.s32.totalorder %v253_v13, %v11460_v2 }
  0x24   :  { %14536 = vst [vmem:[#allocation26_spill] sm:$0xff] %v11615_v56  ;;  %v14552_v26 = vmov 0  ;;  %v235_v27 = vand.u32 63, %v11663_v17  ;;  %185 = vmatpush.bf16.msra.mxu1 %v8013_v14  ;;  %v251_v28 = vand.u32 63, %v11670_v19  ;;  %vm11701_vm15 = vcmp.eq.s32.totalorder %v236_v18, %v11460_v2 }
  0x25   :  { %14537 = vst [vmem:[#allocation27_spill] sm:$0xff] %v11618_v57  ;;  %8045 = vmatpush.msk.msra.mxu2 %vm11653_vm10, %v14396_v29  ;;  %8061 = vmatpush.msk.msra.mxu3 %vm11658_vm11, %v14396_v29  ;;  %v14553_v26 = vsel %vm11685_vm14, 4294967295, %v14552_v26  ;;  %v11786_v24 = vadd.s32 48, %v11458_v1  ;;  %v11789_v30 = vadd.s32 176, %v11458_v1  ;;  %v11794_v35 = vadd.s32 40, %v11458_v1 }
  0x26   :  { %14538 = vst [vmem:[#allocation28_spill] sm:$0xff] %v11621_v58  ;;  %8072 = vmatpush.msk.msrb.mxu0 %vm11509_vm0, %v14396_v29  ;;  %vm11710_vm0 = vcmp.eq.s32.totalorder %v252_v25, %v11460_v2  ;;  %v11797_v36 = vadd.s32 168, %v11458_v1  ;;  %v11806_v39 = vadd.s32 32, %v11458_v1  ;;  %v11809_v40 = vadd.s32 160, %v11458_v1 }
  0x27   :  { %14541 = vst [vmem:[#allocation29_spill] sm:$0xff] %v11634_v62  ;;  %8046 = vmatpush.msk.msra.mxu2 %vm11676_vm12, %v14396_v29  ;;  %8038 = vmatmul.msk.bf16.vlgmr.msra.gmra.mxu0 %vm14434_vm13, %v112_v20  ;;  %v234_v33 = vand.u32 63, %v11786_v24  ;;  %v250_v34 = vand.u32 63, %v11789_v30  ;;  %v233_v37 = vand.u32 63, %v11794_v35  ;;  %v11816_v41 = vadd.s32 24, %v11458_v1 }
  0x28   :  { %14548 = vst [vmem:[#allocation30_spill] sm:$0xff] %v11663_v17  ;;  %8088 = vmatpush.msk.msrb.mxu1 %vm11514_vm1, %v14396_v29  ;;  %8062 = vmatpush.msk.msra.mxu3 %vm11685_vm14, %v14396_v29  ;;  %vm11719_vm1 = vcmp.eq.s32.totalorder %v235_v27, %v11460_v2  ;;  %vm11730_vm14 = vcmp.eq.s32.totalorder %v251_v28, %v11460_v2  ;;  %v249_v38 = vand.u32 63, %v11797_v36  ;;  %v11819_v43 = vadd.s32 152, %v11458_v1 }
  0x29   :  { %14549 = vst [vmem:[#allocation31_spill] sm:$0xff] %v11670_v19  ;;  %8039 = vmatmul.msk.bf16.vlgmr.msra.gmra.mxu1 %vm14434_vm13, %v112_v20  ;;  %8073 = vmatpush.msk.msrb.mxu0 %vm11519_vm2, %v14396_v29  ;;  %vm14562_vm2 = vnez %v14553_v26  ;;  %v232_v44 = vand.u32 63, %v11806_v39  ;;  %v248_v45 = vand.u32 63, %v11809_v40  ;;  %v231_v46 = vand.u32 63, %v11816_v41 }
  0x2a   :  { %8089 = vmatpush.msk.msrb.mxu1 %vm11539_vm3, %v14396_v29  ;;  %8047 = vmatpush.msk.msra.mxu2 %vm11701_vm15, %v14396_v29  ;;  %14563 = vst [vmem:[#allocation32_spill] sm:$0xff] %v11786_v24  ;;  %vm266_vm3 = vcmp.eq.s32.totalorder %v234_v33, %v11460_v2  ;;  %v247_v47 = vand.u32 63, %v11819_v43  ;;  %v11830_v49 = vadd.s32 16, %v11458_v1  ;;  %v11833_v50 = vadd.s32 144, %v11458_v1 }
  0x2b   :  { %8074 = vmatpush.msk.msrb.mxu0 %vm11572_vm4, %v14396_v29  ;;  %8063 = vmatpush.msk.msra.mxu3 %vm11710_vm0, %v14396_v29  ;;  %14564 = vst [vmem:[#allocation33_spill] sm:$0xff] %v11789_v30  ;;  %vm282_vm4 = vcmp.eq.s32.totalorder %v250_v34, %v11460_v2  ;;  %v11846_v55 = vadd.s32 8, %v11458_v1  ;;  %v11849_v59 = vadd.s32 136, %v11458_v1  ;;  %v11856_v60 = vadd.s32 128, %v11458_v1 }
  0x2c   :  { %8090 = vmatpush.msk.msrb.mxu1 %vm11577_vm5, %v14396_v29  ;;  %8048 = vmatpush.msk.msra.mxu2 %vm11719_vm1, %v14396_v29  ;;  %14565 = vst [vmem:[#allocation34_spill] sm:$0xff] %v11794_v35  ;;  %vm265_vm5 = vcmp.eq.s32.totalorder %v233_v37, %v11460_v2  ;;  %v230_v51 = vand.u32 63, %v11830_v49  ;;  %v246_v54 = vand.u32 63, %v11833_v50  ;;  %v228_v0 = vand.u32 63, %v11458_v1 }
  0x2d   :  { %8075 = vmatpush.msk.msrb.mxu0 %vm11582_vm6, %v14396_v29  ;;  %8064 = vmatpush.msk.msra.mxu3 %vm11730_vm14, %v14396_v29  ;;  %14566 = vst [vmem:[#allocation35_spill] sm:$0xff] %v11797_v36  ;;  %vm281_vm6 = vcmp.eq.s32.totalorder %v249_v38, %v11460_v2  ;;  %v229_v61 = vand.u32 63, %v11846_v55  ;;  %v245_v63 = vand.u32 63, %v11849_v59  ;;  %v244_v11 = vand.u32 63, %v11856_v60 }
  0x2e   :  { %8091 = vmatpush.msk.msrb.mxu1 %vm11596_vm7, %v14396_v29  ;;  %8049 = vmatpush.msk.msra.mxu2 %vm266_vm3, %v14396_v29  ;;  %14567 = vst [vmem:[#allocation36_spill] sm:$0xff] %v11806_v39  ;;  %vm264_vm7 = vcmp.eq.s32.totalorder %v232_v44, %v11460_v2 }
  0x2f   :  { %8076 = vmatpush.msk.msrb.mxu0 %vm11627_vm8, %v14396_v29  ;;  %8065 = vmatpush.msk.msra.mxu3 %vm282_vm4, %v14396_v29  ;;  %14568 = vst [vmem:[#allocation37_spill] sm:$0xff] %v11809_v40  ;;  %vm280_vm8 = vcmp.eq.s32.totalorder %v248_v45, %v11460_v2 }
  0x30   :  { %8092 = vmatpush.msk.msrb.mxu1 %vm11643_vm9, %v14396_v29  ;;  %14569 = vst [vmem:[#allocation38_spill] sm:$0xff] %v11816_v41  ;;  %8050 = vmatpush.msk.msra.mxu2 %vm265_vm5, %v14396_v29  ;;  %vm263_vm9 = vcmp.eq.s32.totalorder %v231_v46, %v11460_v2 }
  0x31   :  { %8077 = vmatpush.msk.msrb.mxu0 %vm11653_vm10, %v14396_v29  ;;  %14570 = vst [vmem:[#allocation39_spill] sm:$0xff] %v11819_v43  ;;  %8066 = vmatpush.msk.msra.mxu3 %vm281_vm6, %v14396_v29  ;;  %vm279_vm10 = vcmp.eq.s32.totalorder %v247_v47, %v11460_v2 }
  0x32   :  { %8093 = vmatpush.msk.msrb.mxu1 %vm11658_vm11, %v14396_v29  ;;  %14571 = vst [vmem:[#allocation40_spill] sm:$0xff] %v11830_v49  ;;  %8051 = vmatpush.msk.msra.mxu2 %vm264_vm7, %v14396_v29  ;;  %vm262_vm11 = vcmp.eq.s32.totalorder %v230_v51, %v11460_v2 }
  0x33   :  { %8078 = vmatpush.msk.msrb.mxu0 %vm11676_vm12, %v14396_v29  ;;  %14572 = vst [vmem:[#allocation41_spill] sm:$0xff] %v11833_v50  ;;  %8067 = vmatpush.msk.msra.mxu3 %vm280_vm8, %v14396_v29  ;;  %vm278_vm12 = vcmp.eq.s32.totalorder %v246_v54, %v11460_v2 }
  0x34   :  { %8094 = vmatpush.msk.msrb.mxu1 %vm14562_vm2, %v14396_v29  ;;  %14573 = vst [vmem:[#allocation42_spill] sm:$0xff] %v11846_v55  ;;  %8052 = vmatpush.msk.msra.mxu2 %vm263_vm9, %v14396_v29 }
  0x35   :  { %8079 = vmatpush.msk.msrb.mxu0 %vm11701_vm15, %v14396_v29  ;;  %14574 = vst [vmem:[#allocation43_spill] sm:$0xff] %v11849_v59  ;;  %8068 = vmatpush.msk.msra.mxu3 %vm279_vm10, %v14396_v29  ;;  %vm277_vm15 = vcmp.eq.s32.totalorder %v245_v63, %v11460_v2  ;;  %v10720_v59 = vld [vmem:[#allocation2 + $0x19c] sm:$0xf] }
  0x36   :  { %8095 = vmatpush.msk.msrb.mxu1 %vm11710_vm0, %v14396_v29  ;;  %14575 = vst [vmem:[#allocation44_spill] sm:$0xff] %v11856_v60  ;;  %8053 = vmatpush.msk.msra.mxu2 %vm262_vm11, %v14396_v29  ;;  %vm260_vm0 = vcmp.eq.s32.totalorder %v228_v0, %v11460_v2 }
  0x37   :  { %8080 = vmatpush.msk.msrb.mxu0 %vm11719_vm1, %v14396_v29  ;;  %8069 = vmatpush.msk.msra.mxu3 %vm278_vm12, %v14396_v29  ;;  %vm276_vm1 = vcmp.eq.s32.totalorder %v244_v11, %v11460_v2 }
  0x38   :  { %8096 = vmatpush.msk.msrb.mxu1 %vm11730_vm14, %v14396_v29  ;;  %vm261_vm14 = vcmp.eq.s32.totalorder %v229_v61, %v11460_v2 }
  0x39   :  { %8081 = vmatpush.msk.msrb.mxu0 %vm266_vm3, %v14396_v29  ;;  %8054 = vmatpush.msk.msra.mxu2 %vm261_vm14, %v14396_v29 }
  0x3a   :  { %8097 = vmatpush.msk.msrb.mxu1 %vm282_vm4, %v14396_v29  ;;  %8070 = vmatpush.msk.msra.mxu3 %vm277_vm15, %v14396_v29 }
  0x3b   :  { %8082 = vmatpush.msk.msrb.mxu0 %vm265_vm5, %v14396_v29  ;;  %8055 = vmatpush.msk.msra.mxu2 %vm260_vm0, %v14396_v29 }
  0x3c   :  { %8098 = vmatpush.msk.msrb.mxu1 %vm281_vm6, %v14396_v29  ;;  %8071 = vmatpush.msk.msra.mxu3 %vm276_vm1, %v14396_v29 }
  0x3d   :  { %8083 = vmatpush.msk.msrb.mxu0 %vm264_vm7, %v14396_v29 }
  0x3e   :  { %8099 = vmatpush.msk.msrb.mxu1 %vm280_vm8, %v14396_v29 }
  0x3f   :  { %8084 = vmatpush.msk.msrb.mxu0 %vm263_vm9, %v14396_v29 }
  0x40   :  { %8100 = vmatpush.msk.msrb.mxu1 %vm279_vm10, %v14396_v29 }
  0x41   :  { %8085 = vmatpush.msk.msrb.mxu0 %vm262_vm11, %v14396_v29 }
  0x42   :  { %8101 = vmatpush.msk.msrb.mxu1 %vm278_vm12, %v14396_v29 }
  0x43   :  { %8086 = vmatpush.msk.msrb.mxu0 %vm261_vm14, %v14396_v29 }
  0x44   :  { %8102 = vmatpush.msk.msrb.mxu1 %vm277_vm15, %v14396_v29 }
  0x45   :  { %8087 = vmatpush.msk.msrb.mxu0 %vm260_vm0, %v14396_v29 }
  0x46   :  { %8103 = vmatpush.msk.msrb.mxu1 %vm276_vm1, %v14396_v29 }
  0xa4   :  { %v11880_v12 = vpop.f32.mrf.mxu0 }
  0xa5   :  { %v371_v13 = vmul.f32 %v11880_v12, %v11880_v12  ;;  %v359_v15 = vrot.slane %v11880_v12, 4 }
  0xa6   :  { %v11884_v14 = vpop.f32.mrf.mxu1 }
  0xa7   :  { %v372_v16 = vmul.f32 %v11884_v14, %v11884_v14  ;;  %v365_v18 = vrot.slane %v11884_v14, 4  ;;  %v360_v20 = vadd.f32 %v359_v15, %v11880_v12  ;;  %v373_v21 = vrot.slane %v371_v13, 4 }
  0xa8   :  { %v325_v15 = vand.u32 63, %v11460_v2 }
  0xa9   :  { %v366_v25 = vadd.f32 %v365_v18, %v11884_v14  ;;  %v379_v26 = vrot.slane %v372_v16, 4  ;;  %v361_v27 = vrot.slane %v360_v20, 2  ;;  %v374_v28 = vadd.f32 %v373_v21, %v371_v13 }
  0xaa   :  { %v11893_v13 = vadd.s32 128, %v11460_v2  ;;  %vm341_vm2 = vcmp.eq.s32.totalorder %v325_v15, %v11663_v17  ;;  %vm339_vm4 = vcmp.eq.s32.totalorder %v325_v15, %v11786_v24  ;;  %vm337_vm6 = vcmp.eq.s32.totalorder %v325_v15, %v11794_v35 }
  0xab   :  { %v367_v31 = vrot.slane %v366_v25, 2  ;;  %v380_v22 = vadd.f32 %v379_v26, %v372_v16  ;;  %v362_v23 = vadd.f32 %v361_v27, %v360_v20  ;;  %v375_v32 = vrot.slane %v374_v28, 2  ;;  %8104 = vmatpush.msk.msrb.mxu2 %vm341_vm2, %v14396_v29  ;;  %8122 = vmatpush.msk.msra.mxu0 %vm341_vm2, %v14396_v29 }
  0xac   :  { %v176_v33 = vpop.f32.mrf.mxu0  ;;  %14576 = vst [vmem:[#allocation45_spill] sm:$0xff] %v11893_v13  ;;  %v326_v16 = vand.u32 63, %v11893_v13  ;;  %vm335_vm8 = vcmp.eq.s32.totalorder %v325_v15, %v11806_v39  ;;  %vm333_vm10 = vcmp.eq.s32.totalorder %v325_v15, %v11816_v41  ;;  %vm331_vm12 = vcmp.eq.s32.totalorder %v325_v15, %v11830_v49  ;;  %v8464_v13 = vld [vmem:[#allocation2 + $0x2a0] sm:$0xf0] }
  0xad   :  { %v368_v34 = vadd.f32 %v367_v31, %v366_v25  ;;  %v381_v37 = vrot.slane %v380_v22, 2  ;;  %v363_v44 = vrot.slane %v362_v23, 1  ;;  %v376_v45 = vadd.f32 %v375_v32, %v374_v28  ;;  %8105 = vmatpush.msk.msrb.mxu2 %vm339_vm4, %v14396_v29  ;;  %8123 = vmatpush.msk.msra.mxu0 %vm339_vm4, %v14396_v29  ;;  %v8622_v33 = vld [vmem:[#allocation2 + $0x3c0] sm:$0xf] }
  0xae   :  { %v189_v38 = vpop.f32.mrf.mxu1  ;;  %vm342_vm3 = vcmp.eq.s32.totalorder %v326_v16, %v11663_v17  ;;  %vm340_vm5 = vcmp.eq.s32.totalorder %v326_v16, %v11786_v24  ;;  %vm338_vm7 = vcmp.eq.s32.totalorder %v326_v16, %v11794_v35  ;;  %vm336_vm9 = vcmp.eq.s32.totalorder %v326_v16, %v11806_v39 }
  0xaf   :  { %v369_v46 = vrot.slane %v368_v34, 1  ;;  %v382_v47 = vadd.f32 %v381_v37, %v380_v22  ;;  %v364_v51 = vadd.f32 %v363_v44, %v362_v23  ;;  %v377_v54 = vrot.slane %v376_v45, 1  ;;  %8113 = vmatpush.msk.msrb.mxu3 %vm342_vm3, %v14396_v29  ;;  %8131 = vmatpush.msk.msra.mxu1 %vm342_vm3, %v14396_v29  ;;  %v8366_v22 = vld [vmem:[#allocation2 + $0x1c0] sm:$0xf]  ;;  %v10725_v37 = vld [vmem:[#allocation2 + $0x1c4] sm:$0xf] }
  0xb0   :  { %8106 = vmatpush.msk.msrb.mxu2 %vm337_vm6, %v14396_v29  ;;  %8124 = vmatpush.msk.msra.mxu0 %vm337_vm6, %v14396_v29  ;;  %vm334_vm11 = vcmp.eq.s32.totalorder %v326_v16, %v11816_v41  ;;  %vm332_vm14 = vcmp.eq.s32.totalorder %v326_v16, %v11830_v49  ;;  %vm329_vm15 = vcmp.eq.s32.totalorder %v325_v15, %v11846_v55  ;;  %v10729_v23 = vld [vmem:[#allocation2 + $0x1dc] sm:$0xf0] }
  0xb1   :  { %v370_v61 = vadd.f32 %v369_v46, %v368_v34  ;;  %v383_v63 = vrot.slane %v382_v47, 1  ;;  %401 = vmatmul.f32.vlgmr.msra.gmra.mxu2 %v364_v51  ;;  %v378_v0 = vadd.f32 %v377_v54, %v376_v45  ;;  %8114 = vmatpush.msk.msrb.mxu3 %vm340_vm5, %v14396_v29  ;;  %vm330_vm0 = vcmp.eq.s32.totalorder %v326_v16, %v11846_v55  ;;  %v10793_v34 = vld [vmem:[#allocation2 + $0x3dc] sm:$0xf0]  ;;  %v8368_v45 = vld [vmem:[#allocation2 + $0x1e0] sm:$0xf0] }
  0xb2   :  { %8132 = vmatpush.msk.msra.mxu1 %vm340_vm5, %v14396_v29  ;;  %8107 = vmatpush.msk.msrb.mxu2 %vm335_vm8, %v14396_v29  ;;  %vm327_vm1 = vcmp.eq.s32.totalorder %v325_v15, %v11458_v1  ;;  %vm328_vm2 = vcmp.eq.s32.totalorder %v326_v16, %v11458_v1  ;;  %v8367_v32 = vor.u32 %v10729_v23, %v8366_v22  ;;  %v10789_v46 = vld [vmem:[#allocation2 + $0x3c4] sm:$0xf]  ;;  %v10785_v16 = vld [vmem:[#allocation2 + $0x39c] sm:$0xf0] }
  0xb3   :  { %421 = vmatmul.f32.vlgmr.msra.gmra.mxu3 %v370_v61  ;;  %v384_v11 = vadd.f32 %v383_v63, %v382_v47  ;;  %441 = vmatmul.f32.vlgmr.msrb.gmra.mxu0 %v378_v0  ;;  %v8623_v44 = vor.u32 %v10793_v34, %v8622_v33  ;;  %v8624_v47 = vld [vmem:[#allocation2 + $0x3e0] sm:$0xf0]  ;;  %v8371_v51 = vor.u32 %v10725_v37, %v8368_v45  ;;  %v8334_v61 = vld [vmem:[#allocation2 + $0x180] sm:$0xf] }
  0xb4   :  { %8115 = vmatpush.msk.msrb.mxu3 %vm338_vm7, %v14396_v29  ;;  %8133 = vmatpush.msk.msra.mxu1 %vm338_vm7, %v14396_v29  ;;  %v8627_v54 = vor.u32 %v10789_v46, %v8624_v47  ;;  %v10721_v63 = vld [vmem:[#allocation2 + $0x19c] sm:$0xf0]  ;;  %v10773_v46 = vld [vmem:[#allocation2 + $0x344] sm:$0xf]  ;;  %vm14435_vm7 = vcmask 64512  }
  0xb5   :  { %461 = vmatmul.f32.vlgmr.msrb.gmra.mxu1 %v384_v11  ;;  %8125 = vmatpush.msk.msra.mxu0 %vm335_vm8, %v14396_v29  ;;  %v8590_v0 = vld [vmem:[#allocation2 + $0x380] sm:$0xf]  ;;  %v8335_v15 = vor.u32 %v10721_v63, %v8334_v61  ;;  %v8560_v47 = vld [vmem:[#allocation2 + $0x360] sm:$0xf0] }
  0xb6   :  { %8116 = vmatpush.msk.msrb.mxu3 %vm336_vm9, %v14396_v29  ;;  %8134 = vmatpush.msk.msra.mxu1 %vm336_vm9, %v14396_v29  ;;  %v8302_v22 = vld [vmem:[#allocation2 + $0x140] sm:$0xf]  ;;  %v8563_v61 = vor.u32 %v10773_v46, %v8560_v47  ;;  %v10757_v46 = vld [vmem:[#allocation2 + $0x2c4] sm:$0xf] }
  0xb7   :  { %8108 = vmatpush.msk.msrb.mxu2 %vm333_vm10, %v14396_v29  ;;  %8126 = vmatpush.msk.msra.mxu0 %vm333_vm10, %v14396_v29  ;;  %v10713_v33 = vld [vmem:[#allocation2 + $0x15c] sm:$0xf0]  ;;  %v8496_v47 = vld [vmem:[#allocation2 + $0x2e0] sm:$0xf0] }
  0xb8   :  { %8117 = vmatpush.msk.msrb.mxu3 %vm334_vm11, %v14396_v29  ;;  %8135 = vmatpush.msk.msra.mxu1 %vm334_vm11, %v14396_v29  ;;  %v8558_v34 = vld [vmem:[#allocation2 + $0x340] sm:$0xf]  ;;  %v8303_v37 = vor.u32 %v10713_v33, %v8302_v22 }
  0xb9   :  { %8109 = vmatpush.msk.msrb.mxu2 %vm331_vm12, %v14396_v29  ;;  %8127 = vmatpush.msk.msra.mxu0 %vm331_vm12, %v14396_v29  ;;  %v10705_v63 = vld [vmem:[#allocation2 + $0x11c] sm:$0xf0] }
  0xba   :  { %8118 = vmatpush.msk.msrb.mxu3 %vm332_vm14, %v14396_v29  ;;  %8136 = vmatpush.msk.msra.mxu1 %vm332_vm14, %v14396_v29  ;;  %v10697_v22 = vld [vmem:[#allocation2 + $0xdc] sm:$0xf0] }
  0xbb   :  { %8110 = vmatpush.msk.msrb.mxu2 %vm329_vm15, %v14396_v29  ;;  %8128 = vmatpush.msk.msra.mxu0 %vm329_vm15, %v14396_v29 }
  0xbc   :  { %8119 = vmatpush.msk.msrb.mxu3 %vm330_vm0, %v14396_v29  ;;  %8137 = vmatpush.msk.msra.mxu1 %vm330_vm0, %v14396_v29 }
  0xbd   :  { %8111 = vmatpush.msk.msrb.mxu2 %vm327_vm1, %v14396_v29  ;;  %8129 = vmatpush.msk.msra.mxu0 %vm327_vm1, %v14396_v29 }
  0xbe   :  { %8120 = vmatpush.msk.msrb.mxu3 %vm328_vm2, %v14396_v29  ;;  %8138 = vmatpush.msk.msra.mxu1 %vm328_vm2, %v14396_v29 }
  0xbf   :  { %1349 = vmatpush.bf16.msra.mxu2 %v8367_v32  ;;  %1375 = vmatpush.bf16.msrb.mxu0 %v8371_v51  ;;  %v8270_v51 = vld [vmem:[#allocation2 + $0x100] sm:$0xf] }
  0xc0   :  { %1362 = vmatpush.bf16.msra.mxu3 %v8623_v44  ;;  %1388 = vmatpush.bf16.msrb.mxu1 %v8627_v54  ;;  %v8304_v44 = vld [vmem:[#allocation2 + $0x160] sm:$0xf0] }
  0xc3   :  { %1350 = vmatpush.bf16.msra.mxu2 %v8335_v15  ;;  %v8272_v15 = vld [vmem:[#allocation2 + $0x120] sm:$0xf0] }
  0xc7   :  { %1351 = vmatpush.bf16.msra.mxu2 %v8303_v37 }
 0x130   :  { %v442_v18 = vpop.f32.mrf.mxu0 }
 0x132   :  { %v462_v20 = vpop.f32.mrf.mxu1 }
 0x133   :  { %v463_v21 = vadd.f32 %v462_v20, %v442_v18  ;;  %v10717_v18 = vld [vmem:[#allocation2 + $0x184] sm:$0xf] }
 0x134   :  { %v402_v25 = vpop.f32.mrf.mxu2  ;;  %v8336_v20 = vld [vmem:[#allocation2 + $0x1a0] sm:$0xf0] }
 0x135   :  { %v466_v28 = vmul.f32 0.03125, %v463_v21  ;;  %v8591_v21 = vor.u32 %v10785_v16, %v8590_v0  ;;  %v8526_v0 = vld [vmem:[#allocation2 + $0x300] sm:$0xf]  ;;  %v10701_v16 = vld [vmem:[#allocation2 + $0x104] sm:$0xf] }
 0x136   :  { %v422_v26 = vpop.f32.mrf.mxu3  ;;  %v8275_v33 = vor.u32 %v10701_v16, %v8272_v15  ;;  %v10753_v16 = vld [vmem:[#allocation2 + $0x29c] sm:$0xf0]  ;;  %v10685_v15 = vld [vmem:[#allocation2 + $0x84] sm:$0xf] }
 0x137   :  { %v423_v27 = vadd.f32 %v422_v26, %v402_v25  ;;  %v8339_v25 = vor.u32 %v10717_v18, %v8336_v20  ;;  %v10781_v26 = vld [vmem:[#allocation2 + $0x384] sm:$0xf]  ;;  %1363 = vmatpush.bf16.msra.mxu3 %v8591_v21  ;;  %v8271_v20 = vor.u32 %v10705_v63, %v8270_v51  ;;  %v8238_v21 = vld [vmem:[#allocation2 + $0xc0] sm:$0xf] }
 0x138   :  { %v10765_v18 = vld [vmem:[#allocation2 + $0x304] sm:$0xf]  ;;  %v8239_v37 = vor.u32 %v10697_v22, %v8238_v21  ;;  %v8206_v51 = vld [vmem:[#allocation2 + $0x80] sm:$0xf] }
 0x139   :  { %v11945_v31 = vmul.f32 0.03125, %v423_v27  ;;  %v8592_v27 = vld [vmem:[#allocation2 + $0x3a0] sm:$0xf0]  ;;  %1376 = vmatpush.bf16.msrb.mxu0 %v8339_v25  ;;  %1352 = vmatpush.bf16.msra.mxu2 %v8271_v20  ;;  %v10689_v63 = vld [vmem:[#allocation2 + $0x9c] sm:$0xf0] }
 0x13a   :  { %v8595_v32 = vor.u32 %v10781_v26, %v8592_v27  ;;  %v8528_v26 = vld [vmem:[#allocation2 + $0x320] sm:$0xf0]  ;;  %v8207_v60 = vor.u32 %v10689_v63, %v8206_v51  ;;  %v10681_v21 = vld [vmem:[#allocation2 + $0x5c] sm:$0xf0] }
 0x13b   :  { %v467_v38 = vmul.f32 %v11945_v31, %v11945_v31  ;;  %v8531_v25 = vor.u32 %v10765_v18, %v8528_v26  ;;  %v8208_v18 = vld [vmem:[#allocation2 + $0xa0] sm:$0xf0]  ;;  %v192_v51 = vld [vmem:[%s14387_s7] sm:$0x1] }
 0x13c   :  { %1389 = vmatpush.bf16.msrb.mxu1 %v8595_v32  ;;  %v8494_v32 = vld [vmem:[#allocation2 + $0x2c0] sm:$0xf]  ;;  %v10749_v26 = vld [vmem:[#allocation2 + $0x284] sm:$0xf] }
 0x13d   :  { %v468_v11 = vsub.f32 %v466_v28, %v467_v38  ;;  %v10777_v28 = vld [vmem:[#allocation2 + $0x35c] sm:$0xf0]  ;;  %v10709_v38 = vld [vmem:[#allocation2 + $0x144] sm:$0xf]  ;;  %1353 = vmatpush.bf16.msra.mxu2 %v8239_v37 }
 0x13e   :  { %v8559_v45 = vor.u32 %v10777_v28, %v8558_v34  ;;  %v8307_v54 = vor.u32 %v10709_v38, %v8304_v44  ;;  %v10761_v34 = vld [vmem:[#allocation2 + $0x2dc] sm:$0xf0]  ;;  %v10693_v28 = vld [vmem:[#allocation2 + $0xc4] sm:$0xf] }
 0x13f   :  { %v11949_v23 = vadd.f32 1e-05, %v468_v11  ;;  %v10769_v11 = vld [vmem:[#allocation2 + $0x31c] sm:$0xf0]  ;;  %v8240_v44 = vld [vmem:[#allocation2 + $0xe0] sm:$0xf0] }
 0x140   :  { %1364 = vmatpush.bf16.msra.mxu3 %v8559_v45  ;;  %v8527_v27 = vor.u32 %v10769_v11, %v8526_v0  ;;  %1377 = vmatpush.bf16.msrb.mxu0 %v8307_v54  ;;  %v8495_v45 = vor.u32 %v10761_v34, %v8494_v32  ;;  %v8243_v54 = vor.u32 %v10693_v28, %v8240_v44  ;;  %v8462_v11 = vld [vmem:[#allocation2 + $0x280] sm:$0xf]  ;;  %v10677_v34 = vld [vmem:[#allocation2 + $0x44] sm:$0xf] }
 0x141   :  { %11189 = vrsqrt.f32 %v11949_v23  ;;  %1390 = vmatpush.bf16.msrb.mxu1 %v8563_v61  ;;  %v8499_v61 = vor.u32 %v10757_v46, %v8496_v47  ;;  %v8463_v20 = vor.u32 %v10753_v16, %v8462_v11  ;;  %v10745_v32 = vld [vmem:[#allocation2 + $0x25c] sm:$0xf0]  ;;  %v8176_v28 = vld [vmem:[#allocation2 + $0x60] sm:$0xf0]  ;;  %vm476_vm4 = vweird.f32 %v11949_v23  ;;  %1354 = vmatpush.bf16.msra.mxu2 %v8207_v60 }
 0x142   :  { %v191_v44 = vld [vmem:[%s14386_s6] sm:$0x1]  ;;  %v10741_v37 = vld [vmem:[#allocation2 + $0x244] sm:$0xf] }
 0x143   :  { %v10669_v60 = vld [vmem:[#allocation2 + $0x4] sm:$0xf] }
 0x144   :  { %1365 = vmatpush.bf16.msra.mxu3 %v8527_v27  ;;  %1378 = vmatpush.bf16.msrb.mxu0 %v8275_v33  ;;  %v8174_v27 = vld [vmem:[#allocation2 + $0x40] sm:$0xf]  ;;  %v8467_v33 = vor.u32 %v10749_v26, %v8464_v13  ;;  %v8400_v26 = vld [vmem:[#allocation2 + $0x220] sm:$0xf0] }
 0x145   :  { %1391 = vmatpush.bf16.msrb.mxu1 %v8531_v25  ;;  %v8430_v25 = vld [vmem:[#allocation2 + $0x240] sm:$0xf]  ;;  %v8175_v47 = vor.u32 %v10681_v21, %v8174_v27  ;;  %v8374_v27 = vld [vmem:[#allocation2 + $0x1c8] sm:$0xf] }
 0x146   :  { %v10673_v13 = vld [vmem:[#allocation2 + $0x1c] sm:$0xf0]  ;;  %v10730_v21 = vld [vmem:[#allocation2 + $0x1e4] sm:$0xf0] }
 0x147   :  { %v11190_v38 = vpop.eup %11189  ;;  %1355 = vmatpush.bf16.msra.mxu2 %v8175_v47  ;;  %v8375_v47 = vor.u32 %v10730_v21, %v8374_v27  ;;  %v10710_v27 = vld [vmem:[#allocation2 + $0x14c] sm:$0xf] }
 0x148   :  { %v471_v29 = vmul.f32 %v11190_v38, %v11949_v23  ;;  %1366 = vmatpush.bf16.msra.mxu3 %v8495_v45  ;;  %vm477_vm3 = vweird.f32 %v11190_v38  ;;  %1379 = vmatpush.bf16.msrb.mxu0 %v8243_v54  ;;  %v8142_v45 = vld [vmem:[#allocation2] sm:$0xf]  ;;  %v8179_v54 = vor.u32 %v10677_v34, %v8176_v28  ;;  %v10790_v34 = vld [vmem:[#allocation2 + $0x3cc] sm:$0xf] }
 0x149   :  { %1392 = vmatpush.bf16.msrb.mxu1 %v8499_v61  ;;  %vm478_vm5 = vmor %vm476_vm4, %vm477_vm3  ;;  %v8398_v61 = vld [vmem:[#allocation2 + $0x200] sm:$0xf]  ;;  %v8632_v28 = vld [vmem:[#allocation2 + $0x3e8] sm:$0xf0] }
 0x14a   :  { %v472_v0 = vmul.f32 %v11190_v38, %v471_v29  ;;  %v8211_v29 = vor.u32 %v10685_v15, %v8208_v18  ;;  %v10737_v23 = vld [vmem:[#allocation2 + $0x21c] sm:$0xf0]  ;;  %v8144_v15 = vld [vmem:[#allocation2 + $0x20] sm:$0xf0]  ;;  %v8312_v21 = vld [vmem:[#allocation2 + $0x168] sm:$0xf0] }
 0x14b   :  { %v10733_v18 = vld [vmem:[#allocation2 + $0x204] sm:$0xf] }
 0x14c   :  { %v473_v49 = vmul.f32 0.5, %v472_v0  ;;  %1367 = vmatpush.bf16.msra.mxu3 %v8463_v20  ;;  %1380 = vmatpush.bf16.msrb.mxu0 %v8211_v29  ;;  %v8431_v0 = vor.u32 %v10745_v32, %v8430_v25  ;;  %v8143_v20 = vor.u32 %v10673_v13, %v8142_v45  ;;  %v10726_v29 = vld [vmem:[#allocation2 + $0x1cc] sm:$0xf]  ;;  %v8399_v25 = vor.u32 %v10737_v23, %v8398_v61  ;;  %v10722_v45 = vld [vmem:[#allocation2 + $0x1a4] sm:$0xf0] }
 0x14d   :  { %1393 = vmatpush.bf16.msrb.mxu1 %v8467_v33  ;;  %v8376_v33 = vld [vmem:[#allocation2 + $0x1e8] sm:$0xf0]  ;;  %v8147_v32 = vor.u32 %v10669_v60, %v8144_v15  ;;  %v8598_v13 = vld [vmem:[#allocation2 + $0x388] sm:$0xf] }
 0x14e   :  { %v474_v22 = vsub.f32 1.5, %v473_v49  ;;  %v8432_v49 = vld [vmem:[#allocation2 + $0x260] sm:$0xf0]  ;;  %1356 = vmatpush.bf16.msra.mxu2 %v8143_v20  ;;  %v8344_v61 = vld [vmem:[#allocation2 + $0x1a8] sm:$0xf0] }
 0x14f   :  { %v8435_v16 = vor.u32 %v10741_v37, %v8432_v49  ;;  %v8342_v49 = vld [vmem:[#allocation2 + $0x188] sm:$0xf] }
 0x150   :  { %v475_v46 = vmul.f32 %v11190_v38, %v474_v22  ;;  %v8630_v22 = vld [vmem:[#allocation2 + $0x3c8] sm:$0xf]  ;;  %1368 = vmatpush.bf16.msra.mxu3 %v8431_v0  ;;  %1381 = vmatpush.bf16.msrb.mxu0 %v8179_v54  ;;  %v10718_v54 = vld [vmem:[#allocation2 + $0x18c] sm:$0xf]  ;;  %v8343_v23 = vor.u32 %v10722_v45, %v8342_v49 }
 0x151   :  { %1394 = vmatpush.bf16.msrb.mxu1 %v8435_v16  ;;  %v10786_v0 = vld [vmem:[#allocation2 + $0x3a4] sm:$0xf0]  ;;  %v8536_v49 = vld [vmem:[#allocation2 + $0x328] sm:$0xf0] }
 0x152   :  { %v479_v63 = vsel %vm478_vm5, %v11190_v38, %v475_v46  ;;  %v10794_v38 = vld [vmem:[#allocation2 + $0x3e4] sm:$0xf0]  ;;  %v8403_v46 = vor.u32 %v10733_v18, %v8400_v26  ;;  %v8599_v60 = vor.u32 %v10786_v0, %v8598_v13 }
 0x153   :  { %v480_v11 = vmul.f32 %v479_v63, %v191_v44  ;;  %v8631_v37 = vor.u32 %v10794_v38, %v8630_v22  ;;  %v8635_v63 = vor.u32 %v10790_v34, %v8632_v28  ;;  %v8310_v16 = vld [vmem:[#allocation2 + $0x148] sm:$0xf]  ;;  %v10774_v22 = vld [vmem:[#allocation2 + $0x34c] sm:$0xf] }
 0x154   :  { %1369 = vmatpush.bf16.msra.mxu3 %v8399_v25  ;;  %1382 = vmatpush.bf16.msrb.mxu0 %v8147_v32  ;;  %v10714_v15 = vld [vmem:[#allocation2 + $0x164] sm:$0xf0]  ;;  %v8568_v38 = vld [vmem:[#allocation2 + $0x368] sm:$0xf0]  ;;  %v8315_v25 = vor.u32 %v10710_v27, %v8312_v21 }
 0x155   :  { %v481_v41 = vmul.f32 %v480_v11, %v11945_v31  ;;  %8112 = vmatmul.msk.f32.vlgmr.msrb.gmra.mxu2 %vm14434_vm13, %v480_v11  ;;  %8121 = vmatmul.msk.f32.vlgmr.msrb.gmra.mxu3 %vm14434_vm13, %v480_v11  ;;  %v8379_v31 = vor.u32 %v10726_v29, %v8376_v33  ;;  %v8347_v11 = vor.u32 %v10718_v54, %v8344_v61  ;;  %v8566_v18 = vld [vmem:[#allocation2 + $0x348] sm:$0xf] }
 0x156   :  { %1395 = vmatpush.bf16.msrb.mxu1 %v8403_v46  ;;  %1401 = vmatpush.bf16.msrb.mxu2 %v8375_v47  ;;  %v10778_v20 = vld [vmem:[#allocation2 + $0x364] sm:$0xf0]  ;;  %v8311_v29 = vor.u32 %v10714_v15, %v8310_v16  ;;  %v10702_v47 = vld [vmem:[#allocation2 + $0x10c] sm:$0xf] }
 0x157   :  { %v482_v44 = vsub.f32 %v192_v51, %v481_v41  ;;  %v10782_v41 = vld [vmem:[#allocation2 + $0x38c] sm:$0xf]  ;;  %v8567_v33 = vor.u32 %v10778_v20, %v8566_v18  ;;  %v8278_v32 = vld [vmem:[#allocation2 + $0x108] sm:$0xf] }
 0x158   :  { %v8600_v51 = vld [vmem:[#allocation2 + $0x3a8] sm:$0xf0]  ;;  %1414 = vmatpush.bf16.msrb.mxu3 %v8631_v37  ;;  %v10706_v34 = vld [vmem:[#allocation2 + $0x124] sm:$0xf0] }
 0x159   :  { %8130 = vmatmul.msk.f32.vlgmr.msra.gmra.mxu0 %vm14434_vm13, %v482_v44  ;;  %8139 = vmatmul.msk.f32.vlgmr.msra.gmra.mxu1 %vm14434_vm13, %v482_v44  ;;  %v8603_v26 = vor.u32 %v10782_v41, %v8600_v51  ;;  %v8534_v28 = vld [vmem:[#allocation2 + $0x308] sm:$0xf]  ;;  %v8571_v44 = vor.u32 %v10774_v22, %v8568_v38  ;;  %v8280_v37 = vld [vmem:[#allocation2 + $0x128] sm:$0xf0]  ;;  %v8279_v45 = vor.u32 %v10706_v34, %v8278_v32 }
 0x15a   :  { %1427 = vmatpush.bf16.msra.mxu0 %v8379_v31  ;;  %1440 = vmatpush.bf16.msra.mxu1 %v8635_v63  ;;  %v10770_v46 = vld [vmem:[#allocation2 + $0x324] sm:$0xf0]  ;;  %v10766_v31 = vld [vmem:[#allocation2 + $0x30c] sm:$0xf]  ;;  %v8283_v63 = vor.u32 %v10702_v47, %v8280_v37 }
 0x15b   :  { %1402 = vmatpush.bf16.msrb.mxu2 %v8343_v23  ;;  %v8535_v13 = vor.u32 %v10770_v46, %v8534_v28  ;;  %v8539_v0 = vor.u32 %v10766_v31, %v8536_v49  ;;  %v8246_v54 = vld [vmem:[#allocation2 + $0xc8] sm:$0xf]  ;;  %v10758_v18 = vld [vmem:[#allocation2 + $0x2cc] sm:$0xf] }
 0x15c   :  { %1415 = vmatpush.bf16.msrb.mxu3 %v8599_v60  ;;  %v10698_v61 = vld [vmem:[#allocation2 + $0xe4] sm:$0xf0]  ;;  %v10694_v60 = vld [vmem:[#allocation2 + $0xcc] sm:$0xf] }
 0x15d   :  { %v8502_v41 = vld [vmem:[#allocation2 + $0x2c8] sm:$0xf]  ;;  %v8247_v51 = vor.u32 %v10698_v61, %v8246_v54  ;;  %v10750_v28 = vld [vmem:[#allocation2 + $0x28c] sm:$0xf] }
 0x15e   :  { %1428 = vmatpush.bf16.msra.mxu0 %v8347_v11  ;;  %1441 = vmatpush.bf16.msra.mxu1 %v8603_v26  ;;  %v10762_v23 = vld [vmem:[#allocation2 + $0x2e4] sm:$0xf0]  ;;  %v8248_v11 = vld [vmem:[#allocation2 + $0xe8] sm:$0xf0] }
 0x15f   :  { %1403 = vmatpush.bf16.msrb.mxu2 %v8311_v29  ;;  %v8503_v16 = vor.u32 %v10762_v23, %v8502_v41  ;;  %v8251_v15 = vor.u32 %v10694_v60, %v8248_v11  ;;  %v8504_v26 = vld [vmem:[#allocation2 + $0x2e8] sm:$0xf0]  ;;  %v8214_v27 = vld [vmem:[#allocation2 + $0x88] sm:$0xf] }
 0x160   :  { %1416 = vmatpush.bf16.msrb.mxu3 %v8567_v33  ;;  %v8507_v20 = vor.u32 %v10758_v18, %v8504_v26  ;;  %v10690_v21 = vld [vmem:[#allocation2 + $0xa4] sm:$0xf0]  ;;  %v10686_v33 = vld [vmem:[#allocation2 + $0x8c] sm:$0xf] }
 0x161   :  { %v8470_v22 = vld [vmem:[#allocation2 + $0x288] sm:$0xf]  ;;  %v8215_v38 = vor.u32 %v10690_v21, %v8214_v27  ;;  %v10742_v61 = vld [vmem:[#allocation2 + $0x24c] sm:$0xf] }
 0x162   :  { %1429 = vmatpush.bf16.msra.mxu0 %v8315_v25  ;;  %1442 = vmatpush.bf16.msra.mxu1 %v8571_v44  ;;  %v10754_v29 = vld [vmem:[#allocation2 + $0x2a4] sm:$0xf0]  ;;  %v8216_v25 = vld [vmem:[#allocation2 + $0xa8] sm:$0xf0] }
 0x163   :  { %1404 = vmatpush.bf16.msrb.mxu2 %v8279_v45  ;;  %v8471_v32 = vor.u32 %v10754_v29, %v8470_v22  ;;  %v8219_v34 = vor.u32 %v10686_v33, %v8216_v25  ;;  %v8472_v44 = vld [vmem:[#allocation2 + $0x2a8] sm:$0xf0]  ;;  %v8182_v47 = vld [vmem:[#allocation2 + $0x48] sm:$0xf] }
 0x164   :  { %1417 = vmatpush.bf16.msrb.mxu3 %v8535_v13  ;;  %v8475_v46 = vor.u32 %v10750_v28, %v8472_v44  ;;  %v10682_v37 = vld [vmem:[#allocation2 + $0x64] sm:$0xf0]  ;;  %v10678_v13 = vld [vmem:[#allocation2 + $0x4c] sm:$0xf] }
 0x165   :  { %v8438_v31 = vld [vmem:[#allocation2 + $0x248] sm:$0xf]  ;;  %v8183_v49 = vor.u32 %v10682_v37, %v8182_v47  ;;  %v8440_v41 = vld [vmem:[#allocation2 + $0x268] sm:$0xf0] }
 0x166   :  { %1430 = vmatpush.bf16.msra.mxu0 %v8283_v63  ;;  %1443 = vmatpush.bf16.msra.mxu1 %v8539_v0  ;;  %v10746_v45 = vld [vmem:[#allocation2 + $0x264] sm:$0xf0]  ;;  %v8184_v63 = vld [vmem:[#allocation2 + $0x68] sm:$0xf0] }
 0x167   :  { %1405 = vmatpush.bf16.msrb.mxu2 %v8247_v51  ;;  %v8439_v0 = vor.u32 %v10746_v45, %v8438_v31  ;;  %v8187_v54 = vor.u32 %v10678_v13, %v8184_v63  ;;  %v8443_v51 = vor.u32 %v10742_v61, %v8440_v41  ;;  %v8150_v23 = vld [vmem:[#allocation2 + $0x8] sm:$0xf]  ;;  %v10670_v18 = vld [vmem:[#allocation2 + $0xc] sm:$0xf]  ;;  %v8382_v45 = vld [vmem:[#allocation2 + $0x1d0] sm:$0xf] }
 0x168   :  { %1418 = vmatpush.bf16.msrb.mxu3 %v8503_v16  ;;  %v10674_v60 = vld [vmem:[#allocation2 + $0x24] sm:$0xf0]  ;;  %v8152_v26 = vld [vmem:[#allocation2 + $0x28] sm:$0xf0]  ;;  %v10731_v13 = vld [vmem:[#allocation2 + $0x1ec] sm:$0xf0] }
 0x169   :  { %v8406_v11 = vld [vmem:[#allocation2 + $0x208] sm:$0xf]  ;;  %v8151_v16 = vor.u32 %v10674_v60, %v8150_v23  ;;  %v8155_v27 = vor.u32 %v10670_v18, %v8152_v26  ;;  %v10734_v21 = vld [vmem:[#allocation2 + $0x20c] sm:$0xf]  ;;  %v8638_v63 = vld [vmem:[#allocation2 + $0x3d0] sm:$0xf] }
 0x16a   :  { %1431 = vmatpush.bf16.msra.mxu0 %v8251_v15  ;;  %1444 = vmatpush.bf16.msra.mxu1 %v8507_v20  ;;  %v10738_v15 = vld [vmem:[#allocation2 + $0x224] sm:$0xf0]  ;;  %v8408_v22 = vld [vmem:[#allocation2 + $0x228] sm:$0xf0]  ;;  %v8384_v61 = vld [vmem:[#allocation2 + $0x1f0] sm:$0xf0] }
 0x16b   :  { %1406 = vmatpush.bf16.msrb.mxu2 %v8215_v38  ;;  %v8407_v20 = vor.u32 %v10738_v15, %v8406_v11  ;;  %v8411_v38 = vor.u32 %v10734_v21, %v8408_v22  ;;  %v10791_v23 = vld [vmem:[#allocation2 + $0x3d4] sm:$0xf]  ;;  %v8383_v15 = vor.u32 %v10731_v13, %v8382_v45  ;;  %v8350_v18 = vld [vmem:[#allocation2 + $0x190] sm:$0xf] }
 0x16c   :  { %1419 = vmatpush.bf16.msrb.mxu3 %v8471_v32  ;;  %v8640_v60 = vld [vmem:[#allocation2 + $0x3f0] sm:$0xf0]  ;;  %v10787_v21 = vld [vmem:[#allocation2 + $0x3ac] sm:$0xf0] }
 0x16d   :  { %v10719_v22 = vld [vmem:[#allocation2 + $0x194] sm:$0xf] }
 0x16e   :  { %1432 = vmatpush.bf16.msra.mxu0 %v8219_v34  ;;  %1445 = vmatpush.bf16.msra.mxu1 %v8475_v46  ;;  %v10775_v45 = vld [vmem:[#allocation2 + $0x354] sm:$0xf] }
 0x16f   :  { %1407 = vmatpush.bf16.msrb.mxu2 %v8183_v49  ;;  %v8576_v13 = vld [vmem:[#allocation2 + $0x370] sm:$0xf0] }
 0x170   :  { %1420 = vmatpush.bf16.msrb.mxu3 %v8439_v0  ;;  %v10795_v0 = vld [vmem:[#allocation2 + $0x3ec] sm:$0xf0] }
 0x172   :  { %1433 = vmatpush.bf16.msra.mxu0 %v8187_v54  ;;  %1446 = vmatpush.bf16.msra.mxu1 %v8443_v51  ;;  %v10727_v54 = vld [vmem:[#allocation2 + $0x1d4] sm:$0xf] }
 0x173   :  { %1408 = vmatpush.bf16.msrb.mxu2 %v8151_v16  ;;  %v8387_v26 = vor.u32 %v10727_v54, %v8384_v61  ;;  %v8286_v54 = vld [vmem:[#allocation2 + $0x110] sm:$0xf] }
 0x174   :  { %1421 = vmatpush.bf16.msrb.mxu3 %v8407_v20  ;;  %v8643_v20 = vor.u32 %v10791_v23, %v8640_v60  ;;  %v10707_v61 = vld [vmem:[#allocation2 + $0x12c] sm:$0xf0] }
 0x175   :  { %v8542_v23 = vld [vmem:[#allocation2 + $0x310] sm:$0xf] }
 0x176   :  { %1434 = vmatpush.bf16.msra.mxu0 %v8155_v27  ;;  %1447 = vmatpush.bf16.msra.mxu1 %v8411_v38  ;;  %v8606_v27 = vld [vmem:[#allocation2 + $0x390] sm:$0xf]  ;;  %v8352_v38 = vld [vmem:[#allocation2 + $0x1b0] sm:$0xf0] }
 0x177   :  { %v10771_v60 = vld [vmem:[#allocation2 + $0x32c] sm:$0xf0] }
 0x1d6   :  { %v546_v29 = vpop.f32.mrf.mxu0  ;;  %v566_v33 = vpop.f32.mrf.mxu1 }
 0x1d7   :  { %v573_v44 = vperm.slane %v546_v29, 0  ;;  %v574_v46 = vperm.slane %v566_v33, 0  ;;  %v10783_v29 = vld [vmem:[#allocation2 + $0x394] sm:$0xf] }
 0x1d8   :  { %v503_v25 = vpop.f32.mrf.mxu2  ;;  %v523_v32 = vpop.f32.mrf.mxu3  ;;  %v8608_v33 = vld [vmem:[#allocation2 + $0x3b0] sm:$0xf0] }
 0x1d9   :  { %v569_v34 = vperm.slane %v503_v25, 0  ;;  %v570_v28 = vperm.slane %v523_v32, 0  ;;  %v8607_v32 = vor.u32 %v10787_v21, %v8606_v27  ;;  %v8254_v27 = vld [vmem:[#allocation2 + $0xd0] sm:$0xf] }
 0x1da   :  { %v10699_v21 = vld [vmem:[#allocation2 + $0xec] sm:$0xf0] }
 0x1db   :  { %v571_v47 = vmul.f32 %v569_v34, %v11880_v12  ;;  %v572_v37 = vmul.f32 %v570_v28, %v11884_v14  ;;  %v8639_v12 = vor.u32 %v10795_v0, %v8638_v63  ;;  %v10723_v14 = vld [vmem:[#allocation2 + $0x1ac] sm:$0xf0] }
 0x1dc   :  { %v8351_v25 = vor.u32 %v10723_v14, %v8350_v18  ;;  %v8318_v34 = vld [vmem:[#allocation2 + $0x150] sm:$0xf]  ;;  %v10767_v18 = vld [vmem:[#allocation2 + $0x314] sm:$0xf] }
 0x1dd   :  { %v575_v31 = vadd.f32 %v573_v44, %v571_v47  ;;  %v576_v49 = vadd.f32 %v574_v46, %v572_v37  ;;  %v10715_v28 = vld [vmem:[#allocation2 + $0x16c] sm:$0xf0]  ;;  %v8355_v44 = vor.u32 %v10719_v22, %v8352_v38  ;;  %v8611_v46 = vor.u32 %v10783_v29, %v8608_v33  ;;  %v8544_v14 = vld [vmem:[#allocation2 + $0x330] sm:$0xf0] }
 0x1de   :  { %v8574_v47 = vld [vmem:[#allocation2 + $0x350] sm:$0xf]  ;;  %v8319_v63 = vor.u32 %v10715_v28, %v8318_v34  ;;  %v8547_v38 = vor.u32 %v10767_v18, %v8544_v14  ;;  %v10759_v34 = vld [vmem:[#allocation2 + $0x2d4] sm:$0xf] }
 0x1df   :  { %v577_v41 = vmax.f32 %v575_v31, 0.0  ;;  %v578_v51 = vmax.f32 %v576_v49, 0.0  ;;  %v10779_v37 = vld [vmem:[#allocation2 + $0x36c] sm:$0xf0]  ;;  %v10711_v31 = vld [vmem:[#allocation2 + $0x154] sm:$0xf] }
 0x1e0   :  { %v8320_v49 = vld [vmem:[#allocation2 + $0x170] sm:$0xf0]  ;;  %v8575_v0 = vor.u32 %v10779_v37, %v8574_v47  ;;  %v8510_v29 = vld [vmem:[#allocation2 + $0x2d0] sm:$0xf] }
 0x1e1   :  { %v11968_v11 = vpack.c.bf16 %v577_v41, %v577_v41  ;;  %v11970_v16 = vpack.c.bf16 %v578_v51, %v578_v51  ;;  %v8323_v41 = vor.u32 %v10711_v31, %v8320_v49  ;;  %v8579_v51 = vor.u32 %v10775_v45, %v8576_v13  ;;  %v10763_v33 = vld [vmem:[#allocation2 + $0x2ec] sm:$0xf0]  ;;  %v8512_v28 = vld [vmem:[#allocation2 + $0x2f0] sm:$0xf0] }
 0x1e2   :  { %v8222_v47 = vld [vmem:[#allocation2 + $0x90] sm:$0xf]  ;;  %v8515_v49 = vor.u32 %v10759_v34, %v8512_v28 }
 0x1e3   :  { %1357 = vmatmul.bf16.vlgmr.msra.gmra.mxu2 %v11968_v11  ;;  %1370 = vmatmul.bf16.vlgmr.msra.gmra.mxu3 %v11970_v16  ;;  %v10691_v37 = vld [vmem:[#allocation2 + $0xac] sm:$0xf0] }
 0x1e4   :  { %1383 = vmatmul.bf16.vlgmr.msrb.gmra.mxu0 %v11968_v11  ;;  %1396 = vmatmul.bf16.vlgmr.msrb.gmra.mxu1 %v11970_v16  ;;  %v8478_v45 = vld [vmem:[#allocation2 + $0x290] sm:$0xf] }
 0x1e5   :  { %1453 = vmatpush.bf16.msra.mxu2 %v8383_v15  ;;  %1466 = vmatpush.bf16.msra.mxu3 %v8639_v12  ;;  %v10703_v15 = vld [vmem:[#allocation2 + $0x114] sm:$0xf]  ;;  %v10755_v13 = vld [vmem:[#allocation2 + $0x2ac] sm:$0xf0] }
 0x1e6   :  { %1479 = vmatpush.bf16.msrb.mxu0 %v8387_v26  ;;  %1492 = vmatpush.bf16.msrb.mxu1 %v8643_v20  ;;  %v8288_v12 = vld [vmem:[#allocation2 + $0x130] sm:$0xf0]  ;;  %v8287_v26 = vor.u32 %v10707_v61, %v8286_v54  ;;  %v8543_v20 = vor.u32 %v10771_v60, %v8542_v23  ;;  %v8190_v23 = vld [vmem:[#allocation2 + $0x50] sm:$0xf] }
 0x1e7   :  { %v8291_v22 = vor.u32 %v10703_v15, %v8288_v12  ;;  %v10751_v54 = vld [vmem:[#allocation2 + $0x294] sm:$0xf]  ;;  %v10683_v60 = vld [vmem:[#allocation2 + $0x6c] sm:$0xf0] }
 0x1e8   :  { %v8480_v61 = vld [vmem:[#allocation2 + $0x2b0] sm:$0xf0]  ;;  %v8446_v18 = vld [vmem:[#allocation2 + $0x250] sm:$0xf] }
 0x1e9   :  { %1454 = vmatpush.bf16.msra.mxu2 %v8351_v25  ;;  %1467 = vmatpush.bf16.msra.mxu3 %v8607_v32  ;;  %v10695_v25 = vld [vmem:[#allocation2 + $0xd4] sm:$0xf]  ;;  %v8483_v12 = vor.u32 %v10751_v54, %v8480_v61  ;;  %v10747_v14 = vld [vmem:[#allocation2 + $0x26c] sm:$0xf0]  ;;  %v8392_v61 = vld [vmem:[#allocation2 + $0x1f8] sm:$0xf0] }
 0x1ea   :  { %1480 = vmatpush.bf16.msrb.mxu0 %v8355_v44  ;;  %1493 = vmatpush.bf16.msrb.mxu1 %v8611_v46  ;;  %v8256_v32 = vld [vmem:[#allocation2 + $0xf0] sm:$0xf0]  ;;  %v8255_v44 = vor.u32 %v10699_v21, %v8254_v27  ;;  %v8511_v46 = vor.u32 %v10763_v33, %v8510_v29  ;;  %v8447_v29 = vor.u32 %v10747_v14, %v8446_v18  ;;  %v10675_v33 = vld [vmem:[#allocation2 + $0x2c] sm:$0xf0]  ;;  %v8358_v18 = vld [vmem:[#allocation2 + $0x198] sm:$0xf] }
 0x1eb   :  { %v8259_v31 = vor.u32 %v10695_v25, %v8256_v32  ;;  %v10743_v27 = vld [vmem:[#allocation2 + $0x254] sm:$0xf]  ;;  %v8414_v25 = vld [vmem:[#allocation2 + $0x210] sm:$0xf]  ;;  %v10724_v14 = vld [vmem:[#allocation2 + $0x1b4] sm:$0xf0] }
 0x1ec   :  { %v8448_v21 = vld [vmem:[#allocation2 + $0x270] sm:$0xf0]  ;;  %v10739_v32 = vld [vmem:[#allocation2 + $0x22c] sm:$0xf0] }
 0x1ed   :  { %1455 = vmatpush.bf16.msra.mxu2 %v8319_v63  ;;  %1468 = vmatpush.bf16.msra.mxu3 %v8575_v0  ;;  %v10687_v63 = vld [vmem:[#allocation2 + $0x94] sm:$0xf]  ;;  %v8451_v28 = vor.u32 %v10743_v27, %v8448_v21  ;;  %v8415_v54 = vor.u32 %v10739_v32, %v8414_v25  ;;  %v8614_v27 = vld [vmem:[#allocation2 + $0x398] sm:$0xf] }
 0x1ee   :  { %1481 = vmatpush.bf16.msrb.mxu0 %v8323_v41  ;;  %1494 = vmatpush.bf16.msrb.mxu1 %v8579_v51  ;;  %v8224_v0 = vld [vmem:[#allocation2 + $0xb0] sm:$0xf0]  ;;  %v8223_v41 = vor.u32 %v10691_v37, %v8222_v47  ;;  %v8479_v51 = vor.u32 %v10755_v13, %v8478_v45  ;;  %v8646_v45 = vld [vmem:[#allocation2 + $0x3d8] sm:$0xf] }
 0x1ef   :  { %v8227_v15 = vor.u32 %v10687_v63, %v8224_v0  ;;  %v10735_v47 = vld [vmem:[#allocation2 + $0x214] sm:$0xf]  ;;  %v10796_v13 = vld [vmem:[#allocation2 + $0x3f4] sm:$0xf0]  ;;  %v10728_v63 = vld [vmem:[#allocation2 + $0x1dc] sm:$0xf] }
 0x1f0   :  { %v8416_v37 = vld [vmem:[#allocation2 + $0x230] sm:$0xf0]  ;;  %v10788_v21 = vld [vmem:[#allocation2 + $0x3b4] sm:$0xf0] }
 0x1f1   :  { %1456 = vmatpush.bf16.msra.mxu2 %v8287_v26  ;;  %1469 = vmatpush.bf16.msra.mxu3 %v8543_v20  ;;  %v10679_v26 = vld [vmem:[#allocation2 + $0x54] sm:$0xf]  ;;  %v8615_v25 = vor.u32 %v10788_v21, %v8614_v27  ;;  %v8326_v32 = vld [vmem:[#allocation2 + $0x158] sm:$0xf] }
 0x1f2   :  { %1482 = vmatpush.bf16.msrb.mxu0 %v8291_v22  ;;  %1495 = vmatpush.bf16.msrb.mxu1 %v8547_v38  ;;  %v8192_v20 = vld [vmem:[#allocation2 + $0x70] sm:$0xf0]  ;;  %v8158_v22 = vld [vmem:[#allocation2 + $0x10] sm:$0xf]  ;;  %v8191_v38 = vor.u32 %v10683_v60, %v8190_v23  ;;  %v8419_v60 = vor.u32 %v10735_v47, %v8416_v37  ;;  %v10780_v47 = vld [vmem:[#allocation2 + $0x374] sm:$0xf0] }
 0x1f3   :  { %1409 = vmatmul.bf16.vlgmr.msrb.gmra.mxu2 %v11968_v11  ;;  %1422 = vmatmul.bf16.vlgmr.msrb.gmra.mxu3 %v11970_v16  ;;  %v8195_v34 = vor.u32 %v10679_v26, %v8192_v20  ;;  %v8159_v0 = vor.u32 %v10675_v33, %v8158_v22  ;;  %v8395_v26 = vor.u32 %v10728_v63, %v8392_v61  ;;  %v8360_v22 = vld [vmem:[#allocation2 + $0x1b8] sm:$0xf0] }
 0x1f4   :  { %1435 = vmatmul.bf16.vlgmr.msra.gmra.mxu0 %v11968_v11  ;;  %1448 = vmatmul.bf16.vlgmr.msra.gmra.mxu1 %v11970_v16  ;;  %v8359_v33 = vor.u32 %v10724_v14, %v8358_v18  ;;  %v10712_v37 = vld [vmem:[#allocation2 + $0x15c] sm:$0xf] }
 0x1f5   :  { %1457 = vmatpush.bf16.msra.mxu2 %v8255_v44  ;;  %1470 = vmatpush.bf16.msra.mxu3 %v8511_v46  ;;  %v10671_v44 = vld [vmem:[#allocation2 + $0x14] sm:$0xf] }
 0x1f6   :  { %1483 = vmatpush.bf16.msrb.mxu0 %v8259_v31  ;;  %1496 = vmatpush.bf16.msrb.mxu1 %v8515_v49  ;;  %v8160_v46 = vld [vmem:[#allocation2 + $0x30] sm:$0xf0]  ;;  %v8390_v31 = vld [vmem:[#allocation2 + $0x1d8] sm:$0xf] }
 0x1f7   :  { %v10732_v49 = vld [vmem:[#allocation2 + $0x1f4] sm:$0xf0]  ;;  %v8163_v23 = vor.u32 %v10671_v44, %v8160_v46 }
 0x1f8   :  { %v8582_v46 = vld [vmem:[#allocation2 + $0x358] sm:$0xf] }
 0x1f9   :  { %1458 = vmatpush.bf16.msra.mxu2 %v8223_v41  ;;  %1471 = vmatpush.bf16.msra.mxu3 %v8479_v51  ;;  %v10792_v41 = vld [vmem:[#allocation2 + $0x3dc] sm:$0xf]  ;;  %v8583_v63 = vor.u32 %v10780_v47, %v8582_v46  ;;  %v10692_v46 = vld [vmem:[#allocation2 + $0xb4] sm:$0xf0] }
 0x1fa   :  { %1484 = vmatpush.bf16.msrb.mxu0 %v8227_v15  ;;  %1497 = vmatpush.bf16.msrb.mxu1 %v8483_v12  ;;  %v8648_v51 = vld [vmem:[#allocation2 + $0x3f8] sm:$0xf0]  ;;  %v8391_v15 = vor.u32 %v10732_v49, %v8390_v31  ;;  %v8647_v12 = vor.u32 %v10796_v13, %v8646_v45 }
 0x1fb   :  { %v8651_v20 = vor.u32 %v10792_v41, %v8648_v51  ;;  %v8328_v31 = vld [vmem:[#allocation2 + $0x178] sm:$0xf0]  ;;  %v8550_v41 = vld [vmem:[#allocation2 + $0x318] sm:$0xf] }
 0x1fc   :  { %v10776_v49 = vld [vmem:[#allocation2 + $0x35c] sm:$0xf]  ;;  %v10772_v51 = vld [vmem:[#allocation2 + $0x334] sm:$0xf0] }
 0x1fd   :  { %1459 = vmatpush.bf16.msra.mxu2 %v8191_v38  ;;  %1472 = vmatpush.bf16.msra.mxu3 %v8447_v29  ;;  %v10784_v38 = vld [vmem:[#allocation2 + $0x39c] sm:$0xf]  ;;  %v8551_v14 = vor.u32 %v10772_v51, %v8550_v41  ;;  %v10684_v41 = vld [vmem:[#allocation2 + $0x74] sm:$0xf0] }
 0x1fe   :  { %1485 = vmatpush.bf16.msrb.mxu0 %v8195_v34  ;;  %1498 = vmatpush.bf16.msrb.mxu1 %v8451_v28  ;;  %v8616_v29 = vld [vmem:[#allocation2 + $0x3b8] sm:$0xf0]  ;;  %v10716_v34 = vld [vmem:[#allocation2 + $0x174] sm:$0xf0]  ;;  %v8363_v28 = vor.u32 %v10720_v59, %v8360_v22 }
 0x1ff   :  { %v8619_v44 = vor.u32 %v10784_v38, %v8616_v29  ;;  %v8584_v45 = vld [vmem:[#allocation2 + $0x378] sm:$0xf0]  ;;  %v8327_v13 = vor.u32 %v10716_v34, %v8326_v32  ;;  %v8294_v59 = vld [vmem:[#allocation2 + $0x118] sm:$0xf] }
 0x200   :  { %v8587_v61 = vor.u32 %v10776_v49, %v8584_v45  ;;  %v8518_v22 = vld [vmem:[#allocation2 + $0x2d8] sm:$0xf]  ;;  %v10696_v29 = vld [vmem:[#allocation2 + $0xdc] sm:$0xf] }
 0x201   :  { %1460 = vmatpush.bf16.msra.mxu2 %v8159_v0  ;;  %1473 = vmatpush.bf16.msra.mxu3 %v8415_v54  ;;  %v10708_v0 = vld [vmem:[#allocation2 + $0x134] sm:$0xf0]  ;;  %v8331_v54 = vor.u32 %v10712_v37, %v8328_v31  ;;  %v8520_v32 = vld [vmem:[#allocation2 + $0x2f8] sm:$0xf0] }
 0x202   :  { %1486 = vmatpush.bf16.msrb.mxu0 %v8163_v23  ;;  %1499 = vmatpush.bf16.msrb.mxu1 %v8419_v60  ;;  %v10704_v23 = vld [vmem:[#allocation2 + $0x11c] sm:$0xf]  ;;  %v8295_v18 = vor.u32 %v10708_v0, %v8294_v59  ;;  %v10764_v38 = vld [vmem:[#allocation2 + $0x2f4] sm:$0xf0] }
 0x203   :  { %v8296_v60 = vld [vmem:[#allocation2 + $0x138] sm:$0xf0]  ;;  %v8486_v31 = vld [vmem:[#allocation2 + $0x298] sm:$0xf] }
 0x204   :  { %1461 = vmatmul.bf16.vlgmr.msra.gmra.mxu2 %v11968_v11  ;;  %1474 = vmatmul.bf16.vlgmr.msra.gmra.mxu3 %v11970_v16  ;;  %v8299_v27 = vor.u32 %v10704_v23, %v8296_v60  ;;  %v10756_v49 = vld [vmem:[#allocation2 + $0x2b4] sm:$0xf0]  ;;  %v10688_v45 = vld [vmem:[#allocation2 + $0x9c] sm:$0xf] }
 0x205   :  { %1505 = vmatpush.bf16.msrb.mxu2 %v8391_v15  ;;  %1518 = vmatpush.bf16.msrb.mxu3 %v8647_v12  ;;  %v10768_v15 = vld [vmem:[#allocation2 + $0x31c] sm:$0xf]  ;;  %v8454_v60 = vld [vmem:[#allocation2 + $0x258] sm:$0xf] }
 0x206   :  { %1531 = vmatpush.bf16.msra.mxu0 %v8395_v26  ;;  %1544 = vmatpush.bf16.msra.mxu1 %v8651_v20  ;;  %v8552_v12 = vld [vmem:[#allocation2 + $0x338] sm:$0xf0]  ;;  %v8262_v26 = vld [vmem:[#allocation2 + $0xd8] sm:$0xf] }
 0x207   :  { %1487 = vmatmul.bf16.vlgmr.msrb.gmra.mxu0 %v11968_v11  ;;  %1500 = vmatmul.bf16.vlgmr.msrb.gmra.mxu1 %v11970_v16  ;;  %v10700_v20 = vld [vmem:[#allocation2 + $0xf4] sm:$0xf0]  ;;  %v8555_v21 = vor.u32 %v10768_v15, %v8552_v12  ;;  %v8488_v59 = vld [vmem:[#allocation2 + $0x2b8] sm:$0xf0] }
 0x208   :  { %v8263_v34 = vor.u32 %v10700_v20, %v8262_v26  ;;  %v10748_v15 = vld [vmem:[#allocation2 + $0x274] sm:$0xf0]  ;;  %v10680_v12 = vld [vmem:[#allocation2 + $0x5c] sm:$0xf] }
 0x209   :  { %1506 = vmatpush.bf16.msrb.mxu2 %v8359_v33  ;;  %1519 = vmatpush.bf16.msrb.mxu3 %v8615_v25  ;;  %v8264_v33 = vld [vmem:[#allocation2 + $0xf8] sm:$0xf0] }
 0x20a   :  { %1532 = vmatpush.bf16.msra.mxu0 %v8363_v28  ;;  %1545 = vmatpush.bf16.msra.mxu1 %v8619_v44  ;;  %v10760_v25 = vld [vmem:[#allocation2 + $0x2dc] sm:$0xf]  ;;  %v8519_v28 = vor.u32 %v10764_v38, %v8518_v22  ;;  %v8230_v44 = vld [vmem:[#allocation2 + $0x98] sm:$0xf]  ;;  %v8267_v47 = vor.u32 %v10696_v29, %v8264_v33 }
 0x20b   :  { %v8523_v37 = vor.u32 %v10760_v25, %v8520_v32  ;;  %v8231_v0 = vor.u32 %v10692_v46, %v8230_v44  ;;  %v8456_v26 = vld [vmem:[#allocation2 + $0x278] sm:$0xf0]  ;;  %v10676_v22 = vld [vmem:[#allocation2 + $0x34] sm:$0xf0] }
 0x20c   :  { %v8422_v33 = vld [vmem:[#allocation2 + $0x218] sm:$0xf]  ;;  %v10672_v32 = vld [vmem:[#allocation2 + $0x1c] sm:$0xf] }
 0x20d   :  { %1507 = vmatpush.bf16.msrb.mxu2 %v8327_v13  ;;  %1520 = vmatpush.bf16.msrb.mxu3 %v8583_v63  ;;  %v8232_v13 = vld [vmem:[#allocation2 + $0xb8] sm:$0xf0]  ;;  %v10740_v25 = vld [vmem:[#allocation2 + $0x234] sm:$0xf0] }
 0x20e   :  { %1533 = vmatpush.bf16.msra.mxu0 %v8331_v54  ;;  %1546 = vmatpush.bf16.msra.mxu1 %v8587_v61  ;;  %v10752_v63 = vld [vmem:[#allocation2 + $0x29c] sm:$0xf]  ;;  %v8487_v54 = vor.u32 %v10756_v49, %v8486_v31  ;;  %v8198_v61 = vld [vmem:[#allocation2 + $0x58] sm:$0xf]  ;;  %v8235_v51 = vor.u32 %v10688_v45, %v8232_v13 }
 0x20f   :  { %v8491_v23 = vor.u32 %v10752_v63, %v8488_v59  ;;  %v8199_v20 = vor.u32 %v10684_v41, %v8198_v61  ;;  %v8424_v44 = vld [vmem:[#allocation2 + $0x238] sm:$0xf0]  ;;  %v11989_v41 = vmul.u32 2, %v11460_v2 }
 0x211   :  { %1508 = vmatpush.bf16.msrb.mxu2 %v8295_v18  ;;  %1521 = vmatpush.bf16.msrb.mxu3 %v8551_v14  ;;  %v8200_v18 = vld [vmem:[#allocation2 + $0x78] sm:$0xf0]  ;;  %14577 = vst [vmem:[#allocation46_spill] sm:$0xff] %v11989_v41  ;;  %vm1567_vm6 = vcmp.eq.s32.totalorder %v11458_v1, %v11989_v41  ;;  %vm1568_vm8 = vcmp.eq.s32.totalorder %v11846_v55, %v11989_v41 }
 0x212   :  { %1534 = vmatpush.bf16.msra.mxu0 %v8299_v27  ;;  %1547 = vmatpush.bf16.msra.mxu1 %v8555_v21  ;;  %v10744_v14 = vld [vmem:[#allocation2 + $0x25c] sm:$0xf]  ;;  %v8455_v27 = vor.u32 %v10748_v15, %v8454_v60  ;;  %v8166_v21 = vld [vmem:[#allocation2 + $0x18] sm:$0xf]  ;;  %v8203_v38 = vor.u32 %v10680_v12, %v8200_v18 }
 0x213   :  { %v8459_v29 = vor.u32 %v10744_v14, %v8456_v26  ;;  %v8167_v46 = vor.u32 %v10676_v22, %v8166_v21 }
 0x215   :  { %1509 = vmatpush.bf16.msrb.mxu2 %v8263_v34  ;;  %1522 = vmatpush.bf16.msrb.mxu3 %v8519_v28  ;;  %v8168_v34 = vld [vmem:[#allocation2 + $0x38] sm:$0xf0] }
 0x216   :  { %1535 = vmatpush.bf16.msra.mxu0 %v8267_v47  ;;  %1548 = vmatpush.bf16.msra.mxu1 %v8523_v37  ;;  %v10736_v28 = vld [vmem:[#allocation2 + $0x21c] sm:$0xf]  ;;  %v8423_v47 = vor.u32 %v10740_v25, %v8422_v33  ;;  %v8171_v37 = vor.u32 %v10672_v32, %v8168_v34 }
 0x217   :  { %v8427_v31 = vor.u32 %v10736_v28, %v8424_v44 }
 0x219   :  { %1510 = vmatpush.bf16.msrb.mxu2 %v8231_v0  ;;  %1523 = vmatpush.bf16.msrb.mxu3 %v8487_v54 }
 0x21a   :  { %1536 = vmatpush.bf16.msra.mxu0 %v8235_v51  ;;  %1549 = vmatpush.bf16.msra.mxu1 %v8491_v23 }
 0x21d   :  { %1511 = vmatpush.bf16.msrb.mxu2 %v8199_v20  ;;  %1524 = vmatpush.bf16.msrb.mxu3 %v8455_v27  ;;  %v12006_v27 = vadd.s32 1, %v11989_v41 }
 0x21e   :  { %1537 = vmatpush.bf16.msra.mxu0 %v8203_v38  ;;  %1550 = vmatpush.bf16.msra.mxu1 %v8459_v29 }
 0x21f   :  { %14578 = vst [vmem:[#allocation47_spill] sm:$0xff] %v12006_v27  ;;  %vm1572_vm9 = vcmp.eq.s32.totalorder %v11458_v1, %v12006_v27  ;;  %vm1573_vm10 = vcmp.eq.s32.totalorder %v11846_v55, %v12006_v27 }
 0x221   :  { %1512 = vmatpush.bf16.msrb.mxu2 %v8167_v46  ;;  %1525 = vmatpush.bf16.msrb.mxu3 %v8423_v47  ;;  %v1557_v46 = vand.u32 3, %v11460_v2  ;;  %v12023_v47 = vadd.s32 4294967295, %v11989_v41 }
 0x222   :  { %1538 = vmatpush.bf16.msra.mxu0 %v8171_v37  ;;  %1551 = vmatpush.bf16.msra.mxu1 %v8427_v31 }
 0x223   :  { %14580 = vst [vmem:[#allocation49_spill] sm:$0xff] %v12023_v47  ;;  %vm1560_vm11 = vcmp.eq.s32.totalorder %v11458_v1, %v12023_v47  ;;  %vm1562_vm12 = vcmp.ne.s32.totalorder %v1557_v46, 0  ;;  %vm1561_vm15 = vcmp.eq.s32.totalorder %v11846_v55, %v12023_v47  ;;  %vm12051_vm2 = vcmp.ne.s32.totalorder %v1557_v46, 3 }
 0x224   :  { %1513 = vmatmul.bf16.vlgmr.msrb.gmra.mxu2 %v11968_v11  ;;  %1526 = vmatmul.bf16.vlgmr.msrb.gmra.mxu3 %v11970_v16  ;;  %vm1563_vm14 = vmand %vm1560_vm11, %vm1562_vm12  ;;  %v1831_v46 = vand.u32 31, %v11484_v10 }
 0x225   :  { %1539 = vmatmul.bf16.vlgmr.msra.gmra.mxu0 %v11968_v11  ;;  %1552 = vmatmul.bf16.vlgmr.msra.gmra.mxu1 %v11970_v16  ;;  %v14408_v11 = vmov 0.0   ;;  %vm1564_vm0 = vmand %vm1561_vm15, %vm1562_vm12 }
 0x226   :  { %v11994_v16 = vsel %vm1567_vm6, 1.0, %v14408_v11  ;;  %v12003_v20 = vsel %vm1568_vm8, 1.0, %v14408_v11  ;;  %v12015_v25 = vsel %vm1572_vm9, 1.0, %v14408_v11  ;;  %vm1863_vm12 = vcmp.eq.s32.totalorder %v1831_v46, %v11460_v2 }
 0x227   :  { %14579 = vst [vmem:[#allocation48_spill] sm:$0xff] %v12015_v25 }
 0x261   :  { %v1384_v49 = vpop.f32.mrf.mxu0  ;;  %v1397_v45 = vpop.f32.mrf.mxu1 }
 0x262   :  { %v1398_v32 = vadd.f32 %v1397_v45, %v1384_v49  ;;  %v12028_v49 = vsel %vm1573_vm10, 1.0, %v14408_v11 }
 0x263   :  { %14581 = vst [vmem:[#allocation50_spill] sm:$0xff] %v12028_v49 }
 0x266   :  { %v1358_v13 = vpop.f32.mrf.mxu2  ;;  %v1371_v63 = vpop.f32.mrf.mxu3 }
 0x267   :  { %v1372_v37 = vadd.f32 %v1371_v63, %v1358_v13  ;;  %v1565_v13 = vsel %vm1563_vm14, 1.0, %v14408_v11  ;;  %v12044_v63 = vadd.s32 2, %v11989_v41 }
 0x269   :  { %v1386_v59 = vpop.f32.mrf.mxu0  ;;  %v1399_v0 = vpop.f32.mrf.mxu1  ;;  %14582 = vst [vmem:[#allocation51_spill] sm:$0xff] %v12044_v63  ;;  %vm1577_vm1 = vcmp.eq.s32.totalorder %v11458_v1, %v12044_v63  ;;  %vm1578_vm4 = vcmp.eq.s32.totalorder %v11846_v55, %v12044_v63 }
 0x26a   :  { %vm1580_vm3 = vmand %vm1577_vm1, %vm12051_vm2 }
 0x26b   :  { %vm1581_vm5 = vmand %vm1578_vm4, %vm12051_vm2 }
 0x26e   :  { %v1360_v54 = vpop.f32.mrf.mxu2  ;;  %v1373_v61 = vpop.f32.mrf.mxu3 }
 0x26f   :  { %v1566_v61 = vsel %vm1564_vm0, 1.0, %v14408_v11  ;;  %v1814_v54 = vand.u32 31, %v11563_v42 }
 0x271   :  { %v1436_v51 = vpop.f32.mrf.mxu0  ;;  %v1449_v23 = vpop.f32.mrf.mxu1 }
 0x272   :  { %v1450_v60 = vadd.f32 %v1449_v23, %v1436_v51 }
 0x274   :  { %1681 = vmatpush.msrb.mxu1 %v1450_v60 }
 0x275   :  { %8659 = vmatmul.msk.f32.vlgmr.msrb.gmra.mxu1 %vm14435_vm7, %v11994_v16 }
 0x276   :  { %v1410_v15 = vpop.f32.mrf.mxu2  ;;  %v1423_v12 = vpop.f32.mrf.mxu3 }
 0x277   :  { %v1424_v18 = vadd.f32 %v1423_v12, %v1410_v15  ;;  %v1582_v15 = vsel %vm1580_vm3, 1.0, %v14408_v11 }
 0x279   :  { %v1438_v14 = vpop.f32.mrf.mxu0  ;;  %v1451_v26 = vpop.f32.mrf.mxu1  ;;  %1658 = vmatpush.msrb.mxu0 %v1424_v18 }
 0x27a   :  { %8657 = vmatmul.msk.f32.vlgmr.msrb.gmra.mxu0 %vm14435_vm7, %v11994_v16 }
 0x27d   :  { %8660 = vmatmul.msk.f32.gmra.mxu1 %vm14435_vm7, %v12003_v20 }
 0x27e   :  { %v1412_v21 = vpop.f32.mrf.mxu2  ;;  %v1425_v22 = vpop.f32.mrf.mxu3 }
 0x27f   :  { %v1583_v22 = vsel %vm1581_vm5, 1.0, %v14408_v11 }
 0x282   :  { %8658 = vmatmul.msk.f32.gmra.mxu0 %vm14435_vm7, %v12003_v20 }
 0x284   :  { %v1488_v38 = vpop.f32.mrf.mxu0  ;;  %v1501_v29 = vpop.f32.mrf.mxu1 }
 0x285   :  { %v1502_v33 = vadd.f32 %v1501_v29, %v1488_v38 }
 0x287   :  { %1629 = vmatpush.msra.mxu3 %v1502_v33  ;;  %v1462_v34 = vpop.f32.mrf.mxu2  ;;  %v1475_v28 = vpop.f32.mrf.mxu3  ;;  %v1834_v33 = vand.u32 31, %v11466_v4 }
 0x288   :  { %8655 = vmatmul.msk.f32.vlgmr.msra.gmra.mxu3 %vm14435_vm7, %v12015_v25  ;;  %v1476_v44 = vadd.f32 %v1475_v28, %v1462_v34  ;;  %v14585_v34 = vmov 1.0   ;;  %v1832_v28 = vand.u32 31, %v11478_v8 }
 0x289   :  { %1733 = vmatpush.msrb.mxu3 %v1398_v32  ;;  %vm1866_vm6 = vcmp.eq.s32.totalorder %v1834_v33, %v11460_v2  ;;  %v1833_v32 = vand.u32 31, %v11472_v6  ;;  %v1822_v33 = vand.u32 31, %v11819_v43 }
 0x28a   :  { %1606 = vmatpush.msra.mxu2 %v1476_v44  ;;  %vm1864_vm9 = vcmp.eq.s32.totalorder %v1832_v28, %v11460_v2  ;;  %v1818_v44 = vand.u32 31, %v11463_v3  ;;  %v1808_v28 = vand.u32 31, %v11794_v35  ;;  %v9243_v35 = vld [vmem:[#allocation4 + $0x3c8] sm:$0xf] }
 0x28b   :  { %8653 = vmatmul.msk.f32.vlgmr.msra.gmra.mxu2 %vm14435_vm7, %v12015_v25  ;;  %8685 = vmatpush.msk.msra.mxu3 %vm1866_vm6, %v14585_v34  ;;  %vm1865_vm8 = vcmp.eq.s32.totalorder %v1833_v32, %v11460_v2 }
 0x28c   :  { %v1490_v31 = vpop.f32.mrf.mxu0  ;;  %v1503_v59 = vpop.f32.mrf.mxu1  ;;  %1710 = vmatpush.msrb.mxu2 %v1372_v37  ;;  %vm1850_vm10 = vcmp.eq.s32.totalorder %v1818_v44, %v11460_v2  ;;  %v1817_v37 = vand.u32 31, %v11469_v5  ;;  %v1821_v44 = vand.u32 31, %v11833_v50 }
 0x28d   :  { %8686 = vmatpush.msk.msra.mxu3 %vm1865_vm8, %v14585_v34  ;;  %v1830_v31 = vand.u32 31, %v11587_v48  ;;  %v1816_v59 = vand.u32 31, %v11475_v7 }
 0x28e   :  { %8669 = vmatpush.msk.msra.mxu2 %vm1850_vm10, %v14585_v34  ;;  %vm1849_vm14 = vcmp.eq.s32.totalorder %v1817_v37, %v11460_v2  ;;  %v1807_v37 = vand.u32 31, %v11806_v39  ;;  %v9205_v39 = vld [vmem:[#allocation4 + $0x3a0] sm:$0xf0] }
 0x28f   :  { %v1464_v45 = vpop.f32.mrf.mxu2  ;;  %v1477_v0 = vpop.f32.mrf.mxu3  ;;  %8687 = vmatpush.msk.msra.mxu3 %vm1864_vm9, %v14585_v34  ;;  %vm1862_vm0 = vcmp.eq.s32.totalorder %v1830_v31, %v11460_v2  ;;  %vm1848_vm2 = vcmp.eq.s32.totalorder %v1816_v59, %v11460_v2  ;;  %v14586_v31 = vld [vmem:[#allocation43_spill] sm:$0xff] }
 0x290   :  { %8656 = vmatmul.msk.f32.gmra.mxu3 %vm14435_vm7, %v12028_v49  ;;  %v1829_v45 = vand.u32 31, %v11605_v53  ;;  %8670 = vmatpush.msk.msra.mxu2 %vm1849_vm14, %v14585_v34  ;;  %v1815_v0 = vand.u32 31, %v11481_v9  ;;  %v1820_v59 = vand.u32 31, %v14586_v31 }
 0x291   :  { %8688 = vmatpush.msk.msra.mxu3 %vm1863_vm12, %v14585_v34 }
 0x292   :  { %vm1861_vm3 = vcmp.eq.s32.totalorder %v1829_v45, %v11460_v2  ;;  %8671 = vmatpush.msk.msra.mxu2 %vm1848_vm2, %v14585_v34  ;;  %vm1847_vm5 = vcmp.eq.s32.totalorder %v1815_v0, %v11460_v2  ;;  %v14587_v45 = vld [vmem:[#allocation38_spill] sm:$0xff] }
 0x293   :  { %8654 = vmatmul.msk.f32.gmra.mxu2 %vm14435_vm7, %v12028_v49  ;;  %8689 = vmatpush.msk.msra.mxu3 %vm1862_vm0, %v14585_v34  ;;  %v1806_v0 = vand.u32 31, %v14587_v45 }
 0x294   :  { %8672 = vmatpush.msk.msra.mxu2 %vm1847_vm5, %v14585_v34 }
 0x295   :  { %8690 = vmatpush.msk.msra.mxu3 %vm1861_vm3, %v14585_v34 }
 0x298   :  { %8663 = vmatmul.msk.f32.vlgmr.msrb.gmra.mxu3 %vm14435_vm7, %v1565_v13 }
 0x29b   :  { %8661 = vmatmul.msk.f32.vlgmr.msrb.gmra.mxu2 %vm14435_vm7, %v1565_v13  ;;  %v1828_v13 = vand.u32 31, %v11618_v57  ;;  %v10922_v57 = vld [vmem:[#allocation4 + $0x3e4] sm:$0xf0] }
 0x2a0   :  { %8664 = vmatmul.msk.f32.gmra.mxu3 %vm14435_vm7, %v1566_v61 }
 0x2a2   :  { %v1540_v51 = vpop.f32.mrf.mxu0  ;;  %v1553_v23 = vpop.f32.mrf.mxu1 }
 0x2a3   :  { %v1554_v60 = vadd.f32 %v1553_v23, %v1540_v51  ;;  %8662 = vmatmul.msk.f32.gmra.mxu2 %vm14435_vm7, %v1566_v61  ;;  %v1827_v61 = vand.u32 31, %v11634_v62  ;;  %v1813_v51 = vand.u32 31, %v11602_v52  ;;  %v1826_v23 = vand.u32 31, %v11670_v19  ;;  %v10909_v19 = vld [vmem:[#allocation4 + $0x384] sm:$0xf] }
 0x2a5   :  { %1789 = vmatpush.msra.mxu1 %v1554_v60 }
 0x2a6   :  { %8667 = vmatmul.msk.f32.vlgmr.msra.gmra.mxu1 %vm14435_vm7, %v1582_v15 }
 0x2a7   :  { %v1514_v12 = vpop.f32.mrf.mxu2  ;;  %v1527_v18 = vpop.f32.mrf.mxu3  ;;  %8717 = vmatpush.msk.msrb.mxu1 %vm1866_vm6, %v14585_v34  ;;  %vm1860_vm6 = vcmp.eq.s32.totalorder %v1828_v13, %v11460_v2  ;;  %v14588_v13 = vld [vmem:[#allocation44_spill] sm:$0xff] }
 0x2a8   :  { %v1528_v14 = vadd.f32 %v1527_v18, %v1514_v12  ;;  %8691 = vmatpush.msk.msra.mxu3 %vm1860_vm6, %v14585_v34  ;;  %v1825_v12 = vand.u32 31, %v11789_v30  ;;  %v1811_v18 = vand.u32 31, %v11621_v58 }
 0x2a9   :  { %8718 = vmatpush.msk.msrb.mxu1 %vm1865_vm8, %v14585_v34  ;;  %vm1846_vm8 = vcmp.eq.s32.totalorder %v1814_v54, %v11460_v2  ;;  %v1819_v54 = vand.u32 31, %v14588_v13 }
 0x2aa   :  { %v1542_v26 = vpop.f32.mrf.mxu0  ;;  %v1555_v21 = vpop.f32.mrf.mxu1  ;;  %1766 = vmatpush.msra.mxu0 %v1528_v14  ;;  %8673 = vmatpush.msk.msra.mxu2 %vm1846_vm8, %v14585_v34  ;;  %v1824_v14 = vand.u32 31, %v11797_v36 }
 0x2ab   :  { %8665 = vmatmul.msk.f32.vlgmr.msra.gmra.mxu0 %vm14435_vm7, %v1582_v15  ;;  %8719 = vmatpush.msk.msrb.mxu1 %vm1864_vm9, %v14585_v34  ;;  %vm1859_vm9 = vcmp.eq.s32.totalorder %v1827_v61, %v11460_v2  ;;  %v1812_v15 = vand.u32 31, %v11615_v56  ;;  %v1810_v21 = vand.u32 31, %v11663_v17 }
 0x2ac   :  { %8701 = vmatpush.msk.msrb.mxu0 %vm1850_vm10, %v14585_v34  ;;  %8692 = vmatpush.msk.msra.mxu3 %vm1859_vm9, %v14585_v34  ;;  %vm1845_vm10 = vcmp.eq.s32.totalorder %v1813_v51, %v11460_v2 }
 0x2ad   :  { %8720 = vmatpush.msk.msrb.mxu1 %vm1863_vm12, %v14585_v34  ;;  %vm1858_vm12 = vcmp.eq.s32.totalorder %v1826_v23, %v11460_v2  ;;  %8674 = vmatpush.msk.msra.mxu2 %vm1845_vm10, %v14585_v34  ;;  %v14589_v23 = vld [vmem:[#allocation40_spill] sm:$0xff] }
 0x2ae   :  { %8668 = vmatmul.msk.f32.gmra.mxu1 %vm14435_vm7, %v1583_v22  ;;  %8702 = vmatpush.msk.msrb.mxu0 %vm1849_vm14, %v14585_v34  ;;  %vm1844_vm14 = vcmp.eq.s32.totalorder %v1812_v15, %v11460_v2  ;;  %v1805_v15 = vand.u32 31, %v14589_v23 }
 0x2af   :  { %v1516_v38 = vpop.f32.mrf.mxu2  ;;  %v1529_v29 = vpop.f32.mrf.mxu3  ;;  %8721 = vmatpush.msk.msrb.mxu1 %vm1862_vm0, %v14585_v34  ;;  %8693 = vmatpush.msk.msra.mxu3 %vm1858_vm12, %v14585_v34  ;;  %vm1857_vm0 = vcmp.eq.s32.totalorder %v1825_v12, %v11460_v2  ;;  %v1804_v12 = vand.u32 31, %v11846_v55 }
 0x2b0   :  { %8703 = vmatpush.msk.msrb.mxu0 %vm1848_vm2, %v14585_v34  ;;  %8675 = vmatpush.msk.msra.mxu2 %vm1844_vm14, %v14585_v34  ;;  %vm1843_vm2 = vcmp.eq.s32.totalorder %v1811_v18, %v11460_v2  ;;  %v1809_v29 = vand.u32 31, %v11786_v24  ;;  %v10848_v24 = vld [vmem:[#allocation4 + $0x19c] sm:$0xf] }
 0x2b1   :  { %8722 = vmatpush.msk.msrb.mxu1 %vm1861_vm3, %v14585_v34  ;;  %8694 = vmatpush.msk.msra.mxu3 %vm1857_vm0, %v14585_v34  ;;  %vm1856_vm3 = vcmp.eq.s32.totalorder %v1824_v14, %v11460_v2  ;;  %v1803_v14 = vand.u32 31, %v11458_v1 }
 0x2b2   :  { %8704 = vmatpush.msk.msrb.mxu0 %vm1847_vm5, %v14585_v34  ;;  %8676 = vmatpush.msk.msra.mxu2 %vm1843_vm2, %v14585_v34  ;;  %vm1842_vm5 = vcmp.eq.s32.totalorder %v1810_v21, %v11460_v2 }
 0x2b3   :  { %8666 = vmatmul.msk.f32.gmra.mxu0 %vm14435_vm7, %v1583_v22  ;;  %8723 = vmatpush.msk.msrb.mxu1 %vm1860_vm6, %v14585_v34  ;;  %v1823_v22 = vand.u32 31, %v11809_v40 }
 0x2b4   :  { %8705 = vmatpush.msk.msrb.mxu0 %vm1846_vm8, %v14585_v34  ;;  %8695 = vmatpush.msk.msra.mxu3 %vm1856_vm3, %v14585_v34  ;;  %vm1841_vm8 = vcmp.eq.s32.totalorder %v1809_v29, %v11460_v2 }
 0x2b5   :  { %8724 = vmatpush.msk.msrb.mxu1 %vm1859_vm9, %v14585_v34  ;;  %vm1855_vm6 = vcmp.eq.s32.totalorder %v1823_v22, %v11460_v2  ;;  %8677 = vmatpush.msk.msra.mxu2 %vm1842_vm5, %v14585_v34  ;;  %vm1854_vm9 = vcmp.eq.s32.totalorder %v1822_v33, %v11460_v2 }
 0x2b6   :  { %8706 = vmatpush.msk.msrb.mxu0 %vm1845_vm10, %v14585_v34  ;;  %8696 = vmatpush.msk.msra.mxu3 %vm1855_vm6, %v14585_v34  ;;  %vm1840_vm10 = vcmp.eq.s32.totalorder %v1808_v28, %v11460_v2 }
 0x2b7   :  { %8725 = vmatpush.msk.msrb.mxu1 %vm1858_vm12, %v14585_v34  ;;  %8678 = vmatpush.msk.msra.mxu2 %vm1841_vm8, %v14585_v34  ;;  %vm1853_vm12 = vcmp.eq.s32.totalorder %v1821_v44, %v11460_v2 }
 0x2b8   :  { %8707 = vmatpush.msk.msrb.mxu0 %vm1844_vm14, %v14585_v34  ;;  %8697 = vmatpush.msk.msra.mxu3 %vm1854_vm9, %v14585_v34  ;;  %vm1839_vm14 = vcmp.eq.s32.totalorder %v1807_v37, %v11460_v2 }
 0x2b9   :  { %8726 = vmatpush.msk.msrb.mxu1 %vm1857_vm0, %v14585_v34  ;;  %8679 = vmatpush.msk.msra.mxu2 %vm1840_vm10, %v14585_v34  ;;  %vm1852_vm0 = vcmp.eq.s32.totalorder %v1820_v59, %v11460_v2 }
 0x2ba   :  { %8708 = vmatpush.msk.msrb.mxu0 %vm1843_vm2, %v14585_v34  ;;  %8698 = vmatpush.msk.msra.mxu3 %vm1853_vm12, %v14585_v34  ;;  %vm1838_vm2 = vcmp.eq.s32.totalorder %v1806_v0, %v11460_v2 }
 0x2bb   :  { %8727 = vmatpush.msk.msrb.mxu1 %vm1856_vm3, %v14585_v34  ;;  %8680 = vmatpush.msk.msra.mxu2 %vm1839_vm14, %v14585_v34  ;;  %vm1851_vm3 = vcmp.eq.s32.totalorder %v1819_v54, %v11460_v2 }
 0x2bc   :  { %8709 = vmatpush.msk.msrb.mxu0 %vm1842_vm5, %v14585_v34  ;;  %8699 = vmatpush.msk.msra.mxu3 %vm1852_vm0, %v14585_v34  ;;  %vm1837_vm5 = vcmp.eq.s32.totalorder %v1805_v15, %v11460_v2 }
 0x2bd   :  { %8728 = vmatpush.msk.msrb.mxu1 %vm1855_vm6, %v14585_v34  ;;  %8681 = vmatpush.msk.msra.mxu2 %vm1838_vm2, %v14585_v34  ;;  %vm1836_vm6 = vcmp.eq.s32.totalorder %v1804_v12, %v11460_v2 }
 0x2be   :  { %8710 = vmatpush.msk.msrb.mxu0 %vm1841_vm8, %v14585_v34  ;;  %8700 = vmatpush.msk.msra.mxu3 %vm1851_vm3, %v14585_v34  ;;  %vm1835_vm8 = vcmp.eq.s32.totalorder %v1803_v14, %v11460_v2 }
 0x2bf   :  { %8729 = vmatpush.msk.msrb.mxu1 %vm1854_vm9, %v14585_v34  ;;  %8682 = vmatpush.msk.msra.mxu2 %vm1837_vm5, %v14585_v34 }
 0x2c0   :  { %8711 = vmatpush.msk.msrb.mxu0 %vm1840_vm10, %v14585_v34 }
 0x2c1   :  { %8730 = vmatpush.msk.msrb.mxu1 %vm1853_vm12, %v14585_v34  ;;  %8683 = vmatpush.msk.msra.mxu2 %vm1836_vm6, %v14585_v34 }
 0x2c2   :  { %8712 = vmatpush.msk.msrb.mxu0 %vm1839_vm14, %v14585_v34 }
 0x2c3   :  { %8731 = vmatpush.msk.msrb.mxu1 %vm1852_vm0, %v14585_v34  ;;  %8684 = vmatpush.msk.msra.mxu2 %vm1835_vm8, %v14585_v34 }
 0x2c4   :  { %8713 = vmatpush.msk.msrb.mxu0 %vm1838_vm2, %v14585_v34 }
 0x2c5   :  { %8732 = vmatpush.msk.msrb.mxu1 %vm1851_vm3, %v14585_v34 }
 0x2c6   :  { %8714 = vmatpush.msk.msrb.mxu0 %vm1837_vm5, %v14585_v34 }
 0x2c8   :  { %8715 = vmatpush.msk.msrb.mxu0 %vm1836_vm6, %v14585_v34 }
 0x2ca   :  { %8716 = vmatpush.msk.msrb.mxu0 %vm1835_vm8, %v14585_v34 }
 0x2f2   :  { %v12145_v26 = vpop.f32.mrf.mxu1 }
 0x2f7   :  { %v1660_v46 = vpop.f32.mrf.mxu0 }
 0x2fa   :  { %v1686_v51 = vpop.f32.mrf.mxu1 }
 0x2ff   :  { %v1663_v21 = vpop.f32.mrf.mxu0 }
 0x30b   :  { %v12129_v60 = vpop.f32.mrf.mxu3 }
 0x30c   :  { %v1684_v33 = vadd.f32 %v12145_v26, %v12129_v60 }
 0x30e   :  { %v12155_v38 = vpop.f32.mrf.mxu2 }
 0x30f   :  { %v1661_v15 = vadd.f32 %v1660_v46, %v12155_v38 }
 0x313   :  { %v1634_v32 = vpop.f32.mrf.mxu3 }
 0x314   :  { %v1687_v44 = vadd.f32 %v1686_v51, %v1634_v32 }
 0x316   :  { %v1611_v61 = vpop.f32.mrf.mxu2 }
 0x317   :  { %v1664_v13 = vadd.f32 %v1663_v21, %v1611_v61 }
 0x31b   :  { %v1735_v18 = vpop.f32.mrf.mxu3 }
 0x31c   :  { %v1742_v37 = vadd.f32 %v1735_v18, %v1684_v33 }
 0x31e   :  { %v1712_v22 = vpop.f32.mrf.mxu2 }
 0x31f   :  { %v1741_v31 = vadd.f32 %v1712_v22, %v1661_v15 }
 0x323   :  { %v1791_v29 = vpop.f32.mrf.mxu1  ;;  %v1738_v28 = vpop.f32.mrf.mxu3 }
 0x324   :  { %v12213_v0 = vadd.f32 %v1791_v29, %v1742_v37  ;;  %v1744_v54 = vadd.f32 %v1738_v28, %v1687_v44 }
 0x326   :  { %v1715_v14 = vpop.f32.mrf.mxu2  ;;  %v1932_v50 = vmul.f32 %v12213_v0, %v12213_v0 }
 0x327   :  { %v1743_v51 = vadd.f32 %v1715_v14, %v1664_v13 }
 0x328   :  { %v1768_v59 = vpop.f32.mrf.mxu0 }
 0x329   :  { %v12224_v32 = vadd.f32 %v1768_v59, %v1741_v31 }
 0x32b   :  { %v1794_v12 = vpop.f32.mrf.mxu1  ;;  %v1931_v21 = vmul.f32 %v12224_v32, %v12224_v32 }
 0x32c   :  { %v12216_v11 = vadd.f32 %v1794_v12, %v1744_v54 }
 0x32e   :  { %v1924_v60 = vadd.f32 %v12216_v11, %v12213_v0  ;;  %v1934_v26 = vmul.f32 %v12216_v11, %v12216_v11 }
 0x330   :  { %v1925_v18 = vrot.slane %v1924_v60, 4  ;;  %v1942_v38 = vadd.f32 %v1934_v26, %v1932_v50  ;;  %v1771_v46 = vpop.f32.mrf.mxu0 }
 0x331   :  { %v12226_v29 = vadd.f32 %v1771_v46, %v1743_v51 }
 0x332   :  { %v1926_v33 = vadd.f32 %v1925_v18, %v1924_v60  ;;  %v1943_v61 = vrot.slane %v1942_v38, 4 }
 0x333   :  { %v1917_v22 = vadd.f32 %v12226_v29, %v12224_v32  ;;  %v1933_v28 = vmul.f32 %v12226_v29, %v12226_v29 }
 0x334   :  { %v1927_v44 = vrot.slane %v1926_v33, 2  ;;  %v1944_v31 = vadd.f32 %v1943_v61, %v1942_v38 }
 0x335   :  { %v1918_v37 = vrot.slane %v1917_v22, 4  ;;  %v1935_v13 = vadd.f32 %v1933_v28, %v1931_v21  ;;  %v12235_v21 = vand.u32 31, %v11460_v2 }
 0x336   :  { %v1928_v59 = vadd.f32 %v1927_v44, %v1926_v33  ;;  %v1945_v50 = vrot.slane %v1944_v31, 2 }
 0x337   :  { %v1919_v54 = vadd.f32 %v1918_v37, %v1917_v22  ;;  %v1936_v15 = vrot.slane %v1935_v13, 4  ;;  %14590 = vst [vmem:[#allocation52_spill] sm:$0xff] %v12235_v21  ;;  %v14591_v22 = vld [vmem:[#allocation45_spill] sm:$0xff]  ;;  %vm1907_vm9 = vcmp.eq.s32.totalorder %v12235_v21, %v14587_v45  ;;  %vm1905_vm12 = vcmp.eq.s32.totalorder %v12235_v21, %v14589_v23 }
 0x338   :  { %v1929_v12 = vrot.slane %v1928_v59, 1  ;;  %v1946_v14 = vadd.f32 %v1945_v50, %v1944_v31  ;;  %v1900_v28 = vand.u32 31, %v14591_v22  ;;  %8733 = vmatpush.msk.msrb.mxu2 %vm1907_vm9, %v14585_v34  ;;  %vm1903_vm0 = vcmp.eq.s32.totalorder %v12235_v21, %v11846_v55  ;;  %v8981_v22 = vld [vmem:[#allocation4 + $0x1e0] sm:$0xf0] }
 0x339   :  { %v1920_v60 = vrot.slane %v1919_v54, 2  ;;  %v1937_v26 = vadd.f32 %v1936_v15, %v1935_v13  ;;  %vm1901_vm3 = vcmp.eq.s32.totalorder %v12235_v21, %v11458_v1  ;;  %v10857_v15 = vld [vmem:[#allocation4 + $0x1dc] sm:$0xf0] }
 0x33a   :  { %v1930_v51 = vadd.f32 %v1929_v12, %v1928_v59  ;;  %v1947_v18 = vrot.slane %v1946_v14, 1  ;;  %vm1908_vm10 = vcmp.eq.s32.totalorder %v1900_v28, %v14587_v45  ;;  %vm1906_vm14 = vcmp.eq.s32.totalorder %v1900_v28, %v14589_v23  ;;  %8734 = vmatpush.msk.msrb.mxu2 %vm1905_vm12, %v14585_v34  ;;  %v9235_v12 = vld [vmem:[#allocation4 + $0x3c0] sm:$0xf] }
 0x33b   :  { %v1921_v46 = vadd.f32 %v1920_v60, %v1919_v54  ;;  %v1938_v43 = vrot.slane %v1937_v26, 2  ;;  %8738 = vmatpush.msk.msrb.mxu3 %vm1908_vm10, %v14585_v34  ;;  %vm1904_vm2 = vcmp.eq.s32.totalorder %v1900_v28, %v11846_v55  ;;  %vm1902_vm5 = vcmp.eq.s32.totalorder %v1900_v28, %v11458_v1  ;;  %v8979_v54 = vld [vmem:[#allocation4 + $0x1c0] sm:$0xf] }
 0x33c   :  { %1985 = vmatmul.f32.vlgmr.msra.gmra.mxu3 %v1930_v51  ;;  %v1948_v40 = vadd.f32 %v1947_v18, %v1946_v14  ;;  %8735 = vmatpush.msk.msrb.mxu2 %vm1903_vm0, %v14585_v34  ;;  %v8980_v14 = vor.u32 %v10857_v15, %v8979_v54  ;;  %v10921_v60 = vld [vmem:[#allocation4 + $0x3dc] sm:$0xf0] }
 0x33d   :  { %v1922_v36 = vrot.slane %v1921_v46, 1  ;;  %v1939_v30 = vadd.f32 %v1938_v43, %v1937_v26  ;;  %8739 = vmatpush.msk.msrb.mxu3 %vm1906_vm14, %v14585_v34  ;;  %v9236_v51 = vor.u32 %v10921_v60, %v9235_v12  ;;  %v8947_v18 = vld [vmem:[#allocation4 + $0x180] sm:$0xf] }
 0x33e   :  { %2025 = vmatmul.f32.vlgmr.msrb.gmra.mxu1 %v1948_v40  ;;  %8736 = vmatpush.msk.msrb.mxu2 %vm1901_vm3, %v14585_v34  ;;  %v10841_v28 = vld [vmem:[#allocation4 + $0x15c] sm:$0xf0] }
 0x33f   :  { %v1923_v38 = vadd.f32 %v1922_v36, %v1921_v46  ;;  %v1940_v61 = vrot.slane %v1939_v30, 1  ;;  %8740 = vmatpush.msk.msrb.mxu3 %vm1904_vm2, %v14585_v34  ;;  %2920 = vmatpush.bf16.msra.mxu0 %v8980_v14  ;;  %v10849_v46 = vld [vmem:[#allocation4 + $0x19c] sm:$0xf0] }
 0x340   :  { %2934 = vmatpush.bf16.msra.mxu1 %v9236_v51  ;;  %v10897_v54 = vld [vmem:[#allocation4 + $0x31c] sm:$0xf0] }
 0x341   :  { %1965 = vmatmul.f32.vlgmr.msra.gmra.mxu2 %v1923_v38  ;;  %v1941_v33 = vadd.f32 %v1940_v61, %v1939_v30  ;;  %8741 = vmatpush.msk.msrb.mxu3 %vm1902_vm5, %v14585_v34  ;;  %v9203_v38 = vld [vmem:[#allocation4 + $0x380] sm:$0xf]  ;;  %v8948_v61 = vor.u32 %v10849_v46, %v8947_v18 }
 0x342   :  { %8743 = vmatpush.msk.msra.mxu2 %vm1907_vm9, %v14585_v34  ;;  %v8851_v51 = vld [vmem:[#allocation4 + $0xc0] sm:$0xf] }
 0x343   :  { %2005 = vmatmul.f32.vlgmr.msrb.gmra.mxu0 %v1941_v33  ;;  %8748 = vmatpush.msk.msra.mxu3 %vm1908_vm10, %v14585_v34  ;;  %v10913_v33 = vld [vmem:[#allocation4 + $0x39c] sm:$0xf0]  ;;  %vm2047_vm10 = vcmask 261120  }
 0x344   :  { %8744 = vmatpush.msk.msra.mxu2 %vm1905_vm12, %v14585_v34  ;;  %2921 = vmatpush.bf16.msra.mxu0 %v8948_v61  ;;  %v10825_v18 = vld [vmem:[#allocation4 + $0xdc] sm:$0xf0]  ;;  %vm3175_vm12 = vcmask 130048  }
 0x345   :  { %8749 = vmatpush.msk.msra.mxu3 %vm1906_vm14, %v14585_v34  ;;  %v8852_v61 = vor.u32 %v10825_v18, %v8851_v51  ;;  %vm3156_vm14 = vcmp.eq.s32.totalorder %v14589_v23, %v11989_v41 }
 0x346   :  { %8745 = vmatpush.msk.msra.mxu2 %vm1903_vm0, %v14585_v34  ;;  %vm3157_vm0 = vcmp.eq.s32.totalorder %v14587_v45, %v11989_v41 }
 0x347   :  { %8750 = vmatpush.msk.msra.mxu3 %vm1904_vm2, %v14585_v34  ;;  %vm3160_vm2 = vcmp.eq.s32.totalorder %v14589_v23, %v12006_v27 }
 0x348   :  { %8746 = vmatpush.msk.msra.mxu2 %vm1901_vm3, %v14585_v34  ;;  %vm3161_vm3 = vcmp.eq.s32.totalorder %v14587_v45, %v12006_v27 }
 0x349   :  { %8751 = vmatpush.msk.msra.mxu3 %vm1902_vm5, %v14585_v34 }
 0x3bb   :  { %v2026_v36 = vpop.f32.mrf.mxu1 }
 0x3bf   :  { %v1986_v40 = vpop.f32.mrf.mxu3 }
 0x3c0   :  { %v2006_v30 = vpop.f32.mrf.mxu0 }
 0x3c1   :  { %v2027_v44 = vadd.f32 %v2026_v36, %v2006_v30  ;;  %v9204_v30 = vor.u32 %v10913_v33, %v9203_v38  ;;  %v8915_v36 = vld [vmem:[#allocation4 + $0x140] sm:$0xf] }
 0x3c2   :  { %v9107_v38 = vld [vmem:[#allocation4 + $0x2c0] sm:$0xf] }
 0x3c3   :  { %v2030_v13 = vmul.f32 0.0078125, %v2027_v44  ;;  %v8916_v44 = vor.u32 %v10841_v28, %v8915_v36  ;;  %2935 = vmatpush.bf16.msra.mxu1 %v9204_v30  ;;  %v10889_v33 = vld [vmem:[#allocation4 + $0x2dc] sm:$0xf0] }
 0x3c4   :  { %v1966_v43 = vpop.f32.mrf.mxu2  ;;  %v9108_v30 = vor.u32 %v10889_v33, %v9107_v38  ;;  %v8819_v36 = vld [vmem:[#allocation4 + $0x80] sm:$0xf]  ;;  %v8949_v33 = vld [vmem:[#allocation4 + $0x1a0] sm:$0xf0] }
 0x3c5   :  { %v1987_v31 = vadd.f32 %v1986_v40, %v1966_v43  ;;  %v9171_v40 = vld [vmem:[#allocation4 + $0x340] sm:$0xf]  ;;  %2922 = vmatpush.bf16.msra.mxu0 %v8916_v44  ;;  %v10917_v44 = vld [vmem:[#allocation4 + $0x3c4] sm:$0xf] }
 0x3c6   :  { %v10905_v43 = vld [vmem:[#allocation4 + $0x35c] sm:$0xf0] }
 0x3c7   :  { %v12292_v37 = vmul.f32 0.0078125, %v1987_v31  ;;  %v9172_v31 = vor.u32 %v10905_v43, %v9171_v40  ;;  %v10817_v28 = vld [vmem:[#allocation4 + $0x9c] sm:$0xf0]  ;;  %v10853_v43 = vld [vmem:[#allocation4 + $0x1c4] sm:$0xf] }
 0x3c8   :  { %v8984_v51 = vor.u32 %v10853_v43, %v8981_v22  ;;  %v1802_v22 = vld [vmem:[%s14389_s9] sm:$0x1]  ;;  %v10837_v43 = vld [vmem:[#allocation4 + $0x144] sm:$0xf] }
 0x3c9   :  { %v2031_v59 = vmul.f32 %v12292_v37, %v12292_v37  ;;  %2936 = vmatpush.bf16.msra.mxu1 %v9172_v31  ;;  %v1801_v31 = vld [vmem:[%s14388_s8] sm:$0x1] }
 0x3cb   :  { %v2032_v50 = vsub.f32 %v2030_v13, %v2031_v59  ;;  %v8883_v13 = vld [vmem:[#allocation4 + $0x100] sm:$0xf] }
 0x3cc   :  { %v10833_v59 = vld [vmem:[#allocation4 + $0x11c] sm:$0xf0] }
 0x3cd   :  { %v2033_v26 = vadd.f32 1e-05, %v2032_v50  ;;  %v9139_v50 = vld [vmem:[#allocation4 + $0x300] sm:$0xf]  ;;  %v8884_v14 = vor.u32 %v10833_v59, %v8883_v13  ;;  %v9237_v13 = vld [vmem:[#allocation4 + $0x3e0] sm:$0xf0] }
 0x3ce   :  { %v9140_v60 = vor.u32 %v10897_v54, %v9139_v50  ;;  %v8820_v50 = vor.u32 %v10817_v28, %v8819_v36  ;;  %v9075_v54 = vld [vmem:[#allocation4 + $0x280] sm:$0xf]  ;;  %v9240_v18 = vor.u32 %v10917_v44, %v9237_v13  ;;  %v8917_v44 = vld [vmem:[#allocation4 + $0x160] sm:$0xf0] }
 0x3cf   :  { %11191 = vrsqrt.f32 %v2033_v26  ;;  %2923 = vmatpush.bf16.msra.mxu0 %v8884_v14  ;;  %vm2040_vm8 = vweird.f32 %v2033_v26  ;;  %v8787_v14 = vld [vmem:[#allocation4 + $0x40] sm:$0xf] }
 0x3d0   :  { %2937 = vmatpush.bf16.msra.mxu1 %v9140_v60  ;;  %v10809_v60 = vld [vmem:[#allocation4 + $0x5c] sm:$0xf0] }
 0x3d1   :  { %v10873_v36 = vld [vmem:[#allocation4 + $0x25c] sm:$0xf0] }
 0x3d2   :  { %v10801_v28 = vld [vmem:[#allocation4 + $0x1c] sm:$0xf0] }
 0x3d3   :  { %2924 = vmatpush.bf16.msra.mxu0 %v8852_v61  ;;  %v9043_v61 = vld [vmem:[#allocation4 + $0x240] sm:$0xf] }
 0x3d4   :  { %2938 = vmatpush.bf16.msra.mxu1 %v9108_v30  ;;  %v8755_v30 = vld [vmem:[#allocation4] sm:$0xf] }
 0x3d5   :  { %v11192_v15 = vpop.eup %11191 }
 0x3d6   :  { %v2035_v12 = vmul.f32 %v11192_v15, %v2033_v26  ;;  %vm2041_vm6 = vweird.f32 %v11192_v15  ;;  %v8788_v26 = vor.u32 %v10809_v60, %v8787_v14  ;;  %v10865_v14 = vld [vmem:[#allocation4 + $0x21c] sm:$0xf0]  ;;  %v8987_v60 = vld [vmem:[#allocation4 + $0x1c8] sm:$0xf] }
 0x3d7   :  { %vm2042_vm9 = vmor %vm2040_vm8, %vm2041_vm6  ;;  %2925 = vmatpush.bf16.msra.mxu0 %v8820_v50  ;;  %v9044_v50 = vor.u32 %v10873_v36, %v9043_v61  ;;  %v8955_v61 = vld [vmem:[#allocation4 + $0x188] sm:$0xf] }
 0x3d8   :  { %v2036_v46 = vmul.f32 %v11192_v15, %v2035_v12  ;;  %v10881_v12 = vld [vmem:[#allocation4 + $0x29c] sm:$0xf0]  ;;  %v10850_v36 = vld [vmem:[#allocation4 + $0x1a4] sm:$0xf0] }
 0x3d9   :  { %v9076_v62 = vor.u32 %v10881_v12, %v9075_v54  ;;  %v9011_v54 = vld [vmem:[#allocation4 + $0x200] sm:$0xf]  ;;  %v8756_v12 = vor.u32 %v10801_v28, %v8755_v30  ;;  %v9211_v30 = vld [vmem:[#allocation4 + $0x388] sm:$0xf] }
 0x3da   :  { %v2037_v21 = vmul.f32 0.5, %v2036_v46  ;;  %v10845_v46 = vld [vmem:[#allocation4 + $0x184] sm:$0xf]  ;;  %v10914_v28 = vld [vmem:[#allocation4 + $0x3a4] sm:$0xf0] }
 0x3db   :  { %2939 = vmatpush.bf16.msra.mxu1 %v9076_v62  ;;  %2926 = vmatpush.bf16.msra.mxu0 %v8788_v26  ;;  %v9012_v62 = vor.u32 %v10865_v14, %v9011_v54  ;;  %v9244_v26 = vor.u32 %v10922_v57, %v9243_v35  ;;  %v9212_v57 = vor.u32 %v10914_v28, %v9211_v30  ;;  %v8923_v35 = vld [vmem:[#allocation4 + $0x148] sm:$0xf]  ;;  %v10797_v30 = vld [vmem:[#allocation4 + $0x4] sm:$0xf] }
 0x3dc   :  { %v2038_v40 = vsub.f32 1.5, %v2037_v21  ;;  %v10906_v54 = vld [vmem:[#allocation4 + $0x364] sm:$0xf0]  ;;  %v8757_v28 = vld [vmem:[#allocation4 + $0x20] sm:$0xf0] }
 0x3de   :  { %v2039_v59 = vmul.f32 %v11192_v15, %v2038_v40  ;;  %v9208_v40 = vor.u32 %v10909_v19, %v9205_v39  ;;  %v10829_v39 = vld [vmem:[#allocation4 + $0x104] sm:$0xf] }
 0x3df   :  { %2940 = vmatpush.bf16.msra.mxu1 %v9044_v50  ;;  %2927 = vmatpush.bf16.msra.mxu0 %v8756_v12  ;;  %v9179_v50 = vld [vmem:[#allocation4 + $0x348] sm:$0xf] }
 0x3e0   :  { %v2043_v21 = vsel %vm2042_vm9, %v11192_v15, %v2039_v59  ;;  %v8952_v15 = vor.u32 %v10845_v46, %v8949_v33  ;;  %v9173_v59 = vld [vmem:[#allocation4 + $0x360] sm:$0xf0] }
 0x3e1   :  { %v2044_v38 = vmul.f32 %v2043_v21, %v1801_v31  ;;  %v10901_v31 = vld [vmem:[#allocation4 + $0x344] sm:$0xf]  ;;  %v10858_v21 = vld [vmem:[#allocation4 + $0x1e4] sm:$0xf0] }
 0x3e2   :  { %v9176_v19 = vor.u32 %v10901_v31, %v9173_v59  ;;  %v8885_v46 = vld [vmem:[#allocation4 + $0x120] sm:$0xf0]  ;;  %v8988_v33 = vor.u32 %v10858_v21, %v8987_v60  ;;  %v8956_v31 = vor.u32 %v10850_v36, %v8955_v61  ;;  %v10842_v59 = vld [vmem:[#allocation4 + $0x164] sm:$0xf0] }
 0x3e3   :  { %8737 = vmatmul.msk.f32.vlgmr.msrb.gmra.mxu2 %vm2047_vm10, %v2044_v38  ;;  %8742 = vmatmul.msk.f32.vlgmr.msrb.gmra.mxu3 %vm2047_vm10, %v2044_v38  ;;  %v2045_v13 = vmul.f32 %v2044_v38, %v12292_v37  ;;  %v10893_v37 = vld [vmem:[#allocation4 + $0x304] sm:$0xf] }
 0x3e4   :  { %2948 = vmatpush.bf16.msrb.mxu2 %v8984_v51  ;;  %2962 = vmatpush.bf16.msrb.mxu3 %v9240_v18  ;;  %v8920_v51 = vor.u32 %v10837_v43, %v8917_v44  ;;  %v9141_v38 = vld [vmem:[#allocation4 + $0x320] sm:$0xf0] }
 0x3e5   :  { %v2046_v18 = vsub.f32 %v1802_v22, %v2045_v13  ;;  %v9144_v22 = vor.u32 %v10893_v37, %v9141_v38  ;;  %v8853_v43 = vld [vmem:[#allocation4 + $0xe0] sm:$0xf0]  ;;  %2941 = vmatpush.bf16.msra.mxu1 %v9012_v62  ;;  %2976 = vmatpush.bf16.msrb.mxu0 %v8988_v33 }
 0x3e6   :  { %v10885_v44 = vld [vmem:[#allocation4 + $0x2c4] sm:$0xf] }
 0x3e7   :  { %v9109_v13 = vld [vmem:[#allocation4 + $0x2e0] sm:$0xf0] }
 0x3e8   :  { %2949 = vmatpush.bf16.msrb.mxu2 %v8952_v15  ;;  %2963 = vmatpush.bf16.msrb.mxu3 %v9208_v40  ;;  %v8888_v15 = vor.u32 %v10829_v39, %v8885_v46  ;;  %v10821_v40 = vld [vmem:[#allocation4 + $0xc4] sm:$0xf]  ;;  %v9112_v14 = vor.u32 %v10885_v44, %v9109_v13  ;;  %v8924_v39 = vor.u32 %v10842_v59, %v8923_v35  ;;  %v10918_v44 = vld [vmem:[#allocation4 + $0x3cc] sm:$0xf] }
 0x3e9   :  { %2990 = vmatpush.bf16.msrb.mxu1 %v9244_v26  ;;  %v8856_v12 = vor.u32 %v10821_v40, %v8853_v43  ;;  %v10813_v60 = vld [vmem:[#allocation4 + $0x84] sm:$0xf]  ;;  %2977 = vmatpush.bf16.msrb.mxu0 %v8956_v31  ;;  %v10854_v40 = vld [vmem:[#allocation4 + $0x1cc] sm:$0xf]  ;;  %v8760_v31 = vor.u32 %v10797_v30, %v8757_v28 }
 0x3ea   :  { %v8821_v21 = vld [vmem:[#allocation4 + $0xa0] sm:$0xf0]  ;;  %v8989_v43 = vld [vmem:[#allocation4 + $0x1e8] sm:$0xf0] }
 0x3eb   :  { %8747 = vmatmul.msk.f32.vlgmr.msra.gmra.mxu2 %vm2047_vm10, %v2046_v18  ;;  %8752 = vmatmul.msk.f32.vlgmr.msra.gmra.mxu3 %vm2047_vm10, %v2046_v18  ;;  %v9180_v18 = vor.u32 %v10906_v54, %v9179_v50  ;;  %v8824_v46 = vor.u32 %v10813_v60, %v8821_v21  ;;  %v10805_v38 = vld [vmem:[#allocation4 + $0x44] sm:$0xf]  ;;  %v9245_v13 = vld [vmem:[#allocation4 + $0x3e8] sm:$0xf0]  ;;  %v8992_v35 = vor.u32 %v10854_v40, %v8989_v43 }
 0x3ec   :  { %2950 = vmatpush.bf16.msrb.mxu2 %v8920_v51  ;;  %2964 = vmatpush.bf16.msrb.mxu3 %v9176_v19  ;;  %v10877_v51 = vld [vmem:[#allocation4 + $0x284] sm:$0xf]  ;;  %v9248_v59 = vor.u32 %v10918_v44, %v9245_v13  ;;  %v10846_v50 = vld [vmem:[#allocation4 + $0x18c] sm:$0xf]  ;;  %v8859_v44 = vld [vmem:[#allocation4 + $0xc8] sm:$0xf] }
 0x3ed   :  { %v9077_v19 = vld [vmem:[#allocation4 + $0x2a0] sm:$0xf0]  ;;  %2991 = vmatpush.bf16.msrb.mxu1 %v9212_v57  ;;  %2978 = vmatpush.bf16.msrb.mxu0 %v8924_v39  ;;  %v8957_v54 = vld [vmem:[#allocation4 + $0x1a8] sm:$0xf0]  ;;  %v10826_v13 = vld [vmem:[#allocation4 + $0xe4] sm:$0xf0] }
 0x3ee   :  { %v9080_v37 = vor.u32 %v10877_v51, %v9077_v19  ;;  %v8789_v62 = vld [vmem:[#allocation4 + $0x60] sm:$0xf0]  ;;  %v8960_v60 = vor.u32 %v10846_v50, %v8957_v54  ;;  %v10838_v51 = vld [vmem:[#allocation4 + $0x14c] sm:$0xf] }
 0x3ef   :  { %v10869_v33 = vld [vmem:[#allocation4 + $0x244] sm:$0xf]  ;;  %v8792_v61 = vor.u32 %v10805_v38, %v8789_v62  ;;  %v8925_v19 = vld [vmem:[#allocation4 + $0x168] sm:$0xf0]  ;;  %v8891_v38 = vld [vmem:[#allocation4 + $0x108] sm:$0xf] }
 0x3f0   :  { %2951 = vmatpush.bf16.msrb.mxu2 %v8888_v15  ;;  %2965 = vmatpush.bf16.msrb.mxu3 %v9144_v22  ;;  %v9045_v26 = vld [vmem:[#allocation4 + $0x260] sm:$0xf0]  ;;  %v10902_v39 = vld [vmem:[#allocation4 + $0x34c] sm:$0xf]  ;;  %v10834_v62 = vld [vmem:[#allocation4 + $0x124] sm:$0xf0] }
 0x3f1   :  { %2992 = vmatpush.bf16.msrb.mxu1 %v9180_v18  ;;  %v9048_v36 = vor.u32 %v10869_v33, %v9045_v26  ;;  %v10861_v15 = vld [vmem:[#allocation4 + $0x204] sm:$0xf]  ;;  %v9181_v18 = vld [vmem:[#allocation4 + $0x368] sm:$0xf0]  ;;  %v9147_v33 = vld [vmem:[#allocation4 + $0x308] sm:$0xf]  ;;  %v8892_v26 = vor.u32 %v10834_v62, %v8891_v38 }
 0x3f2   :  { %v9013_v22 = vld [vmem:[#allocation4 + $0x220] sm:$0xf0]  ;;  %v8893_v30 = vld [vmem:[#allocation4 + $0x128] sm:$0xf0] }
 0x3f3   :  { %v9016_v57 = vor.u32 %v10861_v15, %v9013_v22  ;;  %v10894_v22 = vld [vmem:[#allocation4 + $0x30c] sm:$0xf]  ;;  %2979 = vmatpush.bf16.msrb.mxu0 %v8892_v26 }
 0x3f4   :  { %2952 = vmatpush.bf16.msrb.mxu2 %v8856_v12  ;;  %2966 = vmatpush.bf16.msrb.mxu3 %v9112_v14  ;;  %v10910_v12 = vld [vmem:[#allocation4 + $0x38c] sm:$0xf] }
 0x3f5   :  { %v9213_v14 = vld [vmem:[#allocation4 + $0x3a8] sm:$0xf0] }
 0x3f6   :  { %v9216_v21 = vor.u32 %v10910_v12, %v9213_v14  ;;  %v9149_v40 = vld [vmem:[#allocation4 + $0x328] sm:$0xf0] }
 0x3f7   :  { %v9152_v43 = vor.u32 %v10894_v22, %v9149_v40  ;;  %v8861_v50 = vld [vmem:[#allocation4 + $0xe8] sm:$0xf0]  ;;  %v10874_v40 = vld [vmem:[#allocation4 + $0x264] sm:$0xf0] }
 0x3f8   :  { %2953 = vmatpush.bf16.msrb.mxu2 %v8824_v46  ;;  %2967 = vmatpush.bf16.msrb.mxu3 %v9080_v37  ;;  %v8928_v46 = vor.u32 %v10838_v51, %v8925_v19  ;;  %v9184_v37 = vor.u32 %v10902_v39, %v9181_v18  ;;  %v10886_v14 = vld [vmem:[#allocation4 + $0x2cc] sm:$0xf]  ;;  %v8827_v51 = vld [vmem:[#allocation4 + $0x88] sm:$0xf] }
 0x3f9   :  { %v10818_v19 = vld [vmem:[#allocation4 + $0xa4] sm:$0xf0]  ;;  %v8829_v38 = vld [vmem:[#allocation4 + $0xa8] sm:$0xf0] }
 0x3fa   :  { %v9083_v39 = vld [vmem:[#allocation4 + $0x288] sm:$0xf]  ;;  %v8828_v18 = vor.u32 %v10818_v19, %v8827_v51  ;;  %v10878_v26 = vld [vmem:[#allocation4 + $0x28c] sm:$0xf] }
 0x3fb   :  { %v8765_v51 = vld [vmem:[#allocation4 + $0x28] sm:$0xf0] }
 0x3fc   :  { %2954 = vmatpush.bf16.msrb.mxu2 %v8792_v61  ;;  %2968 = vmatpush.bf16.msrb.mxu3 %v9048_v36  ;;  %v10898_v61 = vld [vmem:[#allocation4 + $0x324] sm:$0xf0]  ;;  %v10830_v36 = vld [vmem:[#allocation4 + $0x10c] sm:$0xf] }
 0x3fd   :  { %v9148_v28 = vor.u32 %v10898_v61, %v9147_v33  ;;  %v8896_v15 = vor.u32 %v10830_v36, %v8893_v30  ;;  %v9085_v61 = vld [vmem:[#allocation4 + $0x2a8] sm:$0xf0]  ;;  %v8795_v30 = vld [vmem:[#allocation4 + $0x48] sm:$0xf] }
 0x3fe   :  { %v9088_v36 = vor.u32 %v10878_v26, %v9085_v61 }
 0x3ff   :  { %2993 = vmatpush.bf16.msrb.mxu1 %v9148_v28  ;;  %v10810_v28 = vld [vmem:[#allocation4 + $0x64] sm:$0xf0] }
 0x400   :  { %2955 = vmatpush.bf16.msrb.mxu2 %v8760_v31  ;;  %2969 = vmatpush.bf16.msrb.mxu3 %v9016_v57  ;;  %v9115_v31 = vld [vmem:[#allocation4 + $0x2c8] sm:$0xf]  ;;  %v8860_v57 = vor.u32 %v10826_v13, %v8859_v44  ;;  %v8796_v22 = vor.u32 %v10810_v28, %v8795_v30  ;;  %v8797_v44 = vld [vmem:[#allocation4 + $0x68] sm:$0xf0] }
 0x402   :  { %2980 = vmatpush.bf16.msrb.mxu0 %v8860_v57  ;;  %v10870_v57 = vld [vmem:[#allocation4 + $0x24c] sm:$0xf] }
 0x404   :  { %3004 = vmatpush.bf16.msra.mxu2 %v8992_v35  ;;  %3018 = vmatpush.bf16.msra.mxu3 %v9248_v59  ;;  %v10890_v35 = vld [vmem:[#allocation4 + $0x2e4] sm:$0xf0]  ;;  %v10822_v59 = vld [vmem:[#allocation4 + $0xcc] sm:$0xf] }
 0x405   :  { %v9116_v54 = vor.u32 %v10890_v35, %v9115_v31  ;;  %v8864_v12 = vor.u32 %v10822_v59, %v8861_v50  ;;  %v9053_v35 = vld [vmem:[#allocation4 + $0x268] sm:$0xf0]  ;;  %v8763_v50 = vld [vmem:[#allocation4 + $0x8] sm:$0xf] }
 0x406   :  { %2981 = vmatpush.bf16.msrb.mxu0 %v8828_v18  ;;  %v9056_v59 = vor.u32 %v10870_v57, %v9053_v35  ;;  %v10862_v18 = vld [vmem:[#allocation4 + $0x20c] sm:$0xf] }
 0x407   :  { %2994 = vmatpush.bf16.msrb.mxu1 %v9116_v54  ;;  %v10802_v54 = vld [vmem:[#allocation4 + $0x24] sm:$0xf0] }
 0x408   :  { %3005 = vmatpush.bf16.msra.mxu2 %v8960_v60  ;;  %3019 = vmatpush.bf16.msra.mxu3 %v9216_v21  ;;  %v9117_v60 = vld [vmem:[#allocation4 + $0x2e8] sm:$0xf0] }
 0x409   :  { %v9120_v21 = vor.u32 %v10886_v14, %v9117_v60  ;;  %v8764_v14 = vor.u32 %v10802_v54, %v8763_v50  ;;  %v10866_v60 = vld [vmem:[#allocation4 + $0x224] sm:$0xf0]  ;;  %v9251_v50 = vld [vmem:[#allocation4 + $0x3d0] sm:$0xf] }
 0x40a   :  { %2982 = vmatpush.bf16.msrb.mxu0 %v8796_v22  ;;  %v10923_v54 = vld [vmem:[#allocation4 + $0x3ec] sm:$0xf0] }
 0x40c   :  { %3006 = vmatpush.bf16.msra.mxu2 %v8928_v46  ;;  %3020 = vmatpush.bf16.msra.mxu3 %v9184_v37  ;;  %v10882_v46 = vld [vmem:[#allocation4 + $0x2a4] sm:$0xf0]  ;;  %v10814_v37 = vld [vmem:[#allocation4 + $0x8c] sm:$0xf] }
 0x40d   :  { %v9084_v62 = vor.u32 %v10882_v46, %v9083_v39  ;;  %v8832_v33 = vor.u32 %v10814_v37, %v8829_v38  ;;  %v9021_v46 = vld [vmem:[#allocation4 + $0x228] sm:$0xf0] }
 0x40e   :  { %2983 = vmatpush.bf16.msrb.mxu0 %v8764_v14  ;;  %v9024_v37 = vor.u32 %v10862_v18, %v9021_v46  ;;  %v10919_v14 = vld [vmem:[#allocation4 + $0x3d4] sm:$0xf]  ;;  %v9252_v18 = vor.u32 %v10923_v54, %v9251_v50  ;;  %v8963_v46 = vld [vmem:[#allocation4 + $0x190] sm:$0xf] }
 0x40f   :  { %2995 = vmatpush.bf16.msrb.mxu1 %v9084_v62  ;;  %v10903_v50 = vld [vmem:[#allocation4 + $0x354] sm:$0xf] }
 0x410   :  { %3007 = vmatpush.bf16.msra.mxu2 %v8896_v15  ;;  %3021 = vmatpush.bf16.msra.mxu3 %v9152_v43  ;;  %v9051_v15 = vld [vmem:[#allocation4 + $0x248] sm:$0xf]  ;;  %v10806_v43 = vld [vmem:[#allocation4 + $0x4c] sm:$0xf]  ;;  %v9189_v54 = vld [vmem:[#allocation4 + $0x370] sm:$0xf0] }
 0x411   :  { %v9052_v13 = vor.u32 %v10874_v40, %v9051_v15  ;;  %v8800_v31 = vor.u32 %v10806_v43, %v8797_v44  ;;  %v8995_v44 = vld [vmem:[#allocation4 + $0x1d0] sm:$0xf] }
 0x413   :  { %2996 = vmatpush.bf16.msrb.mxu1 %v9052_v13 }
 0x414   :  { %3008 = vmatpush.bf16.msra.mxu2 %v8864_v12  ;;  %3022 = vmatpush.bf16.msra.mxu3 %v9120_v21  ;;  %v9019_v12 = vld [vmem:[#allocation4 + $0x208] sm:$0xf]  ;;  %v10798_v21 = vld [vmem:[#allocation4 + $0xc] sm:$0xf] }
 0x415   :  { %v9020_v19 = vor.u32 %v10866_v60, %v9019_v12  ;;  %v8768_v39 = vor.u32 %v10798_v21, %v8765_v51  ;;  %v10855_v12 = vld [vmem:[#allocation4 + $0x1d4] sm:$0xf] }
 0x417   :  { %2997 = vmatpush.bf16.msrb.mxu1 %v9020_v19 }
 0x418   :  { %3009 = vmatpush.bf16.msra.mxu2 %v8832_v33  ;;  %3023 = vmatpush.bf16.msra.mxu3 %v9088_v36 }
 0x41c   :  { %3010 = vmatpush.bf16.msra.mxu2 %v8800_v31  ;;  %3024 = vmatpush.bf16.msra.mxu3 %v9056_v59  ;;  %v10859_v59 = vld [vmem:[#allocation4 + $0x1ec] sm:$0xf0] }
 0x420   :  { %3011 = vmatpush.bf16.msra.mxu2 %v8768_v39  ;;  %3025 = vmatpush.bf16.msra.mxu3 %v9024_v37  ;;  %v8996_v39 = vor.u32 %v10859_v59, %v8995_v44  ;;  %v10851_v37 = vld [vmem:[#allocation4 + $0x1ac] sm:$0xf0]  ;;  %v8933_v59 = vld [vmem:[#allocation4 + $0x170] sm:$0xf0] }
 0x466   :  { %v2068_v38 = vpop.f32.mrf.mxu2  ;;  %v2088_v62 = vpop.f32.mrf.mxu3 }
 0x467   :  { %v2134_v33 = vperm.slane %v2068_v38, 0  ;;  %v2135_v26 = vperm.slane %v2088_v62, 0 }
 0x469   :  { %v2136_v61 = vmul.f32 %v2134_v33, %v12224_v32  ;;  %v2138_v36 = vmul.f32 %v2134_v33, %v12226_v29  ;;  %v2137_v15 = vmul.f32 %v2135_v26, %v12213_v0  ;;  %v2139_v22 = vmul.f32 %v2135_v26, %v12216_v11  ;;  %v8997_v32 = vld [vmem:[#allocation4 + $0x1f0] sm:$0xf0]  ;;  %v9219_v33 = vld [vmem:[#allocation4 + $0x390] sm:$0xf] }
 0x46a   :  { %v9253_v0 = vld [vmem:[#allocation4 + $0x3f0] sm:$0xf0]  ;;  %v9000_v38 = vor.u32 %v10855_v12, %v8997_v32  ;;  %v10915_v26 = vld [vmem:[#allocation4 + $0x3ac] sm:$0xf0] }
 0x46b   :  { %v9256_v62 = vor.u32 %v10919_v14, %v9253_v0  ;;  %v8899_v14 = vld [vmem:[#allocation4 + $0x110] sm:$0xf] }
 0x46c   :  { %v10899_v0 = vld [vmem:[#allocation4 + $0x32c] sm:$0xf0] }
 0x46e   :  { %v2111_v30 = vpop.f32.mrf.mxu2  ;;  %v2131_v28 = vpop.f32.mrf.mxu3 }
 0x46f   :  { %v2140_v40 = vperm.slane %v2111_v30, 0  ;;  %v2141_v43 = vperm.slane %v2131_v28, 0  ;;  %v10911_v30 = vld [vmem:[#allocation4 + $0x394] sm:$0xf] }
 0x470   :  { %v9221_v28 = vld [vmem:[#allocation4 + $0x3b0] sm:$0xf0] }
 0x471   :  { %v2142_v13 = vadd.f32 %v2140_v40, %v2136_v61  ;;  %v2144_v31 = vadd.f32 %v2140_v40, %v2138_v36  ;;  %v2143_v57 = vadd.f32 %v2141_v43, %v2137_v15  ;;  %v2145_v35 = vadd.f32 %v2141_v43, %v2139_v22  ;;  %v10847_v61 = vld [vmem:[#allocation4 + $0x194] sm:$0xf]  ;;  %v8931_v40 = vld [vmem:[#allocation4 + $0x150] sm:$0xf] }
 0x472   :  { %v8965_v36 = vld [vmem:[#allocation4 + $0x1b0] sm:$0xf0]  ;;  %v8964_v15 = vor.u32 %v10851_v37, %v8963_v46  ;;  %v9220_v22 = vor.u32 %v10915_v26, %v9219_v33  ;;  %v10843_v43 = vld [vmem:[#allocation4 + $0x16c] sm:$0xf0] }
 0x473   :  { %v2146_v29 = vmax.f32 %v2142_v13, 0.0  ;;  %v2148_v60 = vmax.f32 %v2144_v31, 0.0  ;;  %v2147_v21 = vmax.f32 %v2143_v57, 0.0  ;;  %v2149_v51 = vmax.f32 %v2145_v35, 0.0  ;;  %v9187_v31 = vld [vmem:[#allocation4 + $0x350] sm:$0xf] }
 0x474   :  { %v8968_v44 = vor.u32 %v10847_v61, %v8965_v36  ;;  %v9224_v13 = vor.u32 %v10911_v30, %v9221_v28  ;;  %v10907_v57 = vld [vmem:[#allocation4 + $0x36c] sm:$0xf0]  ;;  %v10839_v35 = vld [vmem:[#allocation4 + $0x154] sm:$0xf]  ;;  %v8932_v12 = vor.u32 %v10843_v43, %v8931_v40 }
 0x475   :  { %v12325_v19 = vpack.c.bf16 %v2148_v60, %v2146_v29  ;;  %v12327_v11 = vpack.c.bf16 %v2149_v51, %v2147_v21  ;;  %v9188_v32 = vor.u32 %v10907_v57, %v9187_v31  ;;  %v10835_v29 = vld [vmem:[#allocation4 + $0x12c] sm:$0xf0]  ;;  %v8936_v60 = vor.u32 %v10839_v35, %v8933_v59  ;;  %v10895_v46 = vld [vmem:[#allocation4 + $0x314] sm:$0xf] }
 0x476   :  { %v9192_v21 = vor.u32 %v10903_v50, %v9189_v54  ;;  %v9155_v51 = vld [vmem:[#allocation4 + $0x310] sm:$0xf]  ;;  %v9157_v37 = vld [vmem:[#allocation4 + $0x330] sm:$0xf0] }
 0x477   :  { %2928 = vmatmul.bf16.vlgmr.msra.gmra.mxu0 %v12325_v19  ;;  %2942 = vmatmul.bf16.vlgmr.msra.gmra.mxu1 %v12327_v11  ;;  %v8867_v33 = vld [vmem:[#allocation4 + $0xd0] sm:$0xf]  ;;  %v9160_v36 = vor.u32 %v10895_v46, %v9157_v37  ;;  %v10887_v40 = vld [vmem:[#allocation4 + $0x2d4] sm:$0xf] }
 0x478   :  { %2956 = vmatmul.bf16.vlgmr.msrb.gmra.mxu2 %v12325_v19  ;;  %2970 = vmatmul.bf16.vlgmr.msrb.gmra.mxu3 %v12327_v11  ;;  %v10827_v26 = vld [vmem:[#allocation4 + $0xec] sm:$0xf0]  ;;  %v9125_v43 = vld [vmem:[#allocation4 + $0x2f0] sm:$0xf0] }
 0x479   :  { %3032 = vmatpush.bf16.msra.mxu0 %v8996_v39  ;;  %3046 = vmatpush.bf16.msra.mxu1 %v9252_v18  ;;  %v10831_v39 = vld [vmem:[#allocation4 + $0x114] sm:$0xf]  ;;  %v9123_v30 = vld [vmem:[#allocation4 + $0x2d0] sm:$0xf]  ;;  %v9128_v59 = vor.u32 %v10887_v40, %v9125_v43 }
 0x47a   :  { %3060 = vmatpush.bf16.msrb.mxu2 %v9000_v38  ;;  %3074 = vmatpush.bf16.msrb.mxu3 %v9256_v62  ;;  %v8901_v18 = vld [vmem:[#allocation4 + $0x130] sm:$0xf0]  ;;  %v8900_v38 = vor.u32 %v10835_v29, %v8899_v14  ;;  %v9156_v62 = vor.u32 %v10899_v0, %v9155_v51  ;;  %v10891_v28 = vld [vmem:[#allocation4 + $0x2ec] sm:$0xf0] }
 0x47b   :  { %v8904_v61 = vor.u32 %v10831_v39, %v8901_v18  ;;  %v8835_v31 = vld [vmem:[#allocation4 + $0x90] sm:$0xf]  ;;  %v10879_v14 = vld [vmem:[#allocation4 + $0x294] sm:$0xf] }
 0x47c   :  { %v10819_v57 = vld [vmem:[#allocation4 + $0xac] sm:$0xf0]  ;;  %v9093_v29 = vld [vmem:[#allocation4 + $0x2b0] sm:$0xf0] }
 0x47d   :  { %3033 = vmatpush.bf16.msra.mxu0 %v8964_v15  ;;  %3047 = vmatpush.bf16.msra.mxu1 %v9220_v22  ;;  %v10823_v15 = vld [vmem:[#allocation4 + $0xd4] sm:$0xf]  ;;  %v9091_v50 = vld [vmem:[#allocation4 + $0x290] sm:$0xf]  ;;  %v9096_v18 = vor.u32 %v10879_v14, %v9093_v29  ;;  %v9005_v29 = vld [vmem:[#allocation4 + $0x1f8] sm:$0xf0] }
 0x47e   :  { %3061 = vmatpush.bf16.msrb.mxu2 %v8968_v44  ;;  %3075 = vmatpush.bf16.msrb.mxu3 %v9224_v13  ;;  %v8869_v22 = vld [vmem:[#allocation4 + $0xf0] sm:$0xf0]  ;;  %v8868_v44 = vor.u32 %v10827_v26, %v8867_v33  ;;  %v9124_v13 = vor.u32 %v10891_v28, %v9123_v30  ;;  %v10883_v54 = vld [vmem:[#allocation4 + $0x2ac] sm:$0xf0] }
 0x47f   :  { %v8872_v35 = vor.u32 %v10823_v15, %v8869_v22  ;;  %v8803_v51 = vld [vmem:[#allocation4 + $0x50] sm:$0xf]  ;;  %v10871_v33 = vld [vmem:[#allocation4 + $0x254] sm:$0xf] }
 0x480   :  { %v10811_v0 = vld [vmem:[#allocation4 + $0x6c] sm:$0xf0]  ;;  %v9061_v26 = vld [vmem:[#allocation4 + $0x270] sm:$0xf0] }
 0x481   :  { %3034 = vmatpush.bf16.msra.mxu0 %v8932_v12  ;;  %3048 = vmatpush.bf16.msra.mxu1 %v9188_v32  ;;  %v10815_v12 = vld [vmem:[#allocation4 + $0x94] sm:$0xf]  ;;  %v9059_v46 = vld [vmem:[#allocation4 + $0x250] sm:$0xf]  ;;  %v9064_v43 = vor.u32 %v10871_v33, %v9061_v26  ;;  %v9227_v33 = vld [vmem:[#allocation4 + $0x398] sm:$0xf] }
 0x482   :  { %3062 = vmatpush.bf16.msrb.mxu2 %v8936_v60  ;;  %3076 = vmatpush.bf16.msrb.mxu3 %v9192_v21  ;;  %v8837_v32 = vld [vmem:[#allocation4 + $0xb0] sm:$0xf0]  ;;  %v8836_v60 = vor.u32 %v10819_v57, %v8835_v31  ;;  %v9092_v21 = vor.u32 %v10883_v54, %v9091_v50  ;;  %v10875_v37 = vld [vmem:[#allocation4 + $0x26c] sm:$0xf0]  ;;  %v9259_v50 = vld [vmem:[#allocation4 + $0x3d8] sm:$0xf] }
 0x483   :  { %v8840_v39 = vor.u32 %v10815_v12, %v8837_v32  ;;  %v9060_v30 = vor.u32 %v10875_v37, %v9059_v46  ;;  %v10803_v28 = vld [vmem:[#allocation4 + $0x2c] sm:$0xf0]  ;;  %v10863_v31 = vld [vmem:[#allocation4 + $0x214] sm:$0xf]  ;;  %v10924_v54 = vld [vmem:[#allocation4 + $0x3f4] sm:$0xf0] }
 0x484   :  { %v9027_v15 = vld [vmem:[#allocation4 + $0x210] sm:$0xf]  ;;  %v9029_v57 = vld [vmem:[#allocation4 + $0x230] sm:$0xf0]  ;;  %v10856_v12 = vld [vmem:[#allocation4 + $0x1dc] sm:$0xf] }
 0x485   :  { %3035 = vmatpush.bf16.msra.mxu0 %v8900_v38  ;;  %3049 = vmatpush.bf16.msra.mxu1 %v9156_v62  ;;  %v10807_v38 = vld [vmem:[#allocation4 + $0x54] sm:$0xf]  ;;  %v10867_v22 = vld [vmem:[#allocation4 + $0x22c] sm:$0xf0]  ;;  %v8971_v46 = vld [vmem:[#allocation4 + $0x198] sm:$0xf] }
 0x486   :  { %3063 = vmatpush.bf16.msrb.mxu2 %v8904_v61  ;;  %3077 = vmatpush.bf16.msrb.mxu3 %v9160_v36  ;;  %v8805_v62 = vld [vmem:[#allocation4 + $0x70] sm:$0xf0]  ;;  %v8771_v61 = vld [vmem:[#allocation4 + $0x10] sm:$0xf]  ;;  %v8804_v36 = vor.u32 %v10811_v0, %v8803_v51  ;;  %v9028_v14 = vor.u32 %v10867_v22, %v9027_v15  ;;  %v9032_v0 = vor.u32 %v10863_v31, %v9029_v57  ;;  %v10852_v37 = vld [vmem:[#allocation4 + $0x1b4] sm:$0xf0] }
 0x487   :  { %2984 = vmatmul.bf16.vlgmr.msrb.gmra.mxu0 %v12325_v19  ;;  %2998 = vmatmul.bf16.vlgmr.msrb.gmra.mxu1 %v12327_v11  ;;  %v8808_v40 = vor.u32 %v10807_v38, %v8805_v62  ;;  %v8772_v32 = vor.u32 %v10803_v28, %v8771_v61  ;;  %v9008_v38 = vor.u32 %v10856_v12, %v9005_v29  ;;  %v10916_v26 = vld [vmem:[#allocation4 + $0x3b4] sm:$0xf0]  ;;  %v8973_v61 = vld [vmem:[#allocation4 + $0x1b8] sm:$0xf0] }
 0x488   :  { %3012 = vmatmul.bf16.vlgmr.msra.gmra.mxu2 %v12325_v19  ;;  %3026 = vmatmul.bf16.vlgmr.msra.gmra.mxu3 %v12327_v11  ;;  %v8972_v28 = vor.u32 %v10852_v37, %v8971_v46  ;;  %v9228_v15 = vor.u32 %v10916_v26, %v9227_v33  ;;  %v8939_v22 = vld [vmem:[#allocation4 + $0x158] sm:$0xf]  ;;  %v10840_v57 = vld [vmem:[#allocation4 + $0x15c] sm:$0xf] }
 0x489   :  { %3036 = vmatpush.bf16.msra.mxu0 %v8868_v44  ;;  %3050 = vmatpush.bf16.msra.mxu1 %v9124_v13  ;;  %v10799_v44 = vld [vmem:[#allocation4 + $0x14] sm:$0xf]  ;;  %v10908_v31 = vld [vmem:[#allocation4 + $0x374] sm:$0xf0] }
 0x48a   :  { %3064 = vmatpush.bf16.msrb.mxu2 %v8872_v35  ;;  %3078 = vmatpush.bf16.msrb.mxu3 %v9128_v59  ;;  %v8773_v13 = vld [vmem:[#allocation4 + $0x30] sm:$0xf0]  ;;  %v9003_v35 = vld [vmem:[#allocation4 + $0x1d8] sm:$0xf] }
 0x48b   :  { %v10860_v59 = vld [vmem:[#allocation4 + $0x1f4] sm:$0xf0]  ;;  %v8776_v51 = vor.u32 %v10799_v44, %v8773_v13 }
 0x48c   :  { %v9195_v13 = vld [vmem:[#allocation4 + $0x358] sm:$0xf] }
 0x48d   :  { %3037 = vmatpush.bf16.msra.mxu0 %v8836_v60  ;;  %3051 = vmatpush.bf16.msra.mxu1 %v9092_v21  ;;  %v10920_v60 = vld [vmem:[#allocation4 + $0x3dc] sm:$0xf]  ;;  %v9196_v12 = vor.u32 %v10908_v31, %v9195_v13  ;;  %v10820_v13 = vld [vmem:[#allocation4 + $0xb4] sm:$0xf0] }
 0x48e   :  { %3065 = vmatpush.bf16.msrb.mxu2 %v8840_v39  ;;  %3079 = vmatpush.bf16.msrb.mxu3 %v9096_v18  ;;  %v9261_v21 = vld [vmem:[#allocation4 + $0x3f8] sm:$0xf0]  ;;  %v9004_v39 = vor.u32 %v10860_v59, %v9003_v35  ;;  %v9260_v18 = vor.u32 %v10924_v54, %v9259_v50 }
 0x48f   :  { %v9264_v62 = vor.u32 %v10920_v60, %v9261_v21  ;;  %v8941_v35 = vld [vmem:[#allocation4 + $0x178] sm:$0xf0]  ;;  %v9163_v60 = vld [vmem:[#allocation4 + $0x318] sm:$0xf] }
 0x490   :  { %v10904_v59 = vld [vmem:[#allocation4 + $0x35c] sm:$0xf]  ;;  %v10900_v21 = vld [vmem:[#allocation4 + $0x334] sm:$0xf0] }
 0x491   :  { %3038 = vmatpush.bf16.msra.mxu0 %v8804_v36  ;;  %3052 = vmatpush.bf16.msra.mxu1 %v9060_v30  ;;  %v10912_v36 = vld [vmem:[#allocation4 + $0x39c] sm:$0xf]  ;;  %v9164_v37 = vor.u32 %v10900_v21, %v9163_v60  ;;  %v10812_v60 = vld [vmem:[#allocation4 + $0x74] sm:$0xf0] }
 0x492   :  { %3066 = vmatpush.bf16.msrb.mxu2 %v8808_v40  ;;  %3080 = vmatpush.bf16.msrb.mxu3 %v9064_v43  ;;  %v9229_v30 = vld [vmem:[#allocation4 + $0x3b8] sm:$0xf0]  ;;  %v10844_v40 = vld [vmem:[#allocation4 + $0x174] sm:$0xf0]  ;;  %v8976_v43 = vor.u32 %v10848_v24, %v8973_v61 }
 0x493   :  { %v9232_v44 = vor.u32 %v10912_v36, %v9229_v30  ;;  %v9197_v50 = vld [vmem:[#allocation4 + $0x378] sm:$0xf0]  ;;  %v8940_v54 = vor.u32 %v10844_v40, %v8939_v22  ;;  %v8907_v24 = vld [vmem:[#allocation4 + $0x118] sm:$0xf] }
 0x494   :  { %v9200_v29 = vor.u32 %v10904_v59, %v9197_v50  ;;  %v9131_v61 = vld [vmem:[#allocation4 + $0x2d8] sm:$0xf]  ;;  %v10824_v30 = vld [vmem:[#allocation4 + $0xdc] sm:$0xf] }
 0x495   :  { %3039 = vmatpush.bf16.msra.mxu0 %v8772_v32  ;;  %3053 = vmatpush.bf16.msra.mxu1 %v9028_v14  ;;  %v10836_v32 = vld [vmem:[#allocation4 + $0x134] sm:$0xf0]  ;;  %v8944_v14 = vor.u32 %v10840_v57, %v8941_v35  ;;  %v9133_v22 = vld [vmem:[#allocation4 + $0x2f8] sm:$0xf0] }
 0x496   :  { %3067 = vmatpush.bf16.msrb.mxu2 %v8776_v51  ;;  %3081 = vmatpush.bf16.msrb.mxu3 %v9032_v0  ;;  %v10832_v51 = vld [vmem:[#allocation4 + $0x11c] sm:$0xf]  ;;  %v8908_v46 = vor.u32 %v10836_v32, %v8907_v24  ;;  %v10892_v36 = vld [vmem:[#allocation4 + $0x2f4] sm:$0xf0] }
 0x497   :  { %v8909_v0 = vld [vmem:[#allocation4 + $0x138] sm:$0xf0]  ;;  %v9099_v35 = vld [vmem:[#allocation4 + $0x298] sm:$0xf] }
 0x498   :  { %3040 = vmatmul.bf16.vlgmr.msra.gmra.mxu0 %v12325_v19  ;;  %3054 = vmatmul.bf16.vlgmr.msra.gmra.mxu1 %v12327_v11  ;;  %v8912_v33 = vor.u32 %v10832_v51, %v8909_v0  ;;  %v10884_v59 = vld [vmem:[#allocation4 + $0x2b4] sm:$0xf0]  ;;  %v10816_v50 = vld [vmem:[#allocation4 + $0x9c] sm:$0xf] }
 0x499   :  { %3088 = vmatpush.bf16.msrb.mxu0 %v9004_v39  ;;  %3102 = vmatpush.bf16.msrb.mxu1 %v9260_v18  ;;  %v10896_v39 = vld [vmem:[#allocation4 + $0x31c] sm:$0xf]  ;;  %v9067_v0 = vld [vmem:[#allocation4 + $0x258] sm:$0xf] }
 0x49a   :  { %3116 = vmatpush.bf16.msra.mxu2 %v9008_v38  ;;  %3130 = vmatpush.bf16.msra.mxu3 %v9264_v62  ;;  %v9165_v18 = vld [vmem:[#allocation4 + $0x338] sm:$0xf0]  ;;  %v8875_v38 = vld [vmem:[#allocation4 + $0xd8] sm:$0xf] }
 0x49b   :  { %3068 = vmatmul.bf16.vlgmr.msrb.gmra.mxu2 %v12325_v19  ;;  %3082 = vmatmul.bf16.vlgmr.msrb.gmra.mxu3 %v12327_v11  ;;  %v10828_v62 = vld [vmem:[#allocation4 + $0xf4] sm:$0xf0]  ;;  %v9168_v26 = vor.u32 %v10896_v39, %v9165_v18  ;;  %v9101_v24 = vld [vmem:[#allocation4 + $0x2b8] sm:$0xf0] }
 0x49c   :  { %v8876_v40 = vor.u32 %v10828_v62, %v8875_v38  ;;  %v10876_v39 = vld [vmem:[#allocation4 + $0x274] sm:$0xf0]  ;;  %v10808_v18 = vld [vmem:[#allocation4 + $0x5c] sm:$0xf] }
 0x49d   :  { %3089 = vmatpush.bf16.msrb.mxu0 %v8972_v28  ;;  %3103 = vmatpush.bf16.msrb.mxu1 %v9228_v15  ;;  %v8877_v28 = vld [vmem:[#allocation4 + $0xf8] sm:$0xf0] }
 0x49e   :  { %3117 = vmatpush.bf16.msra.mxu2 %v8976_v43  ;;  %3131 = vmatpush.bf16.msra.mxu3 %v9232_v44  ;;  %v10888_v15 = vld [vmem:[#allocation4 + $0x2dc] sm:$0xf]  ;;  %v9132_v43 = vor.u32 %v10892_v36, %v9131_v61  ;;  %v8843_v44 = vld [vmem:[#allocation4 + $0x98] sm:$0xf]  ;;  %v8880_v31 = vor.u32 %v10824_v30, %v8877_v28 }
 0x49f   :  { %v9136_v57 = vor.u32 %v10888_v15, %v9133_v22  ;;  %v8844_v32 = vor.u32 %v10820_v13, %v8843_v44  ;;  %v9069_v38 = vld [vmem:[#allocation4 + $0x278] sm:$0xf0]  ;;  %v10804_v61 = vld [vmem:[#allocation4 + $0x34] sm:$0xf0] }
 0x4a0   :  { %v9035_v28 = vld [vmem:[#allocation4 + $0x218] sm:$0xf]  ;;  %v10800_v22 = vld [vmem:[#allocation4 + $0x1c] sm:$0xf] }
 0x4a1   :  { %3090 = vmatpush.bf16.msrb.mxu0 %v8940_v54  ;;  %3104 = vmatpush.bf16.msrb.mxu1 %v9196_v12  ;;  %v8845_v54 = vld [vmem:[#allocation4 + $0xb8] sm:$0xf0]  ;;  %v10868_v15 = vld [vmem:[#allocation4 + $0x234] sm:$0xf0] }
 0x4a2   :  { %3118 = vmatpush.bf16.msra.mxu2 %v8944_v14  ;;  %3132 = vmatpush.bf16.msra.mxu3 %v9200_v29  ;;  %v10880_v12 = vld [vmem:[#allocation4 + $0x29c] sm:$0xf]  ;;  %v9100_v14 = vor.u32 %v10884_v59, %v9099_v35  ;;  %v8811_v29 = vld [vmem:[#allocation4 + $0x58] sm:$0xf]  ;;  %v8848_v21 = vor.u32 %v10816_v50, %v8845_v54 }
 0x4a3   :  { %v9104_v51 = vor.u32 %v10880_v12, %v9101_v24  ;;  %v8812_v62 = vor.u32 %v10812_v60, %v8811_v29  ;;  %v9037_v44 = vld [vmem:[#allocation4 + $0x238] sm:$0xf0] }
 0x4a5   :  { %3091 = vmatpush.bf16.msrb.mxu0 %v8908_v46  ;;  %3105 = vmatpush.bf16.msrb.mxu1 %v9164_v37  ;;  %v8813_v46 = vld [vmem:[#allocation4 + $0x78] sm:$0xf0] }
 0x4a6   :  { %3119 = vmatpush.bf16.msra.mxu2 %v8912_v33  ;;  %3133 = vmatpush.bf16.msra.mxu3 %v9168_v26  ;;  %v10872_v37 = vld [vmem:[#allocation4 + $0x25c] sm:$0xf]  ;;  %v9068_v33 = vor.u32 %v10876_v39, %v9067_v0  ;;  %v8779_v26 = vld [vmem:[#allocation4 + $0x18] sm:$0xf]  ;;  %v8816_v36 = vor.u32 %v10808_v18, %v8813_v46 }
 0x4a7   :  { %v9072_v30 = vor.u32 %v10872_v37, %v9069_v38  ;;  %v8780_v13 = vor.u32 %v10804_v61, %v8779_v26 }
 0x4a9   :  { %3092 = vmatpush.bf16.msrb.mxu0 %v8876_v40  ;;  %3106 = vmatpush.bf16.msrb.mxu1 %v9132_v43  ;;  %v8781_v40 = vld [vmem:[#allocation4 + $0x38] sm:$0xf0] }
 0x4aa   :  { %3120 = vmatpush.bf16.msra.mxu2 %v8880_v31  ;;  %3134 = vmatpush.bf16.msra.mxu3 %v9136_v57  ;;  %v10864_v43 = vld [vmem:[#allocation4 + $0x21c] sm:$0xf]  ;;  %v9036_v31 = vor.u32 %v10868_v15, %v9035_v28  ;;  %v8784_v57 = vor.u32 %v10800_v22, %v8781_v40  ;;  %v14592_v22 = vmov 0.0  }
 0x4ab   :  { %v9040_v35 = vor.u32 %v10864_v43, %v9037_v44  ;;  %v12354_v40 = vsel %vm3156_vm14, 1.0, %v14592_v22 }
 0x4ad   :  { %3093 = vmatpush.bf16.msrb.mxu0 %v8844_v32  ;;  %3107 = vmatpush.bf16.msrb.mxu1 %v9100_v14 }
 0x4ae   :  { %3121 = vmatpush.bf16.msra.mxu2 %v8848_v21  ;;  %3135 = vmatpush.bf16.msra.mxu3 %v9104_v51 }
 0x4b1   :  { %3094 = vmatpush.bf16.msrb.mxu0 %v8812_v62  ;;  %3108 = vmatpush.bf16.msrb.mxu1 %v9068_v33 }
 0x4b2   :  { %3122 = vmatpush.bf16.msra.mxu2 %v8816_v36  ;;  %3136 = vmatpush.bf16.msra.mxu3 %v9072_v30 }
 0x4b5   :  { %3095 = vmatpush.bf16.msrb.mxu0 %v8780_v13  ;;  %3109 = vmatpush.bf16.msrb.mxu1 %v9036_v31 }
 0x4b6   :  { %3123 = vmatpush.bf16.msra.mxu2 %v8784_v57  ;;  %3137 = vmatpush.bf16.msra.mxu3 %v9040_v35 }
 0x4b8   :  { %3096 = vmatmul.bf16.vlgmr.msrb.gmra.mxu0 %v12325_v19  ;;  %3110 = vmatmul.bf16.vlgmr.msrb.gmra.mxu1 %v12327_v11 }
 0x4b9   :  { %3124 = vmatmul.bf16.vlgmr.msra.gmra.mxu2 %v12325_v19  ;;  %3138 = vmatmul.bf16.vlgmr.msra.gmra.mxu3 %v12327_v11 }
 0x4f4   :  { %v2929_v59 = vpop.f32.mrf.mxu0  ;;  %v2943_v50 = vpop.f32.mrf.mxu1 }
 0x4f5   :  { %v2944_v13 = vadd.f32 %v2943_v50, %v2929_v59  ;;  %v12378_v50 = vsel %vm3160_vm2, 1.0, %v14592_v22  ;;  %vm3164_vm2 = vcmp.eq.s32.totalorder %v14589_v23, %v12044_v63 }
 0x4f6   :  { %14593 = vst [vmem:[#allocation53_spill] sm:$0xff] %v12378_v50 }
 0x4fb   :  { %v2957_v54 = vpop.f32.mrf.mxu2  ;;  %v2971_v12 = vpop.f32.mrf.mxu3 }
 0x4fc   :  { %v2931_v24 = vpop.f32.mrf.mxu0  ;;  %v2945_v32 = vpop.f32.mrf.mxu1  ;;  %v2972_v59 = vadd.f32 %v2971_v12, %v2957_v54  ;;  %v12387_v54 = vand.u32 7, %v11460_v2  ;;  %v12393_v12 = vsel %vm3161_vm3, 1.0, %v14592_v22 }
 0x4fd   :  { %v2946_v44 = vadd.f32 %v2945_v32, %v2931_v24  ;;  %14595 = vst [vmem:[#allocation55_spill] sm:$0xff] %v12393_v12 }
 0x4fe   :  { %14594 = vst [vmem:[#allocation54_spill] sm:$0xff] %v12387_v54  ;;  %vm3166_vm5 = vcmp.ne.s32.totalorder %v12387_v54, 7  ;;  %vm3147_vm8 = vcmp.ne.s32.totalorder %v12387_v54, 0  ;;  %v14603_v54 = vld [vmem:[#allocation35_spill] sm:$0xff] }
 0x4ff   :  { %vm3167_vm6 = vmand %vm1577_vm1, %vm3166_vm5 }
 0x500   :  { %vm3148_vm9 = vmand %vm1560_vm11, %vm3147_vm8 }
 0x501   :  { %vm3168_vm14 = vmand %vm1578_vm4, %vm3166_vm5 }
 0x502   :  { %vm3169_vm3 = vmand %vm3164_vm2, %vm3166_vm5 }
 0x503   :  { %v2959_v14 = vpop.f32.mrf.mxu2  ;;  %v2973_v29 = vpop.f32.mrf.mxu3 }
 0x504   :  { %v2985_v60 = vpop.f32.mrf.mxu0  ;;  %v2999_v21 = vpop.f32.mrf.mxu1  ;;  %v2974_v24 = vadd.f32 %v2973_v29, %v2959_v14 }
 0x505   :  { %v3000_v37 = vadd.f32 %v2999_v21, %v2985_v60  ;;  %v12365_v60 = vsel %vm3157_vm0, 1.0, %v14592_v22  ;;  %vm3149_vm0 = vmand %vm1561_vm15, %vm3147_vm8 }
 0x50b   :  { %v3013_v51 = vpop.f32.mrf.mxu2  ;;  %v3027_v0 = vpop.f32.mrf.mxu3 }
 0x50c   :  { %v2987_v39 = vpop.f32.mrf.mxu0  ;;  %v3001_v18 = vpop.f32.mrf.mxu1  ;;  %v3028_v62 = vadd.f32 %v3027_v0, %v3013_v51 }
 0x50d   :  { %v3002_v46 = vadd.f32 %v3001_v18, %v2987_v39 }
 0x50f   :  { %3268 = vmatpush.msrb.mxu2 %v3002_v46 }
 0x511   :  { %3269 = vmatpush.msrb.mxu2 %v3000_v37  ;;  %v3171_v37 = vsel %vm3167_vm6, 1.0, %v14592_v22  ;;  %vm3145_vm6 = vcmp.eq.s32.totalorder %v14589_v23, %v12023_v47 }
 0x512   :  { %9273 = vmatmul.msk.f32.vlgmr.msrb.gmra.mxu2 %vm3175_vm12, %v11994_v16 }
 0x513   :  { %v3015_v19 = vpop.f32.mrf.mxu2  ;;  %v3029_v11 = vpop.f32.mrf.mxu3 }
 0x514   :  { %v3030_v38 = vadd.f32 %v3029_v11, %v3015_v19  ;;  %v3152_v19 = vsel %vm3148_vm9, 1.0, %v14592_v22  ;;  %vm3150_vm9 = vmand %vm3145_vm6, %vm3147_vm8 }
 0x515   :  { %v3041_v33 = vpop.f32.mrf.mxu0  ;;  %v3055_v26 = vpop.f32.mrf.mxu1 }
 0x516   :  { %3297 = vmatpush.msrb.mxu3 %v3030_v38  ;;  %v3056_v43 = vadd.f32 %v3055_v26, %v3041_v33  ;;  %v3172_v26 = vsel %vm3168_vm14, 1.0, %v14592_v22  ;;  %vm3165_vm14 = vcmp.eq.s32.totalorder %v14587_v45, %v12044_v63 }
 0x518   :  { %3298 = vmatpush.msrb.mxu3 %v3028_v62 }
 0x519   :  { %9277 = vmatmul.msk.f32.vlgmr.msrb.gmra.mxu3 %vm3175_vm12, %v11994_v16 }
 0x51a   :  { %9274 = vmatmul.msk.f32.gmra.mxu2 %vm3175_vm12, %v12003_v20 }
 0x51d   :  { %v3043_v30 = vpop.f32.mrf.mxu0  ;;  %v3057_v28 = vpop.f32.mrf.mxu1 }
 0x51e   :  { %v3069_v61 = vpop.f32.mrf.mxu2  ;;  %v3083_v36 = vpop.f32.mrf.mxu3  ;;  %v3058_v15 = vadd.f32 %v3057_v28, %v3043_v30  ;;  %v3154_v30 = vsel %vm3150_vm9, 1.0, %v14592_v22 }
 0x51f   :  { %v3084_v21 = vadd.f32 %v3083_v36, %v3069_v61  ;;  %v3153_v61 = vsel %vm3149_vm0, 1.0, %v14592_v22  ;;  %v3173_v36 = vsel %vm3169_vm3, 1.0, %v14592_v22  ;;  %vm3170_vm0 = vmand %vm3165_vm14, %vm3166_vm5  ;;  %vm14505_vm3 = vcmp.eq.s32.totalorder %v14587_v45, %v12023_v47 }
 0x520   :  { %3200 = vmatpush.msra.mxu0 %v3058_v15  ;;  %v3174_v28 = vsel %vm3170_vm0, 1.0, %v14592_v22  ;;  %vm3151_vm9 = vmand %vm14505_vm3, %vm3147_vm8 }
 0x521   :  { %9278 = vmatmul.msk.f32.gmra.mxu3 %vm3175_vm12, %v12003_v20  ;;  %v3155_v15 = vsel %vm3151_vm9, 1.0, %v14592_v22 }
 0x522   :  { %9275 = vmatmul.msk.f32.gmra.mxu2 %vm3175_vm12, %v12354_v40  ;;  %3201 = vmatpush.msra.mxu0 %v3056_v43 }
 0x523   :  { %9265 = vmatmul.msk.f32.vlgmr.msra.gmra.mxu0 %vm3175_vm12, %v12015_v25 }
 0x524   :  { %3338 = vmatpush.msrb.mxu0 %v2946_v44 }
 0x526   :  { %v3071_v31 = vpop.f32.mrf.mxu2  ;;  %v3085_v57 = vpop.f32.mrf.mxu3  ;;  %3339 = vmatpush.msrb.mxu0 %v2944_v13 }
 0x527   :  { %v3086_v35 = vadd.f32 %v3085_v57, %v3071_v31 }
 0x529   :  { %3229 = vmatpush.msra.mxu1 %v3086_v35  ;;  %9279 = vmatmul.msk.f32.gmra.mxu3 %vm3175_vm12, %v12354_v40 }
 0x52a   :  { %9276 = vmatmul.msk.f32.gmra.mxu2 %vm3175_vm12, %v12365_v60 }
 0x52b   :  { %3230 = vmatpush.msra.mxu1 %v3084_v21  ;;  %9266 = vmatmul.msk.f32.gmra.mxu0 %vm3175_vm12, %v12028_v49  ;;  %v3485_v21 = vand.u32 15, %v11463_v3 }
 0x52c   :  { %9269 = vmatmul.msk.f32.vlgmr.msra.gmra.mxu1 %vm3175_vm12, %v12015_v25 }
 0x52d   :  { %3367 = vmatpush.msrb.mxu1 %v2974_v24  ;;  %vm3517_vm5 = vcmp.eq.s32.totalorder %v3485_v21, %v11460_v2  ;;  %v3484_v24 = vand.u32 15, %v11469_v5  ;;  %v14596_v21 = vld [vmem:[#allocation32_spill] sm:$0xff] }
 0x52e   :  { %9297 = vmatpush.msk.msra.mxu0 %vm3517_vm5, %v14585_v34 }
 0x52f   :  { %3368 = vmatpush.msrb.mxu1 %v2972_v59  ;;  %vm3516_vm8 = vcmp.eq.s32.totalorder %v3484_v24, %v11460_v2  ;;  %v3476_v24 = vand.u32 15, %v14596_v21 }
 0x530   :  { %9298 = vmatpush.msk.msra.mxu0 %vm3516_vm8, %v14585_v34 }
 0x531   :  { %9280 = vmatmul.msk.f32.gmra.mxu3 %vm3175_vm12, %v12365_v60 }
 0x533   :  { %9267 = vmatmul.msk.f32.gmra.mxu0 %vm3175_vm12, %v12378_v50 }
 0x534   :  { %9270 = vmatmul.msk.f32.gmra.mxu1 %vm3175_vm12, %v12028_v49 }
 0x535   :  { %v3097_v32 = vpop.f32.mrf.mxu0  ;;  %v3111_v14 = vpop.f32.mrf.mxu1 }
 0x536   :  { %v3112_v46 = vadd.f32 %v3111_v14, %v3097_v32 }
 0x53b   :  { %9268 = vmatmul.msk.f32.gmra.mxu0 %vm3175_vm12, %v12393_v12 }
 0x53c   :  { %v3125_v29 = vpop.f32.mrf.mxu2  ;;  %v3139_v51 = vpop.f32.mrf.mxu3  ;;  %9271 = vmatmul.msk.f32.gmra.mxu1 %vm3175_vm12, %v12378_v50 }
 0x53d   :  { %v3099_v0 = vpop.f32.mrf.mxu0  ;;  %v3113_v39 = vpop.f32.mrf.mxu1  ;;  %v3140_v33 = vadd.f32 %v3139_v51, %v3125_v29  ;;  %v3483_v29 = vand.u32 15, %v11475_v7 }
 0x53e   :  { %v3114_v18 = vadd.f32 %v3113_v39, %v3099_v0  ;;  %v3482_v0 = vand.u32 15, %v11481_v9  ;;  %v3501_v39 = vand.u32 15, %v11466_v4  ;;  %v10987_v4 = vld [vmem:[#allocation6 + $0x1ec] sm:$0xf0] }
 0x53f   :  { %vm3515_vm0 = vcmp.eq.s32.totalorder %v3483_v29, %v11460_v2  ;;  %v14597_v29 = vld [vmem:[#allocation27_spill] sm:$0xff] }
 0x540   :  { %3416 = vmatpush.msra.mxu2 %v3114_v18  ;;  %9299 = vmatpush.msk.msra.mxu0 %vm3515_vm0, %v14585_v34  ;;  %vm3514_vm9 = vcmp.eq.s32.totalorder %v3482_v0, %v11460_v2  ;;  %v3481_v18 = vand.u32 15, %v11563_v42  ;;  %v3495_v0 = vand.u32 15, %v14597_v29 }
 0x542   :  { %3417 = vmatpush.msra.mxu2 %v3112_v46  ;;  %v3500_v46 = vand.u32 15, %v11472_v6  ;;  %9300 = vmatpush.msk.msra.mxu0 %vm3514_vm9, %v14585_v34  ;;  %v10938_v6 = vld [vmem:[#allocation6 + $0x64] sm:$0xf0] }
 0x543   :  { %9289 = vmatmul.msk.f32.vlgmr.msra.gmra.mxu2 %vm3175_vm12, %v3171_v37  ;;  %9281 = vmatmul.msk.f32.vlgmr.msrb.gmra.mxu0 %vm3175_vm12, %v3152_v19 }
 0x544   :  { %v3127_v11 = vpop.f32.mrf.mxu2  ;;  %v3141_v38 = vpop.f32.mrf.mxu3  ;;  %9272 = vmatmul.msk.f32.gmra.mxu1 %vm3175_vm12, %v12393_v12  ;;  %9329 = vmatpush.msk.msrb.mxu2 %vm3517_vm5, %v14585_v34  ;;  %vm3533_vm5 = vcmp.eq.s32.totalorder %v3501_v39, %v11460_v2  ;;  %vm3532_vm13 = vcmp.eq.s32.totalorder %v3500_v46, %v11460_v2 }
 0x545   :  { %v3142_v62 = vadd.f32 %v3141_v38, %v3127_v11  ;;  %9313 = vmatpush.msk.msra.mxu1 %vm3533_vm5, %v14585_v34  ;;  %v3479_v38 = vand.u32 15, %v11615_v56 }
 0x546   :  { %9330 = vmatpush.msk.msrb.mxu2 %vm3516_vm8, %v14585_v34  ;;  %vm3513_vm8 = vcmp.eq.s32.totalorder %v3481_v18, %v11460_v2  ;;  %v14598_v18 = vld [vmem:[#allocation34_spill] sm:$0xff] }
 0x547   :  { %3445 = vmatpush.msra.mxu3 %v3142_v62  ;;  %9301 = vmatpush.msk.msra.mxu0 %vm3513_vm8, %v14585_v34  ;;  %v3498_v62 = vand.u32 15, %v11484_v10  ;;  %v3475_v46 = vand.u32 15, %v14598_v18 }
 0x548   :  { %9331 = vmatpush.msk.msrb.mxu2 %vm3515_vm0, %v14585_v34  ;;  %9314 = vmatpush.msk.msra.mxu1 %vm3532_vm13, %v14585_v34 }
 0x549   :  { %3446 = vmatpush.msra.mxu3 %v3140_v33 }
 0x54a   :  { %9293 = vmatmul.msk.f32.vlgmr.msra.gmra.mxu3 %vm3175_vm12, %v3171_v37  ;;  %9332 = vmatpush.msk.msrb.mxu2 %vm3514_vm9, %v14585_v34  ;;  %v3480_v37 = vand.u32 15, %v11602_v52  ;;  %vm3511_vm9 = vcmp.eq.s32.totalorder %v3479_v38, %v11460_v2  ;;  %v11033_v52 = vld [vmem:[#allocation6 + $0x35c] sm:$0xf0] }
 0x54b   :  { %9290 = vmatmul.msk.f32.gmra.mxu2 %vm3175_vm12, %v3172_v26  ;;  %9282 = vmatmul.msk.f32.gmra.mxu0 %vm3175_vm12, %v3153_v61 }
 0x54c   :  { %9285 = vmatmul.msk.f32.vlgmr.msrb.gmra.mxu1 %vm3175_vm12, %v3152_v19  ;;  %9345 = vmatpush.msk.msrb.mxu3 %vm3533_vm5, %v14585_v34  ;;  %v3499_v19 = vand.u32 15, %v11478_v8  ;;  %vm3512_vm0 = vcmp.eq.s32.totalorder %v3480_v37, %v11460_v2  ;;  %vm3530_vm5 = vcmp.eq.s32.totalorder %v3498_v62, %v11460_v2  ;;  %v14599_v37 = vld [vmem:[#allocation29_spill] sm:$0xff]  ;;  %v14600_v62 = vld [vmem:[#allocation36_spill] sm:$0xff] }
 0x54d   :  { %9333 = vmatpush.msk.msrb.mxu2 %vm3513_vm8, %v14585_v34  ;;  %9302 = vmatpush.msk.msra.mxu0 %vm3512_vm0, %v14585_v34 }
 0x54e   :  { %vm3531_vm7 = vcmp.eq.s32.totalorder %v3499_v19, %v11460_v2  ;;  %9346 = vmatpush.msk.msrb.mxu3 %vm3532_vm13, %v14585_v34  ;;  %v3494_v19 = vand.u32 15, %v14599_v37 }
 0x54f   :  { %9315 = vmatpush.msk.msra.mxu1 %vm3531_vm7, %v14585_v34  ;;  %9334 = vmatpush.msk.msrb.mxu2 %vm3512_vm0, %v14585_v34 }
 0x550   :  { %9347 = vmatpush.msk.msrb.mxu3 %vm3531_vm7, %v14585_v34  ;;  %9303 = vmatpush.msk.msra.mxu0 %vm3511_vm9, %v14585_v34 }
 0x551   :  { %9316 = vmatpush.msk.msra.mxu1 %vm3530_vm5, %v14585_v34  ;;  %9335 = vmatpush.msk.msrb.mxu2 %vm3511_vm9, %v14585_v34  ;;  %vm3508_vm9 = vcmp.eq.s32.totalorder %v3476_v24, %v11460_v2 }
 0x552   :  { %9294 = vmatmul.msk.f32.gmra.mxu3 %vm3175_vm12, %v3172_v26 }
 0x553   :  { %9291 = vmatmul.msk.f32.gmra.mxu2 %vm3175_vm12, %v3173_v36  ;;  %9283 = vmatmul.msk.f32.gmra.mxu0 %vm3175_vm12, %v3154_v30 }
 0x554   :  { %9286 = vmatmul.msk.f32.gmra.mxu1 %vm3175_vm12, %v3153_v61  ;;  %9348 = vmatpush.msk.msrb.mxu3 %vm3530_vm5, %v14585_v34  ;;  %vm3527_vm5 = vcmp.eq.s32.totalorder %v3495_v0, %v11460_v2  ;;  %v3473_v0 = vand.u32 15, %v14587_v45 }
 0x55a   :  { %9295 = vmatmul.msk.f32.gmra.mxu3 %vm3175_vm12, %v3173_v36  ;;  %v3478_v36 = vand.u32 15, %v11621_v58 }
 0x55b   :  { %9292 = vmatmul.msk.f32.gmra.mxu2 %vm3175_vm12, %v3174_v28  ;;  %9284 = vmatmul.msk.f32.gmra.mxu0 %vm3175_vm12, %v3155_v15 }
 0x55c   :  { %9287 = vmatmul.msk.f32.gmra.mxu1 %vm3175_vm12, %v3154_v30  ;;  %v3497_v30 = vand.u32 15, %v11587_v48  ;;  %vm3510_vm13 = vcmp.eq.s32.totalorder %v3478_v36, %v11460_v2  ;;  %v3474_v36 = vand.u32 15, %v14600_v62 }
 0x55d   :  { %9304 = vmatpush.msk.msra.mxu0 %vm3510_vm13, %v14585_v34  ;;  %9336 = vmatpush.msk.msrb.mxu2 %vm3510_vm13, %v14585_v34  ;;  %vm3507_vm13 = vcmp.eq.s32.totalorder %v3475_v46, %v11460_v2  ;;  %v14602_v46 = vld [vmem:[#allocation33_spill] sm:$0xff] }
 0x55e   :  { %vm3529_vm7 = vcmp.eq.s32.totalorder %v3497_v30, %v11460_v2 }
 0x55f   :  { %9317 = vmatpush.msk.msra.mxu1 %vm3529_vm7, %v14585_v34  ;;  %9349 = vmatpush.msk.msrb.mxu3 %vm3529_vm7, %v14585_v34  ;;  %vm3526_vm7 = vcmp.eq.s32.totalorder %v3494_v19, %v11460_v2  ;;  %v3492_v19 = vand.u32 15, %v14602_v46 }
 0x562   :  { %9296 = vmatmul.msk.f32.gmra.mxu3 %vm3175_vm12, %v3174_v28  ;;  %v3477_v28 = vand.u32 15, %v11663_v17 }
 0x564   :  { %9288 = vmatmul.msk.f32.gmra.mxu1 %vm3175_vm12, %v3155_v15  ;;  %v3496_v15 = vand.u32 15, %v11605_v53  ;;  %vm3509_vm8 = vcmp.eq.s32.totalorder %v3477_v28, %v11460_v2  ;;  %v14601_v28 = vld [vmem:[#allocation31_spill] sm:$0xff] }
 0x565   :  { %9305 = vmatpush.msk.msra.mxu0 %vm3509_vm8, %v14585_v34  ;;  %9337 = vmatpush.msk.msrb.mxu2 %vm3509_vm8, %v14585_v34  ;;  %vm3506_vm8 = vcmp.eq.s32.totalorder %v3474_v36, %v11460_v2  ;;  %v3472_v36 = vand.u32 15, %v14589_v23 }
 0x566   :  { %vm3528_vm0 = vcmp.eq.s32.totalorder %v3496_v15, %v11460_v2  ;;  %v3493_v15 = vand.u32 15, %v14601_v28  ;;  %v3491_v28 = vand.u32 15, %v14603_v54 }
 0x567   :  { %9318 = vmatpush.msk.msra.mxu1 %vm3528_vm0, %v14585_v34  ;;  %9306 = vmatpush.msk.msra.mxu0 %vm3508_vm9, %v14585_v34 }
 0x568   :  { %9350 = vmatpush.msk.msrb.mxu3 %vm3528_vm0, %v14585_v34  ;;  %9338 = vmatpush.msk.msrb.mxu2 %vm3508_vm9, %v14585_v34  ;;  %vm3525_vm0 = vcmp.eq.s32.totalorder %v3493_v15, %v11460_v2  ;;  %vm3505_vm9 = vcmp.eq.s32.totalorder %v3473_v0, %v11460_v2  ;;  %v3471_v15 = vand.u32 15, %v11846_v55  ;;  %v14604_v0 = vld [vmem:[#allocation37_spill] sm:$0xff] }
 0x569   :  { %9319 = vmatpush.msk.msra.mxu1 %vm3527_vm5, %v14585_v34  ;;  %9307 = vmatpush.msk.msra.mxu0 %vm3507_vm13, %v14585_v34 }
 0x56a   :  { %9351 = vmatpush.msk.msrb.mxu3 %vm3527_vm5, %v14585_v34  ;;  %9339 = vmatpush.msk.msrb.mxu2 %vm3507_vm13, %v14585_v34  ;;  %vm3524_vm5 = vcmp.eq.s32.totalorder %v3492_v19, %v11460_v2  ;;  %vm3504_vm13 = vcmp.eq.s32.totalorder %v3472_v36, %v11460_v2  ;;  %v3490_v19 = vand.u32 15, %v14604_v0  ;;  %v14605_v0 = vld [vmem:[#allocation39_spill] sm:$0xff] }
 0x56b   :  { %9320 = vmatpush.msk.msra.mxu1 %vm3526_vm7, %v14585_v34  ;;  %9308 = vmatpush.msk.msra.mxu0 %vm3506_vm8, %v14585_v34  ;;  %v3489_v54 = vand.u32 15, %v14605_v0  ;;  %v14607_v0 = vld [vmem:[#allocation43_spill] sm:$0xff] }
 0x56c   :  { %9352 = vmatpush.msk.msrb.mxu3 %vm3526_vm7, %v14585_v34  ;;  %9340 = vmatpush.msk.msrb.mxu2 %vm3506_vm8, %v14585_v34  ;;  %vm3523_vm7 = vcmp.eq.s32.totalorder %v3491_v28, %v11460_v2  ;;  %vm3503_vm8 = vcmp.eq.s32.totalorder %v3471_v15, %v11460_v2  ;;  %v3470_v28 = vand.u32 15, %v11458_v1  ;;  %v14606_v15 = vld [vmem:[#allocation41_spill] sm:$0xff]  ;;  %v3487_v53 = vand.u32 15, %v14607_v0 }
 0x56d   :  { %9321 = vmatpush.msk.msra.mxu1 %vm3525_vm0, %v14585_v34  ;;  %9309 = vmatpush.msk.msra.mxu0 %vm3505_vm9, %v14585_v34 }
 0x56e   :  { %9353 = vmatpush.msk.msrb.mxu3 %vm3525_vm0, %v14585_v34  ;;  %9341 = vmatpush.msk.msrb.mxu2 %vm3505_vm9, %v14585_v34  ;;  %vm3522_vm0 = vcmp.eq.s32.totalorder %v3490_v19, %v11460_v2  ;;  %vm3502_vm9 = vcmp.eq.s32.totalorder %v3470_v28, %v11460_v2  ;;  %v3488_v19 = vand.u32 15, %v14606_v15 }
 0x56f   :  { %9322 = vmatpush.msk.msra.mxu1 %vm3524_vm5, %v14585_v34  ;;  %9310 = vmatpush.msk.msra.mxu0 %vm3504_vm13, %v14585_v34 }
 0x570   :  { %9354 = vmatpush.msk.msrb.mxu3 %vm3524_vm5, %v14585_v34  ;;  %9342 = vmatpush.msk.msrb.mxu2 %vm3504_vm13, %v14585_v34  ;;  %vm3521_vm5 = vcmp.eq.s32.totalorder %v3489_v54, %v11460_v2  ;;  %vm3520_vm13 = vcmp.eq.s32.totalorder %v3488_v19, %v11460_v2  ;;  %v14608_v54 = vld [vmem:[#allocation44_spill] sm:$0xff] }
 0x571   :  { %9323 = vmatpush.msk.msra.mxu1 %vm3523_vm7, %v14585_v34  ;;  %9311 = vmatpush.msk.msra.mxu0 %vm3503_vm8, %v14585_v34  ;;  %v3486_v48 = vand.u32 15, %v14608_v54 }
 0x572   :  { %9355 = vmatpush.msk.msrb.mxu3 %vm3523_vm7, %v14585_v34  ;;  %9343 = vmatpush.msk.msrb.mxu2 %vm3503_vm8, %v14585_v34  ;;  %vm3519_vm7 = vcmp.eq.s32.totalorder %v3487_v53, %v11460_v2 }
 0x573   :  { %9324 = vmatpush.msk.msra.mxu1 %vm3522_vm0, %v14585_v34  ;;  %9312 = vmatpush.msk.msra.mxu0 %vm3502_vm9, %v14585_v34  ;;  %vm3518_vm8 = vcmp.eq.s32.totalorder %v3486_v48, %v11460_v2 }
 0x574   :  { %9356 = vmatpush.msk.msrb.mxu3 %vm3522_vm0, %v14585_v34  ;;  %9344 = vmatpush.msk.msrb.mxu2 %vm3502_vm9, %v14585_v34 }
 0x575   :  { %9325 = vmatpush.msk.msra.mxu1 %vm3521_vm5, %v14585_v34 }
 0x576   :  { %9357 = vmatpush.msk.msrb.mxu3 %vm3521_vm5, %v14585_v34 }
 0x577   :  { %9326 = vmatpush.msk.msra.mxu1 %vm3520_vm13, %v14585_v34 }
 0x578   :  { %9358 = vmatpush.msk.msrb.mxu3 %vm3520_vm13, %v14585_v34 }
 0x579   :  { %9327 = vmatpush.msk.msra.mxu1 %vm3519_vm7, %v14585_v34 }
 0x57a   :  { %9359 = vmatpush.msk.msrb.mxu3 %vm3519_vm7, %v14585_v34 }
 0x57b   :  { %9328 = vmatpush.msk.msra.mxu1 %vm3518_vm8, %v14585_v34 }
 0x57c   :  { %9360 = vmatpush.msk.msrb.mxu3 %vm3518_vm8, %v14585_v34 }
 0x595   :  { %v12474_v43 = vpop.f32.mrf.mxu2 }
 0x59c   :  { %v12478_v13 = vpop.f32.mrf.mxu3 }
 0x59d   :  { %v12480_v31 = vpop.f32.mrf.mxu2 }
 0x5a0   :  { %v12476_v44 = vpop.f32.mrf.mxu0 }
 0x5a1   :  { %v3272_v58 = vadd.f32 %v12474_v43, %v12476_v44 }
 0x5a4   :  { %v12489_v59 = vpop.f32.mrf.mxu3 }
 0x5a5   :  { %v12495_v14 = vpop.f32.mrf.mxu2 }
 0x5a8   :  { %v12484_v35 = vpop.f32.mrf.mxu0 }
 0x5a9   :  { %v12482_v57 = vpop.f32.mrf.mxu1  ;;  %v3275_v28 = vadd.f32 %v12480_v31, %v12484_v35 }
 0x5ac   :  { %v12530_v33 = vpop.f32.mrf.mxu3 }
 0x5ad   :  { %v12536_v61 = vpop.f32.mrf.mxu2 }
 0x5b0   :  { %v12499_v51 = vpop.f32.mrf.mxu0 }
 0x5b1   :  { %v12493_v32 = vpop.f32.mrf.mxu1  ;;  %v3278_v19 = vadd.f32 %v12495_v14, %v12499_v51 }
 0x5b2   :  { %v3304_v44 = vadd.f32 %v12489_v59, %v12493_v32 }
 0x5b4   :  { %v12578_v30 = vpop.f32.mrf.mxu3 }
 0x5b8   :  { %v12532_v26 = vpop.f32.mrf.mxu0 }
 0x5b9   :  { %v12522_v11 = vpop.f32.mrf.mxu1 }
 0x5ba   :  { %v3307_v51 = vadd.f32 %v12530_v33, %v12522_v11 }
 0x5c0   :  { %v12569_v38 = vpop.f32.mrf.mxu0 }
 0x5c1   :  { %v12561_v39 = vpop.f32.mrf.mxu1  ;;  %v3382_v31 = vadd.f32 %v12569_v38, %v3272_v58  ;;  %v3301_v58 = vadd.f32 %v12478_v13, %v12482_v57 }
 0x5c6   :  { %v12583_v24 = vpop.f32.mrf.mxu2 }
 0x5c7   :  { %v12650_v14 = vadd.f32 %v12583_v24, %v3382_v31  ;;  %v3310_v31 = vadd.f32 %v12578_v30, %v12561_v39 }
 0x5c8   :  { %v3344_v37 = vpop.f32.mrf.mxu0 }
 0x5c9   :  { %v3370_v46 = vpop.f32.mrf.mxu1  ;;  %v3384_v10 = vadd.f32 %v3344_v37, %v3275_v28  ;;  %v3594_v28 = vmul.f32 %v12650_v14, %v12650_v14 }
 0x5ca   :  { %v3383_v32 = vadd.f32 %v3370_v46, %v3301_v58 }
 0x5cd   :  { %v3448_v36 = vpop.f32.mrf.mxu3 }
 0x5ce   :  { %v3422_v29 = vpop.f32.mrf.mxu2  ;;  %v12673_v46 = vadd.f32 %v3448_v36, %v3383_v32 }
 0x5cf   :  { %v12644_v43 = vadd.f32 %v3422_v29, %v3384_v10  ;;  %v3281_v10 = vadd.f32 %v12536_v61, %v12532_v26 }
 0x5d0   :  { %v3347_v0 = vpop.f32.mrf.mxu0  ;;  %v3595_v36 = vmul.f32 %v12673_v46, %v12673_v46 }
 0x5d1   :  { %v3373_v15 = vpop.f32.mrf.mxu1  ;;  %v3386_v35 = vadd.f32 %v3347_v0, %v3278_v19  ;;  %v3596_v38 = vmul.f32 %v12644_v43, %v12644_v43  ;;  %v3576_v13 = vadd.f32 %v12644_v43, %v12650_v14 }
 0x5d2   :  { %v3385_v29 = vadd.f32 %v3373_v15, %v3304_v44 }
 0x5d3   :  { %v3602_v61 = vadd.f32 %v3596_v38, %v3594_v28 }
 0x5d5   :  { %v3451_v53 = vpop.f32.mrf.mxu3 }
 0x5d6   :  { %v3425_v54 = vpop.f32.mrf.mxu2  ;;  %v12668_v33 = vadd.f32 %v3451_v53, %v3385_v29 }
 0x5d7   :  { %v12652_v48 = vadd.f32 %v3425_v54, %v3386_v35 }
 0x5d8   :  { %v3350_v59 = vpop.f32.mrf.mxu0  ;;  %v3597_v58 = vmul.f32 %v12668_v33, %v12668_v33  ;;  %v3585_v38 = vadd.f32 %v12668_v33, %v12673_v46 }
 0x5d9   :  { %v3376_v37 = vpop.f32.mrf.mxu1  ;;  %v3388_v0 = vadd.f32 %v3350_v59, %v3281_v10  ;;  %v3598_v57 = vmul.f32 %v12652_v48, %v12652_v48  ;;  %v3577_v15 = vadd.f32 %v3576_v13, %v12652_v48 }
 0x5da   :  { %v3387_v24 = vadd.f32 %v3376_v37, %v3307_v51 }
 0x5db   :  { %v3603_v35 = vadd.f32 %v3602_v61, %v3598_v57 }
 0x5dd   :  { %v3454_v11 = vpop.f32.mrf.mxu3 }
 0x5de   :  { %v3428_v26 = vpop.f32.mrf.mxu2  ;;  %v12675_v19 = vadd.f32 %v3454_v11, %v3387_v24  ;;  %v3611_v24 = vadd.f32 %v3597_v58, %v3595_v36 }
 0x5df   :  { %v12671_v54 = vadd.f32 %v3428_v26, %v3388_v0 }
 0x5e0   :  { %v3599_v39 = vmul.f32 %v12675_v19, %v12675_v19  ;;  %v3586_v0 = vadd.f32 %v3585_v38, %v12675_v19 }
 0x5e1   :  { %v3578_v44 = vadd.f32 %v3577_v15, %v12671_v54  ;;  %v3600_v53 = vmul.f32 %v12671_v54, %v12671_v54  ;;  %v3379_v51 = vpop.f32.mrf.mxu1 }
 0x5e2   :  { %v3389_v37 = vadd.f32 %v3379_v51, %v3310_v31  ;;  %v3612_v11 = vadd.f32 %v3611_v24, %v3599_v39 }
 0x5e3   :  { %v3579_v10 = vrot.slane %v3578_v44, 4  ;;  %v3604_v29 = vadd.f32 %v3603_v35, %v3600_v53 }
 0x5e5   :  { %v3580_v30 = vadd.f32 %v3579_v10, %v3578_v44  ;;  %v3605_v59 = vrot.slane %v3604_v29, 4  ;;  %v3457_v32 = vpop.f32.mrf.mxu3 }
 0x5e6   :  { %v12691_v28 = vadd.f32 %v3457_v32, %v3389_v37 }
 0x5e7   :  { %v3581_v13 = vrot.slane %v3580_v30, 2  ;;  %v3606_v57 = vadd.f32 %v3605_v59, %v3604_v29 }
 0x5e8   :  { %v3587_v26 = vadd.f32 %v3586_v0, %v12691_v28  ;;  %v3601_v61 = vmul.f32 %v12691_v28, %v12691_v28 }
 0x5e9   :  { %v3582_v15 = vadd.f32 %v3581_v13, %v3580_v30  ;;  %v3607_v31 = vrot.slane %v3606_v57, 2 }
 0x5ea   :  { %v3588_v35 = vrot.slane %v3587_v26, 4  ;;  %v3613_v53 = vadd.f32 %v3612_v11, %v3601_v61  ;;  %v14609_v11 = vld [vmem:[#allocation45_spill] sm:$0xff] }
 0x5eb   :  { %v3583_v44 = vrot.slane %v3582_v15, 1  ;;  %v3608_v51 = vadd.f32 %v3607_v31, %v3606_v57  ;;  %v12697_v57 = vand.u32 15, %v11460_v2 }
 0x5ec   :  { %v3589_v10 = vadd.f32 %v3588_v35, %v3587_v26  ;;  %v3614_v58 = vrot.slane %v3613_v53, 4  ;;  %v3567_v26 = vand.u32 15, %v14609_v11 }
 0x5ed   :  { %v3584_v36 = vadd.f32 %v3583_v44, %v3582_v15  ;;  %v3609_v38 = vrot.slane %v3608_v51, 1  ;;  %vm3570_vm0 = vcmp.eq.s32.totalorder %v12697_v57, %v11846_v55  ;;  %vm3568_vm5 = vcmp.eq.s32.totalorder %v12697_v57, %v11458_v1 }
 0x5ee   :  { %v3590_v37 = vrot.slane %v3589_v10, 2  ;;  %v3615_v32 = vadd.f32 %v3614_v58, %v3613_v53  ;;  %vm3571_vm9 = vcmp.eq.s32.totalorder %v3567_v26, %v11846_v55  ;;  %9361 = vmatpush.msk.msrb.mxu0 %vm3570_vm0, %v14585_v34  ;;  %vm3569_vm13 = vcmp.eq.s32.totalorder %v3567_v26, %v11458_v1  ;;  %9367 = vmatpush.msk.msra.mxu2 %vm3570_vm0, %v14585_v34  ;;  %v9855_v58 = vld [vmem:[#allocation6 + $0x3c0] sm:$0xf] }
 0x5ef   :  { %3636 = vmatmul.f32.vlgmr.msra.gmra.mxu0 %v3584_v36  ;;  %v3610_v29 = vadd.f32 %v3609_v38, %v3608_v51  ;;  %9364 = vmatpush.msk.msrb.mxu1 %vm3571_vm9, %v14585_v34  ;;  %v9599_v51 = vld [vmem:[#allocation6 + $0x1c0] sm:$0xf] }
 0x5f0   :  { %v3591_v39 = vadd.f32 %v3590_v37, %v3589_v10  ;;  %v3616_v59 = vrot.slane %v3615_v32, 2  ;;  %9370 = vmatpush.msk.msra.mxu3 %vm3571_vm9, %v14585_v34  ;;  %9362 = vmatpush.msk.msrb.mxu0 %vm3568_vm5, %v14585_v34  ;;  %v10985_v10 = vld [vmem:[#allocation6 + $0x1dc] sm:$0xf0]  ;;  %v10981_v37 = vld [vmem:[#allocation6 + $0x1c4] sm:$0xf]  ;;  %vm4930_vm9 = vcmp.eq.s32.totalorder %v14598_v18, %v11989_v41 }
 0x5f1   :  { %3676 = vmatmul.f32.vlgmr.msrb.gmra.mxu2 %v3610_v29  ;;  %9365 = vmatpush.msk.msrb.mxu1 %vm3569_vm13, %v14585_v34  ;;  %v9600_v36 = vor.u32 %v10985_v10, %v9599_v51  ;;  %v11049_v38 = vld [vmem:[#allocation6 + $0x3dc] sm:$0xf0]  ;;  %v10973_v51 = vld [vmem:[#allocation6 + $0x184] sm:$0xf] }
 0x5f2   :  { %v3592_v24 = vrot.slane %v3591_v39, 1  ;;  %v3617_v0 = vadd.f32 %v3616_v59, %v3615_v32  ;;  %9368 = vmatpush.msk.msra.mxu2 %vm3568_vm5, %v14585_v34  ;;  %9371 = vmatpush.msk.msra.mxu3 %vm3569_vm13, %v14585_v34  ;;  %v9601_v32 = vld [vmem:[#allocation6 + $0x1e0] sm:$0xf0]  ;;  %v9856_v59 = vor.u32 %v11049_v38, %v9855_v58  ;;  %v9567_v26 = vld [vmem:[#allocation6 + $0x180] sm:$0xf]  ;;  %vm4931_vm5 = vcmp.eq.s32.totalorder %v14596_v21, %v11989_v41 }
 0x5f3   :  { %4604 = vmatpush.bf16.msra.mxu0 %v9600_v36  ;;  %v9569_v10 = vld [vmem:[#allocation6 + $0x1a0] sm:$0xf0]  ;;  %v9535_v38 = vld [vmem:[#allocation6 + $0x140] sm:$0xf]  ;;  %vm4932_vm13 = vcmp.eq.s32.totalorder %v11663_v17, %v11989_v41 }
 0x5f4   :  { %v3593_v56 = vadd.f32 %v3592_v24, %v3591_v39  ;;  %v3618_v30 = vrot.slane %v3617_v0, 1  ;;  %v9604_v24 = vor.u32 %v10981_v37, %v9601_v32  ;;  %v9572_v8 = vor.u32 %v10973_v51, %v9569_v10  ;;  %v9825_v58 = vld [vmem:[#allocation6 + $0x3a0] sm:$0xf0]  ;;  %v10969_v36 = vld [vmem:[#allocation6 + $0x15c] sm:$0xf0] }
 0x5f6   :  { %3656 = vmatmul.f32.vlgmr.msra.gmra.mxu1 %v3593_v56  ;;  %v3619_v13 = vadd.f32 %v3618_v30, %v3617_v0  ;;  %v11045_v0 = vld [vmem:[#allocation6 + $0x3c4] sm:$0xf]  ;;  %4642 = vmatpush.bf16.msrb.mxu2 %v9604_v24 }
 0x5f7   :  { %v9857_v30 = vld [vmem:[#allocation6 + $0x3e0] sm:$0xf0]  ;;  %4623 = vmatpush.bf16.msra.mxu1 %v9856_v59 }
 0x5f8   :  { %3696 = vmatmul.f32.vlgmr.msrb.gmra.mxu3 %v3619_v13  ;;  %v9860_v13 = vor.u32 %v11045_v0, %v9857_v30  ;;  %v9791_v0 = vld [vmem:[#allocation6 + $0x340] sm:$0xf]  ;;  %v9536_v30 = vor.u32 %v10969_v36, %v9535_v38 }
 0x5f9   :  { %v9792_v59 = vor.u32 %v11033_v52, %v9791_v0  ;;  %v9759_v36 = vld [vmem:[#allocation6 + $0x300] sm:$0xf] }
 0x5fa   :  { %4661 = vmatpush.bf16.msrb.mxu3 %v9860_v13  ;;  %4643 = vmatpush.bf16.msrb.mxu2 %v9572_v8  ;;  %v11029_v13 = vld [vmem:[#allocation6 + $0x344] sm:$0xf]  ;;  %v3468_v8 = vld [vmem:[%s14390_s10] sm:$0x1] }
 0x66c   :  { %v3637_v15 = vpop.f32.mrf.mxu0 }
 0x673   :  { %v3657_v61 = vpop.f32.mrf.mxu1 }
 0x674   :  { %v3658_v31 = vadd.f32 %v3657_v61, %v3637_v15  ;;  %v3677_v35 = vpop.f32.mrf.mxu2  ;;  %v10977_v61 = vld [vmem:[#allocation6 + $0x19c] sm:$0xf0] }
 0x675   :  { %v9823_v15 = vld [vmem:[#allocation6 + $0x380] sm:$0xf] }
 0x676   :  { %v12714_v56 = vmul.f32 0.001953125, %v3658_v31 }
 0x678   :  { %v3702_v29 = vmul.f32 %v12714_v56, %v12714_v56 }
 0x67b   :  { %v3697_v53 = vpop.f32.mrf.mxu3 }
 0x67c   :  { %v3698_v44 = vadd.f32 %v3697_v53, %v3677_v35  ;;  %v9568_v35 = vor.u32 %v10977_v61, %v9567_v26  ;;  %v11041_v53 = vld [vmem:[#allocation6 + $0x39c] sm:$0xf0]  ;;  %v9793_v26 = vld [vmem:[#allocation6 + $0x360] sm:$0xf0] }
 0x67d   :  { %v9824_v11 = vor.u32 %v11041_v53, %v9823_v15  ;;  %v9796_v61 = vor.u32 %v11029_v13, %v9793_v26  ;;  %v11021_v13 = vld [vmem:[#allocation6 + $0x304] sm:$0xf] }
 0x67e   :  { %v3701_v39 = vmul.f32 0.001953125, %v3698_v44  ;;  %v11037_v44 = vld [vmem:[#allocation6 + $0x384] sm:$0xf]  ;;  %4605 = vmatpush.bf16.msra.mxu0 %v9568_v35 }
 0x67f   :  { %v9828_v32 = vor.u32 %v11037_v44, %v9825_v58  ;;  %4624 = vmatpush.bf16.msra.mxu1 %v9824_v11  ;;  %v3469_v44 = vld [vmem:[%s14391_s11] sm:$0x1] }
 0x680   :  { %v3703_v31 = vsub.f32 %v3701_v39, %v3702_v29  ;;  %v10965_v29 = vld [vmem:[#allocation6 + $0x144] sm:$0xf] }
 0x681   :  { %v9537_v39 = vld [vmem:[#allocation6 + $0x160] sm:$0xf0]  ;;  %4662 = vmatpush.bf16.msrb.mxu3 %v9828_v32  ;;  %v9503_v32 = vld [vmem:[#allocation6 + $0x100] sm:$0xf] }
 0x682   :  { %v3704_v37 = vadd.f32 1e-05, %v3703_v31  ;;  %v9540_v24 = vor.u32 %v10965_v29, %v9537_v39  ;;  %4606 = vmatpush.bf16.msra.mxu0 %v9536_v30  ;;  %v11025_v30 = vld [vmem:[#allocation6 + $0x31c] sm:$0xf0]  ;;  %v10957_v29 = vld [vmem:[#allocation6 + $0x104] sm:$0xf] }
 0x683   :  { %4625 = vmatpush.bf16.msra.mxu1 %v9792_v59  ;;  %v9505_v39 = vld [vmem:[#allocation6 + $0x120] sm:$0xf0]  ;;  %v9760_v59 = vor.u32 %v11025_v30, %v9759_v36  ;;  %v11009_v36 = vld [vmem:[#allocation6 + $0x29c] sm:$0xf0] }
 0x684   :  { %11193 = vrsqrt.f32 %v3704_v37  ;;  %4644 = vmatpush.bf16.msrb.mxu2 %v9540_v24  ;;  %vm3711_vm8 = vweird.f32 %v3704_v37  ;;  %v9508_v24 = vor.u32 %v10957_v29, %v9505_v39  ;;  %v10941_v29 = vld [vmem:[#allocation6 + $0x84] sm:$0xf] }
 0x685   :  { %4663 = vmatpush.bf16.msrb.mxu3 %v9796_v61  ;;  %v9471_v61 = vld [vmem:[#allocation6 + $0xc0] sm:$0xf]  ;;  %v9441_v39 = vld [vmem:[#allocation6 + $0xa0] sm:$0xf0] }
 0x687   :  { %4626 = vmatpush.bf16.msra.mxu1 %v9760_v59  ;;  %v11005_v59 = vld [vmem:[#allocation6 + $0x284] sm:$0xf] }
 0x688   :  { %4645 = vmatpush.bf16.msrb.mxu2 %v9508_v24  ;;  %v9444_v24 = vor.u32 %v10941_v29, %v9441_v39 }
 0x68a   :  { %v11194_v15 = vpop.eup %11193 }
 0x68b   :  { %v3706_v31 = vmul.f32 %v11194_v15, %v3704_v37  ;;  %vm3712_vm7 = vweird.f32 %v11194_v15  ;;  %v10961_v37 = vld [vmem:[#allocation6 + $0x11c] sm:$0xf0] }
 0x68c   :  { %vm3713_vm0 = vmor %vm3711_vm8, %vm3712_vm7  ;;  %v9504_v0 = vor.u32 %v10961_v37, %v9503_v32  ;;  %v10945_v32 = vld [vmem:[#allocation6 + $0x9c] sm:$0xf0]  ;;  %vm4949_vm7 = vcmp.ne.s32.totalorder %v12697_v57, 15  ;;  %vm4937_vm8 = vcmp.eq.s32.totalorder %v14600_v62, %v12006_v27 }
 0x68d   :  { %v3707_v35 = vmul.f32 %v11194_v15, %v3706_v31  ;;  %v9727_v31 = vld [vmem:[#allocation6 + $0x2c0] sm:$0xf] }
 0x68e   :  { %4607 = vmatpush.bf16.msra.mxu0 %v9504_v0  ;;  %v9695_v37 = vld [vmem:[#allocation6 + $0x280] sm:$0xf] }
 0x68f   :  { %v3708_v53 = vmul.f32 0.5, %v3707_v35  ;;  %v9696_v30 = vor.u32 %v11009_v36, %v9695_v37  ;;  %v10993_v36 = vld [vmem:[#allocation6 + $0x21c] sm:$0xf0] }
 0x691   :  { %v3709_v51 = vsub.f32 1.5, %v3708_v53  ;;  %v11017_v53 = vld [vmem:[#allocation6 + $0x2dc] sm:$0xf0] }
 0x693   :  { %v3710_v52 = vmul.f32 %v11194_v15, %v3709_v51  ;;  %v10949_v51 = vld [vmem:[#allocation6 + $0xc4] sm:$0xf] }
 0x695   :  { %v3714_v11 = vsel %vm3713_vm0, %v11194_v15, %v3710_v52  ;;  %v10953_v15 = vld [vmem:[#allocation6 + $0xdc] sm:$0xf0]  ;;  %v9728_v52 = vor.u32 %v11017_v53, %v9727_v31  ;;  %v10933_v53 = vld [vmem:[#allocation6 + $0x44] sm:$0xf]  ;;  %vm4950_vm0 = vmand %vm1577_vm1, %vm4949_vm7 }
 0x696   :  { %v3715_v10 = vmul.f32 %v3714_v11, %v3468_v8  ;;  %v9472_v35 = vor.u32 %v10953_v15, %v9471_v61  ;;  %v9473_v8 = vld [vmem:[#allocation6 + $0xe0] sm:$0xf0]  ;;  %v10937_v61 = vld [vmem:[#allocation6 + $0x5c] sm:$0xf0] }
 0x697   :  { %v9476_v11 = vor.u32 %v10949_v51, %v9473_v8  ;;  %4627 = vmatpush.bf16.msra.mxu1 %v9728_v52  ;;  %v9663_v15 = vld [vmem:[#allocation6 + $0x240] sm:$0xf]  ;;  %v9409_v51 = vld [vmem:[#allocation6 + $0x60] sm:$0xf0] }
 0x698   :  { %v3716_v58 = vmul.f32 %v3715_v10, %v12714_v56  ;;  %9363 = vmatmul.msk.f32.vlgmr.msrb.gmra.mxu0 %vm3175_vm12, %v3715_v10  ;;  %9366 = vmatmul.msk.f32.vlgmr.msrb.gmra.mxu1 %vm3175_vm12, %v3715_v10  ;;  %v9761_v56 = vld [vmem:[#allocation6 + $0x320] sm:$0xf0]  ;;  %v9412_v52 = vor.u32 %v10933_v53, %v9409_v51  ;;  %v9609_v53 = vld [vmem:[#allocation6 + $0x1e8] sm:$0xf0] }
 0x699   :  { %v9764_v26 = vor.u32 %v11021_v13, %v9761_v56  ;;  %v11013_v10 = vld [vmem:[#allocation6 + $0x2c4] sm:$0xf]  ;;  %4608 = vmatpush.bf16.msra.mxu0 %v9472_v35  ;;  %4646 = vmatpush.bf16.msrb.mxu2 %v9476_v11  ;;  %v11001_v35 = vld [vmem:[#allocation6 + $0x25c] sm:$0xf0] }
 0x69a   :  { %v3717_v38 = vsub.f32 %v3469_v44, %v3716_v58  ;;  %v9729_v44 = vld [vmem:[#allocation6 + $0x2e0] sm:$0xf0]  ;;  %v9439_v58 = vld [vmem:[#allocation6 + $0x80] sm:$0xf]  ;;  %v9664_v8 = vor.u32 %v11001_v35, %v9663_v15  ;;  %v10982_v35 = vld [vmem:[#allocation6 + $0x1cc] sm:$0xf] }
 0x69b   :  { %4664 = vmatpush.bf16.msrb.mxu3 %v9764_v26  ;;  %v9440_v0 = vor.u32 %v10945_v32, %v9439_v58  ;;  %v9697_v13 = vld [vmem:[#allocation6 + $0x2a0] sm:$0xf0]  ;;  %4628 = vmatpush.bf16.msra.mxu1 %v9696_v30  ;;  %v9407_v26 = vld [vmem:[#allocation6 + $0x40] sm:$0xf] }
 0x69c   :  { %9369 = vmatmul.msk.f32.vlgmr.msra.gmra.mxu2 %vm3175_vm12, %v3717_v38  ;;  %9372 = vmatmul.msk.f32.vlgmr.msra.gmra.mxu3 %vm3175_vm12, %v3717_v38  ;;  %v9732_v38 = vor.u32 %v11013_v10, %v9729_v44  ;;  %v9700_v56 = vor.u32 %v11005_v59, %v9697_v13  ;;  %v9408_v31 = vor.u32 %v10937_v61, %v9407_v26  ;;  %v10997_v11 = vld [vmem:[#allocation6 + $0x244] sm:$0xf]  ;;  %v9375_v58 = vld [vmem:[#allocation6] sm:$0xf]  ;;  %v10986_v26 = vld [vmem:[#allocation6 + $0x1e4] sm:$0xf0] }
 0x69d   :  { %4609 = vmatpush.bf16.msra.mxu0 %v9440_v0  ;;  %4647 = vmatpush.bf16.msrb.mxu2 %v9444_v24  ;;  %v9665_v10 = vld [vmem:[#allocation6 + $0x260] sm:$0xf0]  ;;  %v9631_v32 = vld [vmem:[#allocation6 + $0x200] sm:$0xf]  ;;  %v9863_v61 = vld [vmem:[#allocation6 + $0x3c8] sm:$0xf]  ;;  %vm4929_vm12 = vcmp.eq.s32.totalorder %v14600_v62, %v11989_v41 }
 0x69e   :  { %v9668_v44 = vor.u32 %v10997_v11, %v9665_v10  ;;  %v10925_v0 = vld [vmem:[#allocation6 + $0x4] sm:$0xf]  ;;  %v9632_v29 = vor.u32 %v10993_v36, %v9631_v32  ;;  %v9865_v11 = vld [vmem:[#allocation6 + $0x3e8] sm:$0xf0]  ;;  %v9575_v10 = vld [vmem:[#allocation6 + $0x188] sm:$0xf] }
 0x69f   :  { %4665 = vmatpush.bf16.msrb.mxu3 %v9732_v38  ;;  %4629 = vmatpush.bf16.msra.mxu1 %v9664_v8  ;;  %v10929_v38 = vld [vmem:[#allocation6 + $0x1c] sm:$0xf0]  ;;  %v9377_v30 = vld [vmem:[#allocation6 + $0x20] sm:$0xf0]  ;;  %v9612_v8 = vor.u32 %v10982_v35, %v9609_v53  ;;  %v11042_v32 = vld [vmem:[#allocation6 + $0x3a4] sm:$0xf0] }
 0x6a0   :  { %v9376_v37 = vor.u32 %v10929_v38, %v9375_v58  ;;  %v9380_v39 = vor.u32 %v10925_v0, %v9377_v30  ;;  %v10989_v59 = vld [vmem:[#allocation6 + $0x204] sm:$0xf]  ;;  %v10978_v58 = vld [vmem:[#allocation6 + $0x1a4] sm:$0xf0]  ;;  %v10974_v0 = vld [vmem:[#allocation6 + $0x18c] sm:$0xf] }
 0x6a1   :  { %4610 = vmatpush.bf16.msra.mxu0 %v9408_v31  ;;  %4648 = vmatpush.bf16.msrb.mxu2 %v9412_v52  ;;  %v9633_v24 = vld [vmem:[#allocation6 + $0x220] sm:$0xf0]  ;;  %v11050_v31 = vld [vmem:[#allocation6 + $0x3e4] sm:$0xf0]  ;;  %v11046_v52 = vld [vmem:[#allocation6 + $0x3cc] sm:$0xf] }
 0x6a2   :  { %v9636_v13 = vor.u32 %v10989_v59, %v9633_v24  ;;  %v9864_v51 = vor.u32 %v11050_v31, %v9863_v61  ;;  %v9831_v38 = vld [vmem:[#allocation6 + $0x388] sm:$0xf]  ;;  %v9577_v30 = vld [vmem:[#allocation6 + $0x1a8] sm:$0xf0]  ;;  %v14619_v41 = vld [vmem:[#allocation15_spill] sm:$0xff] }
 0x6a3   :  { %4666 = vmatpush.bf16.msrb.mxu3 %v9700_v56  ;;  %4630 = vmatpush.bf16.msra.mxu1 %v9632_v29  ;;  %v9607_v56 = vld [vmem:[#allocation6 + $0x1c8] sm:$0xf]  ;;  %v9832_v36 = vor.u32 %v11042_v32, %v9831_v38  ;;  %v11038_v29 = vld [vmem:[#allocation6 + $0x38c] sm:$0xf] }
 0x6a4   :  { %v9608_v15 = vor.u32 %v10986_v26, %v9607_v56  ;;  %v9833_v59 = vld [vmem:[#allocation6 + $0x3a8] sm:$0xf0]  ;;  %v9543_v24 = vld [vmem:[#allocation6 + $0x148] sm:$0xf] }
 0x6a5   :  { %4611 = vmatpush.bf16.msra.mxu0 %v9376_v37  ;;  %4649 = vmatpush.bf16.msrb.mxu2 %v9380_v39  ;;  %v9576_v37 = vor.u32 %v10978_v58, %v9575_v10  ;;  %v9580_v39 = vor.u32 %v10974_v0, %v9577_v30  ;;  %v9836_v56 = vor.u32 %v11038_v29, %v9833_v59  ;;  %v9799_v26 = vld [vmem:[#allocation6 + $0x348] sm:$0xf]  ;;  %v9545_v35 = vld [vmem:[#allocation6 + $0x168] sm:$0xf0] }
 0x6a6   :  { %v11034_v61 = vld [vmem:[#allocation6 + $0x364] sm:$0xf0]  ;;  %v11030_v53 = vld [vmem:[#allocation6 + $0x34c] sm:$0xf] }
 0x6a7   :  { %4667 = vmatpush.bf16.msrb.mxu3 %v9668_v44  ;;  %v9868_v44 = vor.u32 %v11046_v52, %v9865_v11  ;;  %4699 = vmatpush.bf16.msrb.mxu1 %v9864_v51  ;;  %v9801_v51 = vld [vmem:[#allocation6 + $0x368] sm:$0xf0]  ;;  %v9511_v11 = vld [vmem:[#allocation6 + $0x108] sm:$0xf] }
 0x6a8   :  { %v10962_v10 = vld [vmem:[#allocation6 + $0x124] sm:$0xf0]  ;;  %v9804_v58 = vor.u32 %v11030_v53, %v9801_v51  ;;  %v10958_v32 = vld [vmem:[#allocation6 + $0x10c] sm:$0xf] }
 0x6a9   :  { %4680 = vmatpush.bf16.msrb.mxu0 %v9608_v15  ;;  %4718 = vmatpush.bf16.msra.mxu2 %v9612_v8  ;;  %v10966_v15 = vld [vmem:[#allocation6 + $0x14c] sm:$0xf]  ;;  %v9800_v8 = vor.u32 %v11034_v61, %v9799_v26  ;;  %v11026_v38 = vld [vmem:[#allocation6 + $0x324] sm:$0xf0] }
 0x6aa   :  { %v9548_v52 = vor.u32 %v10966_v15, %v9545_v35  ;;  %v9513_v0 = vld [vmem:[#allocation6 + $0x128] sm:$0xf0]  ;;  %v10954_v15 = vld [vmem:[#allocation6 + $0xe4] sm:$0xf0] }
 0x6ab   :  { %4668 = vmatpush.bf16.msrb.mxu3 %v9636_v13  ;;  %v10970_v13 = vld [vmem:[#allocation6 + $0x164] sm:$0xf0]  ;;  %4700 = vmatpush.bf16.msrb.mxu1 %v9832_v36  ;;  %v11022_v30 = vld [vmem:[#allocation6 + $0x30c] sm:$0xf] }
 0x6ac   :  { %v9544_v31 = vor.u32 %v10970_v13, %v9543_v24  ;;  %v9769_v29 = vld [vmem:[#allocation6 + $0x328] sm:$0xf0]  ;;  %v9516_v24 = vor.u32 %v10958_v32, %v9513_v0  ;;  %v9735_v35 = vld [vmem:[#allocation6 + $0x2c8] sm:$0xf] }
 0x6ad   :  { %4681 = vmatpush.bf16.msrb.mxu0 %v9576_v37  ;;  %4719 = vmatpush.bf16.msra.mxu2 %v9580_v39  ;;  %v9512_v37 = vor.u32 %v10962_v10, %v9511_v11  ;;  %v9772_v36 = vor.u32 %v11022_v30, %v9769_v29  ;;  %v10950_v53 = vld [vmem:[#allocation6 + $0xcc] sm:$0xf]  ;;  %v9447_v11 = vld [vmem:[#allocation6 + $0x88] sm:$0xf] }
 0x6ae   :  { %v9481_v51 = vld [vmem:[#allocation6 + $0xe8] sm:$0xf0]  ;;  %v10946_v32 = vld [vmem:[#allocation6 + $0xa4] sm:$0xf0] }
 0x6af   :  { %4737 = vmatpush.bf16.msra.mxu3 %v9868_v44  ;;  %v9767_v44 = vld [vmem:[#allocation6 + $0x308] sm:$0xf]  ;;  %4701 = vmatpush.bf16.msrb.mxu1 %v9800_v8  ;;  %v11014_v8 = vld [vmem:[#allocation6 + $0x2cc] sm:$0xf] }
 0x6b0   :  { %v9768_v59 = vor.u32 %v11026_v38, %v9767_v44  ;;  %v9703_v0 = vld [vmem:[#allocation6 + $0x288] sm:$0xf]  ;;  %v10942_v29 = vld [vmem:[#allocation6 + $0x8c] sm:$0xf] }
 0x6b1   :  { %4682 = vmatpush.bf16.msrb.mxu0 %v9544_v31  ;;  %4720 = vmatpush.bf16.msra.mxu2 %v9548_v52  ;;  %v11018_v31 = vld [vmem:[#allocation6 + $0x2e4] sm:$0xf0]  ;;  %v9737_v52 = vld [vmem:[#allocation6 + $0x2e8] sm:$0xf0] }
 0x6b2   :  { %v9736_v44 = vor.u32 %v11018_v31, %v9735_v35  ;;  %v9740_v38 = vor.u32 %v11014_v8, %v9737_v52  ;;  %v11010_v30 = vld [vmem:[#allocation6 + $0x2a4] sm:$0xf0]  ;;  %v10934_v31 = vld [vmem:[#allocation6 + $0x4c] sm:$0xf] }
 0x6b3   :  { %4738 = vmatpush.bf16.msra.mxu3 %v9836_v56  ;;  %4702 = vmatpush.bf16.msrb.mxu1 %v9768_v59  ;;  %v9479_v56 = vld [vmem:[#allocation6 + $0xc8] sm:$0xf]  ;;  %v11006_v59 = vld [vmem:[#allocation6 + $0x28c] sm:$0xf] }
 0x6b4   :  { %v9480_v10 = vor.u32 %v10954_v15, %v9479_v56  ;;  %v9671_v15 = vld [vmem:[#allocation6 + $0x248] sm:$0xf]  ;;  %v9673_v8 = vld [vmem:[#allocation6 + $0x268] sm:$0xf0] }
 0x6b5   :  { %4683 = vmatpush.bf16.msrb.mxu0 %v9512_v37  ;;  %4721 = vmatpush.bf16.msra.mxu2 %v9516_v24  ;;  %v9449_v37 = vld [vmem:[#allocation6 + $0xa8] sm:$0xf0]  ;;  %v9448_v24 = vor.u32 %v10946_v32, %v9447_v11  ;;  %v11002_v35 = vld [vmem:[#allocation6 + $0x264] sm:$0xf0] }
 0x6b6   :  { %v9452_v42 = vor.u32 %v10942_v29, %v9449_v37 }
 0x6b7   :  { %4739 = vmatpush.bf16.msra.mxu3 %v9804_v58  ;;  %v9484_v58 = vor.u32 %v10950_v53, %v9481_v51  ;;  %4703 = vmatpush.bf16.msrb.mxu1 %v9736_v44  ;;  %v9417_v53 = vld [vmem:[#allocation6 + $0x68] sm:$0xf0] }
 0x6b8   :  { %v10998_v51 = vld [vmem:[#allocation6 + $0x24c] sm:$0xf] }
 0x6b9   :  { %4684 = vmatpush.bf16.msrb.mxu0 %v9480_v10  ;;  %4722 = vmatpush.bf16.msra.mxu2 %v9484_v58 }
 0x6bb   :  { %4740 = vmatpush.bf16.msra.mxu3 %v9772_v36  ;;  %v9704_v36 = vor.u32 %v11010_v30, %v9703_v0  ;;  %v9672_v30 = vor.u32 %v11002_v35, %v9671_v15 }
 0x6bd   :  { %4685 = vmatpush.bf16.msrb.mxu0 %v9448_v24  ;;  %4704 = vmatpush.bf16.msrb.mxu1 %v9704_v36  ;;  %v10926_v36 = vld [vmem:[#allocation6 + $0xc] sm:$0xf] }
 0x6be   :  { %4723 = vmatpush.bf16.msra.mxu2 %v9452_v42  ;;  %v10990_v42 = vld [vmem:[#allocation6 + $0x20c] sm:$0xf] }
 0x6bf   :  { %4741 = vmatpush.bf16.msra.mxu3 %v9740_v38 }
 0x6c1   :  { %4705 = vmatpush.bf16.msrb.mxu1 %v9672_v30  ;;  %v11051_v30 = vld [vmem:[#allocation6 + $0x3ec] sm:$0xf0] }
 0x715   :  { %v3738_v39 = vpop.f32.mrf.mxu0  ;;  %v3758_v13 = vpop.f32.mrf.mxu1 }
 0x716   :  { %v12729_v26 = vperm.slane %v3738_v39, 0  ;;  %v12731_v61 = vperm.slane %v3758_v13, 0  ;;  %v9705_v39 = vld [vmem:[#allocation6 + $0x2a8] sm:$0xf0]  ;;  %v9415_v13 = vld [vmem:[#allocation6 + $0x48] sm:$0xf] }
 0x717   :  { %v9708_v56 = vor.u32 %v11006_v59, %v9705_v39  ;;  %v9416_v0 = vor.u32 %v10938_v6, %v9415_v13  ;;  %v9383_v59 = vld [vmem:[#allocation6 + $0x8] sm:$0xf]  ;;  %v9385_v13 = vld [vmem:[#allocation6 + $0x28] sm:$0xf0] }
 0x718   :  { %v3806_v52 = vmul.f32 %v12729_v26, %v12650_v14  ;;  %v3808_v11 = vmul.f32 %v12729_v26, %v12644_v43  ;;  %v3807_v10 = vmul.f32 %v12731_v61, %v12673_v46  ;;  %v3809_v29 = vmul.f32 %v12731_v61, %v12668_v33  ;;  %v10930_v39 = vld [vmem:[#allocation6 + $0x24] sm:$0xf0] }
 0x719   :  { %4742 = vmatpush.bf16.msra.mxu3 %v9708_v56  ;;  %v9420_v14 = vor.u32 %v10934_v31, %v9417_v53  ;;  %v9676_v43 = vor.u32 %v10998_v51, %v9673_v8  ;;  %v10994_v6 = vld [vmem:[#allocation6 + $0x224] sm:$0xf0]  ;;  %4686 = vmatpush.bf16.msrb.mxu0 %v9416_v0  ;;  %v9641_v56 = vld [vmem:[#allocation6 + $0x228] sm:$0xf0]  ;;  %v9384_v51 = vor.u32 %v10930_v39, %v9383_v59  ;;  %v11047_v39 = vld [vmem:[#allocation6 + $0x3d4] sm:$0xf] }
 0x71b   :  { %4724 = vmatpush.bf16.msra.mxu2 %v9420_v14  ;;  %v9617_v14 = vld [vmem:[#allocation6 + $0x1f0] sm:$0xf0] }
 0x71d   :  { %4743 = vmatpush.bf16.msra.mxu3 %v9676_v43  ;;  %4687 = vmatpush.bf16.msrb.mxu0 %v9384_v51 }
 0x71f   :  { %v3781_v44 = vpop.f32.mrf.mxu2  ;;  %v3801_v58 = vpop.f32.mrf.mxu3 }
 0x720   :  { %v12739_v38 = vperm.slane %v3781_v44, 0  ;;  %v12741_v32 = vperm.slane %v3801_v58, 0  ;;  %v9639_v44 = vld [vmem:[#allocation6 + $0x208] sm:$0xf] }
 0x721   :  { %v9640_v8 = vor.u32 %v10994_v6, %v9639_v44  ;;  %v9873_v44 = vld [vmem:[#allocation6 + $0x3f0] sm:$0xf0] }
 0x722   :  { %v3816_v37 = vadd.f32 %v12739_v38, %v3806_v52  ;;  %v3818_v46 = vadd.f32 %v12739_v38, %v3808_v11  ;;  %v3817_v58 = vadd.f32 %v12741_v32, %v3807_v10  ;;  %v3819_v24 = vadd.f32 %v12741_v32, %v3809_v29  ;;  %v9615_v29 = vld [vmem:[#allocation6 + $0x1d0] sm:$0xf] }
 0x723   :  { %v9388_v11 = vor.u32 %v10926_v36, %v9385_v13  ;;  %v9644_v10 = vor.u32 %v10990_v42, %v9641_v56  ;;  %v9616_v0 = vor.u32 %v10987_v4, %v9615_v29  ;;  %4706 = vmatpush.bf16.msrb.mxu1 %v9640_v8  ;;  %v9876_v6 = vor.u32 %v11047_v39, %v9873_v44  ;;  %v10979_v36 = vld [vmem:[#allocation6 + $0x1ac] sm:$0xf0]  ;;  %v10975_v56 = vld [vmem:[#allocation6 + $0x194] sm:$0xf] }
 0x724   :  { %v3824_v15 = vmax.f32 %v3816_v37, 0.0  ;;  %v3826_v33 = vmax.f32 %v3818_v46, 0.0  ;;  %v3825_v35 = vmax.f32 %v3817_v58, 0.0  ;;  %v3827_v31 = vmax.f32 %v3819_v24, 0.0  ;;  %v9871_v37 = vld [vmem:[#allocation6 + $0x3d0] sm:$0xf] }
 0x725   :  { %v10983_v46 = vld [vmem:[#allocation6 + $0x1d4] sm:$0xf]  ;;  %v9872_v43 = vor.u32 %v11051_v30, %v9871_v37  ;;  %v9583_v58 = vld [vmem:[#allocation6 + $0x190] sm:$0xf]  ;;  %v3810_v24 = vmul.f32 %v12729_v26, %v12652_v48  ;;  %v3813_v42 = vmul.f32 %v12731_v61, %v12691_v28  ;;  %4725 = vmatpush.bf16.msra.mxu2 %v9388_v11  ;;  %4744 = vmatpush.bf16.msra.mxu3 %v9644_v10 }
 0x726   :  { %v12749_v53 = vpack.c.bf16 %v3826_v33, %v3824_v15  ;;  %v12751_v52 = vpack.c.bf16 %v3827_v31, %v3825_v35  ;;  %v9620_v59 = vor.u32 %v10983_v46, %v9617_v14  ;;  %v9839_v4 = vld [vmem:[#allocation6 + $0x390] sm:$0xf]  ;;  %v3812_v15 = vmul.f32 %v12729_v26, %v12671_v54  ;;  %v9585_v35 = vld [vmem:[#allocation6 + $0x1b0] sm:$0xf0] }
 0x727   :  { %v11043_v13 = vld [vmem:[#allocation6 + $0x3ac] sm:$0xf0]  ;;  %v3811_v33 = vmul.f32 %v12731_v61, %v12675_v19  ;;  %v11039_v48 = vld [vmem:[#allocation6 + $0x394] sm:$0xf]  ;;  %v3820_v31 = vadd.f32 %v12739_v38, %v3810_v24  ;;  %v9584_v51 = vor.u32 %v10979_v36, %v9583_v58  ;;  %v9588_v19 = vor.u32 %v10975_v56, %v9585_v35 }
 0x728   :  { %4612 = vmatmul.bf16.vlgmr.msra.gmra.mxu0 %v12749_v53  ;;  %4650 = vmatmul.bf16.vlgmr.msrb.gmra.mxu2 %v12749_v53  ;;  %v9840_v8 = vor.u32 %v11043_v13, %v9839_v4  ;;  %v9841_v29 = vld [vmem:[#allocation6 + $0x3b0] sm:$0xf0]  ;;  %v9551_v37 = vld [vmem:[#allocation6 + $0x150] sm:$0xf]  ;;  %v3822_v26 = vadd.f32 %v12739_v38, %v3812_v15  ;;  %v3823_v46 = vadd.f32 %v12741_v32, %v3813_v42 }
 0x729   :  { %4631 = vmatmul.bf16.vlgmr.msra.gmra.mxu1 %v12751_v52  ;;  %4669 = vmatmul.bf16.vlgmr.msrb.gmra.mxu3 %v12751_v52  ;;  %v10971_v54 = vld [vmem:[#allocation6 + $0x16c] sm:$0xf0]  ;;  %v9844_v28 = vor.u32 %v11039_v48, %v9841_v29  ;;  %v10967_v10 = vld [vmem:[#allocation6 + $0x154] sm:$0xf]  ;;  %v3821_v30 = vadd.f32 %v12741_v32, %v3811_v33  ;;  %v3828_v58 = vmax.f32 %v3820_v31, 0.0 }
 0x72a   :  { %4756 = vmatpush.bf16.msra.mxu0 %v9616_v0  ;;  %4775 = vmatpush.bf16.msra.mxu1 %v9872_v43  ;;  %v9807_v61 = vld [vmem:[#allocation6 + $0x350] sm:$0xf]  ;;  %v9553_v0 = vld [vmem:[#allocation6 + $0x170] sm:$0xf0]  ;;  %v9552_v39 = vor.u32 %v10971_v54, %v9551_v37  ;;  %v3830_v38 = vmax.f32 %v3822_v26, 0.0  ;;  %v3831_v36 = vmax.f32 %v3823_v46, 0.0 }
 0x72b   :  { %4794 = vmatpush.bf16.msrb.mxu2 %v9620_v59  ;;  %4813 = vmatpush.bf16.msrb.mxu3 %v9876_v6  ;;  %v11035_v11 = vld [vmem:[#allocation6 + $0x36c] sm:$0xf0]  ;;  %v11031_v14 = vld [vmem:[#allocation6 + $0x354] sm:$0xf]  ;;  %v9556_v59 = vor.u32 %v10967_v10, %v9553_v0  ;;  %v3829_v6 = vmax.f32 %v3821_v30, 0.0 }
 0x72c   :  { %v9809_v43 = vld [vmem:[#allocation6 + $0x370] sm:$0xf0]  ;;  %v9808_v44 = vor.u32 %v11035_v11, %v9807_v61  ;;  %v9519_v4 = vld [vmem:[#allocation6 + $0x110] sm:$0xf]  ;;  %v12769_v48 = vpack.c.bf16 %v3830_v38, %v3828_v58 }
 0x72d   :  { %v9812_v24 = vor.u32 %v11031_v14, %v9809_v43  ;;  %v10963_v13 = vld [vmem:[#allocation6 + $0x12c] sm:$0xf0]  ;;  %v10959_v32 = vld [vmem:[#allocation6 + $0x114] sm:$0xf] }
 0x72e   :  { %4757 = vmatpush.bf16.msra.mxu0 %v9584_v51  ;;  %4776 = vmatpush.bf16.msra.mxu1 %v9840_v8  ;;  %v9775_v15 = vld [vmem:[#allocation6 + $0x310] sm:$0xf]  ;;  %v9521_v42 = vld [vmem:[#allocation6 + $0x130] sm:$0xf0]  ;;  %v9520_v31 = vor.u32 %v10963_v13, %v9519_v4  ;;  %v12771_v8 = vpack.c.bf16 %v3831_v36, %v3829_v6 }
 0x72f   :  { %4795 = vmatpush.bf16.msrb.mxu2 %v9588_v19  ;;  %4814 = vmatpush.bf16.msrb.mxu3 %v9844_v28  ;;  %v11027_v33 = vld [vmem:[#allocation6 + $0x32c] sm:$0xf0]  ;;  %v11023_v56 = vld [vmem:[#allocation6 + $0x314] sm:$0xf]  ;;  %v9524_v29 = vor.u32 %v10959_v32, %v9521_v42 }
 0x730   :  { %v9777_v35 = vld [vmem:[#allocation6 + $0x330] sm:$0xf0]  ;;  %v9776_v51 = vor.u32 %v11027_v33, %v9775_v15  ;;  %v9487_v54 = vld [vmem:[#allocation6 + $0xd0] sm:$0xf] }
 0x731   :  { %v9780_v37 = vor.u32 %v11023_v56, %v9777_v35  ;;  %v10955_v26 = vld [vmem:[#allocation6 + $0xec] sm:$0xf0]  ;;  %v10951_v61 = vld [vmem:[#allocation6 + $0xd4] sm:$0xf] }
 0x732   :  { %4758 = vmatpush.bf16.msra.mxu0 %v9552_v39  ;;  %4777 = vmatpush.bf16.msra.mxu1 %v9808_v44  ;;  %v9743_v19 = vld [vmem:[#allocation6 + $0x2d0] sm:$0xf]  ;;  %v9489_v11 = vld [vmem:[#allocation6 + $0xf0] sm:$0xf0]  ;;  %v9488_v46 = vor.u32 %v10955_v26, %v9487_v54 }
 0x733   :  { %4796 = vmatpush.bf16.msrb.mxu2 %v9556_v59  ;;  %4815 = vmatpush.bf16.msrb.mxu3 %v9812_v24  ;;  %v11019_v28 = vld [vmem:[#allocation6 + $0x2ec] sm:$0xf0]  ;;  %v11015_v10 = vld [vmem:[#allocation6 + $0x2d4] sm:$0xf]  ;;  %v9492_v39 = vor.u32 %v10951_v61, %v9489_v11 }
 0x734   :  { %v9745_v30 = vld [vmem:[#allocation6 + $0x2f0] sm:$0xf0]  ;;  %v9744_v0 = vor.u32 %v11019_v28, %v9743_v19  ;;  %v9455_v14 = vld [vmem:[#allocation6 + $0x90] sm:$0xf] }
 0x735   :  { %v10947_v43 = vld [vmem:[#allocation6 + $0xac] sm:$0xf0]  ;;  %v9748_v44 = vor.u32 %v11015_v10, %v9745_v30  ;;  %v10943_v59 = vld [vmem:[#allocation6 + $0x94] sm:$0xf] }
 0x736   :  { %4759 = vmatpush.bf16.msra.mxu0 %v9520_v31  ;;  %4778 = vmatpush.bf16.msra.mxu1 %v9776_v51  ;;  %v9711_v58 = vld [vmem:[#allocation6 + $0x290] sm:$0xf]  ;;  %v9457_v24 = vld [vmem:[#allocation6 + $0xb0] sm:$0xf0]  ;;  %v9456_v4 = vor.u32 %v10947_v43, %v9455_v14 }
 0x737   :  { %4797 = vmatpush.bf16.msrb.mxu2 %v9524_v29  ;;  %4816 = vmatpush.bf16.msrb.mxu3 %v9780_v37  ;;  %v11011_v38 = vld [vmem:[#allocation6 + $0x2ac] sm:$0xf0]  ;;  %v11007_v6 = vld [vmem:[#allocation6 + $0x294] sm:$0xf]  ;;  %v9460_v32 = vor.u32 %v10943_v59, %v9457_v24  ;;  %v9623_v59 = vld [vmem:[#allocation6 + $0x1d8] sm:$0xf] }
 0x738   :  { %4617 = vmatmul.bf16.gmra.mxu0 %v12769_v48  ;;  %4655 = vmatmul.bf16.gmra.mxu2 %v12769_v48  ;;  %v9713_v36 = vld [vmem:[#allocation6 + $0x2b0] sm:$0xf0]  ;;  %v9712_v13 = vor.u32 %v11011_v38, %v9711_v58  ;;  %v9423_v15 = vld [vmem:[#allocation6 + $0x50] sm:$0xf]  ;;  %v10988_v24 = vld [vmem:[#allocation6 + $0x1f4] sm:$0xf0] }
 0x739   :  { %4636 = vmatmul.bf16.gmra.mxu1 %v12771_v8  ;;  %4674 = vmatmul.bf16.gmra.mxu3 %v12771_v8  ;;  %v10939_v33 = vld [vmem:[#allocation6 + $0x6c] sm:$0xf0]  ;;  %v9716_v42 = vor.u32 %v11007_v6, %v9713_v36  ;;  %v10935_v31 = vld [vmem:[#allocation6 + $0x54] sm:$0xf]  ;;  %v9879_v6 = vld [vmem:[#allocation6 + $0x3d8] sm:$0xf]  ;;  %v9624_v36 = vor.u32 %v10988_v24, %v9623_v59 }
 0x73a   :  { %4760 = vmatpush.bf16.msra.mxu0 %v9488_v46  ;;  %4779 = vmatpush.bf16.msra.mxu1 %v9744_v0  ;;  %v9679_v56 = vld [vmem:[#allocation6 + $0x250] sm:$0xf]  ;;  %v9425_v51 = vld [vmem:[#allocation6 + $0x70] sm:$0xf0]  ;;  %v9424_v54 = vor.u32 %v10939_v33, %v9423_v15  ;;  %v9625_v15 = vld [vmem:[#allocation6 + $0x1f8] sm:$0xf0] }
 0x73b   :  { %4798 = vmatpush.bf16.msrb.mxu2 %v9492_v39  ;;  %4817 = vmatpush.bf16.msrb.mxu3 %v9748_v44  ;;  %v11003_v35 = vld [vmem:[#allocation6 + $0x26c] sm:$0xf0]  ;;  %v10999_v29 = vld [vmem:[#allocation6 + $0x254] sm:$0xf]  ;;  %v9428_v61 = vor.u32 %v10935_v31, %v9425_v51  ;;  %v10980_v51 = vld [vmem:[#allocation6 + $0x1b4] sm:$0xf0] }
 0x73c   :  { %v9681_v37 = vld [vmem:[#allocation6 + $0x270] sm:$0xf0]  ;;  %v9680_v26 = vor.u32 %v11003_v35, %v9679_v56  ;;  %v9391_v19 = vld [vmem:[#allocation6 + $0x10] sm:$0xf]  ;;  %v9881_v56 = vld [vmem:[#allocation6 + $0x3f8] sm:$0xf0] }
 0x73d   :  { %v10931_v28 = vld [vmem:[#allocation6 + $0x2c] sm:$0xf0]  ;;  %v9684_v11 = vor.u32 %v10999_v29, %v9681_v37  ;;  %v10927_v46 = vld [vmem:[#allocation6 + $0x14] sm:$0xf]  ;;  %v9591_v35 = vld [vmem:[#allocation6 + $0x198] sm:$0xf] }
 0x73e   :  { %4761 = vmatpush.bf16.msra.mxu0 %v9456_v4  ;;  %4780 = vmatpush.bf16.msra.mxu1 %v9712_v13  ;;  %v9647_v10 = vld [vmem:[#allocation6 + $0x210] sm:$0xf]  ;;  %v9393_v0 = vld [vmem:[#allocation6 + $0x30] sm:$0xf0]  ;;  %v9392_v39 = vor.u32 %v10931_v28, %v9391_v19  ;;  %v11052_v4 = vld [vmem:[#allocation6 + $0x3f4] sm:$0xf0]  ;;  %v9592_v28 = vor.u32 %v10980_v51, %v9591_v35 }
 0x73f   :  { %4799 = vmatpush.bf16.msrb.mxu2 %v9460_v32  ;;  %4818 = vmatpush.bf16.msrb.mxu3 %v9716_v42  ;;  %v10995_v30 = vld [vmem:[#allocation6 + $0x22c] sm:$0xf0]  ;;  %v10991_v14 = vld [vmem:[#allocation6 + $0x214] sm:$0xf]  ;;  %v9396_v58 = vor.u32 %v10927_v46, %v9393_v0  ;;  %v10984_v13 = vld [vmem:[#allocation6 + $0x1dc] sm:$0xf]  ;;  %v9880_v33 = vor.u32 %v11052_v4, %v9879_v6 }
 0x740   :  { %v9649_v43 = vld [vmem:[#allocation6 + $0x230] sm:$0xf0]  ;;  %v9648_v44 = vor.u32 %v10995_v30, %v9647_v10  ;;  %v9628_v32 = vor.u32 %v10984_v13, %v9625_v15  ;;  %v11048_v42 = vld [vmem:[#allocation6 + $0x3dc] sm:$0xf]  ;;  %v9847_v29 = vld [vmem:[#allocation6 + $0x398] sm:$0xf] }
 0x741   :  { %v9652_v38 = vor.u32 %v10991_v14, %v9649_v43  ;;  %v9884_v31 = vor.u32 %v11048_v42, %v9881_v56  ;;  %v11044_v37 = vld [vmem:[#allocation6 + $0x3b4] sm:$0xf0]  ;;  %v11040_v19 = vld [vmem:[#allocation6 + $0x39c] sm:$0xf] }
 0x742   :  { %4762 = vmatpush.bf16.msra.mxu0 %v9424_v54  ;;  %4781 = vmatpush.bf16.msra.mxu1 %v9680_v26  ;;  %v10976_v54 = vld [vmem:[#allocation6 + $0x19c] sm:$0xf]  ;;  %v9559_v10 = vld [vmem:[#allocation6 + $0x158] sm:$0xf] }
 0x743   :  { %4800 = vmatpush.bf16.msrb.mxu2 %v9428_v61  ;;  %4819 = vmatpush.bf16.msrb.mxu3 %v9684_v11  ;;  %v9593_v26 = vld [vmem:[#allocation6 + $0x1b8] sm:$0xf0]  ;;  %v9848_v61 = vor.u32 %v11044_v37, %v9847_v29  ;;  %v10972_v30 = vld [vmem:[#allocation6 + $0x174] sm:$0xf0] }
 0x744   :  { %v9849_v11 = vld [vmem:[#allocation6 + $0x3b8] sm:$0xf0]  ;;  %v9596_v46 = vor.u32 %v10976_v54, %v9593_v26  ;;  %v9815_v14 = vld [vmem:[#allocation6 + $0x358] sm:$0xf]  ;;  %v9560_v59 = vor.u32 %v10972_v30, %v9559_v10 }
 0x745   :  { %v9852_v0 = vor.u32 %v11040_v19, %v9849_v11  ;;  %v11036_v43 = vld [vmem:[#allocation6 + $0x374] sm:$0xf0]  ;;  %v9529_v42 = vld [vmem:[#allocation6 + $0x138] sm:$0xf0] }
 0x746   :  { %4763 = vmatpush.bf16.msra.mxu0 %v9392_v39  ;;  %4782 = vmatpush.bf16.msra.mxu1 %v9648_v44  ;;  %v10968_v39 = vld [vmem:[#allocation6 + $0x15c] sm:$0xf]  ;;  %v9816_v24 = vor.u32 %v11036_v43, %v9815_v14  ;;  %v9527_v4 = vld [vmem:[#allocation6 + $0x118] sm:$0xf] }
 0x747   :  { %4801 = vmatpush.bf16.msrb.mxu2 %v9396_v58  ;;  %4820 = vmatpush.bf16.msrb.mxu3 %v9652_v38  ;;  %v9561_v44 = vld [vmem:[#allocation6 + $0x178] sm:$0xf0]  ;;  %v10964_v13 = vld [vmem:[#allocation6 + $0x134] sm:$0xf0] }
 0x748   :  { %4688 = vmatmul.bf16.vlgmr.msrb.gmra.mxu0 %v12749_v53  ;;  %4726 = vmatmul.bf16.vlgmr.msra.gmra.mxu2 %v12749_v53  ;;  %v11032_v58 = vld [vmem:[#allocation6 + $0x35c] sm:$0xf]  ;;  %v9564_v6 = vor.u32 %v10968_v39, %v9561_v44  ;;  %v9783_v15 = vld [vmem:[#allocation6 + $0x318] sm:$0xf] }
 0x749   :  { %4707 = vmatmul.bf16.vlgmr.msrb.gmra.mxu1 %v12751_v52  ;;  %4745 = vmatmul.bf16.vlgmr.msra.gmra.mxu3 %v12751_v52  ;;  %v9817_v38 = vld [vmem:[#allocation6 + $0x378] sm:$0xf0]  ;;  %v9495_v54 = vld [vmem:[#allocation6 + $0xd8] sm:$0xf] }
 0x74a   :  { %4832 = vmatpush.bf16.msrb.mxu0 %v9624_v36  ;;  %4851 = vmatpush.bf16.msrb.mxu1 %v9880_v33  ;;  %v9820_v36 = vor.u32 %v11032_v58, %v9817_v38  ;;  %v11028_v33 = vld [vmem:[#allocation6 + $0x334] sm:$0xf0]  ;;  %v11024_v56 = vld [vmem:[#allocation6 + $0x31c] sm:$0xf] }
 0x74b   :  { %4870 = vmatpush.bf16.msra.mxu2 %v9628_v32  ;;  %4889 = vmatpush.bf16.msra.mxu3 %v9884_v31  ;;  %v10960_v32 = vld [vmem:[#allocation6 + $0x11c] sm:$0xf]  ;;  %v9528_v31 = vor.u32 %v10964_v13, %v9527_v4  ;;  %v9784_v51 = vor.u32 %v11028_v33, %v9783_v15  ;;  %v10956_v26 = vld [vmem:[#allocation6 + $0xf4] sm:$0xf0] }
 0x74c   :  { %v9785_v35 = vld [vmem:[#allocation6 + $0x338] sm:$0xf0]  ;;  %v9532_v29 = vor.u32 %v10960_v32, %v9529_v42  ;;  %v9751_v19 = vld [vmem:[#allocation6 + $0x2d8] sm:$0xf] }
 0x74d   :  { %v9788_v37 = vor.u32 %v11024_v56, %v9785_v35  ;;  %v9497_v11 = vld [vmem:[#allocation6 + $0xf8] sm:$0xf0]  ;;  %v9463_v14 = vld [vmem:[#allocation6 + $0x98] sm:$0xf] }
 0x74e   :  { %4833 = vmatpush.bf16.msrb.mxu0 %v9592_v28  ;;  %4852 = vmatpush.bf16.msrb.mxu1 %v9848_v61  ;;  %v11020_v28 = vld [vmem:[#allocation6 + $0x2f4] sm:$0xf0]  ;;  %v10952_v61 = vld [vmem:[#allocation6 + $0xdc] sm:$0xf] }
 0x74f   :  { %4871 = vmatpush.bf16.msra.mxu2 %v9596_v46  ;;  %4890 = vmatpush.bf16.msra.mxu3 %v9852_v0  ;;  %v11016_v10 = vld [vmem:[#allocation6 + $0x2dc] sm:$0xf]  ;;  %v9496_v46 = vor.u32 %v10956_v26, %v9495_v54  ;;  %v9752_v0 = vor.u32 %v11020_v28, %v9751_v19  ;;  %v10948_v43 = vld [vmem:[#allocation6 + $0xb4] sm:$0xf0]  ;;  %v9500_v39 = vor.u32 %v10952_v61, %v9497_v11 }
 0x750   :  { %v9753_v30 = vld [vmem:[#allocation6 + $0x2f8] sm:$0xf0]  ;;  %v9719_v58 = vld [vmem:[#allocation6 + $0x298] sm:$0xf]  ;;  %v9464_v4 = vor.u32 %v10948_v43, %v9463_v14 }
 0x751   :  { %v9756_v44 = vor.u32 %v11016_v10, %v9753_v30  ;;  %v11012_v38 = vld [vmem:[#allocation6 + $0x2b4] sm:$0xf0]  ;;  %v10992_v14 = vld [vmem:[#allocation6 + $0x21c] sm:$0xf] }
 0x752   :  { %4834 = vmatpush.bf16.msrb.mxu0 %v9560_v59  ;;  %4853 = vmatpush.bf16.msrb.mxu1 %v9816_v24  ;;  %v10944_v59 = vld [vmem:[#allocation6 + $0x9c] sm:$0xf]  ;;  %v9720_v13 = vor.u32 %v11012_v38, %v9719_v58  ;;  %v9431_v15 = vld [vmem:[#allocation6 + $0x58] sm:$0xf] }
 0x753   :  { %4872 = vmatpush.bf16.msra.mxu2 %v9564_v6  ;;  %4891 = vmatpush.bf16.msra.mxu3 %v9820_v36  ;;  %v9465_v24 = vld [vmem:[#allocation6 + $0xb8] sm:$0xf0]  ;;  %v10940_v33 = vld [vmem:[#allocation6 + $0x74] sm:$0xf0] }
 0x754   :  { %v11008_v6 = vld [vmem:[#allocation6 + $0x29c] sm:$0xf]  ;;  %v9468_v32 = vor.u32 %v10944_v59, %v9465_v24  ;;  %v9687_v56 = vld [vmem:[#allocation6 + $0x258] sm:$0xf]  ;;  %v9432_v54 = vor.u32 %v10940_v33, %v9431_v15 }
 0x755   :  { %v9721_v36 = vld [vmem:[#allocation6 + $0x2b8] sm:$0xf0]  ;;  %v11004_v35 = vld [vmem:[#allocation6 + $0x274] sm:$0xf0] }
 0x756   :  { %4835 = vmatpush.bf16.msrb.mxu0 %v9528_v31  ;;  %4854 = vmatpush.bf16.msrb.mxu1 %v9784_v51  ;;  %v9724_v42 = vor.u32 %v11008_v6, %v9721_v36  ;;  %v10936_v31 = vld [vmem:[#allocation6 + $0x5c] sm:$0xf]  ;;  %v9688_v26 = vor.u32 %v11004_v35, %v9687_v56  ;;  %v9399_v19 = vld [vmem:[#allocation6 + $0x18] sm:$0xf] }
 0x757   :  { %4873 = vmatpush.bf16.msra.mxu2 %v9532_v29  ;;  %4892 = vmatpush.bf16.msra.mxu3 %v9788_v37  ;;  %v9433_v51 = vld [vmem:[#allocation6 + $0x78] sm:$0xf0]  ;;  %v10932_v28 = vld [vmem:[#allocation6 + $0x34] sm:$0xf0] }
 0x758   :  { %4693 = vmatmul.bf16.gmra.mxu0 %v12769_v48  ;;  %4731 = vmatmul.bf16.gmra.mxu2 %v12769_v48  ;;  %v11000_v29 = vld [vmem:[#allocation6 + $0x25c] sm:$0xf]  ;;  %v9436_v61 = vor.u32 %v10936_v31, %v9433_v51  ;;  %v9655_v10 = vld [vmem:[#allocation6 + $0x218] sm:$0xf] }
 0x759   :  { %4712 = vmatmul.bf16.gmra.mxu1 %v12771_v8  ;;  %4750 = vmatmul.bf16.gmra.mxu3 %v12771_v8  ;;  %v9689_v37 = vld [vmem:[#allocation6 + $0x278] sm:$0xf0]  ;;  %v10996_v30 = vld [vmem:[#allocation6 + $0x234] sm:$0xf0] }
 0x75a   :  { %4836 = vmatpush.bf16.msrb.mxu0 %v9496_v46  ;;  %4855 = vmatpush.bf16.msrb.mxu1 %v9752_v0  ;;  %v9692_v11 = vor.u32 %v11000_v29, %v9689_v37  ;;  %v10928_v46 = vld [vmem:[#allocation6 + $0x1c] sm:$0xf] }
 0x75b   :  { %4874 = vmatpush.bf16.msra.mxu2 %v9500_v39  ;;  %4893 = vmatpush.bf16.msra.mxu3 %v9756_v44  ;;  %v9401_v0 = vld [vmem:[#allocation6 + $0x38] sm:$0xf0]  ;;  %v9400_v39 = vor.u32 %v10932_v28, %v9399_v19  ;;  %v9656_v44 = vor.u32 %v10996_v30, %v9655_v10 }
 0x75c   :  { %v9657_v43 = vld [vmem:[#allocation6 + $0x238] sm:$0xf0]  ;;  %v9404_v58 = vor.u32 %v10928_v46, %v9401_v0 }
 0x75d   :  { %v9660_v38 = vor.u32 %v10992_v14, %v9657_v43 }
 0x75e   :  { %4837 = vmatpush.bf16.msrb.mxu0 %v9464_v4  ;;  %4856 = vmatpush.bf16.msrb.mxu1 %v9720_v13 }
 0x75f   :  { %4875 = vmatpush.bf16.msra.mxu2 %v9468_v32  ;;  %4894 = vmatpush.bf16.msra.mxu3 %v9724_v42 }
 0x762   :  { %4838 = vmatpush.bf16.msrb.mxu0 %v9432_v54  ;;  %4857 = vmatpush.bf16.msrb.mxu1 %v9688_v26 }
 0x763   :  { %4876 = vmatpush.bf16.msra.mxu2 %v9436_v61  ;;  %4895 = vmatpush.bf16.msra.mxu3 %v9692_v11 }
 0x766   :  { %4839 = vmatpush.bf16.msrb.mxu0 %v9400_v39  ;;  %4858 = vmatpush.bf16.msrb.mxu1 %v9656_v44 }
 0x767   :  { %4877 = vmatpush.bf16.msra.mxu2 %v9404_v58  ;;  %4896 = vmatpush.bf16.msra.mxu3 %v9660_v38 }
 0x768   :  { %4764 = vmatmul.bf16.vlgmr.msra.gmra.mxu0 %v12749_v53  ;;  %4802 = vmatmul.bf16.vlgmr.msrb.gmra.mxu2 %v12749_v53 }
 0x769   :  { %4783 = vmatmul.bf16.vlgmr.msra.gmra.mxu1 %v12751_v52  ;;  %4821 = vmatmul.bf16.vlgmr.msrb.gmra.mxu3 %v12751_v52 }
 0x778   :  { %4769 = vmatmul.bf16.gmra.mxu0 %v12769_v48  ;;  %4807 = vmatmul.bf16.gmra.mxu2 %v12769_v48 }
 0x779   :  { %4788 = vmatmul.bf16.gmra.mxu1 %v12771_v8  ;;  %4826 = vmatmul.bf16.gmra.mxu3 %v12771_v8 }
 0x788   :  { %4840 = vmatmul.bf16.vlgmr.msrb.gmra.mxu0 %v12749_v53  ;;  %4878 = vmatmul.bf16.vlgmr.msra.gmra.mxu2 %v12749_v53 }
 0x789   :  { %4859 = vmatmul.bf16.vlgmr.msrb.gmra.mxu1 %v12751_v52  ;;  %4897 = vmatmul.bf16.vlgmr.msra.gmra.mxu3 %v12751_v52 }
 0x798   :  { %4845 = vmatmul.bf16.gmra.mxu0 %v12769_v48  ;;  %4883 = vmatmul.bf16.gmra.mxu2 %v12769_v48 }
 0x799   :  { %4864 = vmatmul.bf16.gmra.mxu1 %v12771_v8  ;;  %4902 = vmatmul.bf16.gmra.mxu3 %v12771_v8 }
 0x7a5   :  { %v12801_v59 = vpop.f32.mrf.mxu0 }
 0x7a6   :  { %v12803_v24 = vpop.f32.mrf.mxu1 }
 0x7ab   :  { %v12805_v6 = vpop.f32.mrf.mxu2 }
 0x7ac   :  { %v12807_v36 = vpop.f32.mrf.mxu3 }
 0x7ad   :  { %v12809_v53 = vpop.f32.mrf.mxu0 }
 0x7ae   :  { %v12811_v4 = vpop.f32.mrf.mxu1 }
 0x7b3   :  { %v12813_v52 = vpop.f32.mrf.mxu2 }
 0x7b4   :  { %v12815_v13 = vpop.f32.mrf.mxu3 }
 0x7b5   :  { %v12817_v48 = vpop.f32.mrf.mxu0 }
 0x7b6   :  { %v12819_v15 = vpop.f32.mrf.mxu1 }
 0x7bb   :  { %v12821_v8 = vpop.f32.mrf.mxu2 }
 0x7bc   :  { %v12823_v33 = vpop.f32.mrf.mxu3 }
 0x7bd   :  { %v12825_v32 = vpop.f32.mrf.mxu0 }
 0x7be   :  { %v12827_v42 = vpop.f32.mrf.mxu1 }
 0x7c3   :  { %v12829_v56 = vpop.f32.mrf.mxu2 }
 0x7c4   :  { %v12831_v35 = vpop.f32.mrf.mxu3 }
 0x7c5   :  { %v4689_v31 = vpop.f32.mrf.mxu0 }
 0x7c6   :  { %v4708_v51 = vpop.f32.mrf.mxu1 }
 0x7c7   :  { %v4709_v38 = vadd.f32 %v4708_v51, %v4689_v31 }
 0x7cb   :  { %v4727_v29 = vpop.f32.mrf.mxu2 }
 0x7cc   :  { %v4746_v37 = vpop.f32.mrf.mxu3 }
 0x7cd   :  { %v4691_v54 = vpop.f32.mrf.mxu0 }
 0x7ce   :  { %v4710_v26 = vpop.f32.mrf.mxu1 }
 0x7cf   :  { %v4711_v39 = vadd.f32 %v4710_v26, %v4691_v54 }
 0x7d3   :  { %v4729_v19 = vpop.f32.mrf.mxu2 }
 0x7d4   :  { %v4748_v28 = vpop.f32.mrf.mxu3 }
 0x7d5   :  { %v4694_v61 = vpop.f32.mrf.mxu0  ;;  %v4749_v2 = vadd.f32 %v4748_v28, %v4729_v19 }
 0x7d6   :  { %v4713_v11 = vpop.f32.mrf.mxu1 }
 0x7d7   :  { %v4714_v43 = vadd.f32 %v4713_v11, %v4694_v61 }
 0x7db   :  { %v4732_v10 = vpop.f32.mrf.mxu2 }
 0x7dc   :  { %v4751_v30 = vpop.f32.mrf.mxu3 }
 0x7dd   :  { %v4696_v46 = vpop.f32.mrf.mxu0  ;;  %v4752_v5 = vadd.f32 %v4751_v30, %v4732_v10 }
 0x7de   :  { %v4715_v0 = vpop.f32.mrf.mxu1 }
 0x7df   :  { %v4716_v14 = vadd.f32 %v4715_v0, %v4696_v46  ;;  %v4747_v46 = vadd.f32 %v4746_v37, %v4727_v29 }
 0x7e1   :  { %5100 = vmatpush.msrb.mxu2 %v4716_v14 }
 0x7e3   :  { %5101 = vmatpush.msrb.mxu2 %v4714_v43  ;;  %v4734_v44 = vpop.f32.mrf.mxu2 }
 0x7e4   :  { %v4753_v58 = vpop.f32.mrf.mxu3 }
 0x7e5   :  { %v4754_v9 = vadd.f32 %v4753_v58, %v4734_v44  ;;  %5102 = vmatpush.msrb.mxu2 %v4711_v39  ;;  %v4765_v7 = vpop.f32.mrf.mxu0  ;;  %v12852_v58 = vsel %vm4929_vm12, 1.0, %v14592_v22  ;;  %vm4938_vm12 = vcmp.eq.s32.totalorder %v14598_v18, %v12006_v27 }
 0x7e6   :  { %v4784_v34 = vpop.f32.mrf.mxu1 }
 0x7e7   :  { %5103 = vmatpush.msrb.mxu2 %v4709_v38  ;;  %5141 = vmatpush.msrb.mxu3 %v4754_v9  ;;  %v4785_v43 = vadd.f32 %v4784_v34, %v4765_v7  ;;  %v4638_v7 = vadd.f32 %v12819_v15, %v12817_v48  ;;  %v4678_v48 = vadd.f32 %v12831_v35, %v12829_v56  ;;  %v12898_v35 = vsel %vm4931_vm5, 1.0, %v14592_v22 }
 0x7e8   :  { %9901 = vmatmul.msk.f32.vlgmr.msrb.gmra.mxu2 %vm2047_vm10, %v11994_v16  ;;  %vm4939_vm5 = vcmp.eq.s32.totalorder %v14596_v21, %v12006_v27 }
 0x7e9   :  { %5142 = vmatpush.msrb.mxu3 %v4752_v5 }
 0x7eb   :  { %5143 = vmatpush.msrb.mxu3 %v4749_v2  ;;  %v4803_v61 = vpop.f32.mrf.mxu2 }
 0x7ec   :  { %v4822_v54 = vpop.f32.mrf.mxu3 }
 0x7ed   :  { %5144 = vmatpush.msrb.mxu3 %v4747_v46  ;;  %v4767_v26 = vpop.f32.mrf.mxu0  ;;  %v4640_v46 = vadd.f32 %v12827_v42, %v12825_v32 }
 0x7ee   :  { %v4786_v11 = vpop.f32.mrf.mxu1  ;;  %9909 = vmatmul.msk.f32.vlgmr.msrb.gmra.mxu3 %vm2047_vm10, %v11994_v16 }
 0x7ef   :  { %v4787_v30 = vadd.f32 %v4786_v11, %v4767_v26  ;;  %v4635_v11 = vadd.f32 %v12811_v4, %v12809_v53  ;;  %v12879_v53 = vsel %vm4930_vm9, 1.0, %v14592_v22  ;;  %vm4951_vm9 = vmand %vm1578_vm4, %vm4949_vm7 }
 0x7f0   :  { %9902 = vmatmul.msk.f32.gmra.mxu2 %vm2047_vm10, %v12003_v20 }
 0x7f3   :  { %v4805_v31 = vpop.f32.mrf.mxu2 }
 0x7f4   :  { %v4824_v9 = vpop.f32.mrf.mxu3 }
 0x7f5   :  { %v4770_v51 = vpop.f32.mrf.mxu0  ;;  %v4825_v34 = vadd.f32 %v4824_v9, %v4805_v31 }
 0x7f6   :  { %v4789_v10 = vpop.f32.mrf.mxu1  ;;  %9910 = vmatmul.msk.f32.gmra.mxu3 %vm2047_vm10, %v12003_v20 }
 0x7f7   :  { %v4790_v28 = vadd.f32 %v4789_v10, %v4770_v51  ;;  %v4823_v51 = vadd.f32 %v4822_v54, %v4803_v61  ;;  %v4633_v10 = vadd.f32 %v12803_v24, %v12801_v59  ;;  %v4676_v61 = vadd.f32 %v12823_v33, %v12821_v8 }
 0x7f8   :  { %9903 = vmatmul.msk.f32.gmra.mxu2 %vm2047_vm10, %v12354_v40  ;;  %v4673_v59 = vadd.f32 %v12815_v13, %v12813_v52  ;;  %v4671_v24 = vadd.f32 %v12807_v36, %v12805_v6  ;;  %v12911_v13 = vsel %vm4932_vm13, 1.0, %v14592_v22  ;;  %vm4952_vm13 = vmand %vm3164_vm2, %vm4949_vm7 }
 0x7fb   :  { %v4808_v2 = vpop.f32.mrf.mxu2 }
 0x7fc   :  { %v4827_v5 = vpop.f32.mrf.mxu3 }
 0x7fd   :  { %v4772_v29 = vpop.f32.mrf.mxu0  ;;  %v4828_v26 = vadd.f32 %v4827_v5, %v4808_v2 }
 0x7fe   :  { %v4791_v37 = vpop.f32.mrf.mxu1  ;;  %9911 = vmatmul.msk.f32.gmra.mxu3 %vm2047_vm10, %v12354_v40 }
 0x7ff   :  { %v4792_v19 = vadd.f32 %v4791_v37, %v4772_v29 }
 0x800   :  { %9904 = vmatmul.msk.f32.gmra.mxu2 %vm2047_vm10, %v12365_v60 }
 0x801   :  { %4998 = vmatpush.msra.mxu0 %v4792_v19 }
 0x803   :  { %4999 = vmatpush.msra.mxu0 %v4790_v28  ;;  %v4810_v0 = vpop.f32.mrf.mxu2 }
 0x804   :  { %v4829_v14 = vpop.f32.mrf.mxu3 }
 0x805   :  { %v4830_v39 = vadd.f32 %v4829_v14, %v4810_v0  ;;  %5000 = vmatpush.msra.mxu0 %v4787_v30  ;;  %v12849_v44 = vpop.f32.mrf.mxu0  ;;  %v12932_v30 = vsel %vm4937_vm8, 1.0, %v14592_v22  ;;  %v4958_v0 = vsel %vm4950_vm0, 1.0, %v14592_v22  ;;  %vm4940_vm8 = vcmp.eq.s32.totalorder %v11663_v17, %v12006_v27  ;;  %vm4953_vm0 = vmand %vm3165_vm14, %vm4949_vm7 }
 0x806   :  { %v12854_v38 = vpop.f32.mrf.mxu1  ;;  %9912 = vmatmul.msk.f32.gmra.mxu3 %vm2047_vm10, %v12365_v60  ;;  %14610 = vst [vmem:[#allocation56_spill] sm:$0xff] %v12932_v30 }
 0x807   :  { %5001 = vmatpush.msra.mxu0 %v4785_v43  ;;  %5039 = vmatpush.msra.mxu1 %v4830_v39  ;;  %v4861_v19 = vadd.f32 %v12854_v38, %v12849_v44  ;;  %v12952_v44 = vsel %vm4938_vm12, 1.0, %v14592_v22  ;;  %v4959_v38 = vsel %vm4951_vm9, 1.0, %v14592_v22  ;;  %vm4912_vm12 = vcmp.ne.s32.totalorder %v12697_v57, 0 }
 0x808   :  { %9885 = vmatmul.msk.f32.vlgmr.msra.gmra.mxu0 %vm2047_vm10, %v12015_v25  ;;  %9905 = vmatmul.msk.f32.gmra.mxu2 %vm2047_vm10, %v12852_v58  ;;  %14611 = vst [vmem:[#allocation57_spill] sm:$0xff] %v12952_v44  ;;  %vm4945_vm9 = vcmp.eq.s32.totalorder %v14600_v62, %v12044_v63 }
 0x809   :  { %5206 = vmatpush.msrb.mxu0 %v4640_v46  ;;  %5040 = vmatpush.msra.mxu1 %v4828_v26  ;;  %v12969_v46 = vsel %vm4939_vm5, 1.0, %v14592_v22  ;;  %v4960_v26 = vsel %vm4952_vm13, 1.0, %v14592_v22  ;;  %vm4913_vm5 = vmand %vm1560_vm11, %vm4912_vm12 }
 0x80a   :  { %14612 = vst [vmem:[#allocation58_spill] sm:$0xff] %v12969_v46  ;;  %vm4954_vm13 = vmand %vm4945_vm9, %vm4949_vm7 }
 0x80b   :  { %5207 = vmatpush.msrb.mxu0 %v4638_v7  ;;  %5041 = vmatpush.msra.mxu1 %v4825_v34  ;;  %v12868_v32 = vpop.f32.mrf.mxu2  ;;  %v12986_v7 = vsel %vm4940_vm8, 1.0, %v14592_v22  ;;  %v4961_v34 = vsel %vm4953_vm0, 1.0, %v14592_v22  ;;  %vm14460_vm8 = vcmp.eq.s32.totalorder %v14598_v18, %v12044_v63  ;;  %vm4914_vm0 = vmand %vm1561_vm15, %vm4912_vm12 }
 0x80c   :  { %v12872_v42 = vpop.f32.mrf.mxu3  ;;  %14613 = vst [vmem:[#allocation59_spill] sm:$0xff] %v12986_v7 }
 0x80d   :  { %5208 = vmatpush.msrb.mxu0 %v4635_v11  ;;  %5042 = vmatpush.msra.mxu1 %v4823_v51  ;;  %v4843_v15 = vpop.f32.mrf.mxu0  ;;  %v4899_v39 = vadd.f32 %v12872_v42, %v12868_v32  ;;  %v4921_v11 = vsel %vm4913_vm5, 1.0, %v14592_v22  ;;  %v4962_v51 = vsel %vm4954_vm13, 1.0, %v14592_v22  ;;  %vm4955_vm5 = vmand %vm14460_vm8, %vm4949_vm7  ;;  %v4922_v32 = vsel %vm4914_vm0, 1.0, %v14592_v22 }
 0x80e   :  { %v4862_v4 = vpop.f32.mrf.mxu1  ;;  %9893 = vmatmul.msk.f32.vlgmr.msra.gmra.mxu1 %vm2047_vm10, %v12015_v25  ;;  %9913 = vmatmul.msk.f32.gmra.mxu3 %vm2047_vm10, %v12852_v58  ;;  %v4963_v42 = vsel %vm4955_vm5, 1.0, %v14592_v22  ;;  %vm14461_vm13 = vcmp.eq.s32.totalorder %v14596_v21, %v12044_v63  ;;  %vm4915_vm8 = vmand %vm3145_vm6, %vm4912_vm12  ;;  %vm14500_vm5 = vcmp.eq.s32.totalorder %v11663_v17, %v12044_v63  ;;  %v14615_v63 = vld [vmem:[#allocation16_spill] sm:$0xff]  ;;  %v14627_v25 = vld [vmem:[#allocation23_spill] sm:$0xff] }
 0x80f   :  { %5209 = vmatpush.msrb.mxu0 %v4633_v10  ;;  %5247 = vmatpush.msrb.mxu1 %v4678_v48  ;;  %v4863_v5 = vadd.f32 %v4862_v4, %v4843_v15  ;;  %vm4956_vm0 = vmand %vm14461_vm13, %vm4949_vm7  ;;  %v4923_v10 = vsel %vm4915_vm8, 1.0, %v14592_v22  ;;  %v5430_v27 = vand.u32 7, %v14615_v63 }
 0x810   :  { %9886 = vmatmul.msk.f32.gmra.mxu0 %vm2047_vm10, %v12028_v49  ;;  %9906 = vmatmul.msk.f32.gmra.mxu2 %vm2047_vm10, %v12879_v53  ;;  %v4964_v48 = vsel %vm4956_vm0, 1.0, %v14592_v22  ;;  %vm4916_vm13 = vmand %vm14505_vm3, %vm4912_vm12  ;;  %vm14462_vm0 = vcmp.eq.s32.totalorder %v14600_v62, %v12023_v47 }
 0x811   :  { %5248 = vmatpush.msrb.mxu1 %v4676_v61  ;;  %vm4957_vm8 = vmand %vm14500_vm5, %vm4949_vm7  ;;  %v4924_v15 = vsel %vm4916_vm13, 1.0, %v14592_v22  ;;  %vm14463_vm13 = vcmp.eq.s32.totalorder %v14598_v18, %v12023_v47 }
 0x812   :  { %v4965_v4 = vsel %vm4957_vm8, 1.0, %v14592_v22  ;;  %vm4917_vm7 = vmand %vm14462_vm0, %vm4912_vm12 }
 0x813   :  { %5249 = vmatpush.msrb.mxu1 %v4673_v59  ;;  %v4881_v8 = vpop.f32.mrf.mxu2  ;;  %v4925_v61 = vsel %vm4917_vm7, 1.0, %v14592_v22  ;;  %vm4918_vm8 = vmand %vm14463_vm13, %vm4912_vm12  ;;  %vm14490_vm7 = vcmp.eq.s32.totalorder %v14596_v21, %v12023_v47 }
 0x814   :  { %v4900_v33 = vpop.f32.mrf.mxu3  ;;  %vm4919_vm0 = vmand %vm14490_vm7, %vm4912_vm12 }
 0x815   :  { %5250 = vmatpush.msrb.mxu1 %v4671_v24  ;;  %v4846_v56 = vpop.f32.mrf.mxu0  ;;  %v4901_v43 = vadd.f32 %v4900_v33, %v4881_v8  ;;  %v4926_v24 = vsel %vm4918_vm8, 1.0, %v14592_v22  ;;  %vm14489_vm8 = vcmp.eq.s32.totalorder %v11663_v17, %v12023_v47  ;;  %v14614_v47 = vld [vmem:[#allocation13_spill] sm:$0xff] }
 0x816   :  { %v4865_v54 = vpop.f32.mrf.mxu1  ;;  %9894 = vmatmul.msk.f32.gmra.mxu1 %vm2047_vm10, %v12028_v49  ;;  %9914 = vmatmul.msk.f32.gmra.mxu3 %vm2047_vm10, %v12879_v53  ;;  %vm4920_vm13 = vmand %vm14489_vm8, %vm4912_vm12  ;;  %vm5462_vm12 = vcmp.eq.s32.totalorder %v5430_v27, %v14614_v47  ;;  %v14620_v27 = vld [vmem:[#allocation22_spill] sm:$0xff] }
 0x817   :  { %v4866_v2 = vadd.f32 %v4865_v54, %v4846_v56  ;;  %v4927_v56 = vsel %vm4919_vm0, 1.0, %v14592_v22 }
 0x818   :  { %9887 = vmatmul.msk.f32.gmra.mxu0 %vm2047_vm10, %v12378_v50  ;;  %9907 = vmatmul.msk.f32.gmra.mxu2 %vm2047_vm10, %v12898_v35 }
 0x81b   :  { %v4884_v6 = vpop.f32.mrf.mxu2 }
 0x81c   :  { %v4903_v36 = vpop.f32.mrf.mxu3 }
 0x81d   :  { %v4848_v52 = vpop.f32.mrf.mxu0  ;;  %v4904_v14 = vadd.f32 %v4903_v36, %v4884_v6  ;;  %v4928_v36 = vsel %vm4920_vm13, 1.0, %v14592_v22 }
 0x81e   :  { %v4867_v31 = vpop.f32.mrf.mxu1  ;;  %9895 = vmatmul.msk.f32.gmra.mxu1 %vm2047_vm10, %v12378_v50  ;;  %9915 = vmatmul.msk.f32.gmra.mxu3 %vm2047_vm10, %v12898_v35  ;;  %v14621_v50 = vld [vmem:[#allocation17_spill] sm:$0xff] }
 0x81f   :  { %v4868_v9 = vadd.f32 %v4867_v31, %v4848_v52  ;;  %v5446_v49 = vand.u32 7, %v14621_v50 }
 0x820   :  { %9888 = vmatmul.msk.f32.gmra.mxu0 %vm2047_vm10, %v12393_v12  ;;  %9908 = vmatmul.msk.f32.gmra.mxu2 %vm2047_vm10, %v12911_v13 }
 0x821   :  { %5328 = vmatpush.msra.mxu2 %v4868_v9  ;;  %vm5478_vm8 = vcmp.eq.s32.totalorder %v5446_v49, %v14614_v47  ;;  %v14624_v49 = vld [vmem:[#allocation26_spill] sm:$0xff] }
 0x823   :  { %5329 = vmatpush.msra.mxu2 %v4866_v2  ;;  %v4886_v29 = vpop.f32.mrf.mxu2 }
 0x824   :  { %v4905_v37 = vpop.f32.mrf.mxu3 }
 0x825   :  { %v4906_v28 = vadd.f32 %v4905_v37, %v4886_v29  ;;  %5330 = vmatpush.msra.mxu2 %v4863_v5 }
 0x826   :  { %9896 = vmatmul.msk.f32.gmra.mxu1 %vm2047_vm10, %v12393_v12  ;;  %9916 = vmatmul.msk.f32.gmra.mxu3 %vm2047_vm10, %v12911_v13  ;;  %v5447_v12 = vand.u32 7, %v14619_v41  ;;  %v14622_v41 = vld [vmem:[#allocation24_spill] sm:$0xff] }
 0x827   :  { %5331 = vmatpush.msra.mxu2 %v4861_v19  ;;  %5369 = vmatpush.msra.mxu3 %v4906_v28 }
 0x828   :  { %9889 = vmatmul.msk.f32.gmra.mxu0 %vm2047_vm10, %v12932_v30  ;;  %9933 = vmatmul.msk.f32.vlgmr.msra.gmra.mxu2 %vm2047_vm10, %v4958_v0 }
 0x829   :  { %5370 = vmatpush.msra.mxu3 %v4904_v14 }
 0x82b   :  { %5371 = vmatpush.msra.mxu3 %v4901_v43 }
 0x82d   :  { %5372 = vmatpush.msra.mxu3 %v4899_v39 }
 0x82e   :  { %9897 = vmatmul.msk.f32.gmra.mxu1 %vm2047_vm10, %v12932_v30  ;;  %9941 = vmatmul.msk.f32.vlgmr.msra.gmra.mxu3 %vm2047_vm10, %v4958_v0 }
 0x830   :  { %9890 = vmatmul.msk.f32.gmra.mxu0 %vm2047_vm10, %v12952_v44  ;;  %9934 = vmatmul.msk.f32.gmra.mxu2 %vm2047_vm10, %v4959_v38 }
 0x836   :  { %9898 = vmatmul.msk.f32.gmra.mxu1 %vm2047_vm10, %v12952_v44  ;;  %9942 = vmatmul.msk.f32.gmra.mxu3 %vm2047_vm10, %v4959_v38  ;;  %v14617_v44 = vld [vmem:[#allocation18_spill] sm:$0xff] }
 0x837   :  { %v5429_v30 = vand.u32 7, %v14617_v44  ;;  %v5427_v44 = vand.u32 7, %v14620_v27  ;;  %v14625_v27 = vld [vmem:[#allocation21_spill] sm:$0xff] }
 0x838   :  { %9891 = vmatmul.msk.f32.gmra.mxu0 %vm2047_vm10, %v12969_v46  ;;  %9935 = vmatmul.msk.f32.gmra.mxu2 %vm2047_vm10, %v4960_v26 }
 0x839   :  { %vm5461_vm0 = vcmp.eq.s32.totalorder %v5429_v30, %v14614_v47  ;;  %v14623_v30 = vld [vmem:[#allocation19_spill] sm:$0xff] }
 0x83e   :  { %9899 = vmatmul.msk.f32.gmra.mxu1 %vm2047_vm10, %v12969_v46  ;;  %9943 = vmatmul.msk.f32.gmra.mxu3 %vm2047_vm10, %v4960_v26 }
 0x840   :  { %9892 = vmatmul.msk.f32.gmra.mxu0 %vm2047_vm10, %v12986_v7  ;;  %9936 = vmatmul.msk.f32.gmra.mxu2 %vm2047_vm10, %v4961_v34 }
 0x846   :  { %9900 = vmatmul.msk.f32.gmra.mxu1 %vm2047_vm10, %v12986_v7  ;;  %9944 = vmatmul.msk.f32.gmra.mxu3 %vm2047_vm10, %v4961_v34  ;;  %v14616_v7 = vmov 1.0  }
 0x848   :  { %9917 = vmatmul.msk.f32.vlgmr.msrb.gmra.mxu0 %vm2047_vm10, %v4921_v11  ;;  %9937 = vmatmul.msk.f32.gmra.mxu2 %vm2047_vm10, %v4962_v51 }
 0x84e   :  { %9925 = vmatmul.msk.f32.vlgmr.msrb.gmra.mxu1 %vm2047_vm10, %v4921_v11  ;;  %9945 = vmatmul.msk.f32.gmra.mxu3 %vm2047_vm10, %v4962_v51 }
 0x850   :  { %9918 = vmatmul.msk.f32.gmra.mxu0 %vm2047_vm10, %v4922_v32  ;;  %9938 = vmatmul.msk.f32.gmra.mxu2 %vm2047_vm10, %v4963_v42 }
 0x856   :  { %9926 = vmatmul.msk.f32.gmra.mxu1 %vm2047_vm10, %v4922_v32  ;;  %9946 = vmatmul.msk.f32.gmra.mxu3 %vm2047_vm10, %v4963_v42 }
 0x858   :  { %9919 = vmatmul.msk.f32.gmra.mxu0 %vm2047_vm10, %v4923_v10  ;;  %9939 = vmatmul.msk.f32.gmra.mxu2 %vm2047_vm10, %v4964_v48 }
 0x85e   :  { %9927 = vmatmul.msk.f32.gmra.mxu1 %vm2047_vm10, %v4923_v10  ;;  %9947 = vmatmul.msk.f32.gmra.mxu3 %vm2047_vm10, %v4964_v48 }
 0x860   :  { %9920 = vmatmul.msk.f32.gmra.mxu0 %vm2047_vm10, %v4924_v15  ;;  %9940 = vmatmul.msk.f32.gmra.mxu2 %vm2047_vm10, %v4965_v4 }
 0x866   :  { %9928 = vmatmul.msk.f32.gmra.mxu1 %vm2047_vm10, %v4924_v15  ;;  %9948 = vmatmul.msk.f32.gmra.mxu3 %vm2047_vm10, %v4965_v4 }
 0x868   :  { %9921 = vmatmul.msk.f32.gmra.mxu0 %vm2047_vm10, %v4925_v61 }
 0x86b   :  { %v5105_v59 = vpop.f32.mrf.mxu2 }
 0x86e   :  { %9929 = vmatmul.msk.f32.gmra.mxu1 %vm2047_vm10, %v4925_v61 }
 0x870   :  { %9922 = vmatmul.msk.f32.gmra.mxu0 %vm2047_vm10, %v4926_v24 }
 0x871   :  { %v5146_v8 = vpop.f32.mrf.mxu3 }
 0x873   :  { %v13097_v33 = vpop.f32.mrf.mxu2 }
 0x876   :  { %9930 = vmatmul.msk.f32.gmra.mxu1 %vm2047_vm10, %v4926_v24 }
 0x878   :  { %9923 = vmatmul.msk.f32.gmra.mxu0 %vm2047_vm10, %v4927_v56 }
 0x879   :  { %v13104_v54 = vpop.f32.mrf.mxu3 }
 0x87b   :  { %v5111_v6 = vpop.f32.mrf.mxu2 }
 0x87e   :  { %9931 = vmatmul.msk.f32.gmra.mxu1 %vm2047_vm10, %v4927_v56 }
 0x880   :  { %9924 = vmatmul.msk.f32.gmra.mxu0 %vm2047_vm10, %v4928_v36 }
 0x881   :  { %v5152_v52 = vpop.f32.mrf.mxu3 }
 0x883   :  { %v13114_v9 = vpop.f32.mrf.mxu2 }
 0x885   :  { %v5003_v31 = vpop.f32.mrf.mxu0 }
 0x886   :  { %9932 = vmatmul.msk.f32.gmra.mxu1 %vm2047_vm10, %v4928_v36  ;;  %v13117_v2 = vadd.f32 %v5105_v59, %v5003_v31 }
 0x889   :  { %v13123_v37 = vpop.f32.mrf.mxu3 }
 0x88b   :  { %v5044_v57 = vpop.f32.mrf.mxu1  ;;  %v5117_v19 = vpop.f32.mrf.mxu2 }
 0x88c   :  { %v13119_v5 = vadd.f32 %v5146_v8, %v5044_v57 }
 0x88d   :  { %v13121_v29 = vpop.f32.mrf.mxu0 }
 0x891   :  { %v5158_v43 = vpop.f32.mrf.mxu3 }
 0x893   :  { %v13125_v28 = vpop.f32.mrf.mxu1  ;;  %v13129_v39 = vpop.f32.mrf.mxu2 }
 0x895   :  { %v5009_v0 = vpop.f32.mrf.mxu0 }
 0x896   :  { %v13127_v14 = vadd.f32 %v5111_v6, %v5009_v0 }
 0x899   :  { %v13135_v11 = vpop.f32.mrf.mxu3 }
 0x89b   :  { %v5050_v38 = vpop.f32.mrf.mxu1  ;;  %v5123_v32 = vpop.f32.mrf.mxu2 }
 0x89c   :  { %v13131_v26 = vadd.f32 %v5152_v52, %v5050_v38 }
 0x89d   :  { %v13133_v34 = vpop.f32.mrf.mxu0 }
 0x8a1   :  { %v5164_v15 = vpop.f32.mrf.mxu3 }
 0x8a3   :  { %v13137_v51 = vpop.f32.mrf.mxu1  ;;  %v13145_v59 = vpop.f32.mrf.mxu2 }
 0x8a5   :  { %v5015_v42 = vpop.f32.mrf.mxu0 }
 0x8a6   :  { %v13139_v10 = vadd.f32 %v5117_v19, %v5015_v42 }
 0x8a9   :  { %v13149_v56 = vpop.f32.mrf.mxu3 }
 0x8ab   :  { %v5056_v48 = vpop.f32.mrf.mxu1  ;;  %v13153_v36 = vpop.f32.mrf.mxu2 }
 0x8ac   :  { %v13141_v4 = vadd.f32 %v5158_v43, %v5056_v48 }
 0x8ad   :  { %v13143_v61 = vpop.f32.mrf.mxu0 }
 0x8b1   :  { %v13159_v19 = vpop.f32.mrf.mxu3 }
 0x8b3   :  { %v13147_v24 = vpop.f32.mrf.mxu1  ;;  %v13161_v0 = vpop.f32.mrf.mxu2 }
 0x8b5   :  { %v5021_v8 = vpop.f32.mrf.mxu0 }
 0x8b6   :  { %v13151_v6 = vadd.f32 %v5123_v32, %v5021_v8 }
 0x8b9   :  { %v13167_v42 = vpop.f32.mrf.mxu3 }
 0x8bb   :  { %v5062_v52 = vpop.f32.mrf.mxu1  ;;  %v13171_v32 = vpop.f32.mrf.mxu2 }
 0x8bc   :  { %v13155_v31 = vadd.f32 %v5164_v15, %v5062_v52  ;;  %v5431_v15 = vand.u32 7, %v11463_v3 }
 0x8bd   :  { %v13157_v57 = vpop.f32.mrf.mxu0 }
 0x8be   :  { %vm5463_vm10 = vcmp.eq.s32.totalorder %v5431_v15, %v14614_v47  ;;  %v14618_v15 = vld [vmem:[#allocation20_spill] sm:$0xff] }
 0x8bf   :  { %9949 = vmatpush.msk.msra.mxu0 %vm5463_vm10, %v14616_v7  ;;  %9981 = vmatpush.msk.msrb.mxu2 %vm5463_vm10, %v14616_v7  ;;  %v5428_v63 = vand.u32 7, %v14618_v15  ;;  %vm5479_vm10 = vcmp.eq.s32.totalorder %v5447_v12, %v14614_v47  ;;  %v5445_v12 = vand.u32 7, %v14623_v30  ;;  %v5444_v30 = vand.u32 7, %v14625_v27 }
 0x8c0   :  { %9965 = vmatpush.msk.msra.mxu1 %vm5479_vm10, %v14616_v7  ;;  %9997 = vmatpush.msk.msrb.mxu3 %vm5479_vm10, %v14616_v7 }
 0x8c1   :  { %v13176_v52 = vpop.f32.mrf.mxu3  ;;  %9950 = vmatpush.msk.msra.mxu0 %vm5462_vm12, %v14616_v7  ;;  %9982 = vmatpush.msk.msrb.mxu2 %vm5462_vm12, %v14616_v7  ;;  %vm5460_vm13 = vcmp.eq.s32.totalorder %v5428_v63, %v14614_v47  ;;  %vm5459_vm12 = vcmp.eq.s32.totalorder %v5427_v44, %v14614_v47  ;;  %v5426_v63 = vand.u32 7, %v14622_v41  ;;  %vm5477_vm7 = vcmp.eq.s32.totalorder %v5445_v12, %v14614_v47 }
 0x8c2   :  { %9966 = vmatpush.msk.msra.mxu1 %vm5478_vm8, %v14616_v7  ;;  %9998 = vmatpush.msk.msrb.mxu3 %vm5478_vm8, %v14616_v7  ;;  %v5425_v44 = vand.u32 7, %v14624_v49  ;;  %vm5476_vm10 = vcmp.eq.s32.totalorder %v5444_v30, %v14614_v47  ;;  %v5443_v49 = vand.u32 7, %v14627_v25  ;;  %v14628_v30 = vld [vmem:[#allocation25_spill] sm:$0xff]  ;;  %v5422_v25 = vand.u32 7, %v14596_v21 }
 0x8c3   :  { %v13163_v43 = vpop.f32.mrf.mxu1  ;;  %v13190_v22 = vpop.f32.mrf.mxu2  ;;  %9951 = vmatpush.msk.msra.mxu0 %vm5461_vm0, %v14616_v7  ;;  %9983 = vmatpush.msk.msrb.mxu2 %vm5461_vm0, %v14616_v7  ;;  %vm5458_vm0 = vcmp.eq.s32.totalorder %v5426_v63, %v14614_v47  ;;  %v14626_v63 = vld [vmem:[#allocation28_spill] sm:$0xff] }
 0x8c4   :  { %9967 = vmatpush.msk.msra.mxu1 %vm5477_vm7, %v14616_v7  ;;  %9999 = vmatpush.msk.msrb.mxu3 %vm5477_vm7, %v14616_v7  ;;  %v5424_v12 = vand.u32 7, %v14626_v63  ;;  %v5442_v63 = vand.u32 7, %v14628_v30 }
 0x8c5   :  { %v13165_v38 = vpop.f32.mrf.mxu0  ;;  %9952 = vmatpush.msk.msra.mxu0 %vm5460_vm13, %v14616_v7  ;;  %9984 = vmatpush.msk.msrb.mxu2 %vm5460_vm13, %v14616_v7  ;;  %vm5457_vm13 = vcmp.eq.s32.totalorder %v5425_v44, %v14614_v47  ;;  %v5423_v44 = vand.u32 7, %v11663_v17 }
 0x8c6   :  { %9968 = vmatpush.msk.msra.mxu1 %vm5476_vm10, %v14616_v7  ;;  %vm5456_vm8 = vcmp.eq.s32.totalorder %v5424_v12, %v14614_v47  ;;  %10000 = vmatpush.msk.msrb.mxu3 %vm5476_vm10, %v14616_v7 }
 0x8c7   :  { %9953 = vmatpush.msk.msra.mxu0 %vm5459_vm12, %v14616_v7  ;;  %9985 = vmatpush.msk.msrb.mxu2 %vm5459_vm12, %v14616_v7  ;;  %vm5475_vm12 = vcmp.eq.s32.totalorder %v5443_v49, %v14614_v47  ;;  %vm5455_vm7 = vcmp.eq.s32.totalorder %v5423_v44, %v14614_v47  ;;  %v14629_v49 = vld [vmem:[#allocation27_spill] sm:$0xff]  ;;  %v14630_v44 = vld [vmem:[#allocation29_spill] sm:$0xff] }
 0x8c8   :  { %9969 = vmatpush.msk.msra.mxu1 %vm5475_vm12, %v14616_v7  ;;  %10001 = vmatpush.msk.msrb.mxu3 %vm5475_vm12, %v14616_v7  ;;  %v5441_v12 = vand.u32 7, %v14629_v49  ;;  %v5440_v17 = vand.u32 7, %v14630_v44 }
 0x8c9   :  { %v13213_v15 = vpop.f32.mrf.mxu3  ;;  %9954 = vmatpush.msk.msra.mxu0 %vm5458_vm0, %v14616_v7  ;;  %9986 = vmatpush.msk.msrb.mxu2 %vm5458_vm0, %v14616_v7  ;;  %vm5474_vm0 = vcmp.eq.s32.totalorder %v5442_v63, %v14614_v47  ;;  %v5421_v63 = vand.u32 7, %v14598_v18 }
 0x8ca   :  { %9970 = vmatpush.msk.msra.mxu1 %vm5474_vm0, %v14616_v7  ;;  %vm5473_vm10 = vcmp.eq.s32.totalorder %v5441_v12, %v14614_v47  ;;  %10002 = vmatpush.msk.msrb.mxu3 %vm5474_vm0, %v14616_v7  ;;  %vm5472_vm12 = vcmp.eq.s32.totalorder %v5440_v17, %v14614_v47  ;;  %v14631_v12 = vld [vmem:[#allocation31_spill] sm:$0xff]  ;;  %v5419_v17 = vand.u32 7, %v14587_v45 }
 0x8cb   :  { %v13169_v48 = vpop.f32.mrf.mxu1  ;;  %9955 = vmatpush.msk.msra.mxu0 %vm5457_vm13, %v14616_v7  ;;  %v13233_v27 = vpop.f32.mrf.mxu2  ;;  %9987 = vmatpush.msk.msrb.mxu2 %vm5457_vm13, %v14616_v7  ;;  %vm5454_vm13 = vcmp.eq.s32.totalorder %v5422_v25, %v14614_v47  ;;  %v5420_v25 = vand.u32 7, %v14600_v62  ;;  %v5439_v44 = vand.u32 7, %v14631_v12 }
 0x8cc   :  { %9971 = vmatpush.msk.msra.mxu1 %vm5473_vm10, %v14616_v7  ;;  %10003 = vmatpush.msk.msrb.mxu3 %vm5473_vm10, %v14616_v7 }
 0x8cd   :  { %v13173_v8 = vpop.f32.mrf.mxu0  ;;  %9956 = vmatpush.msk.msra.mxu0 %vm5456_vm8, %v14616_v7  ;;  %9988 = vmatpush.msk.msrb.mxu2 %vm5456_vm8, %v14616_v7  ;;  %vm5453_vm8 = vcmp.eq.s32.totalorder %v5421_v63, %v14614_v47  ;;  %vm5471_vm0 = vcmp.eq.s32.totalorder %v5439_v44, %v14614_v47  ;;  %v14632_v63 = vld [vmem:[#allocation33_spill] sm:$0xff]  ;;  %v14633_v44 = vld [vmem:[#allocation35_spill] sm:$0xff] }
 0x8ce   :  { %9972 = vmatpush.msk.msra.mxu1 %vm5472_vm12, %v14616_v7  ;;  %10004 = vmatpush.msk.msrb.mxu3 %vm5472_vm12, %v14616_v7  ;;  %v5438_v18 = vand.u32 7, %v14632_v63  ;;  %v5437_v62 = vand.u32 7, %v14633_v44  ;;  %v5109_v63 = vadd.f32 %v13097_v33, %v13121_v29  ;;  %v5276_v33 = vadd.f32 %v13165_v38, %v13117_v2 }
 0x8cf   :  { %9957 = vmatpush.msk.msra.mxu0 %vm5455_vm7, %v14616_v7  ;;  %9989 = vmatpush.msk.msrb.mxu2 %vm5455_vm7, %v14616_v7  ;;  %vm5452_vm7 = vcmp.eq.s32.totalorder %v5420_v25, %v14614_v47  ;;  %v5418_v25 = vand.u32 7, %v14589_v23  ;;  %v5115_v2 = vadd.f32 %v13114_v9, %v13133_v34  ;;  %v14636_v9 = vld [vmem:[#allocation41_spill] sm:$0xff] }
 0x8d0   :  { %9973 = vmatpush.msk.msra.mxu1 %vm5471_vm0, %v14616_v7  ;;  %vm5470_vm10 = vcmp.eq.s32.totalorder %v5438_v18, %v14614_v47  ;;  %10005 = vmatpush.msk.msrb.mxu3 %vm5471_vm0, %v14616_v7  ;;  %vm5469_vm12 = vcmp.eq.s32.totalorder %v5437_v62, %v14614_v47  ;;  %v5417_v18 = vand.u32 7, %v11846_v55  ;;  %v5278_v29 = vadd.f32 %v13173_v8, %v5109_v63 }
 0x8d1   :  { %9958 = vmatpush.msk.msra.mxu0 %vm5454_vm13, %v14616_v7  ;;  %v13263_v21 = vpop.f32.mrf.mxu3  ;;  %9990 = vmatpush.msk.msrb.mxu2 %vm5454_vm13, %v14616_v7  ;;  %vm5451_vm13 = vcmp.eq.s32.totalorder %v5419_v17, %v14614_v47  ;;  %v14634_v17 = vld [vmem:[#allocation37_spill] sm:$0xff]  ;;  %v5416_v62 = vand.u32 7, %v11458_v1  ;;  %v5150_v8 = vadd.f32 %v13104_v54, %v13125_v28  ;;  %v5434_v34 = vand.u32 7, %v14636_v9  ;;  %v14637_v28 = vld [vmem:[#allocation43_spill] sm:$0xff] }
 0x8d2   :  { %9974 = vmatpush.msk.msra.mxu1 %vm5470_vm10, %v14616_v7  ;;  %10006 = vmatpush.msk.msrb.mxu3 %vm5470_vm10, %v14616_v7  ;;  %v5436_v44 = vand.u32 7, %v14634_v17  ;;  %v14635_v17 = vld [vmem:[#allocation39_spill] sm:$0xff]  ;;  %v13334_v54 = vadd.f32 %v13153_v36, %v5276_v33  ;;  %v5156_v33 = vadd.f32 %v13123_v37, %v13137_v51 }
 0x8d3   :  { %v13182_v46 = vpop.f32.mrf.mxu1  ;;  %9959 = vmatpush.msk.msra.mxu0 %vm5453_vm8, %v14616_v7  ;;  %9991 = vmatpush.msk.msrb.mxu2 %vm5453_vm8, %v14616_v7  ;;  %v13281_v12 = vpop.f32.mrf.mxu2  ;;  %vm5450_vm8 = vcmp.eq.s32.totalorder %v5418_v25, %v14614_v47  ;;  %v5435_v23 = vand.u32 7, %v14635_v17 }
 0x8d4   :  { %9975 = vmatpush.msk.msra.mxu1 %vm5469_vm12, %v14616_v7  ;;  %vm5468_vm0 = vcmp.eq.s32.totalorder %v5436_v44, %v14614_v47  ;;  %10007 = vmatpush.msk.msrb.mxu3 %vm5469_vm12, %v14616_v7 }
 0x8d5   :  { %v13188_v3 = vpop.f32.mrf.mxu0  ;;  %9960 = vmatpush.msk.msra.mxu0 %vm5452_vm7, %v14616_v7  ;;  %9992 = vmatpush.msk.msrb.mxu2 %vm5452_vm7, %v14616_v7  ;;  %vm5449_vm7 = vcmp.eq.s32.totalorder %v5417_v18, %v14614_v47  ;;  %vm5467_vm10 = vcmp.eq.s32.totalorder %v5435_v23, %v14614_v47  ;;  %v5279_v23 = vadd.f32 %v13182_v46, %v5150_v8  ;;  %v14638_v46 = vld [vmem:[#allocation44_spill] sm:$0xff] }
 0x8d6   :  { %v5280_v38 = vadd.f32 %v13188_v3, %v13127_v14  ;;  %9976 = vmatpush.msk.msra.mxu1 %vm5468_vm0, %v14616_v7  ;;  %10008 = vmatpush.msk.msrb.mxu3 %vm5468_vm0, %v14616_v7  ;;  %v13328_v3 = vadd.f32 %v13161_v0, %v5278_v29  ;;  %v5433_v0 = vand.u32 7, %v14637_v28  ;;  %v5432_v44 = vand.u32 7, %v14638_v46 }
 0x8d7   :  { %9961 = vmatpush.msk.msra.mxu0 %vm5451_vm13, %v14616_v7  ;;  %9993 = vmatpush.msk.msrb.mxu2 %vm5451_vm13, %v14616_v7  ;;  %vm5448_vm13 = vcmp.eq.s32.totalorder %v5416_v62, %v14614_v47  ;;  %v5277_v29 = vadd.f32 %v13169_v48, %v13119_v5  ;;  %v5543_v5 = vmul.f32 %v13334_v54, %v13334_v54 }
 0x8d8   :  { %9977 = vmatpush.msk.msra.mxu1 %vm5467_vm10, %v14616_v7  ;;  %10009 = vmatpush.msk.msrb.mxu3 %vm5467_vm10, %v14616_v7  ;;  %v13344_v18 = vadd.f32 %v13171_v32, %v5280_v38  ;;  %vm5465_vm12 = vcmp.eq.s32.totalorder %v5433_v0, %v14614_v47  ;;  %v13368_v37 = vadd.f32 %v13167_v42, %v5279_v23 }
 0x8d9   :  { %9962 = vmatpush.msk.msra.mxu0 %vm5450_vm8, %v14616_v7  ;;  %9994 = vmatpush.msk.msrb.mxu2 %vm5450_vm8, %v14616_v7  ;;  %v13320_v63 = vpop.f32.mrf.mxu3  ;;  %vm5466_vm8 = vcmp.eq.s32.totalorder %v5434_v34, %v14614_v47  ;;  %v5162_v42 = vadd.f32 %v13135_v11, %v13147_v24  ;;  %v5127_v11 = vadd.f32 %v13145_v59, %v13157_v57 }
 0x8da   :  { %9978 = vmatpush.msk.msra.mxu1 %vm5466_vm8, %v14616_v7  ;;  %10010 = vmatpush.msk.msrb.mxu3 %vm5466_vm8, %v14616_v7  ;;  %v5547_v48 = vmul.f32 %v13344_v18, %v13344_v18  ;;  %v5546_v24 = vmul.f32 %v13368_v37, %v13368_v37 }
 0x8db   :  { %v13211_v50 = vpop.f32.mrf.mxu1  ;;  %9963 = vmatpush.msk.msra.mxu0 %vm5449_vm7, %v14616_v7  ;;  %9995 = vmatpush.msk.msrb.mxu2 %vm5449_vm7, %v14616_v7  ;;  %vm5464_vm7 = vcmp.eq.s32.totalorder %v5432_v44, %v14614_v47 }
 0x8dc   :  { %v5281_v62 = vadd.f32 %v13211_v50, %v13131_v26  ;;  %9979 = vmatpush.msk.msra.mxu1 %vm5465_vm12, %v14616_v7  ;;  %10011 = vmatpush.msk.msrb.mxu3 %vm5465_vm12, %v14616_v7 }
 0x8dd   :  { %v13223_v41 = vpop.f32.mrf.mxu0  ;;  %9964 = vmatpush.msk.msra.mxu0 %vm5448_vm13, %v14616_v7  ;;  %9996 = vmatpush.msk.msrb.mxu2 %vm5448_vm13, %v14616_v7 }
 0x8de   :  { %v5282_v14 = vadd.f32 %v13223_v41, %v5115_v2  ;;  %v5121_v41 = vadd.f32 %v13129_v39, %v13143_v61  ;;  %v5351_v61 = vpop.f32.mrf.mxu2  ;;  %9980 = vmatpush.msk.msra.mxu1 %vm5464_vm7, %v14616_v7  ;;  %10012 = vmatpush.msk.msrb.mxu3 %vm5464_vm7, %v14616_v7  ;;  %vm14641_vm7 = vcmask 64512  }
 0x8e0   :  { %v13361_v32 = vadd.f32 %v13190_v22, %v5282_v14  ;;  %v5517_v22 = vadd.f32 %v13328_v3, %v13334_v54 }
 0x8e2   :  { %v5518_v2 = vadd.f32 %v5517_v22, %v13344_v18 }
 0x8e3   :  { %v13251_v30 = vpop.f32.mrf.mxu1 }
 0x8e4   :  { %v5283_v26 = vadd.f32 %v13251_v30, %v5156_v33  ;;  %v13384_v30 = vadd.f32 %v13159_v19, %v5277_v29  ;;  %v5519_v8 = vadd.f32 %v5518_v2, %v13361_v32 }
 0x8e5   :  { %v13261_v49 = vpop.f32.mrf.mxu0 }
 0x8e6   :  { %v5284_v36 = vadd.f32 %v13261_v49, %v13139_v10  ;;  %v5545_v10 = vmul.f32 %v13328_v3, %v13328_v3  ;;  %v13403_v19 = vadd.f32 %v13213_v15, %v5283_v26  ;;  %v5530_v59 = vadd.f32 %v13368_v37, %v13384_v30  ;;  %v5354_v29 = vpop.f32.mrf.mxu2 }
 0x8e8   :  { %v13377_v50 = vadd.f32 %v13233_v27, %v5284_v36  ;;  %v5559_v27 = vadd.f32 %v5545_v10, %v5543_v5  ;;  %v5550_v44 = vmul.f32 %v13403_v19, %v13403_v19 }
 0x8ea   :  { %v5551_v9 = vmul.f32 %v13377_v50, %v13377_v50  ;;  %v5520_v28 = vadd.f32 %v5519_v8, %v13377_v50 }
 0x8eb   :  { %v13293_v45 = vpop.f32.mrf.mxu1 }
 0x8ec   :  { %v5285_v17 = vadd.f32 %v13293_v45, %v13141_v4  ;;  %v5392_v4 = vpop.f32.mrf.mxu3 }
 0x8ed   :  { %v5226_v25 = vpop.f32.mrf.mxu0 }
 0x8ee   :  { %v5286_v49 = vadd.f32 %v5226_v25, %v5121_v41  ;;  %v13387_v25 = vadd.f32 %v13176_v52, %v5281_v62  ;;  %v5560_v52 = vadd.f32 %v5559_v27, %v5547_v48  ;;  %v13417_v15 = vadd.f32 %v13263_v21, %v5285_v17 }
 0x8ef   :  { %v5168_v48 = vadd.f32 %v13149_v56, %v13163_v43 }
 0x8f0   :  { %v13396_v38 = vadd.f32 %v13281_v12, %v5286_v49  ;;  %v5544_v12 = vmul.f32 %v13384_v30, %v13384_v30  ;;  %v5548_v57 = vmul.f32 %v13387_v25, %v13387_v25  ;;  %v5531_v46 = vadd.f32 %v5530_v59, %v13387_v25 }
 0x8f2   :  { %v5553_v0 = vmul.f32 %v13396_v38, %v13396_v38  ;;  %v5572_v36 = vadd.f32 %v5546_v24, %v5544_v12  ;;  %v5532_v26 = vadd.f32 %v5531_v46, %v13403_v19 }
 0x8f3   :  { %v5267_v39 = vpop.f32.mrf.mxu1 }
 0x8f4   :  { %v5287_v45 = vadd.f32 %v5267_v39, %v5162_v42  ;;  %v5521_v39 = vadd.f32 %v5520_v28, %v13396_v38  ;;  %v5573_v49 = vadd.f32 %v5572_v36, %v5548_v57  ;;  %v5533_v17 = vadd.f32 %v5532_v26, %v13417_v15 }
 0x8f5   :  { %v5229_v51 = vpop.f32.mrf.mxu0 }
 0x8f6   :  { %v5288_v47 = vadd.f32 %v5229_v51, %v13151_v6  ;;  %v5549_v6 = vmul.f32 %v13361_v32, %v13361_v32  ;;  %v13427_v33 = vadd.f32 %v13320_v63, %v5287_v45 }
 0x8f8   :  { %v13408_v34 = vadd.f32 %v5351_v61, %v5288_v47  ;;  %v5561_v23 = vadd.f32 %v5560_v52, %v5549_v6  ;;  %v5574_v47 = vadd.f32 %v5573_v49, %v5550_v44  ;;  %v5554_v42 = vmul.f32 %v13427_v33, %v13427_v33 }
 0x8f9   :  { %v5534_v56 = vadd.f32 %v5533_v17, %v13427_v33 }
 0x8fa   :  { %v5562_v62 = vadd.f32 %v5561_v23, %v5551_v9  ;;  %v5555_v61 = vmul.f32 %v13408_v34, %v13408_v34  ;;  %v5522_v63 = vadd.f32 %v5521_v39, %v13408_v34 }
 0x8fb   :  { %v5270_v14 = vpop.f32.mrf.mxu1 }
 0x8fc   :  { %v5289_v41 = vadd.f32 %v5270_v14, %v13155_v31  ;;  %v5552_v31 = vmul.f32 %v13417_v15, %v13417_v15  ;;  %v5563_v51 = vadd.f32 %v5562_v62, %v5553_v0 }
 0x8fd   :  { %v5232_v21 = vpop.f32.mrf.mxu0 }
 0x8fe   :  { %v5290_v10 = vadd.f32 %v5232_v21, %v5127_v11  ;;  %v13434_v5 = vadd.f32 %v5392_v4, %v5289_v41  ;;  %v5564_v27 = vadd.f32 %v5563_v51, %v5555_v61  ;;  %v5575_v11 = vadd.f32 %v5574_v47, %v5552_v31  ;;  %v5395_v4 = vpop.f32.mrf.mxu3 }
 0x900   :  { %v13438_v22 = vadd.f32 %v5354_v29, %v5290_v10  ;;  %v5556_v24 = vmul.f32 %v13434_v5, %v13434_v5  ;;  %v5576_v9 = vadd.f32 %v5575_v11, %v5554_v42  ;;  %v5535_v12 = vadd.f32 %v5534_v56, %v13434_v5 }
 0x902   :  { %v5523_v2 = vadd.f32 %v5522_v63, %v13438_v22  ;;  %v5557_v6 = vmul.f32 %v13438_v22, %v13438_v22  ;;  %v5577_v23 = vadd.f32 %v5576_v9, %v5556_v24 }
 0x903   :  { %v5273_v45 = vpop.f32.mrf.mxu1 }
 0x904   :  { %v5524_v43 = vrot.slane %v5523_v2, 4  ;;  %v5565_v52 = vadd.f32 %v5564_v27, %v5557_v6  ;;  %v5291_v8 = vadd.f32 %v5273_v45, %v5168_v48  ;;  %v14639_v45 = vld [vmem:[#allocation45_spill] sm:$0xff] }
 0x906   :  { %v5525_v59 = vadd.f32 %v5524_v43, %v5523_v2  ;;  %v5566_v57 = vrot.slane %v5565_v52, 4  ;;  %v13452_v14 = vadd.f32 %v5395_v4, %v5291_v8  ;;  %v5512_v4 = vand.u32 7, %v14639_v45  ;;  %v14640_v43 = vld [vmem:[#allocation54_spill] sm:$0xff]  ;;  %v10439_v45 = vld [vmem:[#allocation7 + $0x340] sm:$0xf] }
 0x907   :  { %vm5513_vm0 = vcmp.eq.s32.totalorder %v14640_v43, %v11458_v1  ;;  %v11093_v43 = vld [vmem:[#allocation7 + $0x144] sm:$0xf] }
 0x908   :  { %v5526_v28 = vrot.slane %v5525_v59, 2  ;;  %v5567_v0 = vadd.f32 %v5566_v57, %v5565_v52  ;;  %v5536_v41 = vadd.f32 %v5535_v12, %v13452_v14  ;;  %v5558_v36 = vmul.f32 %v13452_v14, %v13452_v14  ;;  %10013 = vmatpush.msk.msrb.mxu0 %vm5513_vm0, %v14616_v7  ;;  %10017 = vmatpush.msk.msra.mxu2 %vm5513_vm0, %v14616_v7  ;;  %v11113_v57 = vld [vmem:[#allocation7 + $0x1dc] sm:$0xf0]  ;;  %vm14642_vm0 = vmmov %vm14641_vm7 }
 0x909   :  { %vm5514_vm13 = vcmp.eq.s32.totalorder %v5512_v4, %v11458_v1  ;;  %vm14644_vm5 = vmmov %vm14642_vm0 }
 0x90a   :  { %v5527_v46 = vadd.f32 %v5526_v28, %v5525_v59  ;;  %v5568_v44 = vrot.slane %v5567_v0, 2  ;;  %v5537_v21 = vrot.slane %v5536_v41, 4  ;;  %v5578_v29 = vadd.f32 %v5577_v23, %v5558_v36  ;;  %10015 = vmatpush.msk.msrb.mxu1 %vm5514_vm13, %v14616_v7  ;;  %10019 = vmatpush.msk.msra.mxu3 %vm5514_vm13, %v14616_v7  ;;  %v10247_v59 = vld [vmem:[#allocation7 + $0x1c0] sm:$0xf]  ;;  %v10249_v36 = vld [vmem:[#allocation7 + $0x1e0] sm:$0xf0]  ;;  %vm14643_vm13 = vmmov %vm14642_vm0 }
 0x90b   :  { %v10503_v23 = vld [vmem:[#allocation7 + $0x3c0] sm:$0xf]  ;;  %v10248_v28 = vor.u32 %v11113_v57, %v10247_v59  ;;  %v10505_v7 = vld [vmem:[#allocation7 + $0x3e0] sm:$0xf0] }
 0x90c   :  { %v5528_v62 = vrot.slane %v5527_v46, 1  ;;  %v5569_v39 = vadd.f32 %v5568_v44, %v5567_v0  ;;  %v5538_v61 = vadd.f32 %v5537_v21, %v5536_v41  ;;  %v5579_v10 = vrot.slane %v5578_v29, 4  ;;  %v11177_v0 = vld [vmem:[#allocation7 + $0x3dc] sm:$0xf0]  ;;  %v11109_v41 = vld [vmem:[#allocation7 + $0x1c4] sm:$0xf] }
 0x90d   :  { %v10504_v21 = vor.u32 %v11177_v0, %v10503_v23  ;;  %v11157_v59 = vld [vmem:[#allocation7 + $0x344] sm:$0xf] }
 0x90e   :  { %v5539_v49 = vrot.slane %v5538_v61, 2  ;;  %v5580_v31 = vadd.f32 %v5579_v10, %v5578_v29  ;;  %v5529_v26 = vadd.f32 %v5528_v62, %v5527_v46  ;;  %v5570_v51 = vrot.slane %v5569_v39, 1  ;;  %v11173_v62 = vld [vmem:[#allocation7 + $0x3c4] sm:$0xf]  ;;  %v11105_v10 = vld [vmem:[#allocation7 + $0x19c] sm:$0xf0] }
 0x90f   :  { %v10252_v29 = vor.u32 %v11109_v41, %v10249_v36  ;;  %v10441_v57 = vld [vmem:[#allocation7 + $0x360] sm:$0xf0] }
 0x910   :  { %v5540_v63 = vadd.f32 %v5539_v49, %v5538_v61  ;;  %v5581_v48 = vrot.slane %v5580_v31, 2  ;;  %5601 = vmatmul.f32.vlgmr.msra.gmra.mxu0 %v5529_v26  ;;  %v5571_v47 = vadd.f32 %v5570_v51, %v5569_v39  ;;  %v10508_v39 = vor.u32 %v11173_v62, %v10505_v7  ;;  %v10215_v61 = vld [vmem:[#allocation7 + $0x180] sm:$0xf] }
 0x911   :  { %6597 = vmatpush.bf16.msra.mxu0 %v10248_v28  ;;  %v10471_v49 = vld [vmem:[#allocation7 + $0x380] sm:$0xf]  ;;  %v10216_v26 = vor.u32 %v11105_v10, %v10215_v61  ;;  %v10444_v23 = vor.u32 %v11157_v59, %v10441_v57 }
 0x912   :  { %v5541_v42 = vrot.slane %v5540_v63, 1  ;;  %v5582_v17 = vadd.f32 %v5581_v48, %v5580_v31  ;;  %5641 = vmatmul.f32.vlgmr.msrb.gmra.mxu2 %v5571_v47  ;;  %v11169_v51 = vld [vmem:[#allocation7 + $0x39c] sm:$0xf0]  ;;  %v10217_v48 = vld [vmem:[#allocation7 + $0x1a0] sm:$0xf0] }
 0x913   :  { %6655 = vmatpush.bf16.msrb.mxu2 %v10252_v29  ;;  %v10472_v47 = vor.u32 %v11169_v51, %v10471_v49  ;;  %v5415_v7 = vld [vmem:[%s14393_s13] sm:$0x1] }
 0x914   :  { %v5542_v27 = vadd.f32 %v5541_v42, %v5540_v63  ;;  %v5583_v2 = vrot.slane %v5582_v17, 1  ;;  %v11101_v63 = vld [vmem:[#allocation7 + $0x184] sm:$0xf]  ;;  %v10151_v10 = vld [vmem:[#allocation7 + $0x100] sm:$0xf] }
 0x915   :  { %v10220_v42 = vor.u32 %v11101_v63, %v10217_v48  ;;  %6598 = vmatpush.bf16.msra.mxu0 %v10216_v26  ;;  %v11089_v49 = vld [vmem:[#allocation7 + $0x11c] sm:$0xf0]  ;;  %v11085_v63 = vld [vmem:[#allocation7 + $0x104] sm:$0xf] }
 0x916   :  { %5621 = vmatmul.f32.vlgmr.msra.gmra.mxu1 %v5542_v27  ;;  %v5584_v6 = vadd.f32 %v5583_v2, %v5582_v17  ;;  %v11165_v17 = vld [vmem:[#allocation7 + $0x384] sm:$0xf]  ;;  %v10183_v2 = vld [vmem:[#allocation7 + $0x140] sm:$0xf]  ;;  %v10152_v26 = vor.u32 %v11089_v49, %v10151_v10 }
 0x917   :  { %6626 = vmatpush.bf16.msra.mxu1 %v10504_v21  ;;  %v10473_v27 = vld [vmem:[#allocation7 + $0x3a0] sm:$0xf0]  ;;  %6656 = vmatpush.bf16.msrb.mxu2 %v10220_v42  ;;  %v11153_v51 = vld [vmem:[#allocation7 + $0x31c] sm:$0xf0] }
 0x918   :  { %5661 = vmatmul.f32.vlgmr.msrb.gmra.mxu3 %v5584_v6  ;;  %v10153_v48 = vld [vmem:[#allocation7 + $0x120] sm:$0xf0]  ;;  %v10087_v59 = vld [vmem:[#allocation7 + $0x80] sm:$0xf] }
 0x919   :  { %6684 = vmatpush.bf16.msrb.mxu3 %v10508_v39  ;;  %v10156_v42 = vor.u32 %v11085_v63, %v10153_v48  ;;  %v10311_v10 = vld [vmem:[#allocation7 + $0x240] sm:$0xf] }
 0x91b   :  { %6627 = vmatpush.bf16.msra.mxu1 %v10472_v47 }
 0x98d   :  { %v5602_v24 = vpop.f32.mrf.mxu0 }
 0x993   :  { %v5622_v11 = vpop.f32.mrf.mxu1 }
 0x994   :  { %v5623_v56 = vadd.f32 %v5622_v11, %v5602_v24  ;;  %v10476_v11 = vor.u32 %v11165_v17, %v10473_v27  ;;  %v11097_v24 = vld [vmem:[#allocation7 + $0x15c] sm:$0xf0]  ;;  %v11149_v17 = vld [vmem:[#allocation7 + $0x304] sm:$0xf] }
 0x995   :  { %v5642_v8 = vpop.f32.mrf.mxu2  ;;  %v10184_v4 = vor.u32 %v11097_v24, %v10183_v2  ;;  %v10119_v2 = vld [vmem:[#allocation7 + $0xc0] sm:$0xf] }
 0x996   :  { %v13465_v52 = vmul.f32 0.00048828125, %v5623_v56  ;;  %v11161_v56 = vld [vmem:[#allocation7 + $0x35c] sm:$0xf0]  ;;  %6685 = vmatpush.bf16.msrb.mxu3 %v10476_v11 }
 0x997   :  { %6599 = vmatpush.bf16.msra.mxu0 %v10184_v4  ;;  %v10375_v11 = vld [vmem:[#allocation7 + $0x2c0] sm:$0xf]  ;;  %v11077_v4 = vld [vmem:[#allocation7 + $0xc4] sm:$0xf] }
 0x998   :  { %v5667_v46 = vmul.f32 %v13465_v52, %v13465_v52 }
 0x99a   :  { %6686 = vmatpush.bf16.msrb.mxu3 %v10444_v23  ;;  %v11073_v23 = vld [vmem:[#allocation7 + $0x9c] sm:$0xf0] }
 0x99b   :  { %v5662_v9 = vpop.f32.mrf.mxu3  ;;  %6600 = vmatpush.bf16.msra.mxu0 %v10152_v26  ;;  %v11061_v26 = vld [vmem:[#allocation7 + $0x44] sm:$0xf] }
 0x99c   :  { %v5663_v12 = vadd.f32 %v5662_v9, %v5642_v8  ;;  %v10185_v8 = vld [vmem:[#allocation7 + $0x160] sm:$0xf0]  ;;  %v10440_v9 = vor.u32 %v11161_v56, %v10439_v45  ;;  %v11145_v45 = vld [vmem:[#allocation7 + $0x2dc] sm:$0xf0] }
 0x99d   :  { %v10121_v56 = vld [vmem:[#allocation7 + $0xe0] sm:$0xf0] }
 0x99e   :  { %v5666_v44 = vmul.f32 0.00048828125, %v5663_v12  ;;  %v10188_v12 = vor.u32 %v11093_v43, %v10185_v8  ;;  %6628 = vmatpush.bf16.msra.mxu1 %v10440_v9  ;;  %v10376_v43 = vor.u32 %v11145_v45, %v10375_v11  ;;  %v10124_v8 = vor.u32 %v11077_v4, %v10121_v56  ;;  %v11141_v9 = vld [vmem:[#allocation7 + $0x2c4] sm:$0xf]  ;;  %v11121_v11 = vld [vmem:[#allocation7 + $0x21c] sm:$0xf0] }
 0x99f   :  { %v10025_v45 = vld [vmem:[#allocation7 + $0x20] sm:$0xf0] }
 0x9a0   :  { %v5668_v31 = vsub.f32 %v5666_v44, %v5667_v46  ;;  %6657 = vmatpush.bf16.msrb.mxu2 %v10188_v12  ;;  %v5414_v44 = vld [vmem:[%s14392_s12] sm:$0x1]  ;;  %v10377_v12 = vld [vmem:[#allocation7 + $0x2e0] sm:$0xf0] }
 0x9a1   :  { %v10380_v57 = vor.u32 %v11141_v9, %v10377_v12 }
 0x9a2   :  { %v5669_v6 = vadd.f32 1e-05, %v5668_v31  ;;  %v10407_v31 = vld [vmem:[#allocation7 + $0x300] sm:$0xf] }
 0x9a3   :  { %v10408_v47 = vor.u32 %v11153_v51, %v10407_v31  ;;  %v11129_v31 = vld [vmem:[#allocation7 + $0x25c] sm:$0xf0]  ;;  %v10057_v51 = vld [vmem:[#allocation7 + $0x60] sm:$0xf0] }
 0x9a4   :  { %11195 = vrsqrt.f32 %v5669_v6  ;;  %vm5676_vm8 = vweird.f32 %v5669_v6  ;;  %6658 = vmatpush.bf16.msrb.mxu2 %v10156_v42  ;;  %v10312_v63 = vor.u32 %v11129_v31, %v10311_v10  ;;  %v10060_v48 = vor.u32 %v11061_v26, %v10057_v51  ;;  %v10313_v42 = vld [vmem:[#allocation7 + $0x260] sm:$0xf0]  ;;  %v10511_v51 = vld [vmem:[#allocation7 + $0x3c8] sm:$0xf] }
 0x9a5   :  { %6629 = vmatpush.bf16.msra.mxu1 %v10408_v47  ;;  %v11125_v47 = vld [vmem:[#allocation7 + $0x244] sm:$0xf] }
 0x9a8   :  { %6659 = vmatpush.bf16.msrb.mxu2 %v10124_v8  ;;  %v10281_v8 = vld [vmem:[#allocation7 + $0x220] sm:$0xf0] }
 0x9a9   :  { %6630 = vmatpush.bf16.msra.mxu1 %v10376_v43  ;;  %v11117_v43 = vld [vmem:[#allocation7 + $0x204] sm:$0xf] }
 0x9aa   :  { %v11196_v28 = vpop.eup %11195  ;;  %v10284_v9 = vor.u32 %v11117_v43, %v10281_v8  ;;  %v11106_v43 = vld [vmem:[#allocation7 + $0x1a4] sm:$0xf0] }
 0x9ab   :  { %v5671_v0 = vmul.f32 %v11196_v28, %v5669_v6  ;;  %vm5677_vm10 = vweird.f32 %v11196_v28  ;;  %v11081_v6 = vld [vmem:[#allocation7 + $0xdc] sm:$0xf0]  ;;  %v10479_v8 = vld [vmem:[#allocation7 + $0x388] sm:$0xf] }
 0x9ac   :  { %vm5678_vm12 = vmor %vm5676_vm8, %vm5677_vm10  ;;  %v10120_v24 = vor.u32 %v11081_v6, %v10119_v2  ;;  %v10279_v2 = vld [vmem:[#allocation7 + $0x200] sm:$0xf] }
 0x9ad   :  { %v5672_v41 = vmul.f32 %v11196_v28, %v5671_v0  ;;  %v11137_v0 = vld [vmem:[#allocation7 + $0x29c] sm:$0xf0]  ;;  %v10280_v4 = vor.u32 %v11121_v11, %v10279_v2  ;;  %v10513_v11 = vld [vmem:[#allocation7 + $0x3e8] sm:$0xf0] }
 0x9ae   :  { %6601 = vmatpush.bf16.msra.mxu0 %v10120_v24  ;;  %v11053_v24 = vld [vmem:[#allocation7 + $0x4] sm:$0xf] }
 0x9af   :  { %v5673_v36 = vmul.f32 0.5, %v5672_v41  ;;  %v10088_v41 = vor.u32 %v11073_v23, %v10087_v59  ;;  %v10028_v56 = vor.u32 %v11053_v24, %v10025_v45  ;;  %v10223_v24 = vld [vmem:[#allocation7 + $0x188] sm:$0xf] }
 0x9b1   :  { %v5674_v46 = vsub.f32 1.5, %v5673_v36 }
 0x9b2   :  { %6602 = vmatpush.bf16.msra.mxu0 %v10088_v41 }
 0x9b3   :  { %v5675_v21 = vmul.f32 %v11196_v28, %v5674_v46  ;;  %v11069_v46 = vld [vmem:[#allocation7 + $0x84] sm:$0xf] }
 0x9b5   :  { %v5679_v29 = vsel %vm5678_vm12, %v11196_v28, %v5675_v21  ;;  %v10343_v28 = vld [vmem:[#allocation7 + $0x280] sm:$0xf]  ;;  %v11133_v21 = vld [vmem:[#allocation7 + $0x284] sm:$0xf] }
 0x9b6   :  { %v5680_v62 = vmul.f32 %v5679_v29, %v5414_v44  ;;  %v10344_v36 = vor.u32 %v11137_v0, %v10343_v28  ;;  %v10089_v44 = vld [vmem:[#allocation7 + $0xa0] sm:$0xf0] }
 0x9b7   :  { %v10092_v29 = vor.u32 %v11069_v46, %v10089_v44 }
 0x9b8   :  { %v5681_v39 = vmul.f32 %v5680_v62, %v13465_v52  ;;  %10014 = vmatmul.msk.f32.vlgmr.msrb.gmra.mxu0 %vm14641_vm7, %v5680_v62  ;;  %10016 = vmatmul.msk.f32.vlgmr.msrb.gmra.mxu1 %vm14642_vm0, %v5680_v62  ;;  %v10409_v52 = vld [vmem:[#allocation7 + $0x320] sm:$0xf0] }
 0x9b9   :  { %v10412_v27 = vor.u32 %v11149_v17, %v10409_v52  ;;  %v10345_v62 = vld [vmem:[#allocation7 + $0x2a0] sm:$0xf0]  ;;  %6631 = vmatpush.bf16.msra.mxu1 %v10344_v36  ;;  %6660 = vmatpush.bf16.msrb.mxu2 %v10092_v29  ;;  %v10316_v17 = vor.u32 %v11125_v47, %v10313_v42  ;;  %v10023_v52 = vld [vmem:[#allocation7] sm:$0xf]  ;;  %v11178_v47 = vld [vmem:[#allocation7 + $0x3e4] sm:$0xf0] }
 0x9ba   :  { %v5682_v61 = vsub.f32 %v5415_v7, %v5681_v39  ;;  %v10348_v7 = vor.u32 %v11133_v21, %v10345_v62  ;;  %v10055_v39 = vld [vmem:[#allocation7 + $0x40] sm:$0xf]  ;;  %v11110_v42 = vld [vmem:[#allocation7 + $0x1cc] sm:$0xf] }
 0x9bb   :  { %6687 = vmatpush.bf16.msrb.mxu3 %v10412_v27  ;;  %v11057_v27 = vld [vmem:[#allocation7 + $0x1c] sm:$0xf0] }
 0x9bc   :  { %10018 = vmatmul.msk.f32.vlgmr.msra.gmra.mxu2 %vm14643_vm13, %v5682_v61  ;;  %10020 = vmatmul.msk.f32.vlgmr.msra.gmra.mxu3 %vm14644_vm5, %v5682_v61  ;;  %v11065_v61 = vld [vmem:[#allocation7 + $0x5c] sm:$0xf0]  ;;  %v10024_v6 = vor.u32 %v11057_v27, %v10023_v52  ;;  %v10512_v27 = vor.u32 %v11178_v47, %v10511_v51  ;;  %vm14647_vm5 = vcmask 523264  }
 0x9bd   :  { %v10056_v49 = vor.u32 %v11065_v61, %v10055_v39  ;;  %6632 = vmatpush.bf16.msra.mxu1 %v10312_v63  ;;  %6661 = vmatpush.bf16.msrb.mxu2 %v10060_v48  ;;  %vm14648_vm10 = vmmov %vm14647_vm5 }
 0x9be   :  { %vm14649_vm8 = vmmov %vm14647_vm5 }
 0x9bf   :  { %6688 = vmatpush.bf16.msrb.mxu3 %v10380_v57  ;;  %6603 = vmatpush.bf16.msra.mxu0 %v10056_v49  ;;  %vm14650_vm12 = vmmov %vm14647_vm5 }
 0x9c0   :  { %vm14651_vm7 = vmmov %vm14647_vm5 }
 0x9c1   :  { %6633 = vmatpush.bf16.msra.mxu1 %v10280_v4  ;;  %6662 = vmatpush.bf16.msrb.mxu2 %v10028_v56  ;;  %vm14652_vm0 = vmmov %vm14647_vm5 }
 0x9c2   :  { %vm14653_vm13 = vmmov %vm14652_vm0 }
 0x9c3   :  { %6689 = vmatpush.bf16.msrb.mxu3 %v10348_v7  ;;  %6604 = vmatpush.bf16.msra.mxu0 %v10024_v6  ;;  %v11174_v6 = vld [vmem:[#allocation7 + $0x3cc] sm:$0xf] }
 0x9c4   :  { %v10516_v56 = vor.u32 %v11174_v6, %v10513_v11  ;;  %v11154_v6 = vld [vmem:[#allocation7 + $0x324] sm:$0xf0]  ;;  %v11086_v11 = vld [vmem:[#allocation7 + $0x10c] sm:$0xf] }
 0x9c5   :  { %6742 = vmatpush.bf16.msrb.mxu1 %v10512_v27  ;;  %v11090_v27 = vld [vmem:[#allocation7 + $0x124] sm:$0xf0] }
 0x9c7   :  { %6690 = vmatpush.bf16.msrb.mxu3 %v10316_v17  ;;  %v10257_v17 = vld [vmem:[#allocation7 + $0x1e8] sm:$0xf0] }
 0x9c8   :  { %v10260_v2 = vor.u32 %v11110_v42, %v10257_v17 }
 0x9ca   :  { %6771 = vmatpush.bf16.msra.mxu2 %v10260_v2  ;;  %v10415_v2 = vld [vmem:[#allocation7 + $0x308] sm:$0xf] }
 0x9cb   :  { %6691 = vmatpush.bf16.msrb.mxu3 %v10284_v9  ;;  %v11170_v9 = vld [vmem:[#allocation7 + $0x3a4] sm:$0xf0] }
 0x9cf   :  { %6800 = vmatpush.bf16.msra.mxu3 %v10516_v56 }
 0xa35   :  { %v5703_v12 = vpop.f32.mrf.mxu0  ;;  %v5723_v59 = vpop.f32.mrf.mxu1 }
 0xa36   :  { %v13480_v57 = vperm.slane %v5703_v12, 0  ;;  %v13482_v23 = vperm.slane %v5723_v59, 0  ;;  %v10224_v12 = vor.u32 %v11106_v43, %v10223_v24  ;;  %v10480_v59 = vor.u32 %v11170_v9, %v10479_v8  ;;  %v10161_v24 = vld [vmem:[#allocation7 + $0x128] sm:$0xf0] }
 0xa37   :  { %v10416_v8 = vor.u32 %v11154_v6, %v10415_v2  ;;  %v10164_v9 = vor.u32 %v11086_v11, %v10161_v24  ;;  %v10319_v11 = vld [vmem:[#allocation7 + $0x248] sm:$0xf] }
 0xa38   :  { %v5771_v41 = vmul.f32 %v13480_v57, %v13334_v54  ;;  %v5773_v36 = vmul.f32 %v13480_v57, %v13328_v3  ;;  %v5772_v21 = vmul.f32 %v13482_v23, %v13384_v30  ;;  %v5774_v29 = vmul.f32 %v13482_v23, %v13368_v37  ;;  %v10255_v37 = vld [vmem:[#allocation7 + $0x1c8] sm:$0xf]  ;;  %6743 = vmatpush.bf16.msrb.mxu1 %v10480_v59 }
 0xa39   :  { %v11114_v30 = vld [vmem:[#allocation7 + $0x1e4] sm:$0xf0]  ;;  %v5775_v63 = vmul.f32 %v13480_v57, %v13344_v18  ;;  %v5777_v52 = vmul.f32 %v13480_v57, %v13361_v32  ;;  %v5776_v45 = vmul.f32 %v13482_v23, %v13387_v25  ;;  %v5778_v4 = vmul.f32 %v13482_v23, %v13403_v19 }
 0xa3a   :  { %v10256_v48 = vor.u32 %v11114_v30, %v10255_v37  ;;  %v10449_v37 = vld [vmem:[#allocation7 + $0x368] sm:$0xf0]  ;;  %v11082_v59 = vld [vmem:[#allocation7 + $0xe4] sm:$0xf0] }
 0xa3b   :  { %v11130_v24 = vld [vmem:[#allocation7 + $0x264] sm:$0xf0] }
 0xa3c   :  { %6713 = vmatpush.bf16.msrb.mxu0 %v10256_v48 }
 0xa3f   :  { %v5746_v28 = vpop.f32.mrf.mxu2  ;;  %v5766_v0 = vpop.f32.mrf.mxu3 }
 0xa40   :  { %v13488_v46 = vperm.slane %v5746_v28, 0  ;;  %v13490_v44 = vperm.slane %v5766_v0, 0  ;;  %v11102_v28 = vld [vmem:[#allocation7 + $0x18c] sm:$0xf]  ;;  %6714 = vmatpush.bf16.msrb.mxu0 %v10224_v12  ;;  %v10127_v12 = vld [vmem:[#allocation7 + $0xc8] sm:$0xf] }
 0xa41   :  { %v10225_v0 = vld [vmem:[#allocation7 + $0x1a8] sm:$0xf0] }
 0xa42   :  { %v5789_v62 = vadd.f32 %v13488_v46, %v5771_v41  ;;  %v5791_v7 = vadd.f32 %v13488_v46, %v5773_v36  ;;  %v5790_v39 = vadd.f32 %v13490_v44, %v5772_v21  ;;  %v5792_v54 = vadd.f32 %v13490_v44, %v5774_v29  ;;  %v11166_v41 = vld [vmem:[#allocation7 + $0x38c] sm:$0xf]  ;;  %v10191_v29 = vld [vmem:[#allocation7 + $0x148] sm:$0xf] }
 0xa43   :  { %v5793_v18 = vadd.f32 %v13488_v46, %v5775_v63  ;;  %v5795_v32 = vadd.f32 %v13488_v46, %v5777_v52  ;;  %v5794_v25 = vadd.f32 %v13490_v44, %v5776_v45  ;;  %v5796_v19 = vadd.f32 %v13490_v44, %v5778_v4  ;;  %v10481_v21 = vld [vmem:[#allocation7 + $0x3a8] sm:$0xf0]  ;;  %v10159_v52 = vld [vmem:[#allocation7 + $0x108] sm:$0xf] }
 0xa44   :  { %v5805_v61 = vmax.f32 %v5789_v62, 0.0  ;;  %v5807_v3 = vmax.f32 %v5791_v7, 0.0  ;;  %v5806_v10 = vmax.f32 %v5790_v39, 0.0  ;;  %v5808_v49 = vmax.f32 %v5792_v54, 0.0  ;;  %v11098_v62 = vld [vmem:[#allocation7 + $0x164] sm:$0xf0] }
 0xa45   :  { %v10228_v36 = vor.u32 %v11102_v28, %v10225_v0  ;;  %v10484_v7 = vor.u32 %v11166_v41, %v10481_v21  ;;  %v10447_v39 = vld [vmem:[#allocation7 + $0x348] sm:$0xf]  ;;  %v5809_v30 = vmax.f32 %v5793_v18, 0.0  ;;  %v5811_v51 = vmax.f32 %v5795_v32, 0.0  ;;  %v11150_v45 = vld [vmem:[#allocation7 + $0x30c] sm:$0xf] }
 0xa46   :  { %v13500_v31 = vpack.c.bf16 %v5807_v3, %v5805_v61  ;;  %v13502_v26 = vpack.c.bf16 %v5808_v49, %v5806_v10  ;;  %v11162_v54 = vld [vmem:[#allocation7 + $0x364] sm:$0xf0]  ;;  %v11094_v61 = vld [vmem:[#allocation7 + $0x14c] sm:$0xf]  ;;  %v10192_v3 = vor.u32 %v11098_v62, %v10191_v29  ;;  %v5810_v47 = vmax.f32 %v5794_v25, 0.0 }
 0xa47   :  { %v10193_v10 = vld [vmem:[#allocation7 + $0x168] sm:$0xf0]  ;;  %6772 = vmatpush.bf16.msra.mxu2 %v10228_v36  ;;  %v10448_v63 = vor.u32 %v11162_v54, %v10447_v39  ;;  %v5812_v42 = vmax.f32 %v5796_v19, 0.0  ;;  %6801 = vmatpush.bf16.msra.mxu3 %v10484_v7  ;;  %v13520_v18 = vpack.c.bf16 %v5811_v51, %v5809_v30  ;;  %v10160_v43 = vor.u32 %v11090_v27, %v10159_v52  ;;  %v10383_v28 = vld [vmem:[#allocation7 + $0x2c8] sm:$0xf] }
 0xa48   :  { %6605 = vmatmul.bf16.vlgmr.msra.gmra.mxu0 %v13500_v31  ;;  %6634 = vmatmul.bf16.vlgmr.msra.gmra.mxu1 %v13502_v26  ;;  %v11158_v49 = vld [vmem:[#allocation7 + $0x34c] sm:$0xf]  ;;  %v10196_v48 = vor.u32 %v11094_v61, %v10193_v10  ;;  %v5779_v0 = vmul.f32 %v13480_v57, %v13377_v50  ;;  %v5781_v41 = vmul.f32 %v13480_v57, %v13396_v38  ;;  %v11146_v19 = vld [vmem:[#allocation7 + $0x2e4] sm:$0xf0] }
 0xa49   :  { %6663 = vmatmul.bf16.vlgmr.msrb.gmra.mxu2 %v13500_v31  ;;  %6692 = vmatmul.bf16.vlgmr.msrb.gmra.mxu3 %v13502_v26  ;;  %v10452_v17 = vor.u32 %v11158_v49, %v10449_v37  ;;  %v10417_v4 = vld [vmem:[#allocation7 + $0x328] sm:$0xf0]  ;;  %v13522_v56 = vpack.c.bf16 %v5812_v42, %v5810_v47  ;;  %v10128_v25 = vor.u32 %v11082_v59, %v10127_v12  ;;  %v10095_v61 = vld [vmem:[#allocation7 + $0x88] sm:$0xf] }
 0xa4a   :  { %6715 = vmatpush.bf16.msrb.mxu0 %v10192_v3  ;;  %6744 = vmatpush.bf16.msrb.mxu1 %v10448_v63  ;;  %v10420_v32 = vor.u32 %v11150_v45, %v10417_v4  ;;  %v11078_v36 = vld [vmem:[#allocation7 + $0xcc] sm:$0xf]  ;;  %v5780_v29 = vmul.f32 %v13482_v23, %v13417_v15  ;;  %v10384_v62 = vor.u32 %v11146_v19, %v10383_v28  ;;  %v11074_v3 = vld [vmem:[#allocation7 + $0xa4] sm:$0xf0] }
 0xa4b   :  { %6773 = vmatpush.bf16.msra.mxu2 %v10196_v48  ;;  %6802 = vmatpush.bf16.msra.mxu3 %v10452_v17  ;;  %v10129_v21 = vld [vmem:[#allocation7 + $0xe8] sm:$0xf0]  ;;  %v5782_v50 = vmul.f32 %v13482_v23, %v13427_v33  ;;  %v10351_v10 = vld [vmem:[#allocation7 + $0x288] sm:$0xf]  ;;  %v5797_v37 = vadd.f32 %v13488_v46, %v5779_v0  ;;  %v5799_v30 = vadd.f32 %v13488_v46, %v5781_v41 }
 0xa4c   :  { %v10132_v7 = vor.u32 %v11078_v36, %v10129_v21  ;;  %v11142_v39 = vld [vmem:[#allocation7 + $0x2cc] sm:$0xf]  ;;  %v11138_v49 = vld [vmem:[#allocation7 + $0x2a4] sm:$0xf0]  ;;  %v5798_v15 = vadd.f32 %v13490_v44, %v5780_v29  ;;  %v10096_v42 = vor.u32 %v11074_v3, %v10095_v61  ;;  %v10320_v0 = vor.u32 %v11130_v24, %v10319_v11  ;;  %v11175_v24 = vld [vmem:[#allocation7 + $0x3d4] sm:$0xf] }
 0xa4d   :  { %v10385_v54 = vld [vmem:[#allocation7 + $0x2e8] sm:$0xf0]  ;;  %v5800_v47 = vadd.f32 %v13490_v44, %v5782_v50  ;;  %v10352_v17 = vor.u32 %v11138_v49, %v10351_v10  ;;  %v10063_v52 = vld [vmem:[#allocation7 + $0x48] sm:$0xf] }
 0xa4e   :  { %6716 = vmatpush.bf16.msrb.mxu0 %v10160_v43  ;;  %6745 = vmatpush.bf16.msrb.mxu1 %v10416_v8  ;;  %v10388_v38 = vor.u32 %v11142_v39, %v10385_v54  ;;  %v11070_v51 = vld [vmem:[#allocation7 + $0x8c] sm:$0xf]  ;;  %v11066_v27 = vld [vmem:[#allocation7 + $0x64] sm:$0xf0]  ;;  %v5814_v12 = vmax.f32 %v5798_v15, 0.0  ;;  %v5784_v15 = vmul.f32 %v13482_v23, %v13434_v5 }
 0xa4f   :  { %6774 = vmatpush.bf16.msra.mxu2 %v10164_v9  ;;  %6803 = vmatpush.bf16.msra.mxu3 %v10420_v32  ;;  %v10097_v63 = vld [vmem:[#allocation7 + $0xa8] sm:$0xf0]  ;;  %v5813_v9 = vmax.f32 %v5797_v37, 0.0  ;;  %v5815_v32 = vmax.f32 %v5799_v30, 0.0  ;;  %v5816_v59 = vmax.f32 %v5800_v47, 0.0  ;;  %v10064_v28 = vor.u32 %v11066_v27, %v10063_v52 }
 0xa50   :  { %v11134_v48 = vld [vmem:[#allocation7 + $0x28c] sm:$0xf]  ;;  %v10100_v2 = vor.u32 %v11070_v51, %v10097_v63  ;;  %v10031_v41 = vld [vmem:[#allocation7 + $0x8] sm:$0xf]  ;;  %v5783_v37 = vmul.f32 %v13480_v57, %v13408_v34  ;;  %v5785_v30 = vmul.f32 %v13480_v57, %v13438_v22  ;;  %v5786_v51 = vmul.f32 %v13482_v23, %v13452_v14  ;;  %v10263_v5 = vld [vmem:[#allocation7 + $0x1d0] sm:$0xf] }
 0xa51   :  { %v10353_v33 = vld [vmem:[#allocation7 + $0x2a8] sm:$0xf0]  ;;  %v10287_v21 = vld [vmem:[#allocation7 + $0x208] sm:$0xf]  ;;  %v13540_v61 = vpack.c.bf16 %v5815_v32, %v5813_v9  ;;  %v13542_v50 = vpack.c.bf16 %v5816_v59, %v5814_v12  ;;  %v5802_v47 = vadd.f32 %v13490_v44, %v5784_v15  ;;  %v11115_v14 = vld [vmem:[#allocation7 + $0x1ec] sm:$0xf0] }
 0xa52   :  { %6717 = vmatpush.bf16.msrb.mxu0 %v10128_v25  ;;  %6746 = vmatpush.bf16.msrb.mxu1 %v10384_v62  ;;  %v10356_v6 = vor.u32 %v11134_v48, %v10353_v33  ;;  %v11062_v45 = vld [vmem:[#allocation7 + $0x4c] sm:$0xf]  ;;  %v11058_v25 = vld [vmem:[#allocation7 + $0x24] sm:$0xf0]  ;;  %v5801_v63 = vadd.f32 %v13488_v46, %v5783_v37  ;;  %v5803_v48 = vadd.f32 %v13488_v46, %v5785_v30  ;;  %v10519_v57 = vld [vmem:[#allocation7 + $0x3d0] sm:$0xf] }
 0xa53   :  { %6775 = vmatpush.bf16.msra.mxu2 %v10132_v7  ;;  %6804 = vmatpush.bf16.msra.mxu3 %v10388_v38  ;;  %v10065_v4 = vld [vmem:[#allocation7 + $0x68] sm:$0xf0]  ;;  %v11122_v29 = vld [vmem:[#allocation7 + $0x224] sm:$0xf0]  ;;  %v10032_v38 = vor.u32 %v11058_v25, %v10031_v41  ;;  %v5818_v34 = vmax.f32 %v5802_v47, 0.0  ;;  %v10264_v23 = vor.u32 %v11115_v14, %v10263_v5 }
 0xa54   :  { %v11126_v43 = vld [vmem:[#allocation7 + $0x24c] sm:$0xf]  ;;  %v10068_v19 = vor.u32 %v11062_v45, %v10065_v4  ;;  %v10288_v3 = vor.u32 %v11122_v29, %v10287_v21  ;;  %v5819_v33 = vmax.f32 %v5803_v48, 0.0  ;;  %v11179_v46 = vld [vmem:[#allocation7 + $0x3ec] sm:$0xf0] }
 0xa55   :  { %v10321_v8 = vld [vmem:[#allocation7 + $0x268] sm:$0xf0]  ;;  %v10521_v45 = vld [vmem:[#allocation7 + $0x3f0] sm:$0xf0]  ;;  %v10231_v4 = vld [vmem:[#allocation7 + $0x190] sm:$0xf] }
 0xa56   :  { %6718 = vmatpush.bf16.msrb.mxu0 %v10096_v42  ;;  %6747 = vmatpush.bf16.msrb.mxu1 %v10352_v17  ;;  %v10324_v36 = vor.u32 %v11126_v43, %v10321_v8  ;;  %v11054_v62 = vld [vmem:[#allocation7 + $0xc] sm:$0xf]  ;;  %v5804_v42 = vadd.f32 %v13490_v44, %v5786_v51  ;;  %v5817_v17 = vmax.f32 %v5801_v63, 0.0  ;;  %v11111_v44 = vld [vmem:[#allocation7 + $0x1d4] sm:$0xf]  ;;  %v10524_v43 = vor.u32 %v11175_v24, %v10521_v45 }
 0xa57   :  { %6776 = vmatpush.bf16.msra.mxu2 %v10100_v2  ;;  %6805 = vmatpush.bf16.msra.mxu3 %v10356_v6  ;;  %v10033_v7 = vld [vmem:[#allocation7 + $0x28] sm:$0xf0]  ;;  %v10265_v2 = vld [vmem:[#allocation7 + $0x1f0] sm:$0xf0]  ;;  %v10520_v6 = vor.u32 %v11179_v46, %v10519_v57  ;;  %v11107_v8 = vld [vmem:[#allocation7 + $0x1ac] sm:$0xf0] }
 0xa58   :  { %6610 = vmatmul.bf16.gmra.mxu0 %v13520_v18  ;;  %6639 = vmatmul.bf16.gmra.mxu1 %v13522_v56  ;;  %v11118_v39 = vld [vmem:[#allocation7 + $0x20c] sm:$0xf]  ;;  %v10036_v10 = vor.u32 %v11054_v62, %v10033_v7  ;;  %v5820_v52 = vmax.f32 %v5804_v42, 0.0  ;;  %v13560_v27 = vpack.c.bf16 %v5819_v33, %v5817_v17  ;;  %v10268_v11 = vor.u32 %v11111_v44, %v10265_v2  ;;  %v10487_v9 = vld [vmem:[#allocation7 + $0x390] sm:$0xf] }
 0xa59   :  { %6668 = vmatmul.bf16.gmra.mxu2 %v13520_v18  ;;  %6697 = vmatmul.bf16.gmra.mxu3 %v13522_v56  ;;  %v10289_v54 = vld [vmem:[#allocation7 + $0x228] sm:$0xf0]  ;;  %v11171_v32 = vld [vmem:[#allocation7 + $0x3ac] sm:$0xf0]  ;;  %v10232_v12 = vor.u32 %v11107_v8, %v10231_v4  ;;  %v11167_v41 = vld [vmem:[#allocation7 + $0x394] sm:$0xf] }
 0xa5a   :  { %6719 = vmatpush.bf16.msrb.mxu0 %v10064_v28  ;;  %6748 = vmatpush.bf16.msrb.mxu1 %v10320_v0  ;;  %v10292_v49 = vor.u32 %v11118_v39, %v10289_v54  ;;  %v13562_v22 = vpack.c.bf16 %v5820_v52, %v5818_v34  ;;  %v10488_v59 = vor.u32 %v11171_v32, %v10487_v9  ;;  %v11103_v28 = vld [vmem:[#allocation7 + $0x194] sm:$0xf]  ;;  %v11099_v21 = vld [vmem:[#allocation7 + $0x16c] sm:$0xf0] }
 0xa5b   :  { %6777 = vmatpush.bf16.msra.mxu2 %v10068_v19  ;;  %6806 = vmatpush.bf16.msra.mxu3 %v10324_v36  ;;  %v10233_v0 = vld [vmem:[#allocation7 + $0x1b0] sm:$0xf0]  ;;  %v10199_v36 = vld [vmem:[#allocation7 + $0x150] sm:$0xf] }
 0xa5c   :  { %v10236_v25 = vor.u32 %v11103_v28, %v10233_v0  ;;  %v10489_v19 = vld [vmem:[#allocation7 + $0x3b0] sm:$0xf0]  ;;  %v10455_v62 = vld [vmem:[#allocation7 + $0x350] sm:$0xf]  ;;  %v10200_v54 = vor.u32 %v11099_v21, %v10199_v36 }
 0xa5d   :  { %v10492_v29 = vor.u32 %v11167_v41, %v10489_v19  ;;  %v11163_v7 = vld [vmem:[#allocation7 + $0x36c] sm:$0xf0]  ;;  %v11095_v39 = vld [vmem:[#allocation7 + $0x154] sm:$0xf] }
 0xa5e   :  { %6720 = vmatpush.bf16.msrb.mxu0 %v10032_v38  ;;  %6749 = vmatpush.bf16.msrb.mxu1 %v10288_v3  ;;  %v10201_v38 = vld [vmem:[#allocation7 + $0x170] sm:$0xf0]  ;;  %v10167_v15 = vld [vmem:[#allocation7 + $0x110] sm:$0xf] }
 0xa5f   :  { %6778 = vmatpush.bf16.msra.mxu2 %v10036_v10  ;;  %6807 = vmatpush.bf16.msra.mxu3 %v10292_v49  ;;  %v11159_v3 = vld [vmem:[#allocation7 + $0x354] sm:$0xf]  ;;  %v10456_v49 = vor.u32 %v11163_v7, %v10455_v62  ;;  %v10204_v37 = vor.u32 %v11095_v39, %v10201_v38  ;;  %v11091_v51 = vld [vmem:[#allocation7 + $0x12c] sm:$0xf0] }
 0xa60   :  { %v10457_v10 = vld [vmem:[#allocation7 + $0x370] sm:$0xf0]  ;;  %v10423_v63 = vld [vmem:[#allocation7 + $0x310] sm:$0xf]  ;;  %v10168_v34 = vor.u32 %v11091_v51, %v10167_v15 }
 0xa61   :  { %v10460_v30 = vor.u32 %v11159_v3, %v10457_v10  ;;  %v11155_v48 = vld [vmem:[#allocation7 + $0x32c] sm:$0xf0]  ;;  %v11087_v47 = vld [vmem:[#allocation7 + $0x114] sm:$0xf] }
 0xa62   :  { %6829 = vmatpush.bf16.msra.mxu0 %v10264_v23  ;;  %6858 = vmatpush.bf16.msra.mxu1 %v10520_v6  ;;  %v10169_v42 = vld [vmem:[#allocation7 + $0x130] sm:$0xf0]  ;;  %v10424_v52 = vor.u32 %v11155_v48, %v10423_v63  ;;  %v10135_v57 = vld [vmem:[#allocation7 + $0xd0] sm:$0xf] }
 0xa63   :  { %6887 = vmatpush.bf16.msrb.mxu2 %v10268_v11  ;;  %6916 = vmatpush.bf16.msrb.mxu3 %v10524_v43  ;;  %v11151_v17 = vld [vmem:[#allocation7 + $0x314] sm:$0xf]  ;;  %v10172_v5 = vor.u32 %v11087_v47, %v10169_v42  ;;  %v11083_v23 = vld [vmem:[#allocation7 + $0xec] sm:$0xf0] }
 0xa64   :  { %v10425_v33 = vld [vmem:[#allocation7 + $0x330] sm:$0xf0]  ;;  %v10391_v46 = vld [vmem:[#allocation7 + $0x2d0] sm:$0xf]  ;;  %v10136_v44 = vor.u32 %v11083_v23, %v10135_v57 }
 0xa65   :  { %v10428_v14 = vor.u32 %v11151_v17, %v10425_v33  ;;  %v11147_v2 = vld [vmem:[#allocation7 + $0x2ec] sm:$0xf0]  ;;  %v11079_v6 = vld [vmem:[#allocation7 + $0xd4] sm:$0xf] }
 0xa66   :  { %6830 = vmatpush.bf16.msra.mxu0 %v10232_v12  ;;  %6859 = vmatpush.bf16.msra.mxu1 %v10488_v59  ;;  %v10137_v11 = vld [vmem:[#allocation7 + $0xf0] sm:$0xf0]  ;;  %v10392_v24 = vor.u32 %v11147_v2, %v10391_v46  ;;  %v10103_v8 = vld [vmem:[#allocation7 + $0x90] sm:$0xf] }
 0xa67   :  { %6888 = vmatpush.bf16.msrb.mxu2 %v10236_v25  ;;  %6917 = vmatpush.bf16.msrb.mxu3 %v10492_v29  ;;  %v10140_v45 = vor.u32 %v11079_v6, %v10137_v11  ;;  %v11143_v4 = vld [vmem:[#allocation7 + $0x2d4] sm:$0xf]  ;;  %v11075_v32 = vld [vmem:[#allocation7 + $0xac] sm:$0xf0]  ;;  %v10271_v6 = vld [vmem:[#allocation7 + $0x1d8] sm:$0xf] }
 0xa68   :  { %6615 = vmatmul.bf16.gmra.mxu0 %v13540_v61  ;;  %6644 = vmatmul.bf16.gmra.mxu1 %v13542_v50  ;;  %v10393_v43 = vld [vmem:[#allocation7 + $0x2f0] sm:$0xf0]  ;;  %v10359_v12 = vld [vmem:[#allocation7 + $0x290] sm:$0xf]  ;;  %v10104_v25 = vor.u32 %v11075_v32, %v10103_v8  ;;  %v11116_v11 = vld [vmem:[#allocation7 + $0x1f4] sm:$0xf0] }
 0xa69   :  { %6673 = vmatmul.bf16.gmra.mxu2 %v13540_v61  ;;  %6702 = vmatmul.bf16.gmra.mxu3 %v13542_v50  ;;  %v10396_v9 = vor.u32 %v11143_v4, %v10393_v43  ;;  %v11139_v59 = vld [vmem:[#allocation7 + $0x2ac] sm:$0xf0]  ;;  %v11071_v28 = vld [vmem:[#allocation7 + $0x94] sm:$0xf]  ;;  %v11180_v4 = vld [vmem:[#allocation7 + $0x3f4] sm:$0xf0] }
 0xa6a   :  { %6831 = vmatpush.bf16.msra.mxu0 %v10200_v54  ;;  %6860 = vmatpush.bf16.msra.mxu1 %v10456_v49  ;;  %v10105_v0 = vld [vmem:[#allocation7 + $0xb0] sm:$0xf0]  ;;  %v10360_v19 = vor.u32 %v11139_v59, %v10359_v12  ;;  %v10071_v21 = vld [vmem:[#allocation7 + $0x50] sm:$0xf]  ;;  %v11112_v43 = vld [vmem:[#allocation7 + $0x1dc] sm:$0xf] }
 0xa6b   :  { %6889 = vmatpush.bf16.msrb.mxu2 %v10204_v37  ;;  %6918 = vmatpush.bf16.msrb.mxu3 %v10460_v30  ;;  %v11135_v41 = vld [vmem:[#allocation7 + $0x294] sm:$0xf]  ;;  %v11067_v29 = vld [vmem:[#allocation7 + $0x6c] sm:$0xf0]  ;;  %v10108_v62 = vor.u32 %v11071_v28, %v10105_v0  ;;  %v10273_v8 = vld [vmem:[#allocation7 + $0x1f8] sm:$0xf0] }
 0xa6c   :  { %v10361_v36 = vld [vmem:[#allocation7 + $0x2b0] sm:$0xf0]  ;;  %v10327_v39 = vld [vmem:[#allocation7 + $0x250] sm:$0xf]  ;;  %v10072_v37 = vor.u32 %v11067_v29, %v10071_v21  ;;  %v10276_v32 = vor.u32 %v11112_v43, %v10273_v8  ;;  %v11176_v12 = vld [vmem:[#allocation7 + $0x3dc] sm:$0xf] }
 0xa6d   :  { %v10364_v7 = vor.u32 %v11135_v41, %v10361_v36  ;;  %v11131_v54 = vld [vmem:[#allocation7 + $0x26c] sm:$0xf0]  ;;  %v11063_v38 = vld [vmem:[#allocation7 + $0x54] sm:$0xf]  ;;  %v10529_v59 = vld [vmem:[#allocation7 + $0x3f8] sm:$0xf0] }
 0xa6e   :  { %6832 = vmatpush.bf16.msra.mxu0 %v10168_v34  ;;  %6861 = vmatpush.bf16.msra.mxu1 %v10424_v52  ;;  %v10073_v3 = vld [vmem:[#allocation7 + $0x70] sm:$0xf0]  ;;  %v10328_v30 = vor.u32 %v11131_v54, %v10327_v39  ;;  %v10039_v63 = vld [vmem:[#allocation7 + $0x10] sm:$0xf]  ;;  %v10532_v41 = vor.u32 %v11176_v12, %v10529_v59  ;;  %v10239_v29 = vld [vmem:[#allocation7 + $0x198] sm:$0xf] }
 0xa6f   :  { %6890 = vmatpush.bf16.msrb.mxu2 %v10172_v5  ;;  %6919 = vmatpush.bf16.msrb.mxu3 %v10428_v14  ;;  %v11127_v10 = vld [vmem:[#allocation7 + $0x254] sm:$0xf]  ;;  %v10076_v15 = vor.u32 %v11063_v38, %v10073_v3  ;;  %v11059_v48 = vld [vmem:[#allocation7 + $0x2c] sm:$0xf0]  ;;  %v11172_v54 = vld [vmem:[#allocation7 + $0x3b4] sm:$0xf0] }
 0xa70   :  { %v10329_v49 = vld [vmem:[#allocation7 + $0x270] sm:$0xf0]  ;;  %v10295_v47 = vld [vmem:[#allocation7 + $0x210] sm:$0xf]  ;;  %v10040_v42 = vor.u32 %v11059_v48, %v10039_v63  ;;  %v11104_v38 = vld [vmem:[#allocation7 + $0x19c] sm:$0xf] }
 0xa71   :  { %v10332_v51 = vor.u32 %v11127_v10, %v10329_v49  ;;  %v11123_v17 = vld [vmem:[#allocation7 + $0x22c] sm:$0xf0]  ;;  %v11055_v33 = vld [vmem:[#allocation7 + $0x14] sm:$0xf]  ;;  %v10241_v3 = vld [vmem:[#allocation7 + $0x1b8] sm:$0xf0] }
 0xa72   :  { %6833 = vmatpush.bf16.msra.mxu0 %v10136_v44  ;;  %6862 = vmatpush.bf16.msra.mxu1 %v10392_v24  ;;  %v10041_v34 = vld [vmem:[#allocation7 + $0x30] sm:$0xf0]  ;;  %v10296_v52 = vor.u32 %v11123_v17, %v10295_v47  ;;  %v10527_v24 = vld [vmem:[#allocation7 + $0x3d8] sm:$0xf]  ;;  %v10244_v49 = vor.u32 %v11104_v38, %v10241_v3  ;;  %v10177_v12 = vld [vmem:[#allocation7 + $0x138] sm:$0xf0] }
 0xa73   :  { %6891 = vmatpush.bf16.msrb.mxu2 %v10140_v45  ;;  %6920 = vmatpush.bf16.msrb.mxu3 %v10396_v9  ;;  %v10044_v5 = vor.u32 %v11055_v33, %v10041_v34  ;;  %v11119_v14 = vld [vmem:[#allocation7 + $0x214] sm:$0xf]  ;;  %v10272_v45 = vor.u32 %v11116_v11, %v10271_v6  ;;  %v10528_v9 = vor.u32 %v11180_v4, %v10527_v24  ;;  %v11100_v63 = vld [vmem:[#allocation7 + $0x174] sm:$0xf0]  ;;  %v11096_v33 = vld [vmem:[#allocation7 + $0x15c] sm:$0xf] }
 0xa74   :  { %v10297_v57 = vld [vmem:[#allocation7 + $0x230] sm:$0xf0]  ;;  %v10463_v48 = vld [vmem:[#allocation7 + $0x358] sm:$0xf]  ;;  %v10209_v34 = vld [vmem:[#allocation7 + $0x178] sm:$0xf0] }
 0xa75   :  { %v10300_v23 = vor.u32 %v11119_v14, %v10297_v57  ;;  %v11164_v47 = vld [vmem:[#allocation7 + $0x374] sm:$0xf0]  ;;  %v10465_v14 = vld [vmem:[#allocation7 + $0x378] sm:$0xf0] }
 0xa76   :  { %6834 = vmatpush.bf16.msra.mxu0 %v10104_v25  ;;  %6863 = vmatpush.bf16.msra.mxu1 %v10360_v19  ;;  %v10464_v17 = vor.u32 %v11164_v47, %v10463_v48  ;;  %v11092_v4 = vld [vmem:[#allocation7 + $0x134] sm:$0xf0]  ;;  %v10145_v38 = vld [vmem:[#allocation7 + $0xf8] sm:$0xf0] }
 0xa77   :  { %6892 = vmatpush.bf16.msrb.mxu2 %v10108_v62  ;;  %6921 = vmatpush.bf16.msrb.mxu3 %v10364_v7  ;;  %v11108_v62 = vld [vmem:[#allocation7 + $0x1b4] sm:$0xf0] }
 0xa78   :  { %6620 = vmatmul.bf16.gmra.mxu0 %v13560_v27  ;;  %6649 = vmatmul.bf16.gmra.mxu1 %v13562_v22  ;;  %v10495_v7 = vld [vmem:[#allocation7 + $0x398] sm:$0xf]  ;;  %v10240_v39 = vor.u32 %v11108_v62, %v10239_v29 }
 0xa79   :  { %6678 = vmatmul.bf16.gmra.mxu2 %v13560_v27  ;;  %6707 = vmatmul.bf16.gmra.mxu3 %v13562_v22  ;;  %v10496_v10 = vor.u32 %v11172_v54, %v10495_v7  ;;  %v10431_v43 = vld [vmem:[#allocation7 + $0x318] sm:$0xf]  ;;  %v11080_v54 = vld [vmem:[#allocation7 + $0xdc] sm:$0xf] }
 0xa7a   :  { %6835 = vmatpush.bf16.msra.mxu0 %v10072_v37  ;;  %6864 = vmatpush.bf16.msra.mxu1 %v10328_v30  ;;  %v11168_v37 = vld [vmem:[#allocation7 + $0x39c] sm:$0xf]  ;;  %v11084_v29 = vld [vmem:[#allocation7 + $0xf4] sm:$0xf0] }
 0xa7b   :  { %6893 = vmatpush.bf16.msrb.mxu2 %v10076_v15  ;;  %6922 = vmatpush.bf16.msrb.mxu3 %v10332_v51  ;;  %v10497_v30 = vld [vmem:[#allocation7 + $0x3b8] sm:$0xf0]  ;;  %v10207_v15 = vld [vmem:[#allocation7 + $0x158] sm:$0xf] }
 0xa7c   :  { %v10500_v51 = vor.u32 %v11168_v37, %v10497_v30  ;;  %v10399_v62 = vld [vmem:[#allocation7 + $0x2d8] sm:$0xf]  ;;  %v10401_v37 = vld [vmem:[#allocation7 + $0x2f8] sm:$0xf0] }
 0xa7e   :  { %6836 = vmatpush.bf16.msra.mxu0 %v10040_v42  ;;  %6865 = vmatpush.bf16.msra.mxu1 %v10296_v52  ;;  %v10208_v42 = vor.u32 %v11100_v63, %v10207_v15  ;;  %v11160_v52 = vld [vmem:[#allocation7 + $0x35c] sm:$0xf] }
 0xa7f   :  { %6894 = vmatpush.bf16.msrb.mxu2 %v10044_v5  ;;  %6923 = vmatpush.bf16.msrb.mxu3 %v10300_v23  ;;  %v10212_v5 = vor.u32 %v11096_v33, %v10209_v34  ;;  %v11076_v33 = vld [vmem:[#allocation7 + $0xb4] sm:$0xf0] }
 0xa80   :  { %v10367_v34 = vld [vmem:[#allocation7 + $0x298] sm:$0xf] }
 0xa88   :  { %6721 = vmatmul.bf16.vlgmr.msrb.gmra.mxu0 %v13500_v31  ;;  %6750 = vmatmul.bf16.vlgmr.msrb.gmra.mxu1 %v13502_v26 }
 0xa89   :  { %6779 = vmatmul.bf16.vlgmr.msra.gmra.mxu2 %v13500_v31  ;;  %6808 = vmatmul.bf16.vlgmr.msra.gmra.mxu3 %v13502_v26 }
 0xa8a   :  { %6945 = vmatpush.bf16.msrb.mxu0 %v10272_v45  ;;  %6974 = vmatpush.bf16.msrb.mxu1 %v10528_v9  ;;  %v10175_v45 = vld [vmem:[#allocation7 + $0x118] sm:$0xf] }
 0xa8b   :  { %7003 = vmatpush.bf16.msra.mxu2 %v10276_v32  ;;  %7032 = vmatpush.bf16.msra.mxu3 %v10532_v41  ;;  %v10176_v8 = vor.u32 %v11092_v4, %v10175_v45  ;;  %v11156_v9 = vld [vmem:[#allocation7 + $0x334] sm:$0xf0]  ;;  %v11088_v32 = vld [vmem:[#allocation7 + $0x11c] sm:$0xf] }
 0xa8c   :  { %v10432_v59 = vor.u32 %v11156_v9, %v10431_v43  ;;  %v10433_v41 = vld [vmem:[#allocation7 + $0x338] sm:$0xf0]  ;;  %v10079_v45 = vld [vmem:[#allocation7 + $0x58] sm:$0xf] }
 0xa8d   :  { %v11068_v43 = vld [vmem:[#allocation7 + $0x74] sm:$0xf0] }
 0xa8e   :  { %6946 = vmatpush.bf16.msrb.mxu0 %v10240_v39  ;;  %6975 = vmatpush.bf16.msrb.mxu1 %v10496_v10  ;;  %v11148_v39 = vld [vmem:[#allocation7 + $0x2f4] sm:$0xf0]  ;;  %v10148_v10 = vor.u32 %v11080_v54, %v10145_v38 }
 0xa8f   :  { %7004 = vmatpush.bf16.msra.mxu2 %v10244_v49  ;;  %7033 = vmatpush.bf16.msra.mxu3 %v10500_v51  ;;  %v10400_v3 = vor.u32 %v11148_v39, %v10399_v62  ;;  %v11144_v49 = vld [vmem:[#allocation7 + $0x2dc] sm:$0xf]  ;;  %v11132_v9 = vld [vmem:[#allocation7 + $0x274] sm:$0xf0] }
 0xa90   :  { %v10404_v51 = vor.u32 %v11144_v49, %v10401_v37  ;;  %v10303_v49 = vld [vmem:[#allocation7 + $0x218] sm:$0xf] }
 0xa92   :  { %6947 = vmatpush.bf16.msrb.mxu0 %v10208_v42  ;;  %6976 = vmatpush.bf16.msrb.mxu1 %v10464_v17  ;;  %v10111_v17 = vld [vmem:[#allocation7 + $0x98] sm:$0xf] }
 0xa93   :  { %7005 = vmatpush.bf16.msra.mxu2 %v10212_v5  ;;  %v11140_v5 = vld [vmem:[#allocation7 + $0x2b4] sm:$0xf0] }
 0xa96   :  { %6948 = vmatpush.bf16.msrb.mxu0 %v10176_v8  ;;  %6977 = vmatpush.bf16.msrb.mxu1 %v10432_v59  ;;  %v10335_v8 = vld [vmem:[#allocation7 + $0x258] sm:$0xf]  ;;  %v11064_v59 = vld [vmem:[#allocation7 + $0x5c] sm:$0xf] }
 0xa98   :  { %6726 = vmatmul.bf16.gmra.mxu0 %v13520_v18  ;;  %6755 = vmatmul.bf16.gmra.mxu1 %v13522_v56 }
 0xa99   :  { %6784 = vmatmul.bf16.gmra.mxu2 %v13520_v18  ;;  %6813 = vmatmul.bf16.gmra.mxu3 %v13522_v56 }
 0xa9a   :  { %6978 = vmatpush.bf16.msrb.mxu1 %v10400_v3  ;;  %v10047_v3 = vld [vmem:[#allocation7 + $0x18] sm:$0xf] }
 0xaa8   :  { %6731 = vmatmul.bf16.gmra.mxu0 %v13540_v61  ;;  %6760 = vmatmul.bf16.gmra.mxu1 %v13542_v50 }
 0xaa9   :  { %6789 = vmatmul.bf16.gmra.mxu2 %v13540_v61  ;;  %6818 = vmatmul.bf16.gmra.mxu3 %v13542_v50 }
 0xab8   :  { %6736 = vmatmul.bf16.gmra.mxu0 %v13560_v27  ;;  %6765 = vmatmul.bf16.gmra.mxu1 %v13562_v22 }
 0xab9   :  { %6794 = vmatmul.bf16.gmra.mxu2 %v13560_v27  ;;  %6823 = vmatmul.bf16.gmra.mxu3 %v13562_v22 }
 0xac5   :  { %v6606_v46 = vpop.f32.mrf.mxu0  ;;  %v6635_v44 = vpop.f32.mrf.mxu1 }
 0xac6   :  { %v13584_v2 = vadd.f32 %v6635_v44, %v6606_v46  ;;  %v10468_v46 = vor.u32 %v11160_v52, %v10465_v14  ;;  %v10112_v52 = vor.u32 %v11076_v33, %v10111_v17  ;;  %v11072_v14 = vld [vmem:[#allocation7 + $0x9c] sm:$0xf] }
 0xac7   :  { %v11120_v17 = vld [vmem:[#allocation7 + $0x21c] sm:$0xf] }
 0xac8   :  { %6837 = vmatmul.bf16.vlgmr.msra.gmra.mxu0 %v13500_v31  ;;  %6866 = vmatmul.bf16.vlgmr.msra.gmra.mxu1 %v13502_v26  ;;  %v10305_v33 = vld [vmem:[#allocation7 + $0x238] sm:$0xf0] }
 0xac9   :  { %6895 = vmatmul.bf16.vlgmr.msrb.gmra.mxu2 %v13500_v31  ;;  %6924 = vmatmul.bf16.vlgmr.msrb.gmra.mxu3 %v13502_v26 }
 0xaca   :  { %7034 = vmatpush.bf16.msra.mxu3 %v10468_v46 }
 0xacc   :  { %v6664_v28 = vpop.f32.mrf.mxu2  ;;  %v6693_v0 = vpop.f32.mrf.mxu3 }
 0xacd   :  { %v13590_v25 = vadd.f32 %v6693_v0, %v6664_v28  ;;  %v6608_v19 = vpop.f32.mrf.mxu0  ;;  %v6637_v36 = vpop.f32.mrf.mxu1  ;;  %v10180_v28 = vor.u32 %v11088_v32, %v10177_v12  ;;  %v11152_v0 = vld [vmem:[#allocation7 + $0x31c] sm:$0xf]  ;;  %v10080_v32 = vor.u32 %v11068_v43, %v10079_v45  ;;  %v10336_v12 = vor.u32 %v11132_v9, %v10335_v8 }
 0xace   :  { %v13592_v21 = vadd.f32 %v6637_v36, %v6608_v19  ;;  %v10436_v19 = vor.u32 %v11152_v0, %v10433_v41  ;;  %v10143_v36 = vld [vmem:[#allocation7 + $0xd8] sm:$0xf]  ;;  %v11128_v0 = vld [vmem:[#allocation7 + $0x25c] sm:$0xf] }
 0xacf   :  { %14645 = vst [vmem:[#allocation13_spill] sm:$0xff] %v13590_v25  ;;  %v10144_v7 = vor.u32 %v11084_v29, %v10143_v36  ;;  %7006 = vmatpush.bf16.msra.mxu2 %v10180_v28  ;;  %v10081_v28 = vld [vmem:[#allocation7 + $0x78] sm:$0xf0] }
 0xad0   :  { %7035 = vmatpush.bf16.msra.mxu3 %v10436_v19  ;;  %v10084_v41 = vor.u32 %v11064_v59, %v10081_v28  ;;  %v10337_v19 = vld [vmem:[#allocation7 + $0x278] sm:$0xf0] }
 0xad1   :  { %6949 = vmatpush.bf16.msrb.mxu0 %v10144_v7  ;;  %v10340_v62 = vor.u32 %v11128_v0, %v10337_v19 }
 0xad3   :  { %7007 = vmatpush.bf16.msra.mxu2 %v10148_v10  ;;  %v11060_v10 = vld [vmem:[#allocation7 + $0x34] sm:$0xf0] }
 0xad4   :  { %v6666_v57 = vpop.f32.mrf.mxu2  ;;  %v6695_v23 = vpop.f32.mrf.mxu3  ;;  %7036 = vmatpush.bf16.msra.mxu3 %v10404_v51  ;;  %v10048_v37 = vor.u32 %v11060_v10, %v10047_v3  ;;  %v10049_v51 = vld [vmem:[#allocation7 + $0x38] sm:$0xf0] }
 0xad5   :  { %v13594_v44 = vadd.f32 %v6695_v23, %v6666_v57  ;;  %v6611_v6 = vpop.f32.mrf.mxu0  ;;  %v6640_v11 = vpop.f32.mrf.mxu1  ;;  %v10113_v57 = vld [vmem:[#allocation7 + $0xb8] sm:$0xf0]  ;;  %v10368_v23 = vor.u32 %v11140_v5, %v10367_v34  ;;  %6950 = vmatpush.bf16.msrb.mxu0 %v10112_v52  ;;  %v10308_v34 = vor.u32 %v11120_v17, %v10305_v33 }
 0xad6   :  { %v13596_v24 = vadd.f32 %v6640_v11, %v6611_v6  ;;  %v10116_v46 = vor.u32 %v11072_v14, %v10113_v57  ;;  %v11136_v6 = vld [vmem:[#allocation7 + $0x29c] sm:$0xf] }
 0xad7   :  { %14646 = vst [vmem:[#allocation15_spill] sm:$0xff] %v13594_v44  ;;  %v10369_v11 = vld [vmem:[#allocation7 + $0x2b8] sm:$0xf0]  ;;  %6979 = vmatpush.bf16.msrb.mxu1 %v10368_v23 }
 0xad8   :  { %6842 = vmatmul.bf16.gmra.mxu0 %v13520_v18  ;;  %6871 = vmatmul.bf16.gmra.mxu1 %v13522_v56  ;;  %v10372_v4 = vor.u32 %v11136_v6, %v10369_v11 }
 0xad9   :  { %6900 = vmatmul.bf16.gmra.mxu2 %v13520_v18  ;;  %6929 = vmatmul.bf16.gmra.mxu3 %v13522_v56 }
 0xada   :  { %7008 = vmatpush.bf16.msra.mxu2 %v10116_v46  ;;  %7037 = vmatpush.bf16.msra.mxu3 %v10372_v4 }
 0xadb   :  { %6951 = vmatpush.bf16.msrb.mxu0 %v10080_v32  ;;  %6980 = vmatpush.bf16.msrb.mxu1 %v10336_v12 }
 0xadc   :  { %v6669_v30 = vpop.f32.mrf.mxu2  ;;  %v6698_v15 = vpop.f32.mrf.mxu3 }
 0xadd   :  { %v13602_v63 = vadd.f32 %v6698_v15, %v6669_v30  ;;  %v6613_v48 = vpop.f32.mrf.mxu0  ;;  %v6642_v47 = vpop.f32.mrf.mxu1  ;;  %v11124_v30 = vld [vmem:[#allocation7 + $0x234] sm:$0xf0]  ;;  %v11056_v15 = vld [vmem:[#allocation7 + $0x1c] sm:$0xf] }
 0xade   :  { %v13604_v42 = vadd.f32 %v6642_v47, %v6613_v48  ;;  %7009 = vmatpush.bf16.msra.mxu2 %v10084_v41  ;;  %7038 = vmatpush.bf16.msra.mxu3 %v10340_v62  ;;  %v10304_v48 = vor.u32 %v11124_v30, %v10303_v49  ;;  %v10052_v47 = vor.u32 %v11056_v15, %v10049_v51 }
 0xadf   :  { %6952 = vmatpush.bf16.msrb.mxu0 %v10048_v37 }
 0xae0   :  { %6981 = vmatpush.bf16.msrb.mxu1 %v10304_v48 }
 0xae2   :  { %7010 = vmatpush.bf16.msra.mxu2 %v10052_v47  ;;  %7039 = vmatpush.bf16.msra.mxu3 %v10308_v34 }
 0xae4   :  { %v6671_v36 = vpop.f32.mrf.mxu2  ;;  %v6700_v29 = vpop.f32.mrf.mxu3 }
 0xae5   :  { %v13606_v7 = vadd.f32 %v6700_v29, %v6671_v36  ;;  %v6616_v39 = vpop.f32.mrf.mxu0  ;;  %v6645_v54 = vpop.f32.mrf.mxu1 }
 0xae6   :  { %v13608_v38 = vadd.f32 %v6645_v54, %v6616_v39 }
 0xae8   :  { %6847 = vmatmul.bf16.gmra.mxu0 %v13540_v61  ;;  %6876 = vmatmul.bf16.gmra.mxu1 %v13542_v50 }
 0xae9   :  { %6905 = vmatmul.bf16.gmra.mxu2 %v13540_v61  ;;  %6934 = vmatmul.bf16.gmra.mxu3 %v13542_v50 }
 0xaec   :  { %v6674_v52 = vpop.f32.mrf.mxu2  ;;  %v6703_v5 = vpop.f32.mrf.mxu3 }
 0xaed   :  { %v13614_v14 = vadd.f32 %v6703_v5, %v6674_v52  ;;  %v6618_v57 = vpop.f32.mrf.mxu0  ;;  %v6647_v23 = vpop.f32.mrf.mxu1 }
 0xaee   :  { %v13616_v46 = vadd.f32 %v6647_v23, %v6618_v57 }
 0xaf4   :  { %v6676_v6 = vpop.f32.mrf.mxu2  ;;  %v6705_v11 = vpop.f32.mrf.mxu3 }
 0xaf5   :  { %v13618_v45 = vadd.f32 %v6705_v11, %v6676_v6  ;;  %v6621_v4 = vpop.f32.mrf.mxu0  ;;  %v6650_v43 = vpop.f32.mrf.mxu1 }
 0xaf6   :  { %v13620_v8 = vadd.f32 %v6650_v43, %v6621_v4 }
 0xaf8   :  { %6852 = vmatmul.bf16.gmra.mxu0 %v13560_v27  ;;  %6881 = vmatmul.bf16.gmra.mxu1 %v13562_v22 }
 0xaf9   :  { %6910 = vmatmul.bf16.gmra.mxu2 %v13560_v27  ;;  %6939 = vmatmul.bf16.gmra.mxu3 %v13562_v22 }
 0xafc   :  { %v6679_v9 = vpop.f32.mrf.mxu2  ;;  %v6708_v32 = vpop.f32.mrf.mxu3 }
 0xafd   :  { %v13626_v12 = vadd.f32 %v6708_v32, %v6679_v9  ;;  %v6623_v59 = vpop.f32.mrf.mxu0  ;;  %v6652_v28 = vpop.f32.mrf.mxu1 }
 0xafe   :  { %v13628_v0 = vadd.f32 %v6652_v28, %v6623_v59 }
 0xb04   :  { %v6681_v41 = vpop.f32.mrf.mxu2  ;;  %v6710_v19 = vpop.f32.mrf.mxu3 }
 0xb05   :  { %v13630_v36 = vadd.f32 %v6710_v19, %v6681_v41  ;;  %v13632_v29 = vpop.f32.mrf.mxu0  ;;  %v13634_v62 = vpop.f32.mrf.mxu1 }
 0xb08   :  { %6953 = vmatmul.bf16.vlgmr.msrb.gmra.mxu0 %v13500_v31  ;;  %6982 = vmatmul.bf16.vlgmr.msrb.gmra.mxu1 %v13502_v26 }
 0xb09   :  { %7011 = vmatmul.bf16.vlgmr.msra.gmra.mxu2 %v13500_v31  ;;  %7040 = vmatmul.bf16.vlgmr.msra.gmra.mxu3 %v13502_v26 }
 0xb0c   :  { %v13640_v39 = vpop.f32.mrf.mxu2  ;;  %v13642_v54 = vpop.f32.mrf.mxu3 }
 0xb0d   :  { %v6724_v3 = vpop.f32.mrf.mxu0  ;;  %v6753_v10 = vpop.f32.mrf.mxu1 }
 0xb14   :  { %v13644_v49 = vpop.f32.mrf.mxu2  ;;  %v13646_v37 = vpop.f32.mrf.mxu3 }
 0xb15   :  { %v6727_v30 = vpop.f32.mrf.mxu0  ;;  %v6756_v15 = vpop.f32.mrf.mxu1 }
 0xb16   :  { %v6757_v44 = vadd.f32 %v6756_v15, %v6727_v30 }
 0xb18   :  { %6958 = vmatmul.bf16.gmra.mxu0 %v13520_v18  ;;  %6987 = vmatmul.bf16.gmra.mxu1 %v13522_v56 }
 0xb19   :  { %7016 = vmatmul.bf16.gmra.mxu2 %v13520_v18  ;;  %7045 = vmatmul.bf16.gmra.mxu3 %v13522_v56 }
 0xb1c   :  { %v6785_v31 = vpop.f32.mrf.mxu2  ;;  %v6814_v26 = vpop.f32.mrf.mxu3 }
 0xb1d   :  { %v6729_v51 = vpop.f32.mrf.mxu0  ;;  %v6758_v48 = vpop.f32.mrf.mxu1  ;;  %v6815_v30 = vadd.f32 %v6814_v26, %v6785_v31 }
 0xb24   :  { %v6787_v47 = vpop.f32.mrf.mxu2  ;;  %v6816_v17 = vpop.f32.mrf.mxu3 }
 0xb25   :  { %v6732_v33 = vpop.f32.mrf.mxu0  ;;  %v6761_v34 = vpop.f32.mrf.mxu1 }
 0xb26   :  { %v6762_v28 = vadd.f32 %v6761_v34, %v6732_v33  ;;  %v6752_v33 = vadd.f32 %v13634_v62, %v13632_v29  ;;  %v6810_v29 = vadd.f32 %v13642_v54, %v13640_v39 }
 0xb28   :  { %6963 = vmatmul.bf16.gmra.mxu0 %v13540_v61  ;;  %6992 = vmatmul.bf16.gmra.mxu1 %v13542_v50 }
 0xb29   :  { %7021 = vmatmul.bf16.gmra.mxu2 %v13540_v61  ;;  %7050 = vmatmul.bf16.gmra.mxu3 %v13542_v50 }
 0xb2c   :  { %v6790_v52 = vpop.f32.mrf.mxu2  ;;  %v6819_v18 = vpop.f32.mrf.mxu3 }
 0xb2d   :  { %v6734_v5 = vpop.f32.mrf.mxu0  ;;  %v6763_v56 = vpop.f32.mrf.mxu1 }
 0xb2e   :  { %v6764_v59 = vadd.f32 %v6763_v56, %v6734_v5  ;;  %v6820_v5 = vadd.f32 %v6819_v18, %v6790_v52 }
 0xb34   :  { %v6792_v57 = vpop.f32.mrf.mxu2  ;;  %v6821_v23 = vpop.f32.mrf.mxu3 }
 0xb35   :  { %v6737_v6 = vpop.f32.mrf.mxu0  ;;  %v6766_v11 = vpop.f32.mrf.mxu1 }
 0xb36   :  { %v6767_v32 = vadd.f32 %v6766_v11, %v6737_v6  ;;  %v6754_v6 = vadd.f32 %v6753_v10, %v6724_v3 }
 0xb38   :  { %6968 = vmatmul.bf16.gmra.mxu0 %v13560_v27  ;;  %6997 = vmatmul.bf16.gmra.mxu1 %v13562_v22 }
 0xb39   :  { %7026 = vmatmul.bf16.gmra.mxu2 %v13560_v27  ;;  %7055 = vmatmul.bf16.gmra.mxu3 %v13562_v22  ;;  %v6759_v27 = vadd.f32 %v6758_v48, %v6729_v51  ;;  %v6817_v51 = vadd.f32 %v6816_v17, %v6787_v47 }
 0xb3c   :  { %v6795_v4 = vpop.f32.mrf.mxu2  ;;  %v6824_v61 = vpop.f32.mrf.mxu3 }
 0xb3d   :  { %v6739_v43 = vpop.f32.mrf.mxu0  ;;  %v6768_v50 = vpop.f32.mrf.mxu1  ;;  %v6825_v22 = vadd.f32 %v6824_v61, %v6795_v4 }
 0xb3e   :  { %v6769_v9 = vadd.f32 %v6768_v50, %v6739_v43  ;;  %v6822_v43 = vadd.f32 %v6821_v23, %v6792_v57 }
 0xb40   :  { %7393 = vmatpush.msrb.mxu2 %v6769_v9 }
 0xb42   :  { %7394 = vmatpush.msrb.mxu2 %v6767_v32 }
 0xb44   :  { %v6797_v41 = vpop.f32.mrf.mxu2  ;;  %v6826_v19 = vpop.f32.mrf.mxu3  ;;  %7395 = vmatpush.msrb.mxu2 %v6764_v59 }
 0xb45   :  { %v6827_v55 = vadd.f32 %v6826_v19, %v6797_v41  ;;  %v13660_v1 = vpop.f32.mrf.mxu0  ;;  %v13662_v25 = vpop.f32.mrf.mxu1 }
 0xb46   :  { %7396 = vmatpush.msrb.mxu2 %v6762_v28 }
 0xb47   :  { %7458 = vmatpush.msrb.mxu3 %v6827_v55 }
 0xb48   :  { %7397 = vmatpush.msrb.mxu2 %v6759_v27 }
 0xb49   :  { %7459 = vmatpush.msrb.mxu3 %v6825_v22 }
 0xb4a   :  { %7398 = vmatpush.msrb.mxu2 %v6757_v44  ;;  %v6812_v44 = vadd.f32 %v13646_v37, %v13644_v49 }
 0xb4b   :  { %7460 = vmatpush.msrb.mxu3 %v6822_v43 }
 0xb4c   :  { %v13666_v34 = vpop.f32.mrf.mxu2  ;;  %v13668_v56 = vpop.f32.mrf.mxu3  ;;  %7399 = vmatpush.msrb.mxu2 %v6754_v6 }
 0xb4d   :  { %7461 = vmatpush.msrb.mxu3 %v6820_v5  ;;  %v13670_v48 = vpop.f32.mrf.mxu0  ;;  %v13672_v55 = vpop.f32.mrf.mxu1 }
 0xb4e   :  { %7400 = vmatpush.msrb.mxu2 %v6752_v33  ;;  %v6870_v33 = vadd.f32 %v13672_v55, %v13670_v48  ;;  %v6926_v55 = vadd.f32 %v13668_v56, %v13666_v34 }
 0xb4f   :  { %7462 = vmatpush.msrb.mxu3 %v6817_v51  ;;  %10565 = vmatmul.msk.f32.vlgmr.msrb.gmra.mxu2 %vm14647_vm5, %v11994_v16  ;;  %vm14654_vm5 = vmmov %vm14652_vm0 }
 0xb51   :  { %7463 = vmatpush.msrb.mxu3 %v6815_v30  ;;  %v6868_v30 = vadd.f32 %v13662_v25, %v13660_v1  ;;  %v14662_v1 = vld [vmem:[#allocation48_spill] sm:$0xff] }
 0xb53   :  { %7464 = vmatpush.msrb.mxu3 %v6812_v44 }
 0xb54   :  { %v13680_v62 = vpop.f32.mrf.mxu2  ;;  %v13682_v3 = vpop.f32.mrf.mxu3 }
 0xb55   :  { %7465 = vmatpush.msrb.mxu3 %v6810_v29  ;;  %v6843_v10 = vpop.f32.mrf.mxu0  ;;  %v6872_v15 = vpop.f32.mrf.mxu1  ;;  %v6928_v25 = vadd.f32 %v13682_v3, %v13680_v62  ;;  %v14675_v62 = vld [vmem:[#allocation28_spill] sm:$0xff] }
 0xb56   :  { %10581 = vmatmul.msk.f32.vlgmr.msrb.gmra.mxu3 %vm14648_vm10, %v11994_v16  ;;  %vm14655_vm10 = vmmov %vm14652_vm0  ;;  %v6873_v6 = vadd.f32 %v6872_v15, %v6843_v10 }
 0xb57   :  { %10566 = vmatmul.msk.f32.gmra.mxu2 %vm14649_vm8, %v12003_v20  ;;  %vm14656_vm8 = vmmov %vm14652_vm0 }
 0xb5c   :  { %v13688_v31 = vpop.f32.mrf.mxu2  ;;  %v13690_v49 = vpop.f32.mrf.mxu3 }
 0xb5d   :  { %v6845_v37 = vpop.f32.mrf.mxu0  ;;  %v6874_v39 = vpop.f32.mrf.mxu1  ;;  %v6931_v48 = vadd.f32 %v13690_v49, %v13688_v31  ;;  %v14676_v49 = vmov 0.0  }
 0xb5e   :  { %10582 = vmatmul.msk.f32.gmra.mxu3 %vm14650_vm12, %v12003_v20  ;;  %vm14657_vm12 = vmmov %vm14652_vm0  ;;  %v6875_v43 = vadd.f32 %v6874_v39, %v6845_v37 }
 0xb5f   :  { %10567 = vmatmul.msk.f32.gmra.mxu2 %vm14651_vm7, %v12354_v40  ;;  %vm14658_vm7 = vmmov %vm14652_vm0 }
 0xb64   :  { %v6903_v54 = vpop.f32.mrf.mxu2  ;;  %v6932_v26 = vpop.f32.mrf.mxu3 }
 0xb65   :  { %v6848_v47 = vpop.f32.mrf.mxu0  ;;  %v6877_v17 = vpop.f32.mrf.mxu1  ;;  %v6933_v29 = vadd.f32 %v6932_v26, %v6903_v54 }
 0xb66   :  { %10583 = vmatmul.msk.f32.gmra.mxu3 %vm14652_vm0, %v12354_v40  ;;  %v6878_v28 = vadd.f32 %v6877_v17, %v6848_v47  ;;  %v14679_v47 = vld [vmem:[#allocation56_spill] sm:$0xff]  ;;  %v14681_v17 = vld [vmem:[#allocation26_spill] sm:$0xff] }
 0xb67   :  { %10568 = vmatmul.msk.f32.gmra.mxu2 %vm14653_vm13, %v12365_v60  ;;  %vm14659_vm13 = vmmov %vm14652_vm0 }
 0xb6c   :  { %v6906_v16 = vpop.f32.mrf.mxu2  ;;  %v6935_v52 = vpop.f32.mrf.mxu3 }
 0xb6d   :  { %v6850_v18 = vpop.f32.mrf.mxu0  ;;  %v6879_v57 = vpop.f32.mrf.mxu1  ;;  %v6936_v51 = vadd.f32 %v6935_v52, %v6906_v16 }
 0xb6e   :  { %10584 = vmatmul.msk.f32.gmra.mxu3 %vm14654_vm5, %v12365_v60  ;;  %v6880_v59 = vadd.f32 %v6879_v57, %v6850_v18  ;;  %vm14660_vm5 = vmmov %vm14652_vm0 }
 0xb6f   :  { %10569 = vmatmul.msk.f32.gmra.mxu2 %vm14655_vm10, %v12852_v58  ;;  %vm14661_vm10 = vmmov %vm14652_vm0 }
 0xb74   :  { %v6908_v20 = vpop.f32.mrf.mxu2  ;;  %v6937_v23 = vpop.f32.mrf.mxu3 }
 0xb75   :  { %v6853_v11 = vpop.f32.mrf.mxu0  ;;  %v6882_v4 = vpop.f32.mrf.mxu1  ;;  %v6938_v5 = vadd.f32 %v6937_v23, %v6908_v20  ;;  %v14685_v23 = vld [vmem:[#allocation57_spill] sm:$0xff] }
 0xb76   :  { %10585 = vmatmul.msk.f32.gmra.mxu3 %vm14656_vm8, %v12852_v58  ;;  %v6883_v60 = vadd.f32 %v6882_v4, %v6853_v11  ;;  %vm14663_vm8 = vmmov %vm14652_vm0  ;;  %v14687_v11 = vld [vmem:[#allocation24_spill] sm:$0xff] }
 0xb77   :  { %10570 = vmatmul.msk.f32.gmra.mxu2 %vm14657_vm12, %v12879_v53  ;;  %vm14664_vm12 = vmmov %vm14652_vm0 }
 0xb7c   :  { %v6911_v40 = vpop.f32.mrf.mxu2  ;;  %v6940_v61 = vpop.f32.mrf.mxu3 }
 0xb7d   :  { %v6855_v50 = vpop.f32.mrf.mxu0  ;;  %v6884_v9 = vpop.f32.mrf.mxu1 }
 0xb7e   :  { %v6885_v32 = vadd.f32 %v6884_v9, %v6855_v50  ;;  %10586 = vmatmul.msk.f32.gmra.mxu3 %vm14658_vm7, %v12879_v53  ;;  %v6941_v53 = vadd.f32 %v6940_v61, %v6911_v40  ;;  %vm14666_vm7 = vmmov %vm14652_vm0 }
 0xb7f   :  { %10571 = vmatmul.msk.f32.gmra.mxu2 %vm14652_vm0, %v12898_v35 }
 0xb80   :  { %7223 = vmatpush.msra.mxu0 %v6885_v32 }
 0xb82   :  { %7224 = vmatpush.msra.mxu0 %v6883_v60  ;;  %v14691_v60 = vld [vmem:[#allocation58_spill] sm:$0xff] }
 0xb84   :  { %v6913_v58 = vpop.f32.mrf.mxu2  ;;  %v6942_v41 = vpop.f32.mrf.mxu3  ;;  %7225 = vmatpush.msra.mxu0 %v6880_v59  ;;  %v14693_v59 = vld [vmem:[#allocation22_spill] sm:$0xff] }
 0xb85   :  { %v6943_v19 = vadd.f32 %v6942_v41, %v6913_v58  ;;  %v13712_v27 = vpop.f32.mrf.mxu0  ;;  %v13714_v22 = vpop.f32.mrf.mxu1 }
 0xb86   :  { %7226 = vmatpush.msra.mxu0 %v6878_v28  ;;  %10587 = vmatmul.msk.f32.gmra.mxu3 %vm14659_vm13, %v12898_v35  ;;  %vm14668_vm13 = vmmov %vm14652_vm0 }
 0xb87   :  { %7288 = vmatpush.msra.mxu1 %v6943_v19  ;;  %10572 = vmatmul.msk.f32.gmra.mxu2 %vm14660_vm5, %v12911_v13  ;;  %vm14671_vm5 = vmmov %vm14652_vm0 }
 0xb88   :  { %7227 = vmatpush.msra.mxu0 %v6875_v43 }
 0xb89   :  { %7289 = vmatpush.msra.mxu1 %v6941_v53 }
 0xb8a   :  { %7228 = vmatpush.msra.mxu0 %v6873_v6 }
 0xb8b   :  { %7290 = vmatpush.msra.mxu1 %v6938_v5 }
 0xb8c   :  { %v13724_v44 = vpop.f32.mrf.mxu2  ;;  %v13726_v35 = vpop.f32.mrf.mxu3  ;;  %7229 = vmatpush.msra.mxu0 %v6870_v33 }
 0xb8d   :  { %7291 = vmatpush.msra.mxu1 %v6936_v51  ;;  %v13728_v10 = vpop.f32.mrf.mxu0  ;;  %v13730_v15 = vpop.f32.mrf.mxu1  ;;  %v14697_v51 = vld [vmem:[#allocation59_spill] sm:$0xff] }
 0xb8e   :  { %7230 = vmatpush.msra.mxu0 %v6868_v30  ;;  %10588 = vmatmul.msk.f32.gmra.mxu3 %vm14661_vm10, %v12911_v13  ;;  %vm14673_vm10 = vmmov %vm14652_vm0  ;;  %v14699_v30 = vld [vmem:[#allocation20_spill] sm:$0xff] }
 0xb8f   :  { %7292 = vmatpush.msra.mxu1 %v6933_v29  ;;  %10533 = vmatmul.msk.f32.vlgmr.msra.gmra.mxu0 %vm14663_vm8, %v14662_v1 }
 0xb90   :  { %7571 = vmatpush.msrb.mxu0 %v13628_v0 }
 0xb91   :  { %7293 = vmatpush.msra.mxu1 %v6931_v48 }
 0xb92   :  { %7572 = vmatpush.msrb.mxu0 %v13620_v8  ;;  %v14665_v8 = vld [vmem:[#allocation50_spill] sm:$0xff] }
 0xb93   :  { %7294 = vmatpush.msra.mxu1 %v6928_v25  ;;  %v6986_v25 = vadd.f32 %v13730_v15, %v13728_v10 }
 0xb94   :  { %v13744_v13 = vpop.f32.mrf.mxu2  ;;  %v13746_v37 = vpop.f32.mrf.mxu3  ;;  %7573 = vmatpush.msrb.mxu0 %v13616_v46 }
 0xb95   :  { %7295 = vmatpush.msra.mxu1 %v6926_v55  ;;  %v13749_v31 = vpop.f32.mrf.mxu0  ;;  %v13751_v0 = vpop.f32.mrf.mxu1 }
 0xb96   :  { %10549 = vmatmul.msk.f32.vlgmr.msra.gmra.mxu1 %vm14664_vm12, %v14662_v1  ;;  %7574 = vmatpush.msrb.mxu0 %v13608_v38  ;;  %vm14677_vm12 = vmmov %vm14652_vm0  ;;  %v6989_v29 = vadd.f32 %v13751_v0, %v13749_v31  ;;  %v14700_v1 = vld [vmem:[#allocation47_spill] sm:$0xff] }
 0xb97   :  { %7636 = vmatpush.msrb.mxu1 %v13630_v36  ;;  %10534 = vmatmul.msk.f32.gmra.mxu0 %vm14666_vm7, %v14665_v8  ;;  %vm14678_vm7 = vmmov %vm14652_vm0 }
 0xb98   :  { %7575 = vmatpush.msrb.mxu0 %v13604_v42  ;;  %v14669_v42 = vld [vmem:[#allocation15_spill] sm:$0xff] }
 0xb99   :  { %7637 = vmatpush.msrb.mxu1 %v13626_v12 }
 0xb9a   :  { %7576 = vmatpush.msrb.mxu0 %v13596_v24  ;;  %v14667_v24 = vld [vmem:[#allocation53_spill] sm:$0xff] }
 0xb9b   :  { %7638 = vmatpush.msrb.mxu1 %v13618_v45 }
 0xb9c   :  { %v13763_v46 = vpop.f32.mrf.mxu2  ;;  %v13765_v34 = vpop.f32.mrf.mxu3  ;;  %7577 = vmatpush.msrb.mxu0 %v13592_v21 }
 0xb9d   :  { %7639 = vmatpush.msrb.mxu1 %v13614_v14  ;;  %v6961_v38 = vpop.f32.mrf.mxu0  ;;  %v6990_v36 = vpop.f32.mrf.mxu1  ;;  %v14670_v14 = vld [vmem:[#allocation13_spill] sm:$0xff]  ;;  %v7047_v10 = vadd.f32 %v13765_v34, %v13763_v46  ;;  %v7042_v46 = vadd.f32 %v13726_v35, %v13724_v44 }
 0xb9e   :  { %10550 = vmatmul.msk.f32.gmra.mxu1 %vm14652_vm0, %v14665_v8  ;;  %7578 = vmatpush.msrb.mxu0 %v13584_v2  ;;  %v14672_v2 = vld [vmem:[#allocation55_spill] sm:$0xff]  ;;  %v6991_v5 = vadd.f32 %v6990_v36, %v6961_v38  ;;  %v6984_v38 = vadd.f32 %v13714_v22, %v13712_v27  ;;  %v14703_v27 = vld [vmem:[#allocation18_spill] sm:$0xff]  ;;  %v7044_v22 = vadd.f32 %v13746_v37, %v13744_v13  ;;  %v14708_v13 = vld [vmem:[#allocation16_spill] sm:$0xff] }
 0xb9f   :  { %7640 = vmatpush.msrb.mxu1 %v13606_v7  ;;  %10535 = vmatmul.msk.f32.gmra.mxu0 %vm14668_vm13, %v14667_v24  ;;  %v14674_v7 = vld [vmem:[#allocation46_spill] sm:$0xff]  ;;  %vm14680_vm13 = vmmov %vm14652_vm0 }
 0xba0   :  { %vm7102_vm8 = vcmp.eq.s32.totalorder %v14675_v62, %v14674_v7  ;;  %v14712_v37 = vld [vmem:[#allocation14_spill] sm:$0xff] }
 0xba1   :  { %7641 = vmatpush.msrb.mxu1 %v13602_v63  ;;  %v7110_v39 = vsel %vm7102_vm8, 1.0, %v14676_v49  ;;  %vm14683_vm8 = vmmov %vm14652_vm0 }
 0xba2   :  { %10573 = vmatmul.msk.f32.gmra.mxu2 %vm14677_vm12, %v7110_v39  ;;  %10589 = vmatmul.msk.f32.gmra.mxu3 %vm14678_vm7, %v7110_v39  ;;  %vm14684_vm12 = vmmov %vm14652_vm0 }
 0xba3   :  { %7642 = vmatpush.msrb.mxu1 %v14669_v42  ;;  %vm14686_vm7 = vmmov %vm14652_vm0 }
 0xba4   :  { %v13777_v45 = vpop.f32.mrf.mxu2  ;;  %v13779_v21 = vpop.f32.mrf.mxu3 }
 0xba5   :  { %7643 = vmatpush.msrb.mxu1 %v14670_v14  ;;  %v6964_v12 = vpop.f32.mrf.mxu0  ;;  %v6993_v56 = vpop.f32.mrf.mxu1  ;;  %v7049_v0 = vadd.f32 %v13779_v21, %v13777_v45  ;;  %v14718_v21 = vld [vmem:[#allocation51_spill] sm:$0xff] }
 0xba6   :  { %10551 = vmatmul.msk.f32.gmra.mxu1 %vm14671_vm5, %v14667_v24  ;;  %vm7103_vm5 = vcmp.eq.s32.totalorder %v14681_v17, %v14674_v7  ;;  %v6994_v19 = vadd.f32 %v6993_v56, %v6964_v12  ;;  %v14714_v24 = vld [vmem:[#allocation52_spill] sm:$0xff] }
 0xba7   :  { %10536 = vmatmul.msk.f32.gmra.mxu0 %vm14673_vm10, %v14672_v2  ;;  %v7111_v18 = vsel %vm7103_vm5, 1.0, %v14676_v49  ;;  %vm14682_vm10 = vmmov %vm14652_vm0 }
 0xba8   :  { %vm14689_vm5 = vmmov %vm14686_vm7 }
 0xbaa   :  { %10574 = vmatmul.msk.f32.gmra.mxu2 %vm14682_vm10, %v7111_v18  ;;  %10590 = vmatmul.msk.f32.gmra.mxu3 %vm14683_vm8, %v7111_v18  ;;  %vm14690_vm10 = vmmov %vm14689_vm5  ;;  %v14732_v18 = vld [vmem:[#allocation38_spill] sm:$0xff] }
 0xbab   :  { %vm14692_vm8 = vmmov %vm14689_vm5 }
 0xbac   :  { %v7022_v63 = vpop.f32.mrf.mxu2  ;;  %v7051_v3 = vpop.f32.mrf.mxu3 }
 0xbad   :  { %v6966_v54 = vpop.f32.mrf.mxu0  ;;  %v6995_v26 = vpop.f32.mrf.mxu1  ;;  %v7052_v8 = vadd.f32 %v7051_v3, %v7022_v63 }
 0xbae   :  { %10552 = vmatmul.msk.f32.gmra.mxu1 %vm14652_vm0, %v14672_v2  ;;  %vm7104_vm0 = vcmp.eq.s32.totalorder %v14687_v11, %v14674_v7  ;;  %v6996_v58 = vadd.f32 %v6995_v26, %v6966_v54 }
 0xbaf   :  { %10537 = vmatmul.msk.f32.gmra.mxu0 %vm14680_vm13, %v14679_v47  ;;  %v7112_v4 = vsel %vm7104_vm0, 1.0, %v14676_v49  ;;  %vm14688_vm13 = vmmov %vm14686_vm7 }
 0xbb0   :  { %vm14695_vm0 = vmmov %vm14689_vm5 }
 0xbb2   :  { %10575 = vmatmul.msk.f32.gmra.mxu2 %vm14688_vm13, %v7112_v4  ;;  %10591 = vmatmul.msk.f32.gmra.mxu3 %vm14689_vm5, %v7112_v4  ;;  %vm14696_vm13 = vmmov %vm14695_vm0 }
 0xbb4   :  { %v7024_v16 = vpop.f32.mrf.mxu2  ;;  %v7053_v52 = vpop.f32.mrf.mxu3 }
 0xbb5   :  { %v6969_v57 = vpop.f32.mrf.mxu0  ;;  %v6998_v20 = vpop.f32.mrf.mxu1  ;;  %v7054_v48 = vadd.f32 %v7053_v52, %v7024_v16 }
 0xbb6   :  { %10553 = vmatmul.msk.f32.gmra.mxu1 %vm14684_vm12, %v14679_v47  ;;  %vm7105_vm12 = vcmp.eq.s32.totalorder %v14693_v59, %v14674_v7  ;;  %v6999_v28 = vadd.f32 %v6998_v20, %v6969_v57 }
 0xbb7   :  { %10538 = vmatmul.msk.f32.gmra.mxu0 %vm14686_vm7, %v14685_v23  ;;  %v7113_v41 = vsel %vm7105_vm12, 1.0, %v14676_v49  ;;  %vm14694_vm7 = vmmov %vm14689_vm5 }
 0xbb8   :  { %vm14698_vm5 = vmmov %vm14695_vm0 }
 0xbb9   :  { %vm14701_vm12 = vmmov %vm14695_vm0 }
 0xbba   :  { %10576 = vmatmul.msk.f32.gmra.mxu2 %vm14694_vm7, %v7113_v41  ;;  %10592 = vmatmul.msk.f32.gmra.mxu3 %vm14695_vm0, %v7113_v41  ;;  %vm14702_vm7 = vmmov %vm14695_vm0  ;;  %v14743_v41 = vld [vmem:[#allocation34_spill] sm:$0xff] }
 0xbbc   :  { %v7027_v40 = vpop.f32.mrf.mxu2  ;;  %v7056_v61 = vpop.f32.mrf.mxu3 }
 0xbbd   :  { %v6971_v50 = vpop.f32.mrf.mxu0  ;;  %v7000_v9 = vpop.f32.mrf.mxu1  ;;  %v7057_v33 = vadd.f32 %v7056_v61, %v7027_v40  ;;  %v14737_v40 = vld [vmem:[#allocation49_spill] sm:$0xff]  ;;  %v14738_v61 = vld [vmem:[#allocation36_spill] sm:$0xff] }
 0xbbe   :  { %v7001_v32 = vadd.f32 %v7000_v9, %v6971_v50  ;;  %10554 = vmatmul.msk.f32.gmra.mxu1 %vm14690_vm10, %v14685_v23  ;;  %vm7106_vm10 = vcmp.eq.s32.totalorder %v14699_v30, %v14674_v7 }
 0xbbf   :  { %10539 = vmatmul.msk.f32.gmra.mxu0 %vm14692_vm8, %v14691_v60  ;;  %vm7118_vm8 = vcmp.eq.s32.totalorder %v14675_v62, %v14700_v1  ;;  %v7114_v55 = vsel %vm7106_vm10, 1.0, %v14676_v49  ;;  %vm7119_vm10 = vcmp.eq.s32.totalorder %v14681_v17, %v14700_v1 }
 0xbc0   :  { %7781 = vmatpush.msra.mxu2 %v7001_v32  ;;  %v7126_v31 = vsel %vm7118_vm8, 1.0, %v14676_v49  ;;  %v7127_v34 = vsel %vm7119_vm10, 1.0, %v14676_v49  ;;  %vm14705_vm8 = vmmov %vm14695_vm0 }
 0xbc2   :  { %7782 = vmatpush.msra.mxu2 %v6999_v28 }
 0xbc3   :  { %10577 = vmatmul.msk.f32.gmra.mxu2 %vm14701_vm12, %v7114_v55  ;;  %vm14706_vm12 = vmmov %vm14695_vm0 }
 0xbc4   :  { %v7029_v43 = vpop.f32.mrf.mxu2  ;;  %v7058_v53 = vpop.f32.mrf.mxu3  ;;  %7783 = vmatpush.msra.mxu2 %v6996_v58 }
 0xbc5   :  { %v7059_v6 = vadd.f32 %v7058_v53, %v7029_v43 }
 0xbc6   :  { %10555 = vmatmul.msk.f32.gmra.mxu1 %vm14696_vm13, %v14691_v60  ;;  %7784 = vmatpush.msra.mxu2 %v6994_v19  ;;  %vm7107_vm13 = vcmp.eq.s32.totalorder %v14703_v27, %v14674_v7 }
 0xbc7   :  { %7846 = vmatpush.msra.mxu3 %v7059_v6  ;;  %10540 = vmatmul.msk.f32.gmra.mxu0 %vm14698_vm5, %v14697_v51  ;;  %vm14704_vm5 = vmmov %vm14695_vm0  ;;  %v7115_v15 = vsel %vm7107_vm13, 1.0, %v14676_v49  ;;  %vm7120_vm13 = vcmp.eq.s32.totalorder %v14687_v11, %v14700_v1 }
 0xbc8   :  { %7785 = vmatpush.msra.mxu2 %v6991_v5  ;;  %10593 = vmatmul.msk.f32.gmra.mxu3 %vm14704_vm5, %v7114_v55  ;;  %v7128_v35 = vsel %vm7120_vm13, 1.0, %v14676_v49  ;;  %vm14709_vm10 = vmmov %vm14704_vm5 }
 0xbc9   :  { %7847 = vmatpush.msra.mxu3 %v7057_v33  ;;  %vm14710_vm3 = vmmov %vm14704_vm5 }
 0xbca   :  { %7786 = vmatpush.msra.mxu2 %v6989_v29  ;;  %vm14715_vm13 = vmmov %vm14710_vm3 }
 0xbcb   :  { %7848 = vmatpush.msra.mxu3 %v7054_v48  ;;  %10578 = vmatmul.msk.f32.gmra.mxu2 %vm14705_vm8, %v7115_v15  ;;  %vm14711_vm8 = vmmov %vm14710_vm3 }
 0xbcc   :  { %7787 = vmatpush.msra.mxu2 %v6986_v25 }
 0xbcd   :  { %7849 = vmatpush.msra.mxu3 %v7052_v8 }
 0xbce   :  { %10556 = vmatmul.msk.f32.gmra.mxu1 %vm14702_vm7, %v14697_v51  ;;  %7788 = vmatpush.msra.mxu2 %v6984_v38  ;;  %vm14707_vm7 = vmmov %vm14695_vm0  ;;  %v14748_v51 = vld [vmem:[#allocation32_spill] sm:$0xff]  ;;  %v14755_v38 = vld [vmem:[#allocation30_spill] sm:$0xff] }
 0xbcf   :  { %7850 = vmatpush.msra.mxu3 %v7049_v0  ;;  %10541 = vmatmul.msk.f32.gmra.mxu0 %vm14695_vm0, %v7126_v31  ;;  %vm7108_vm0 = vcmp.eq.s32.totalorder %v14708_v13, %v14674_v7 }
 0xbd0   :  { %10594 = vmatmul.msk.f32.gmra.mxu3 %vm14704_vm5, %v7115_v15  ;;  %v7116_v44 = vsel %vm7108_vm0, 1.0, %v14676_v49  ;;  %vm7121_vm5 = vcmp.eq.s32.totalorder %v14693_v59, %v14700_v1  ;;  %vm7142_vm0 = vcmp.ne.s32.totalorder %v14714_v24, 31 }
 0xbd1   :  { %7851 = vmatpush.msra.mxu3 %v7047_v10  ;;  %v7129_v42 = vsel %vm7121_vm5, 1.0, %v14676_v49  ;;  %vm14720_vm5 = vmmov %vm14710_vm3 }
 0xbd2   :  { %v13889_v56 = vpop.f32.mrf.mxu2 }
 0xbd3   :  { %7852 = vmatpush.msra.mxu3 %v7044_v22  ;;  %10579 = vmatmul.msk.f32.gmra.mxu2 %vm14709_vm10, %v7116_v44  ;;  %vm14716_vm10 = vmmov %vm14710_vm3 }
 0xbd5   :  { %7853 = vmatpush.msra.mxu3 %v7042_v46 }
 0xbd6   :  { %10557 = vmatmul.msk.f32.gmra.mxu1 %vm14706_vm12, %v7126_v31  ;;  %vm7109_vm12 = vcmp.eq.s32.totalorder %v14712_v37, %v14674_v7 }
 0xbd7   :  { %10542 = vmatmul.msk.f32.gmra.mxu0 %vm14707_vm7, %v7127_v34  ;;  %vm14713_vm7 = vmmov %vm14710_vm3  ;;  %v7117_v36 = vsel %vm7109_vm12, 1.0, %v14676_v49  ;;  %vm7122_vm12 = vcmp.eq.s32.totalorder %v14699_v30, %v14700_v1 }
 0xbd8   :  { %10595 = vmatmul.msk.f32.gmra.mxu3 %vm14713_vm7, %v7116_v44  ;;  %vm14719_vm7 = vmmov %vm14710_vm3  ;;  %v7130_v12 = vsel %vm7122_vm12, 1.0, %v14676_v49 }
 0xbd9   :  { %v13902_v3 = vpop.f32.mrf.mxu3  ;;  %vm14725_vm12 = vmmov %vm14710_vm3 }
 0xbda   :  { %v13906_v39 = vpop.f32.mrf.mxu2 }
 0xbdb   :  { %10580 = vmatmul.msk.f32.gmra.mxu2 %vm14715_vm13, %v7117_v36  ;;  %vm14721_vm13 = vmmov %vm14710_vm3 }
 0xbde   :  { %10558 = vmatmul.msk.f32.gmra.mxu1 %vm14710_vm3, %v7127_v34 }
 0xbdf   :  { %10543 = vmatmul.msk.f32.gmra.mxu0 %vm14711_vm8, %v7128_v35  ;;  %vm7143_vm8 = vmand %vm1577_vm1, %vm7142_vm0  ;;  %vm7123_vm1 = vcmp.eq.s32.totalorder %v14703_v27, %v14700_v1 }
 0xbe0   :  { %10596 = vmatmul.msk.f32.gmra.mxu3 %vm14719_vm7, %v7117_v36  ;;  %v7159_v14 = vsel %vm7143_vm8, 1.0, %v14676_v49  ;;  %vm7144_vm8 = vmand %vm1578_vm4, %vm7142_vm0  ;;  %v7131_v7 = vsel %vm7123_vm1, 1.0, %v14676_v49 }
 0xbe1   :  { %v7160_v63 = vsel %vm7144_vm8, 1.0, %v14676_v49  ;;  %vm14724_vm7 = vmmov %vm14710_vm3  ;;  %v13919_v16 = vpop.f32.mrf.mxu3 }
 0xbe2   :  { %vm7145_vm4 = vmand %vm3164_vm2, %vm7142_vm0  ;;  %v13923_v52 = vpop.f32.mrf.mxu2 }
 0xbe3   :  { %10629 = vmatmul.msk.f32.vlgmr.msra.gmra.mxu2 %vm14720_vm5, %v7159_v14  ;;  %vm14726_vm5 = vmmov %vm14710_vm3  ;;  %v7161_v47 = vsel %vm7145_vm4, 1.0, %v14676_v49 }
 0xbe4   :  { %vm14729_vm1 = vmmov %vm14710_vm3 }
 0xbe5   :  { %vm14730_vm8 = vmmov %vm14729_vm1 }
 0xbe6   :  { %10559 = vmatmul.msk.f32.gmra.mxu1 %vm14716_vm10, %v7128_v35  ;;  %vm14722_vm10 = vmmov %vm14710_vm3 }
 0xbe7   :  { %10544 = vmatmul.msk.f32.gmra.mxu0 %vm14710_vm3, %v7129_v42  ;;  %vm7146_vm2 = vmand %vm3165_vm14, %vm7142_vm0 }
 0xbe8   :  { %10645 = vmatmul.msk.f32.vlgmr.msra.gmra.mxu3 %vm14710_vm3, %v7159_v14  ;;  %v7162_v20 = vsel %vm7146_vm2, 1.0, %v14676_v49  ;;  %vm14735_vm4 = vmmov %vm14729_vm1  ;;  %vm14744_vm2 = vcmp.eq.s32.totalorder %v14743_v41, %v14718_v21 }
 0xbe9   :  { %v13936_v23 = vpop.f32.mrf.mxu3 }
 0xbea   :  { %v13941_v4 = vpop.f32.mrf.mxu2 }
 0xbeb   :  { %10630 = vmatmul.msk.f32.gmra.mxu2 %vm14724_vm7, %v7160_v63  ;;  %vm14731_vm7 = vmmov %vm14729_vm1 }
 0xbee   :  { %10560 = vmatmul.msk.f32.gmra.mxu1 %vm14721_vm13, %v7129_v42  ;;  %vm14727_vm13 = vmmov %vm14710_vm3 }
 0xbef   :  { %10545 = vmatmul.msk.f32.gmra.mxu0 %vm14722_vm10, %v7130_v12  ;;  %vm7124_vm10 = vcmp.eq.s32.totalorder %v14708_v13, %v14700_v1 }
 0xbf0   :  { %10646 = vmatmul.msk.f32.gmra.mxu3 %vm14727_vm13, %v7160_v63  ;;  %v7132_v26 = vsel %vm7124_vm10, 1.0, %v14676_v49  ;;  %vm7069_vm13 = vcmp.ne.s32.totalorder %v14714_v24, 0  ;;  %vm14734_vm10 = vmmov %vm14729_vm1 }
 0xbf1   :  { %vm7070_vm14 = vmand %vm1560_vm11, %vm7069_vm13  ;;  %v13959_v60 = vpop.f32.mrf.mxu3 }
 0xbf2   :  { %v7086_v9 = vsel %vm7070_vm14, 1.0, %v14676_v49  ;;  %v13963_v28 = vpop.f32.mrf.mxu2  ;;  %vm7072_vm14 = vmand %vm3145_vm6, %vm7069_vm13 }
 0xbf3   :  { %10631 = vmatmul.msk.f32.gmra.mxu2 %vm14710_vm3, %v7161_v47  ;;  %vm14736_vm3 = vmmov %vm14729_vm1  ;;  %v7088_v48 = vsel %vm7072_vm14, 1.0, %v14676_v49 }
 0xbf4   :  { %vm14741_vm11 = vmmov %vm14736_vm3 }
 0xbf5   :  { %vm14752_vm6 = vmmov %vm14736_vm3 }
 0xbf6   :  { %10561 = vmatmul.msk.f32.gmra.mxu1 %vm14725_vm12, %v7130_v12  ;;  %vm7125_vm12 = vcmp.eq.s32.totalorder %v14712_v37, %v14700_v1  ;;  %vm14759_vm14 = vmmov %vm14736_vm3 }
 0xbf7   :  { %10546 = vmatmul.msk.f32.gmra.mxu0 %vm14726_vm5, %v7131_v7  ;;  %v7133_v57 = vsel %vm7125_vm12, 1.0, %v14676_v49  ;;  %vm14733_vm5 = vmmov %vm14729_vm1 }
 0xbf8   :  { %10647 = vmatmul.msk.f32.gmra.mxu3 %vm14731_vm7, %v7161_v47  ;;  %vm14740_vm7 = vmmov %vm14736_vm3 }
 0xbf9   :  { %vm14742_vm12 = vmmov %vm14736_vm3  ;;  %v13983_v6 = vpop.f32.mrf.mxu3 }
 0xbfa   :  { %v13987_v5 = vpop.f32.mrf.mxu2 }
 0xbfb   :  { %10632 = vmatmul.msk.f32.gmra.mxu2 %vm14733_vm5, %v7162_v20  ;;  %vm7148_vm5 = vmand %vm14744_vm2, %vm7142_vm0 }
 0xbfc   :  { %v7164_v53 = vsel %vm7148_vm5, 1.0, %v14676_v49  ;;  %vm14756_vm5 = vcmp.eq.s32.totalorder %v14755_v38, %v14718_v21 }
 0xbfe   :  { %10562 = vmatmul.msk.f32.gmra.mxu1 %vm14729_vm1, %v7131_v7  ;;  %vm7147_vm1 = vmand %vm4945_vm9, %vm7142_vm0 }
 0xbff   :  { %10547 = vmatmul.msk.f32.gmra.mxu0 %vm14730_vm8, %v7132_v26  ;;  %v7163_v32 = vsel %vm7147_vm1, 1.0, %v14676_v49  ;;  %vm14739_vm8 = vmmov %vm14736_vm3  ;;  %vm14749_vm1 = vcmp.eq.s32.totalorder %v14748_v51, %v14718_v21 }
 0xc00   :  { %10648 = vmatmul.msk.f32.gmra.mxu3 %vm14736_vm3, %v7162_v20  ;;  %vm7071_vm9 = vmand %vm1561_vm15, %vm7069_vm13 }
 0xc01   :  { %v7087_v43 = vsel %vm7071_vm9, 1.0, %v14676_v49  ;;  %vm14747_vm15 = vmmov %vm14736_vm3  ;;  %v14007_v25 = vpop.f32.mrf.mxu3  ;;  %vm14754_vm9 = vcmp.eq.s32.totalorder %v14732_v18, %v14737_v40 }
 0xc02   :  { %v14011_v55 = vpop.f32.mrf.mxu2  ;;  %vm7073_vm2 = vmand %vm14754_vm9, %vm7069_vm13 }
 0xc03   :  { %10633 = vmatmul.msk.f32.gmra.mxu2 %vm14739_vm8, %v7163_v32  ;;  %vm7149_vm8 = vmand %vm14749_vm1, %vm7142_vm0  ;;  %v7089_v0 = vsel %vm7073_vm2, 1.0, %v14676_v49  ;;  %vm14760_vm1 = vcmp.eq.s32.totalorder %v14738_v61, %v14737_v40 }
 0xc04   :  { %v7165_v1 = vsel %vm7149_vm8, 1.0, %v14676_v49  ;;  %vm7074_vm8 = vmand %vm14760_vm1, %vm7069_vm13 }
 0xc05   :  { %v7090_v44 = vsel %vm7074_vm8, 1.0, %v14676_v49  ;;  %vm14763_vm9 = vmmov %vm14736_vm3 }
 0xc06   :  { %10563 = vmatmul.msk.f32.gmra.mxu1 %vm14734_vm10, %v7132_v26  ;;  %vm14745_vm10 = vmmov %vm14736_vm3 }
 0xc07   :  { %10548 = vmatmul.msk.f32.gmra.mxu0 %vm14735_vm4, %v7133_v57  ;;  %vm14746_vm4 = vmmov %vm14736_vm3 }
 0xc08   :  { %10649 = vmatmul.msk.f32.gmra.mxu3 %vm14742_vm12, %v7163_v32  ;;  %vm14753_vm12 = vmmov %vm14736_vm3 }
 0xc09   :  { %v14031_v22 = vpop.f32.mrf.mxu3  ;;  %vm14764_vm2 = vmmov %vm14736_vm3 }
 0xc0a   :  { %v14035_v15 = vpop.f32.mrf.mxu2  ;;  %vm14768_vm1 = vmmov %vm14764_vm2 }
 0xc0b   :  { %10634 = vmatmul.msk.f32.gmra.mxu2 %vm14745_vm10, %v7164_v53  ;;  %vm7150_vm10 = vmand %vm14756_vm5, %vm7142_vm0  ;;  %vm14765_vm5 = vcmp.eq.s32.totalorder %v14743_v41, %v14737_v40 }
 0xc0c   :  { %v13955_v50 = vpop.f32.mrf.mxu0  ;;  %v7166_v10 = vsel %vm7150_vm10, 1.0, %v14676_v49  ;;  %vm7075_vm10 = vmand %vm14765_vm5, %vm7069_vm13 }
 0xc0d   :  { %v7091_v12 = vsel %vm7075_vm10, 1.0, %v14676_v49  ;;  %vm14769_vm8 = vmmov %vm14768_vm1 }
 0xc0e   :  { %10564 = vmatmul.msk.f32.gmra.mxu1 %vm14740_vm7, %v7133_v57  ;;  %vm14750_vm7 = vmmov %vm14736_vm3 }
 0xc0f   :  { %10597 = vmatmul.msk.f32.vlgmr.msrb.gmra.mxu0 %vm14741_vm11, %v7086_v9  ;;  %vm14751_vm11 = vmmov %vm14736_vm3 }
 0xc10   :  { %10650 = vmatmul.msk.f32.gmra.mxu3 %vm14736_vm3, %v7164_v53  ;;  %vm14773_vm5 = vmmov %vm14768_vm1 }
 0xc11   :  { %v14053_v35 = vpop.f32.mrf.mxu3  ;;  %vm14774_vm10 = vmmov %vm14768_vm1 }
 0xc13   :  { %v13972_v58 = vpop.f32.mrf.mxu1  ;;  %10635 = vmatmul.msk.f32.gmra.mxu2 %vm14750_vm7, %v7165_v1  ;;  %vm7134_vm7 = vcmp.eq.s32.totalorder %v14675_v62, %v14718_v21 }
 0xc14   :  { %v13979_v19 = vpop.f32.mrf.mxu0 }
 0xc16   :  { %10613 = vmatmul.msk.f32.vlgmr.msrb.gmra.mxu1 %vm14746_vm4, %v7086_v9  ;;  %vm14757_vm4 = vmmov %vm14736_vm3 }
 0xc17   :  { %10598 = vmatmul.msk.f32.gmra.mxu0 %vm14747_vm15, %v7087_v43  ;;  %vm14758_vm15 = vmmov %vm14736_vm3 }
 0xc18   :  { %10651 = vmatmul.msk.f32.gmra.mxu3 %vm14753_vm12, %v7165_v1  ;;  %vm14762_vm12 = vmmov %vm14736_vm3 }
 0xc1b   :  { %v13996_v33 = vpop.f32.mrf.mxu1  ;;  %10636 = vmatmul.msk.f32.gmra.mxu2 %vm14757_vm4, %v7166_v10  ;;  %vm7135_vm4 = vcmp.eq.s32.totalorder %v14681_v17, %v14718_v21 }
 0xc1c   :  { %v14003_v29 = vpop.f32.mrf.mxu0 }
 0xc1e   :  { %10614 = vmatmul.msk.f32.gmra.mxu1 %vm14751_vm11, %v7087_v43  ;;  %vm7151_vm11 = vmand %vm7134_vm7, %vm7142_vm0  ;;  %vm14770_vm7 = vcmp.eq.s32.totalorder %v14748_v51, %v14737_v40 }
 0xc1f   :  { %10599 = vmatmul.msk.f32.gmra.mxu0 %vm14752_vm6, %v7088_v48  ;;  %v7167_v36 = vsel %vm7151_vm11, 1.0, %v14676_v49  ;;  %vm14761_vm6 = vmmov %vm14736_vm3 }
 0xc20   :  { %10652 = vmatmul.msk.f32.gmra.mxu3 %vm14759_vm14, %v7166_v10  ;;  %vm14767_vm14 = vmmov %vm14764_vm2 }
 0xc21   :  { %vm7076_vm11 = vmand %vm14770_vm7, %vm7069_vm13 }
 0xc22   :  { %v7092_v47 = vsel %vm7076_vm11, 1.0, %v14676_v49  ;;  %vm14776_vm7 = vmmov %vm14768_vm1 }
 0xc23   :  { %v14020_v8 = vpop.f32.mrf.mxu1  ;;  %10637 = vmatmul.msk.f32.gmra.mxu2 %vm14762_vm12, %v7167_v36  ;;  %vm14777_vm11 = vmmov %vm14768_vm1 }
 0xc24   :  { %v14027_v31 = vpop.f32.mrf.mxu0 }
 0xc25   :  { %v7426_v42 = vpop.f32.mrf.mxu2  ;;  %v7491_v2 = vpop.f32.mrf.mxu3 }
 0xc26   :  { %10615 = vmatmul.msk.f32.gmra.mxu1 %vm14758_vm15, %v7088_v48  ;;  %vm7152_vm15 = vmand %vm7135_vm4, %vm7142_vm0  ;;  %vm14775_vm4 = vcmp.eq.s32.totalorder %v14755_v38, %v14737_v40 }
 0xc27   :  { %10600 = vmatmul.msk.f32.gmra.mxu0 %vm14736_vm3, %v7089_v0  ;;  %v7168_v7 = vsel %vm7152_vm15, 1.0, %v14676_v49  ;;  %vm14766_vm3 = vmmov %vm14764_vm2 }
 0xc28   :  { %10653 = vmatmul.msk.f32.gmra.mxu3 %vm14764_vm2, %v7167_v36  ;;  %vm14772_vm2 = vmmov %vm14768_vm1 }
 0xc29   :  { %vm7077_vm15 = vmand %vm14775_vm4, %vm7069_vm13 }
 0xc2a   :  { %v7093_v32 = vsel %vm7077_vm15, 1.0, %v14676_v49  ;;  %vm14780_vm4 = vmmov %vm14768_vm1 }
 0xc2b   :  { %v14044_v46 = vpop.f32.mrf.mxu1  ;;  %10638 = vmatmul.msk.f32.gmra.mxu2 %vm14767_vm14, %v7168_v7  ;;  %vm14781_vm15 = vmmov %vm14768_vm1 }
 0xc2c   :  { %v14048_v34 = vpop.f32.mrf.mxu0 }
 0xc2d   :  { %v7429_v63 = vpop.f32.mrf.mxu2  ;;  %v7494_v18 = vpop.f32.mrf.mxu3 }
 0xc2e   :  { %10616 = vmatmul.msk.f32.gmra.mxu1 %vm14761_vm6, %v7089_v0  ;;  %vm7136_vm6 = vcmp.eq.s32.totalorder %v14687_v11, %v14718_v21 }
 0xc2f   :  { %10601 = vmatmul.msk.f32.gmra.mxu0 %vm14763_vm9, %v7090_v44  ;;  %vm7153_vm12 = vmand %vm7136_vm6, %vm7142_vm0 }
 0xc30   :  { %10654 = vmatmul.msk.f32.gmra.mxu3 %vm14769_vm8, %v7168_v7  ;;  %v7169_v57 = vsel %vm7153_vm12, 1.0, %v14676_v49  ;;  %vm14771_vm9 = vmmov %vm14768_vm1  ;;  %vm7061_vm8 = vcmp.eq.s32.totalorder %v14675_v62, %v14737_v40 }
 0xc31   :  { %vm14778_vm6 = vmmov %vm14768_vm1 }
 0xc32   :  { %vm7078_vm12 = vmand %vm7061_vm8, %vm7069_vm13 }
 0xc33   :  { %v14065_v45 = vpop.f32.mrf.mxu1  ;;  %10639 = vmatmul.msk.f32.gmra.mxu2 %vm14772_vm2, %v7169_v57  ;;  %v7094_v1 = vsel %vm7078_vm12, 1.0, %v14676_v49 }
 0xc34   :  { %v14069_v14 = vpop.f32.mrf.mxu0 }
 0xc35   :  { %v7432_v20 = vpop.f32.mrf.mxu2  ;;  %v7497_v41 = vpop.f32.mrf.mxu3 }
 0xc36   :  { %10617 = vmatmul.msk.f32.gmra.mxu1 %vm14766_vm3, %v7090_v44  ;;  %vm7137_vm3 = vcmp.eq.s32.totalorder %v14693_v59, %v14718_v21 }
 0xc37   :  { %10602 = vmatmul.msk.f32.gmra.mxu0 %vm14768_vm1, %v7091_v12  ;;  %vm7154_vm14 = vmand %vm7137_vm3, %vm7142_vm0 }
 0xc38   :  { %10655 = vmatmul.msk.f32.gmra.mxu3 %vm14774_vm10, %v7169_v57  ;;  %v7170_v43 = vsel %vm7154_vm14, 1.0, %v14676_v49  ;;  %vm7062_vm10 = vcmp.eq.s32.totalorder %v14681_v17, %v14737_v40  ;;  %vm14782_vm3 = vmmov %vm14768_vm1 }
 0xc39   :  { %vm7079_vm14 = vmand %vm7062_vm10, %vm7069_vm13 }
 0xc3a   :  { %vm14785_vm12 = vmmov %vm14782_vm3 }
 0xc3b   :  { %v14084_v54 = vpop.f32.mrf.mxu1  ;;  %10640 = vmatmul.msk.f32.gmra.mxu2 %vm14776_vm7, %v7170_v43  ;;  %vm14783_vm7 = vmmov %vm14782_vm3 }
 0xc3c   :  { %v14088_v26 = vpop.f32.mrf.mxu0 }
 0xc3d   :  { %v7435_v53 = vpop.f32.mrf.mxu2  ;;  %v7500_v62 = vpop.f32.mrf.mxu3 }
 0xc3e   :  { %10618 = vmatmul.msk.f32.gmra.mxu1 %vm14771_vm9, %v7091_v12  ;;  %vm7138_vm9 = vcmp.eq.s32.totalorder %v14699_v30, %v14718_v21  ;;  %v7095_v12 = vsel %vm7079_vm14, 1.0, %v14676_v49  ;;  %vm14788_vm14 = vmmov %vm14782_vm3 }
 0xc3f   :  { %10603 = vmatmul.msk.f32.gmra.mxu0 %vm14773_vm5, %v7092_v47  ;;  %vm7155_vm2 = vmand %vm7138_vm9, %vm7142_vm0 }
 0xc40   :  { %10656 = vmatmul.msk.f32.gmra.mxu3 %vm14778_vm6, %v7170_v43  ;;  %v7171_v0 = vsel %vm7155_vm2, 1.0, %v14676_v49  ;;  %vm14779_vm5 = vmmov %vm14768_vm1 }
 0xc41   :  { %vm14784_vm6 = vmmov %vm14782_vm3 }
 0xc42   :  { %vm14786_vm9 = vmmov %vm14782_vm3 }
 0xc43   :  { %v14103_v61 = vpop.f32.mrf.mxu1  ;;  %10641 = vmatmul.msk.f32.gmra.mxu2 %vm14780_vm4, %v7171_v0  ;;  %vm14787_vm4 = vmmov %vm14782_vm3 }
 0xc44   :  { %v14107_v9 = vpop.f32.mrf.mxu0 }
 0xc46   :  { %10619 = vmatmul.msk.f32.gmra.mxu1 %vm14768_vm1, %v7092_v47  ;;  %v7438_v10 = vpop.f32.mrf.mxu2  ;;  %vm7139_vm1 = vcmp.eq.s32.totalorder %v14703_v27, %v14718_v21 }
 0xc47   :  { %10604 = vmatmul.msk.f32.gmra.mxu0 %vm14777_vm11, %v7093_v32  ;;  %vm7156_vm8 = vmand %vm7139_vm1, %vm7142_vm0  ;;  %vm7063_vm11 = vcmp.eq.s32.totalorder %v14687_v11, %v14737_v40 }
 0xc48   :  { %10657 = vmatmul.msk.f32.gmra.mxu3 %vm14782_vm3, %v7171_v0  ;;  %v7172_v47 = vsel %vm7156_vm8, 1.0, %v14676_v49  ;;  %vm7080_vm2 = vmand %vm7063_vm11, %vm7069_vm13 }
 0xc49   :  { %v7096_v43 = vsel %vm7080_vm2, 1.0, %v14676_v49  ;;  %vm14789_vm1 = vmmov %vm14782_vm3 }
 0xc4a   :  { %vm14792_vm2 = vmmov %vm14789_vm1 }
 0xc4b   :  { %v14121_v51 = vpop.f32.mrf.mxu1  ;;  %v7503_v17 = vpop.f32.mrf.mxu3  ;;  %10642 = vmatmul.msk.f32.gmra.mxu2 %vm14784_vm6, %v7172_v47  ;;  %vm14790_vm6 = vmmov %vm14789_vm1 }
 0xc4c   :  { %v7256_v48 = vpop.f32.mrf.mxu0 }
 0xc4d   :  { %v14128_v38 = vadd.f32 %v7426_v42, %v7256_v48 }
 0xc4e   :  { %10620 = vmatmul.msk.f32.gmra.mxu1 %vm14779_vm5, %v7093_v32  ;;  %vm7140_vm5 = vcmp.eq.s32.totalorder %v14708_v13, %v14718_v21 }
 0xc4f   :  { %10605 = vmatmul.msk.f32.gmra.mxu0 %vm14781_vm15, %v7094_v1  ;;  %vm7157_vm10 = vmand %vm7140_vm5, %vm7142_vm0  ;;  %vm7064_vm15 = vcmp.eq.s32.totalorder %v14693_v59, %v14737_v40 }
 0xc50   :  { %10658 = vmatmul.msk.f32.gmra.mxu3 %vm14786_vm9, %v7172_v47  ;;  %vm7081_vm8 = vmand %vm7064_vm15, %vm7069_vm13 }
 0xc51   :  { %vm14791_vm9 = vmmov %vm14789_vm1 }
 0xc52   :  { %vm14793_vm5 = vmmov %vm14789_vm1 }
 0xc53   :  { %v7321_v44 = vpop.f32.mrf.mxu1  ;;  %v7506_v11 = vpop.f32.mrf.mxu3 }
 0xc54   :  { %v7259_v36 = vpop.f32.mrf.mxu0  ;;  %v14141_v42 = vadd.f32 %v7491_v2, %v7321_v44  ;;  %v7441_v2 = vpop.f32.mrf.mxu2 }
 0xc55   :  { %v14146_v7 = vadd.f32 %v7429_v63, %v7259_v36  ;;  %v7097_v36 = vsel %vm7081_vm8, 1.0, %v14676_v49 }
 0xc56   :  { %10621 = vmatmul.msk.f32.gmra.mxu1 %vm14783_vm7, %v7094_v1  ;;  %v7173_v1 = vsel %vm7157_vm10, 1.0, %v14676_v49  ;;  %vm7141_vm7 = vcmp.eq.s32.totalorder %v14712_v37, %v14718_v21 }
 0xc57   :  { %10606 = vmatmul.msk.f32.gmra.mxu0 %vm14785_vm12, %v7095_v12  ;;  %10643 = vmatmul.msk.f32.gmra.mxu2 %vm14782_vm3, %v7173_v1  ;;  %vm7158_vm11 = vmand %vm7141_vm7, %vm7142_vm0  ;;  %vm7065_vm12 = vcmp.eq.s32.totalorder %v14699_v30, %v14737_v40 }
 0xc58   :  { %10659 = vmatmul.msk.f32.gmra.mxu3 %vm14789_vm1, %v7173_v1  ;;  %vm7082_vm10 = vmand %vm7065_vm12, %vm7069_vm13 }
 0xc59   :  { %vm14794_vm0 = vmmov %vm14789_vm1  ;;  %vm7067_vm1 = vcmp.eq.s32.totalorder %v14708_v13, %v14737_v40 }
 0xc5a   :  { %vm14795_vm15 = vmmov %vm14794_vm0 }
 0xc5b   :  { %v7324_v57 = vpop.f32.mrf.mxu1  ;;  %v7509_v21 = vpop.f32.mrf.mxu3  ;;  %vm14797_vm8 = vmmov %vm14794_vm0 }
 0xc5c   :  { %v7262_v63 = vpop.f32.mrf.mxu0  ;;  %v14159_v32 = vadd.f32 %v7494_v18, %v7324_v57  ;;  %v7444_v18 = vpop.f32.mrf.mxu2  ;;  %vm7084_vm7 = vmand %vm7067_vm1, %vm7069_vm13 }
 0xc5d   :  { %v14164_v48 = vadd.f32 %v7432_v20, %v7262_v63  ;;  %v7098_v63 = vsel %vm7082_vm10, 1.0, %v14676_v49  ;;  %vm14801_vm12 = vmmov %vm14794_vm0 }
 0xc5e   :  { %10622 = vmatmul.msk.f32.gmra.mxu1 %vm14787_vm4, %v7095_v12  ;;  %v7174_v12 = vsel %vm7158_vm11, 1.0, %v14676_v49  ;;  %vm7066_vm4 = vcmp.eq.s32.totalorder %v14703_v27, %v14737_v40  ;;  %vm14800_vm11 = vmmov %vm14794_vm0 }
 0xc5f   :  { %10607 = vmatmul.msk.f32.gmra.mxu0 %vm14788_vm14, %v7096_v43  ;;  %10644 = vmatmul.msk.f32.gmra.mxu2 %vm14791_vm9, %v7174_v12  ;;  %vm7083_vm3 = vmand %vm7066_vm4, %vm7069_vm13 }
 0xc60   :  { %10660 = vmatmul.msk.f32.gmra.mxu3 %vm14793_vm5, %v7174_v12  ;;  %vm14796_vm14 = vmmov %vm14794_vm0 }
 0xc61   :  { %vm14804_vm5 = vmmov %vm14794_vm0 }
 0xc63   :  { %v7327_v0 = vpop.f32.mrf.mxu1  ;;  %v7512_v30 = vpop.f32.mrf.mxu3 }
 0xc64   :  { %v7265_v20 = vpop.f32.mrf.mxu0  ;;  %v14177_v44 = vadd.f32 %v7497_v41, %v7327_v0 }
 0xc65   :  { %v14182_v59 = vadd.f32 %v7435_v53, %v7265_v20  ;;  %v7447_v53 = vpop.f32.mrf.mxu2 }
 0xc66   :  { %10623 = vmatmul.msk.f32.gmra.mxu1 %vm14790_vm6, %v7096_v43  ;;  %vm7068_vm6 = vcmp.eq.s32.totalorder %v14712_v37, %v14737_v40 }
 0xc67   :  { %10608 = vmatmul.msk.f32.gmra.mxu0 %vm14792_vm2, %v7097_v36  ;;  %vm7085_vm9 = vmand %vm7068_vm6, %vm7069_vm13 }
 0xc68   :  { %vm14803_vm2 = vmmov %vm14794_vm0 }
 0xc69   :  { %vm14806_vm13 = vmmov %vm14794_vm0 }
 0xc6b   :  { %v7330_v41 = vpop.f32.mrf.mxu1  ;;  %v7855_v27 = vpop.f32.mrf.mxu3 }
 0xc6c   :  { %v7268_v47 = vpop.f32.mrf.mxu0  ;;  %v14193_v57 = vadd.f32 %v7500_v62, %v7330_v41  ;;  %v7099_v62 = vsel %vm7083_vm3, 1.0, %v14676_v49 }
 0xc6d   :  { %v14196_v43 = vadd.f32 %v7438_v10, %v7268_v47  ;;  %v7790_v10 = vpop.f32.mrf.mxu2  ;;  %v7100_v47 = vsel %vm7084_vm7, 1.0, %v14676_v49 }
 0xc6e   :  { %10624 = vmatmul.msk.f32.gmra.mxu1 %vm14794_vm0, %v7097_v36 }
 0xc6f   :  { %10609 = vmatmul.msk.f32.gmra.mxu0 %vm14795_vm15, %v7098_v63 }
 0xc73   :  { %v7333_v1 = vpop.f32.mrf.mxu1 }
 0xc74   :  { %v7271_v0 = vpop.f32.mrf.mxu0  ;;  %v14204_v20 = vadd.f32 %v7503_v17, %v7333_v1 }
 0xc75   :  { %v14207_v12 = vadd.f32 %v7441_v2, %v7271_v0  ;;  %v7793_v13 = vpop.f32.mrf.mxu2 }
 0xc76   :  { %10625 = vmatmul.msk.f32.gmra.mxu1 %vm14796_vm14, %v7098_v63  ;;  %v7858_v63 = vpop.f32.mrf.mxu3 }
 0xc77   :  { %10610 = vmatmul.msk.f32.gmra.mxu0 %vm14797_vm8, %v7099_v62 }
 0xc7b   :  { %v7336_v36 = vpop.f32.mrf.mxu1 }
 0xc7c   :  { %v7274_v41 = vpop.f32.mrf.mxu0  ;;  %v14215_v17 = vadd.f32 %v7506_v11, %v7336_v36  ;;  %v7101_v36 = vsel %vm7085_vm9, 1.0, %v14676_v49 }
 0xc7d   :  { %v14218_v2 = vadd.f32 %v7444_v18, %v7274_v41  ;;  %v7796_v37 = vpop.f32.mrf.mxu2 }
 0xc7e   :  { %14798 = vst [vmem:[#allocation17_spill] sm:$0xff] %v14215_v17  ;;  %10626 = vmatmul.msk.f32.gmra.mxu1 %vm14800_vm11, %v7099_v62  ;;  %v7861_v40 = vpop.f32.mrf.mxu3  ;;  %v7403_v62 = vadd.f32 %v13889_v56, %v13955_v50 }
 0xc7f   :  { %14799 = vst [vmem:[#allocation19_spill] sm:$0xff] %v14218_v2  ;;  %10611 = vmatmul.msk.f32.gmra.mxu0 %vm14801_vm12, %v7100_v47 }
 0xc83   :  { %v7339_v1 = vpop.f32.mrf.mxu1 }
 0xc84   :  { %v7277_v0 = vpop.f32.mrf.mxu0  ;;  %v14226_v11 = vadd.f32 %v7509_v21, %v7339_v1 }
 0xc85   :  { %v14229_v18 = vadd.f32 %v7447_v53, %v7277_v0  ;;  %v7799_v49 = vpop.f32.mrf.mxu2  ;;  %v7468_v53 = vadd.f32 %v13902_v3, %v13972_v58  ;;  %v7471_v3 = vadd.f32 %v13919_v16, %v13996_v33  ;;  %v7412_v33 = vadd.f32 %v13941_v4, %v14027_v31 }
 0xc86   :  { %10627 = vmatmul.msk.f32.gmra.mxu1 %vm14803_vm2, %v7100_v47  ;;  %v7406_v47 = vadd.f32 %v13906_v39, %v13979_v19  ;;  %v7864_v0 = vpop.f32.mrf.mxu3  ;;  %v7409_v39 = vadd.f32 %v13923_v52, %v14003_v29  ;;  %v7474_v52 = vadd.f32 %v13936_v23, %v14020_v8  ;;  %v7477_v23 = vadd.f32 %v13959_v60, %v14044_v46 }
 0xc87   :  { %14802 = vst [vmem:[#allocation21_spill] sm:$0xff] %v14229_v18  ;;  %10612 = vmatmul.msk.f32.gmra.mxu0 %vm14804_vm5, %v7101_v36  ;;  %v7415_v8 = vadd.f32 %v13963_v28, %v14048_v34  ;;  %v7480_v28 = vadd.f32 %v13983_v6, %v14065_v45  ;;  %v7418_v46 = vadd.f32 %v13987_v5, %v14069_v14 }
 0xc88   :  { %v7483_v6 = vadd.f32 %v14007_v25, %v14084_v54  ;;  %v7421_v5 = vadd.f32 %v14011_v55, %v14088_v26  ;;  %v7486_v25 = vadd.f32 %v14031_v22, %v14103_v61  ;;  %v7424_v55 = vadd.f32 %v14035_v15, %v14107_v9 }
 0xc89   :  { %v7489_v15 = vadd.f32 %v14053_v35, %v14121_v51 }
 0xc8b   :  { %v7342_v41 = vpop.f32.mrf.mxu1 }
 0xc8c   :  { %v14235_v24 = vadd.f32 %v7512_v30, %v7342_v41  ;;  %v7580_v2 = vpop.f32.mrf.mxu0 }
 0xc8d   :  { %v7693_v17 = vadd.f32 %v7580_v2, %v7403_v62  ;;  %v7802_v2 = vpop.f32.mrf.mxu2 }
 0xc8e   :  { %14805 = vst [vmem:[#allocation23_spill] sm:$0xff] %v14235_v24  ;;  %10628 = vmatmul.msk.f32.gmra.mxu1 %vm14806_vm13, %v7101_v36 }
 0xc8f   :  { %v7903_v21 = vadd.f32 %v7790_v10, %v7693_v17 }
 0xc91   :  { %11197 = vtanh.f32 %v7903_v21 }
 0xc93   :  { %v7645_v1 = vpop.f32.mrf.mxu1 }
 0xc94   :  { %v7694_v18 = vadd.f32 %v7645_v1, %v7468_v53  ;;  %v7583_v56 = vpop.f32.mrf.mxu0 }
 0xc95   :  { %v7695_v50 = vadd.f32 %v7583_v56, %v7406_v47  ;;  %v7805_v16 = vpop.f32.mrf.mxu2 }
 0xc96   :  { %v7904_v30 = vadd.f32 %v7855_v27, %v7694_v18  ;;  %v7867_v27 = vpop.f32.mrf.mxu3 }
 0xc97   :  { %v11198_v41 = vpop.eup %11197  ;;  %v7905_v24 = vadd.f32 %v7793_v13, %v7695_v50 }
 0xc98   :  { %7967 = vst [vmem:[%s14394_s14] sm:$0xff] %v11198_v41  ;;  %11199 = vtanh.f32 %v7904_v30 }
 0xc99   :  { %11201 = vtanh.f32 %v7905_v24 }
 0xc9b   :  { %v7648_v58 = vpop.f32.mrf.mxu1 }
 0xc9c   :  { %v7696_v19 = vadd.f32 %v7648_v58, %v7471_v3  ;;  %v7586_v10 = vpop.f32.mrf.mxu0 }
 0xc9d   :  { %v7697_v17 = vadd.f32 %v7586_v10, %v7409_v39  ;;  %v7808_v4 = vpop.f32.mrf.mxu2 }
 0xc9e   :  { %v11200_v36 = vpop.eup %11199  ;;  %v7906_v13 = vadd.f32 %v7858_v63, %v7696_v19  ;;  %v7870_v56 = vpop.f32.mrf.mxu3 }
 0xc9f   :  { %v11202_v18 = vpop.eup %11201  ;;  %7968 = vst [vmem:[%s14394_s14 + $0x8] sm:$0xff] %v11200_v36  ;;  %v7907_v62 = vadd.f32 %v7796_v37, %v7697_v17 }
 0xca0   :  { %7969 = vst [vmem:[%s14394_s14 + $0x10] sm:$0xff] %v11202_v18  ;;  %11203 = vtanh.f32 %v7906_v13 }
 0xca1   :  { %11205 = vtanh.f32 %v7907_v62 }
 0xca3   :  { %v7651_v29 = vpop.f32.mrf.mxu1 }
 0xca4   :  { %v7698_v63 = vadd.f32 %v7651_v29, %v7474_v52  ;;  %v7589_v24 = vpop.f32.mrf.mxu0 }
 0xca5   :  { %v7699_v21 = vadd.f32 %v7589_v24, %v7412_v33  ;;  %v7811_v19 = vpop.f32.mrf.mxu2 }
 0xca6   :  { %v11204_v53 = vpop.eup %11203  ;;  %v7908_v47 = vadd.f32 %v7861_v40, %v7698_v63  ;;  %v7873_v60 = vpop.f32.mrf.mxu3 }
 0xca7   :  { %v11206_v37 = vpop.eup %11205  ;;  %7970 = vst [vmem:[%s14394_s14 + $0x18] sm:$0xff] %v11204_v53  ;;  %v7909_v1 = vadd.f32 %v7799_v49, %v7699_v21 }
 0xca8   :  { %7971 = vst [vmem:[%s14394_s14 + $0x20] sm:$0xff] %v11206_v37  ;;  %11207 = vtanh.f32 %v7908_v47 }
 0xca9   :  { %11209 = vtanh.f32 %v7909_v1 }
 0xcab   :  { %v7654_v31 = vpop.f32.mrf.mxu1 }
 0xcac   :  { %v7700_v40 = vadd.f32 %v7654_v31, %v7477_v23  ;;  %v7592_v50 = vpop.f32.mrf.mxu0 }
 0xcad   :  { %v7701_v30 = vadd.f32 %v7592_v50, %v7415_v8 }
 0xcae   :  { %v11208_v41 = vpop.eup %11207  ;;  %v7910_v49 = vadd.f32 %v7864_v0, %v7700_v40  ;;  %v7876_v14 = vpop.f32.mrf.mxu3 }
 0xcaf   :  { %v11210_v3 = vpop.eup %11209  ;;  %7972 = vst [vmem:[%s14394_s14 + $0x28] sm:$0xff] %v11208_v41  ;;  %v7911_v39 = vadd.f32 %v7802_v2, %v7701_v30 }
 0xcb0   :  { %7973 = vst [vmem:[%s14394_s14 + $0x30] sm:$0xff] %v11210_v3  ;;  %11211 = vtanh.f32 %v7910_v49 }
 0xcb1   :  { %11213 = vtanh.f32 %v7911_v39 }
 0xcb3   :  { %v7657_v34 = vpop.f32.mrf.mxu1 }
 0xcb4   :  { %v7702_v0 = vadd.f32 %v7657_v34, %v7480_v28  ;;  %v7595_v58 = vpop.f32.mrf.mxu0 }
 0xcb5   :  { %v7703_v10 = vadd.f32 %v7595_v58, %v7418_v46 }
 0xcb6   :  { %v11212_v17 = vpop.eup %11211  ;;  %v7912_v2 = vadd.f32 %v7867_v27, %v7702_v0  ;;  %v7879_v53 = vpop.f32.mrf.mxu3 }
 0xcb7   :  { %v11214_v36 = vpop.eup %11213  ;;  %7974 = vst [vmem:[%s14394_s14 + $0x38] sm:$0xff] %v11212_v17  ;;  %v7913_v13 = vadd.f32 %v7805_v16, %v7703_v10  ;;  %v7814_v16 = vpop.f32.mrf.mxu2 }
 0xcb8   :  { %7975 = vst [vmem:[%s14394_s14 + $0x40] sm:$0xff] %v11214_v36  ;;  %11215 = vtanh.f32 %v7912_v2 }
 0xcb9   :  { %11217 = vtanh.f32 %v7913_v13 }
 0xcbb   :  { %v7660_v45 = vpop.f32.mrf.mxu1 }
 0xcbc   :  { %v7704_v27 = vadd.f32 %v7660_v45, %v7483_v6  ;;  %v7598_v18 = vpop.f32.mrf.mxu0 }
 0xcbd   :  { %v7705_v62 = vadd.f32 %v7598_v18, %v7421_v5 }
 0xcbe   :  { %v11216_v52 = vpop.eup %11215  ;;  %v7914_v33 = vadd.f32 %v7870_v56, %v7704_v27  ;;  %v7882_v30 = vpop.f32.mrf.mxu3 }
 0xcbf   :  { %v11218_v29 = vpop.eup %11217  ;;  %7976 = vst [vmem:[%s14394_s14 + $0x48] sm:$0xff] %v11216_v52  ;;  %v7915_v63 = vadd.f32 %v7808_v4, %v7705_v62  ;;  %v7817_v22 = vpop.f32.mrf.mxu2 }
 0xcc0   :  { %7977 = vst [vmem:[%s14394_s14 + $0x50] sm:$0xff] %v11218_v29  ;;  %11219 = vtanh.f32 %v7914_v33 }
 0xcc1   :  { %11221 = vtanh.f32 %v7915_v63 }
 0xcc3   :  { %v7663_v54 = vpop.f32.mrf.mxu1 }
 0xcc4   :  { %v7706_v26 = vadd.f32 %v7663_v54, %v7486_v25  ;;  %v7601_v24 = vpop.f32.mrf.mxu0 }
 0xcc5   :  { %v7707_v21 = vadd.f32 %v7601_v24, %v7424_v55 }
 0xcc6   :  { %v11220_v47 = vpop.eup %11219  ;;  %v7916_v37 = vadd.f32 %v7873_v60, %v7706_v26  ;;  %v7885_v46 = vpop.f32.mrf.mxu3 }
 0xcc7   :  { %v11222_v1 = vpop.eup %11221  ;;  %7978 = vst [vmem:[%s14394_s14 + $0x58] sm:$0xff] %v11220_v47  ;;  %v7917_v56 = vadd.f32 %v7811_v19, %v7707_v21  ;;  %v7820_v35 = vpop.f32.mrf.mxu2 }
 0xcc8   :  { %7979 = vst [vmem:[%s14394_s14 + $0x60] sm:$0xff] %v11222_v1  ;;  %11223 = vtanh.f32 %v7916_v37 }
 0xcc9   :  { %11225 = vtanh.f32 %v7917_v56  ;;  %v14807_v56 = vld [vmem:[#allocation17_spill] sm:$0xff] }
 0xccb   :  { %v7666_v61 = vpop.f32.mrf.mxu1 }
 0xccc   :  { %v7708_v9 = vadd.f32 %v7666_v61, %v7489_v15  ;;  %v7604_v23 = vpop.f32.mrf.mxu0  ;;  %v14808_v15 = vld [vmem:[#allocation19_spill] sm:$0xff] }
 0xccd   :  { %v7709_v4 = vadd.f32 %v7604_v23, %v14128_v38 }
 0xcce   :  { %v11224_v8 = vpop.eup %11223  ;;  %v7918_v31 = vadd.f32 %v7876_v14, %v7708_v9 }
 0xccf   :  { %v11226_v40 = vpop.eup %11225  ;;  %7980 = vst [vmem:[%s14394_s14 + $0x68] sm:$0xff] %v11224_v8  ;;  %v7919_v50 = vadd.f32 %v7814_v16, %v7709_v4 }
 0xcd0   :  { %7981 = vst [vmem:[%s14394_s14 + $0x70] sm:$0xff] %v11226_v40  ;;  %11227 = vtanh.f32 %v7918_v31 }
 0xcd1   :  { %11229 = vtanh.f32 %v7919_v50 }
 0xcd3   :  { %v7669_v51 = vpop.f32.mrf.mxu1 }
 0xcd4   :  { %v7710_v41 = vadd.f32 %v7669_v51, %v14141_v42  ;;  %v7607_v38 = vpop.f32.mrf.mxu0  ;;  %v14809_v51 = vld [vmem:[#allocation21_spill] sm:$0xff] }
 0xcd5   :  { %v7711_v49 = vadd.f32 %v7607_v38, %v14146_v7  ;;  %v7823_v7 = vpop.f32.mrf.mxu2 }
 0xcd6   :  { %v11228_v3 = vpop.eup %11227  ;;  %v7920_v39 = vadd.f32 %v7879_v53, %v7710_v41 }
 0xcd7   :  { %v11230_v60 = vpop.eup %11229  ;;  %7982 = vst [vmem:[%s14394_s14 + $0x78] sm:$0xff] %v11228_v3  ;;  %v7921_v28 = vadd.f32 %v7817_v22, %v7711_v49 }
 0xcd8   :  { %7983 = vst [vmem:[%s14394_s14 + $0x80] sm:$0xff] %v11230_v60  ;;  %11231 = vtanh.f32 %v7920_v39 }
 0xcd9   :  { %11233 = vtanh.f32 %v7921_v28  ;;  %v14810_v28 = vld [vmem:[#allocation23_spill] sm:$0xff] }
 0xcdb   :  { %v7672_v34 = vpop.f32.mrf.mxu1 }
 0xcdc   :  { %v7712_v42 = vadd.f32 %v7672_v34, %v14159_v32  ;;  %v7610_v0 = vpop.f32.mrf.mxu0  ;;  %v7888_v32 = vpop.f32.mrf.mxu3 }
 0xcdd   :  { %v7713_v58 = vadd.f32 %v7610_v0, %v14164_v48  ;;  %v7826_v14 = vpop.f32.mrf.mxu2 }
 0xcde   :  { %v11232_v19 = vpop.eup %11231  ;;  %v7922_v10 = vadd.f32 %v7882_v30, %v7712_v42 }
 0xcdf   :  { %v11234_v17 = vpop.eup %11233  ;;  %7984 = vst [vmem:[%s14394_s14 + $0x88] sm:$0xff] %v11232_v19  ;;  %v7923_v2 = vadd.f32 %v7820_v35, %v7713_v58 }
 0xce0   :  { %7985 = vst [vmem:[%s14394_s14 + $0x90] sm:$0xff] %v11234_v17  ;;  %11235 = vtanh.f32 %v7922_v10 }
 0xce1   :  { %11237 = vtanh.f32 %v7923_v2 }
 0xce3   :  { %v7675_v36 = vpop.f32.mrf.mxu1 }
 0xce4   :  { %v7714_v13 = vadd.f32 %v7675_v36, %v14177_v44  ;;  %v7613_v6 = vpop.f32.mrf.mxu0  ;;  %v7891_v33 = vpop.f32.mrf.mxu3 }
 0xce5   :  { %v7715_v48 = vadd.f32 %v7613_v6, %v14182_v59  ;;  %v7829_v55 = vpop.f32.mrf.mxu2 }
 0xce6   :  { %v11236_v5 = vpop.eup %11235  ;;  %v7924_v45 = vadd.f32 %v7885_v46, %v7714_v13 }
 0xce7   :  { %v11238_v27 = vpop.eup %11237  ;;  %7986 = vst [vmem:[%s14394_s14 + $0x98] sm:$0xff] %v11236_v5  ;;  %v7925_v18 = vadd.f32 %v7823_v7, %v7715_v48 }
 0xce8   :  { %7987 = vst [vmem:[%s14394_s14 + $0xa0] sm:$0xff] %v11238_v27  ;;  %11239 = vtanh.f32 %v7924_v45 }
 0xce9   :  { %11241 = vtanh.f32 %v7925_v18 }
 0xceb   :  { %v7678_v62 = vpop.f32.mrf.mxu1 }
 0xcec   :  { %v7716_v44 = vadd.f32 %v7678_v62, %v14193_v57  ;;  %v7616_v52 = vpop.f32.mrf.mxu0  ;;  %v7894_v37 = vpop.f32.mrf.mxu3 }
 0xced   :  { %v7717_v59 = vadd.f32 %v7616_v52, %v14196_v43  ;;  %v7832_v1 = vpop.f32.mrf.mxu2 }
 0xcee   :  { %v11240_v16 = vpop.eup %11239  ;;  %v7926_v29 = vadd.f32 %v7888_v32, %v7716_v44 }
 0xcef   :  { %v11242_v63 = vpop.eup %11241  ;;  %7988 = vst [vmem:[%s14394_s14 + $0xa8] sm:$0xff] %v11240_v16  ;;  %v7927_v25 = vadd.f32 %v7826_v14, %v7717_v59 }
 0xcf0   :  { %7989 = vst [vmem:[%s14394_s14 + $0xb0] sm:$0xff] %v11242_v63  ;;  %11243 = vtanh.f32 %v7926_v29 }
 0xcf1   :  { %11245 = vtanh.f32 %v7927_v25 }
 0xcf3   :  { %v7681_v57 = vpop.f32.mrf.mxu1 }
 0xcf4   :  { %v7718_v54 = vadd.f32 %v7681_v57, %v14204_v20  ;;  %v7619_v43 = vpop.f32.mrf.mxu0  ;;  %v7897_v31 = vpop.f32.mrf.mxu3 }
 0xcf5   :  { %v7719_v26 = vadd.f32 %v7619_v43, %v14207_v12  ;;  %v7835_v35 = vpop.f32.mrf.mxu2 }
 0xcf6   :  { %v11244_v24 = vpop.eup %11243  ;;  %v7928_v21 = vadd.f32 %v7891_v33, %v7718_v54 }
 0xcf7   :  { %v11246_v53 = vpop.eup %11245  ;;  %7990 = vst [vmem:[%s14394_s14 + $0xb8] sm:$0xff] %v11244_v24  ;;  %v7929_v47 = vadd.f32 %v7829_v55, %v7719_v26 }
 0xcf8   :  { %7991 = vst [vmem:[%s14394_s14 + $0xc0] sm:$0xff] %v11246_v53  ;;  %11247 = vtanh.f32 %v7928_v21 }
 0xcf9   :  { %11249 = vtanh.f32 %v7929_v47 }
 0xcfb   :  { %v7684_v20 = vpop.f32.mrf.mxu1 }
 0xcfc   :  { %v7720_v22 = vadd.f32 %v7684_v20, %v14807_v56  ;;  %v7622_v12 = vpop.f32.mrf.mxu0 }
 0xcfd   :  { %v7721_v61 = vadd.f32 %v7622_v12, %v14808_v15 }
 0xcfe   :  { %v11248_v9 = vpop.eup %11247  ;;  %v7930_v23 = vadd.f32 %v7894_v37, %v7720_v22 }
 0xcff   :  { %v11250_v4 = vpop.eup %11249  ;;  %7992 = vst [vmem:[%s14394_s14 + $0xc8] sm:$0xff] %v11248_v9  ;;  %v7931_v8 = vadd.f32 %v7832_v1, %v7721_v61 }
 0xd00   :  { %7993 = vst [vmem:[%s14394_s14 + $0xd0] sm:$0xff] %v11250_v4  ;;  %11251 = vtanh.f32 %v7930_v23 }
 0xd01   :  { %11253 = vtanh.f32 %v7931_v8 }
 0xd03   :  { %v7687_v40 = vpop.f32.mrf.mxu1 }
 0xd04   :  { %v7722_v50 = vadd.f32 %v7687_v40, %v14226_v11  ;;  %v7625_v30 = vpop.f32.mrf.mxu0  ;;  %v7900_v11 = vpop.f32.mrf.mxu3 }
 0xd05   :  { %v7723_v41 = vadd.f32 %v7625_v30, %v14809_v51 }
 0xd06   :  { %v11252_v38 = vpop.eup %11251  ;;  %v7932_v49 = vadd.f32 %v7897_v31, %v7722_v50 }
 0xd07   :  { %v11254_v3 = vpop.eup %11253  ;;  %7994 = vst [vmem:[%s14394_s14 + $0xd8] sm:$0xff] %v11252_v38  ;;  %v7933_v39 = vadd.f32 %v7835_v35, %v7723_v41 }
 0xd08   :  { %7995 = vst [vmem:[%s14394_s14 + $0xe0] sm:$0xff] %v11254_v3  ;;  %11255 = vtanh.f32 %v7932_v49 }
 0xd09   :  { %11257 = vtanh.f32 %v7933_v39 }
 0xd0b   :  { %v7690_v60 = vpop.f32.mrf.mxu1 }
 0xd0c   :  { %v7724_v46 = vadd.f32 %v7690_v60, %v14810_v28 }
 0xd0e   :  { %v11256_v34 = vpop.eup %11255  ;;  %v7934_v42 = vadd.f32 %v7900_v11, %v7724_v46 }
 0xd0f   :  { %v11258_v0 = vpop.eup %11257  ;;  %7996 = vst [vmem:[%s14394_s14 + $0xe8] sm:$0xff] %v11256_v34 }
 0xd10   :  { %7997 = vst [vmem:[%s14394_s14 + $0xf0] sm:$0xff] %v11258_v0  ;;  %11259 = vtanh.f32 %v7934_v42 }
 0xd16   :  { %v11260_v7 = vpop.eup %11259 }
 0xd17   :  { %7998 = vst [vmem:[%s14394_s14 + $0xf8] sm:$0xff] %v11260_v7 }
 0xd18   :  { %8003 = vsyncpa [#allocation3], 1 }
 0xd19   :  { %8004 = vsyncpa [#allocation5], 1 }
 0xd1a   :  { %8005 = vsyncpa [#allocation8], 1 }

</bundles_post_ra>
